<compile_context>
chip_gen: v5e
topology: v5e:2x2
jax: 0.10.0
libtpu: 0.0.40
codegen_flags: <defaults>
</compile_context>

<pallas_src>
import functools

import jax
import jax.numpy as jnp
from jax.experimental import pallas as pl
from jax.experimental.pallas import tpu as pltpu

BN_EPS = 1e-5
LANES = 128


def _round_up(x, m):
    return (x + m - 1) // m * m


def _vmem_budget():
    """~75% of per-core VMEM (generation-aware); conservative fallback if query fails."""
    try:
        cap = int(pltpu.get_tpu_info().vmem_capacity_bytes)
    except Exception:
        cap = 64 * 2**20                              # v7x per-core size as safe floor
    return (cap * 3) // 4


def _pick_row_tile(h, w, cp, budget_bytes):
    """Largest divisor of h whose f32 accumulator tile fits the budget (grid stays exact)."""
    best = 1
    for t in range(1, h + 1):
        if h % t == 0 and t * w * cp * 4 <= budget_bytes:
            best = t
    return best


# --------------------------------------------------------------------------------------
# Conv3x3 on one row-tile with in-kernel reflection padding (+ optional fused BN+ReLU of
# the *previous* stage on the input path) + partial BN statistics of this stage's output.
# --------------------------------------------------------------------------------------
def _conv_stats_kernel(top_ref, mid_ref, bot_ref, w_ref, *args, fused_affine_relu):
    """top/bot_ref: (1, 1, W, Cp)   halo rows (already reflection-resolved by index_map)
       mid_ref:     (1, TH, W, Cp)  interior rows of this tile
       w_ref:       (3, 3*Cp, Cp)   bf16 weights, dx taps folded into K (dx-major)
       [scale_ref, shift_ref: (1, Cp) f32  previous stage's folded BN  (fused path only)]
       conv_ref:    (1, TH, W, Cp)  bf16 conv output tile
       stats_ref:   (1, 1, 2, Cp)   f32 per-tile [sum, sum_of_squares] (from f32 acc)
       pad_ref:     (TH+2, W+2, Cp) bf16 VMEM scratch holding the reflect-padded rows
    """
    if fused_affine_relu:
        scale_ref, shift_ref, conv_ref, stats_ref, pad_ref = args
    else:
        conv_ref, stats_ref, pad_ref = args

    _, TH, W, Cp = conv_ref.shape
    K = w_ref.shape[1]                                     # 3 * Cp

    # Gather the TH+2 source rows (halo rows top/bot) and apply the previous stage's
    # folded BN + ReLU on the fly (pointwise, so it commutes with reflection padding).
    rows = jnp.concatenate([top_ref[0], mid_ref[0], bot_ref[0]], axis=0)   # (TH+2, W, Cp)
    rows = rows.astype(jnp.float32)
    if fused_affine_relu:
        rows = jnp.maximum(rows * scale_ref[...].reshape(1, 1, Cp)
                           + shift_ref[...].reshape(1, 1, Cp), 0.0)
    rows = rows.astype(jnp.bfloat16)

    # Reflect-pad the columns into VMEM scratch (every element written before read).
    pad_ref[:, 1:W + 1, :] = rows
    pad_ref[:, 0:1, :] = rows[:, 1:2, :]                   # left reflect  (col -1 -> 1)
    pad_ref[:, W + 1:W + 2, :] = rows[:, W - 2:W - 1, :]   # right reflect (col W  -> W-2)

    # Build the dx-folded patch ONCE: (TH+2, W, 3*Cp), lane-aligned Cp-wide pieces.
    patch = jnp.concatenate([pad_ref[:, dx:dx + W, :] for dx in range(3)], axis=-1)

    acc = jnp.zeros((TH * W, Cp), jnp.float32)
    for dy in range(3):                                    # statically unrolled dy taps
        acc = acc + jnp.dot(patch[dy:dy + TH].reshape(TH * W, K), w_ref[dy],
                            preferred_element_type=jnp.float32)

    conv_ref[...] = acc.reshape(1, TH, W, Cp).astype(conv_ref.dtype)

    s = jnp.sum(acc, axis=0, keepdims=True)                # (1, Cp)
    ssq = jnp.sum(acc * acc, axis=0, keepdims=True)        # (1, Cp)
    stats_ref[:, :, 0:1, :] = s.reshape(1, 1, 1, Cp)
    stats_ref[:, :, 1:2, :] = ssq.reshape(1, 1, 1, Cp)


# --------------------------------------------------------------------------------------
# Final epilogue: folded BN2 affine + residual add, streamed at the TRUE channel count.
# --------------------------------------------------------------------------------------
def _bn_res_epilogue_kernel(y_ref, scale_ref, shift_ref, res_ref, out_ref):
    Cp = y_ref.shape[-1]
    C = out_ref.shape[-1]
    y = y_ref[...].astype(jnp.float32)                     # (1, TH, W, Cp) bf16 -> f32
    y = y * scale_ref[...].reshape(1, 1, 1, Cp) + shift_ref[...].reshape(1, 1, 1, Cp)
    if C != Cp:
        y = y[..., :C]                                     # drop padded lanes (origin slice)
    out_ref[...] = (y + res_ref[...].astype(jnp.float32)).astype(out_ref.dtype)


# --------------------------------------------------------------------------------------
# One conv pass over the full image:  grid (N, H//TH), halo row-tiles via three specs.
# --------------------------------------------------------------------------------------
def _conv_pass(x_in, wk, *, th, vmem_limit, scale=None, shift=None):
    N, H, W, Cp = x_in.shape
    HB = H // th
    fused = scale is not None
    in_bytes = jnp.dtype(x_in.dtype).itemsize

    # Halo rows: padded row r0 (above the tile) and r0+TH+1 (below), reflection resolved
    # in the index_map (block size 1 along H -> returned index is the row itself).
    def top_map(n, h):
        return (n, jnp.where(h == 0, 1, h * th - 1), 0, 0)

    def mid_map(n, h):
        return (n, h, 0, 0)

    def bot_map(n, h):
        return (n, jnp.where(h == HB - 1, H - 2, (h + 1) * th), 0, 0)

    in_specs = [
        pl.BlockSpec((1, 1, W, Cp), top_map),
        pl.BlockSpec((1, th, W, Cp), mid_map),
        pl.BlockSpec((1, 1, W, Cp), bot_map),
        pl.BlockSpec((3, 3 * Cp, Cp), lambda n, h: (0, 0, 0)),
    ]
    inputs = [x_in, x_in, x_in, wk]
    if fused:
        vec_spec = pl.BlockSpec((1, Cp), lambda n, h: (0, 0))
        in_specs += [vec_spec, vec_spec]
        inputs += [scale, shift]

    conv, stats = pl.pallas_call(
        functools.partial(_conv_stats_kernel, fused_affine_relu=fused),
        grid=(N, HB),
        in_specs=in_specs,
        out_specs=[
            pl.BlockSpec((1, th, W, Cp), lambda n, h: (n, h, 0, 0)),
            pl.BlockSpec((1, 1, 2, Cp), lambda n, h: (n, h, 0, 0)),
        ],
        out_shape=[
            jax.ShapeDtypeStruct((N, H, W, Cp), jnp.bfloat16),   # conv output in bf16
            jax.ShapeDtypeStruct((N, HB, 2, Cp), jnp.float32),   # partial BN stats
        ],
        scratch_shapes=[pltpu.VMEM((th + 2, W + 2, Cp), jnp.bfloat16)],
        compiler_params=pltpu.CompilerParams(
            dimension_semantics=("parallel", "parallel"),
            vmem_limit_bytes=vmem_limit),
        cost_estimate=pl.CostEstimate(
            flops=2 * 9 * N * H * W * Cp * Cp,
            transcendentals=0,
            bytes_accessed=(N * (H + 2 * HB) * W * Cp * in_bytes   # image + halo re-reads
                            + 9 * Cp * Cp * 2                      # weights
                            + N * H * W * Cp * 2                   # bf16 conv writeback
                            + N * HB * 2 * Cp * 4)),               # stats
    )(*inputs)
    return conv, stats


def _epilogue_pass(conv2, scale, shift, res, *, th, vmem_limit):
    N, H, W, Cp = conv2.shape
    C = res.shape[-1]
    HB = H // th
    tile_p = pl.BlockSpec((1, th, W, Cp), lambda n, h: (n, h, 0, 0))
    tile_c = pl.BlockSpec((1, th, W, C), lambda n, h: (n, h, 0, 0))
    vec = pl.BlockSpec((1, Cp), lambda n, h: (0, 0))
    return pl.pallas_call(
        _bn_res_epilogue_kernel,
        grid=(N, HB),
        in_specs=[tile_p, vec, vec, tile_c],
        out_specs=tile_c,
        out_shape=jax.ShapeDtypeStruct((N, H, W, C), res.dtype),
        compiler_params=pltpu.CompilerParams(
            dimension_semantics=("parallel", "parallel"),
            vmem_limit_bytes=vmem_limit),
        cost_estimate=pl.CostEstimate(
            flops=4 * N * H * W * Cp,
            transcendentals=0,
            bytes_accessed=N * H * W * (Cp * 2 + 2 * C * 4) + 2 * Cp * 4),
    )(conv2, scale, shift, res)


# --------------------------------------------------------------------------------------
# BN stats finalize (tiny, plain JAX) -> single per-channel scale/shift.
# --------------------------------------------------------------------------------------
def _finalize_bn(part_stats, gamma, beta, count, C, Cp):
    sums = jnp.sum(part_stats, axis=(0, 1))                # (2, Cp)
    mean = sums[0] / count
    var = jnp.maximum(sums[1] / count - mean * mean, 0.0)  # clamp: cancellation guard
    inv_std = jax.lax.rsqrt(var + BN_EPS)
    # gamma/beta zero-padded on padded channels -> scale = shift = 0 there (invariant:
    # keeps the 1/sqrt(eps) of var=0 padded lanes from ever reaching an output).
    gamma_p = jnp.zeros((Cp,), jnp.float32).at[:C].set(gamma)
    beta_p = jnp.zeros((Cp,), jnp.float32).at[:C].set(beta)
    scale = (gamma_p * inv_std).reshape(1, Cp)
    shift = (beta_p - mean * gamma_p * inv_std).reshape(1, Cp)
    return scale, shift


def _fold_weights(w, Cp):
    """(3, 3, C, C) HWIO -> (3, 3*Cp, Cp) bf16 with the dx taps folded into K (dx-major),
    input/output channels zero-padded to Cp."""
    C = w.shape[-1]
    wp = jnp.zeros((3, 3, Cp, Cp), jnp.float32).at[:, :, :C, :C].set(w)
    return wp.reshape(3, 3 * Cp, Cp).astype(jnp.bfloat16)


def residual_block(x_nchw, params):
    """Forward pass of ResidualBlock.  Input/output in PyTorch NCHW layout."""
    x = jnp.transpose(x_nchw, (0, 2, 3, 1))                # NCHW -> NHWC (channels on lanes)
    N, H, W, C = x.shape
    Cp = _round_up(C, LANES)
    # Conv inputs/intermediates carry Cp lanes for the MXU; residual/output stay true-C.
    # TODO(synk): im2col layout (pixels on lanes, K=9*C) for true C << 128.
    xpd = x if Cp == C else jnp.pad(x, ((0, 0), (0, 0), (0, 0), (0, Cp - C)))

    vmem_limit = _vmem_budget()
    tile_budget = max(1 << 20, min(4 << 20, vmem_limit // 24))
    th = _pick_row_tile(H, W, Cp, tile_budget)

    w1k = _fold_weights(params["w1"], Cp)
    w2k = _fold_weights(params["w2"], Cp)
    m = float(N * H * W)

    # Stage 1 conv (+ BN1 stats).  Conv bias dropped: cancelled exactly by BN's mean.
    conv1, stats1 = _conv_pass(xpd, w1k, th=th, vmem_limit=vmem_limit)
    scale1, shift1 = _finalize_bn(stats1, params["g1"], params["beta1"], m, C, Cp)

    # Stage 2 conv with stage-1's BN + ReLU fused into its input path (+ BN2 stats).
    conv2, stats2 = _conv_pass(conv1, w2k, th=th, vmem_limit=vmem_limit,
                               scale=scale1, shift=shift1)
    scale2, shift2 = _finalize_bn(stats2, params["g2"], params["beta2"], m, C, Cp)

    # Final BN2 affine + residual, streamed at the true channel count.
    y = _epilogue_pass(conv2, scale2, shift2, x, th=th, vmem_limit=vmem_limit)
    return jnp.transpose(y, (0, 3, 1, 2))                  # NHWC -> NCHW


def init_params(key, in_features):
    """Deterministic init mirroring PyTorch defaults (kaiming-uniform conv, gamma=1 /
    beta=0 BN).  Conv biases kept for interface parity but unused: a per-channel bias
    before BatchNorm is exactly cancelled by the mean subtraction."""
    C = in_features
    k = jax.random.split(key, 4)
    fan_in = C * 3 * 3
    bound = 1.0 / (fan_in ** 0.5)
    return {
        # weights stored tap-major: (ky, kx, Cin, Cout)  == HWIO
        "w1": jax.random.uniform(k[0], (3, 3, C, C), jnp.float32, -bound, bound),
        "b1": jax.random.uniform(k[1], (C,), jnp.float32, -bound, bound),
        "g1": jnp.ones((C,), jnp.float32),
        "beta1": jnp.zeros((C,), jnp.float32),
        "w2": jax.random.uniform(k[2], (3, 3, C, C), jnp.float32, -bound, bound),
        "b2": jax.random.uniform(k[3], (C,), jnp.float32, -bound, bound),
        "g2": jnp.ones((C,), jnp.float32),
        "beta2": jnp.zeros((C,), jnp.float32),
    }


def _reference(x_nchw, params):
    """Pure-JAX reference using the kernel's bf16-conv-input / f32-accumulate precision.
    (The kernel additionally rounds the inter-stage conv output to bf16; the difference
    is well inside the test tolerance.)"""
    x = jnp.transpose(x_nchw, (0, 2, 3, 1))

    def stage(inp, w, g, b, relu):
        xp = jnp.pad(inp, ((0, 0), (1, 1), (1, 1), (0, 0)), mode="reflect")
        xp = xp.astype(jnp.bfloat16).astype(jnp.float32)
        wc = w.astype(jnp.bfloat16).astype(jnp.float32)
        y = jax.lax.conv_general_dilated(
            xp, wc, window_strides=(1, 1), padding="VALID",
            dimension_numbers=("NHWC", "HWIO", "NHWC"),
            precision=jax.lax.Precision.HIGHEST)
        mean = jnp.mean(y, axis=(0, 1, 2))
        var = jnp.mean((y - mean) ** 2, axis=(0, 1, 2))
        y = (y - mean) * jax.lax.rsqrt(var + BN_EPS) * g + b
        return jnp.maximum(y, 0.0) if relu else y

    h = stage(x, params["w1"], params["g1"], params["beta1"], True)
    y = stage(h, params["w2"], params["g2"], params["beta2"], False) + x
    return jnp.transpose(y, (0, 3, 1, 2))


if __name__ == "__main__":
    key = jax.random.PRNGKey(0)
    kx, kp = jax.random.split(key)

    N, C, H, W = 2, 4, 16, 16
    x = jax.random.normal(kx, (N, C, H, W), jnp.float32)
    params = init_params(kp, C)

    fwd = jax.jit(lambda inp: residual_block(inp, params))
    out = jax.block_until_ready(fwd(x))

    assert out.shape == (N, C, H, W)
    assert out.dtype == jnp.float32
    assert bool(jnp.all(jnp.isfinite(out)))

    ref = _reference(x, params)
    err = float(jnp.max(jnp.abs(out - ref)))
    assert bool(jnp.allclose(out, ref, atol=3e-2, rtol=3e-2)), err

    print("KERNEL_OK")
</pallas_src>

<mosaic_0001>
module attributes {stable_mosaic.version = 11 : i64} {
  func.func @_conv_stats_kernel(%arg0: i32, %arg1: i32, %arg2: memref<1x1x16x128xf32, #tpu.memory_space<vmem>>, %arg3: memref<1x16x16x128xf32, #tpu.memory_space<vmem>>, %arg4: memref<1x1x16x128xf32, #tpu.memory_space<vmem>>, %arg5: memref<3x384x128xbf16, #tpu.memory_space<vmem>>, %arg6: memref<1x16x16x128xbf16, #tpu.memory_space<vmem>>, %arg7: memref<1x1x2x128xf32, #tpu.memory_space<vmem>>, %arg8: memref<18x18x128xbf16, #tpu.memory_space<vmem>>) attributes {dimension_semantics = [#tpu.dimension_semantics<parallel>, #tpu.dimension_semantics<parallel>], iteration_bounds = array<i64: 2, 1>, scalar_prefetch = 0 : i64, scratch_operands = 1 : i64, tpu.core_type = #tpu.core_type<tc>, window_params = [{transform_indices = @transform_0, window_bounds = array<i64: 1, 1, 16, 128>}, {transform_indices = @transform_1, window_bounds = array<i64: 1, 16, 16, 128>}, {transform_indices = @transform_2, window_bounds = array<i64: 1, 1, 16, 128>}, {pipeline_mode = #tpu.pipeline_mode<synchronous>, transform_indices = @transform_3, window_bounds = array<i64: 3, 384, 128>}, {transform_indices = @transform_4, window_bounds = array<i64: 1, 16, 16, 128>}, {transform_indices = @transform_5, window_bounds = array<i64: 1, 1, 2, 128>}]} {
    %c0 = arith.constant 0 : index
    %c0_0 = arith.constant 0 : index
    %c0_1 = arith.constant 0 : index
    %c0_2 = arith.constant 0 : index
    %0 = vector.load %arg2[%c0, %c0_0, %c0_1, %c0_2] : memref<1x1x16x128xf32, #tpu.memory_space<vmem>>, vector<1x1x16x128xf32>
    %1 = vector.shape_cast %0 : vector<1x1x16x128xf32> to vector<1x16x128xf32>
    %c0_3 = arith.constant 0 : index
    %c0_4 = arith.constant 0 : index
    %c0_5 = arith.constant 0 : index
    %c0_6 = arith.constant 0 : index
    %2 = vector.load %arg3[%c0_3, %c0_4, %c0_5, %c0_6] : memref<1x16x16x128xf32, #tpu.memory_space<vmem>>, vector<1x16x16x128xf32>
    %3 = vector.shape_cast %2 : vector<1x16x16x128xf32> to vector<16x16x128xf32>
    %c0_7 = arith.constant 0 : index
    %c0_8 = arith.constant 0 : index
    %c0_9 = arith.constant 0 : index
    %c0_10 = arith.constant 0 : index
    %4 = vector.load %arg4[%c0_7, %c0_8, %c0_9, %c0_10] : memref<1x1x16x128xf32, #tpu.memory_space<vmem>>, vector<1x1x16x128xf32>
    %5 = vector.shape_cast %4 : vector<1x1x16x128xf32> to vector<1x16x128xf32>
    %6 = tpu.concatenate %1, %3, %5 in 0 : vector<1x16x128xf32>, vector<16x16x128xf32>, vector<1x16x128xf32> -> vector<18x16x128xf32>
    %7 = arith.truncf %6 : vector<18x16x128xf32> to vector<18x16x128xbf16>
    %c0_11 = arith.constant 0 : index
    %c1 = arith.constant 1 : index
    %c0_12 = arith.constant 0 : index
    %8 = vector.load %arg8[%c0_11, %c1, %c0_12] : memref<18x18x128xbf16, #tpu.memory_space<vmem>>, vector<18x16x128xbf16>
    tpu.vector_store %arg8[%c0_11, %c1, %c0_12], %7 {strides = array<i32>} : memref<18x18x128xbf16, #tpu.memory_space<vmem>>, vector<18x16x128xbf16>,
    %9 = vector.extract_strided_slice %7 {offsets = [0, 1, 0], sizes = [18, 1, 128], strides = [1, 1, 1]} : vector<18x16x128xbf16> to vector<18x1x128xbf16>
    %c0_13 = arith.constant 0 : index
    %c0_14 = arith.constant 0 : index
    %c0_15 = arith.constant 0 : index
    %10 = vector.load %arg8[%c0_13, %c0_14, %c0_15] : memref<18x18x128xbf16, #tpu.memory_space<vmem>>, vector<18x1x128xbf16>
    tpu.vector_store %arg8[%c0_13, %c0_14, %c0_15], %9 {strides = array<i32>} : memref<18x18x128xbf16, #tpu.memory_space<vmem>>, vector<18x1x128xbf16>,
    %11 = vector.extract_strided_slice %7 {offsets = [0, 14, 0], sizes = [18, 1, 128], strides = [1, 1, 1]} : vector<18x16x128xbf16> to vector<18x1x128xbf16>
    %c0_16 = arith.constant 0 : index
    %c17 = arith.constant 17 : index
    %c0_17 = arith.constant 0 : index
    %12 = vector.load %arg8[%c0_16, %c17, %c0_17] : memref<18x18x128xbf16, #tpu.memory_space<vmem>>, vector<18x1x128xbf16>
    tpu.vector_store %arg8[%c0_16, %c17, %c0_17], %11 {strides = array<i32>} : memref<18x18x128xbf16, #tpu.memory_space<vmem>>, vector<18x1x128xbf16>,
    %c0_18 = arith.constant 0 : index
    %c0_19 = arith.constant 0 : index
    %c0_20 = arith.constant 0 : index
    %13 = vector.load %arg8[%c0_18, %c0_19, %c0_20] : memref<18x18x128xbf16, #tpu.memory_space<vmem>>, vector<18x16x128xbf16>
    %c0_21 = arith.constant 0 : index
    %c1_22 = arith.constant 1 : index
    %c0_23 = arith.constant 0 : index
    %14 = vector.load %arg8[%c0_21, %c1_22, %c0_23] : memref<18x18x128xbf16, #tpu.memory_space<vmem>>, vector<18x16x128xbf16>
    %c0_24 = arith.constant 0 : index
    %c2 = arith.constant 2 : index
    %c0_25 = arith.constant 0 : index
    %15 = vector.load %arg8[%c0_24, %c2, %c0_25] : memref<18x18x128xbf16, #tpu.memory_space<vmem>>, vector<18x16x128xbf16>
    %16 = tpu.concatenate %13, %14, %15 in 2 : vector<18x16x128xbf16>, vector<18x16x128xbf16>, vector<18x16x128xbf16> -> vector<18x16x384xbf16>
    %cst = arith.constant 0.000000e+00 : f32
    %17 = vector.broadcast %cst : f32 to vector<256x128xf32>
    %18 = vector.extract_strided_slice %16 {offsets = [0, 0, 0], sizes = [16, 16, 384], strides = [1, 1, 1]} : vector<18x16x384xbf16> to vector<16x16x384xbf16>
    %19 = vector.shape_cast %18 : vector<16x16x384xbf16> to vector<256x384xbf16>
    %c0_26 = arith.constant 0 : index
    %c0_27 = arith.constant 0 : index
    %c0_28 = arith.constant 0 : index
    %20 = vector.load %arg5[%c0_26, %c0_27, %c0_28] : memref<3x384x128xbf16, #tpu.memory_space<vmem>>, vector<1x384x128xbf16>
    %21 = vector.shape_cast %20 : vector<1x384x128xbf16> to vector<384x128xbf16>
    %cst_29 = arith.constant dense<0.000000e+00> : vector<256x128xf32>
    %22 = tpu.matmul %19, %21, %cst_29 {dimension_numbers = #tpu.dot_dimension_numbers<[1], [0], [0], [1], [0, 0, 1, 1], [], []>} : vector<256x384xbf16>, vector<384x128xbf16>, vector<256x128xf32> -> vector<256x128xf32>
    %23 = arith.addf %17, %22 : vector<256x128xf32>
    %24 = vector.extract_strided_slice %16 {offsets = [1, 0, 0], sizes = [16, 16, 384], strides = [1, 1, 1]} : vector<18x16x384xbf16> to vector<16x16x384xbf16>
    %25 = vector.shape_cast %24 : vector<16x16x384xbf16> to vector<256x384xbf16>
    %c1_30 = arith.constant 1 : index
    %c0_31 = arith.constant 0 : index
    %c0_32 = arith.constant 0 : index
    %26 = vector.load %arg5[%c1_30, %c0_31, %c0_32] : memref<3x384x128xbf16, #tpu.memory_space<vmem>>, vector<1x384x128xbf16>
    %27 = vector.shape_cast %26 : vector<1x384x128xbf16> to vector<384x128xbf16>
    %cst_33 = arith.constant dense<0.000000e+00> : vector<256x128xf32>
    %28 = tpu.matmul %25, %27, %cst_33 {dimension_numbers = #tpu.dot_dimension_numbers<[1], [0], [0], [1], [0, 0, 1, 1], [], []>} : vector<256x384xbf16>, vector<384x128xbf16>, vector<256x128xf32> -> vector<256x128xf32>
    %29 = arith.addf %23, %28 : vector<256x128xf32>
    %30 = vector.extract_strided_slice %16 {offsets = [2, 0, 0], sizes = [16, 16, 384], strides = [1, 1, 1]} : vector<18x16x384xbf16> to vector<16x16x384xbf16>
    %31 = vector.shape_cast %30 : vector<16x16x384xbf16> to vector<256x384xbf16>
    %c2_34 = arith.constant 2 : index
    %c0_35 = arith.constant 0 : index
    %c0_36 = arith.constant 0 : index
    %32 = vector.load %arg5[%c2_34, %c0_35, %c0_36] : memref<3x384x128xbf16, #tpu.memory_space<vmem>>, vector<1x384x128xbf16>
    %33 = vector.shape_cast %32 : vector<1x384x128xbf16> to vector<384x128xbf16>
    %cst_37 = arith.constant dense<0.000000e+00> : vector<256x128xf32>
    %34 = tpu.matmul %31, %33, %cst_37 {dimension_numbers = #tpu.dot_dimension_numbers<[1], [0], [0], [1], [0, 0, 1, 1], [], []>} : vector<256x384xbf16>, vector<384x128xbf16>, vector<256x128xf32> -> vector<256x128xf32>
    %35 = arith.addf %29, %34 : vector<256x128xf32>
    %36 = vector.shape_cast %35 : vector<256x128xf32> to vector<1x16x16x128xf32>
    %37 = arith.truncf %36 : vector<1x16x16x128xf32> to vector<1x16x16x128xbf16>
    %c0_38 = arith.constant 0 : index
    %c0_39 = arith.constant 0 : index
    %c0_40 = arith.constant 0 : index
    %c0_41 = arith.constant 0 : index
    %38 = vector.load %arg6[%c0_38, %c0_39, %c0_40, %c0_41] : memref<1x16x16x128xbf16, #tpu.memory_space<vmem>>, vector<1x16x16x128xbf16>
    tpu.vector_store %arg6[%c0_38, %c0_39, %c0_40, %c0_41], %37 {strides = array<i32>} : memref<1x16x16x128xbf16, #tpu.memory_space<vmem>>, vector<1x16x16x128xbf16>,
    %cst_42 = arith.constant dense<0.000000e+00> : vector<128xf32>
    %39 = vector.multi_reduction <add>, %35, %cst_42 [0] : vector<256x128xf32> to vector<128xf32>
    %40 = vector.shape_cast %39 : vector<128xf32> to vector<1x128xf32>
    %41 = arith.mulf %35, %35 : vector<256x128xf32>
    %cst_43 = arith.constant dense<0.000000e+00> : vector<128xf32>
    %42 = vector.multi_reduction <add>, %41, %cst_43 [0] : vector<256x128xf32> to vector<128xf32>
    %43 = vector.shape_cast %42 : vector<128xf32> to vector<1x128xf32>
    %44 = vector.shape_cast %40 : vector<1x128xf32> to vector<1x1x1x128xf32>
    %c0_44 = arith.constant 0 : index
    %c0_45 = arith.constant 0 : index
    %c0_46 = arith.constant 0 : index
    %c0_47 = arith.constant 0 : index
    %45 = vector.load %arg7[%c0_44, %c0_45, %c0_46, %c0_47] : memref<1x1x2x128xf32, #tpu.memory_space<vmem>>, vector<1x1x1x128xf32>
    tpu.vector_store %arg7[%c0_44, %c0_45, %c0_46, %c0_47], %44 {strides = array<i32>} : memref<1x1x2x128xf32, #tpu.memory_space<vmem>>, vector<1x1x1x128xf32>,
    %46 = vector.shape_cast %43 : vector<1x128xf32> to vector<1x1x1x128xf32>
    %c0_48 = arith.constant 0 : index
    %c0_49 = arith.constant 0 : index
    %c1_50 = arith.constant 1 : index
    %c0_51 = arith.constant 0 : index
    %47 = vector.load %arg7[%c0_48, %c0_49, %c1_50, %c0_51] : memref<1x1x2x128xf32, #tpu.memory_space<vmem>>, vector<1x1x1x128xf32>
    tpu.vector_store %arg7[%c0_48, %c0_49, %c1_50, %c0_51], %46 {strides = array<i32>} : memref<1x1x2x128xf32, #tpu.memory_space<vmem>>, vector<1x1x1x128xf32>,
    return
  }
  func.func @transform_0(%arg0: i32, %arg1: i32) -> (i32, i32, i32, i32) {
    %c0_i32 = arith.constant 0 : i32
    %0 = arith.cmpi eq, %arg1, %c0_i32 : i32
    %c16_i32 = arith.constant 16 : i32
    %1 = arith.muli %arg1, %c16_i32 : i32
    %c1_i32 = arith.constant 1 : i32
    %2 = arith.subi %1, %c1_i32 : i32
    %c1_i32_0 = arith.constant 1 : i32
    %3 = arith.select %0, %c1_i32_0, %2 : i32
    %c0_i32_1 = arith.constant 0 : i32
    %c0_i32_2 = arith.constant 0 : i32
    %c0_i32_3 = arith.constant 0 : i32
    return %arg0, %3, %c0_i32_1, %c0_i32_2 : i32, i32, i32, i32
  }
  func.func @transform_1(%arg0: i32, %arg1: i32) -> (i32, i32, i32, i32) {
    %c0_i32 = arith.constant 0 : i32
    %c0_i32_0 = arith.constant 0 : i32
    %c0_i32_1 = arith.constant 0 : i32
    return %arg0, %arg1, %c0_i32, %c0_i32_0 : i32, i32, i32, i32
  }
  func.func @transform_2(%arg0: i32, %arg1: i32) -> (i32, i32, i32, i32) {
    %c0_i32 = arith.constant 0 : i32
    %0 = arith.cmpi eq, %arg1, %c0_i32 : i32
    %c1_i32 = arith.constant 1 : i32
    %1 = arith.addi %arg1, %c1_i32 : i32
    %c16_i32 = arith.constant 16 : i32
    %2 = arith.muli %1, %c16_i32 : i32
    %c14_i32 = arith.constant 14 : i32
    %3 = arith.select %0, %c14_i32, %2 : i32
    %c0_i32_0 = arith.constant 0 : i32
    %c0_i32_1 = arith.constant 0 : i32
    %c0_i32_2 = arith.constant 0 : i32
    return %arg0, %3, %c0_i32_0, %c0_i32_1 : i32, i32, i32, i32
  }
  func.func @transform_3(%arg0: i32, %arg1: i32) -> (i32, i32, i32) {
    %c0_i32 = arith.constant 0 : i32
    %c0_i32_0 = arith.constant 0 : i32
    %c0_i32_1 = arith.constant 0 : i32
    %c0_i32_2 = arith.constant 0 : i32
    return %c0_i32, %c0_i32_0, %c0_i32_1 : i32, i32, i32
  }
  func.func @transform_4(%arg0: i32, %arg1: i32) -> (i32, i32, i32, i32) {
    %c0_i32 = arith.constant 0 : i32
    %c0_i32_0 = arith.constant 0 : i32
    %c0_i32_1 = arith.constant 0 : i32
    return %arg0, %arg1, %c0_i32, %c0_i32_0 : i32, i32, i32, i32
  }
  func.func @transform_5(%arg0: i32, %arg1: i32) -> (i32, i32, i32, i32) {
    %c0_i32 = arith.constant 0 : i32
    %c0_i32_0 = arith.constant 0 : i32
    %c0_i32_1 = arith.constant 0 : i32
    return %arg0, %arg1, %c0_i32, %c0_i32_0 : i32, i32, i32, i32
  }
}

module attributes {stable_mosaic.version = 11 : i64} {
  func.func @_bn_res_epilogue_kernel(%arg0: i32, %arg1: i32, %arg2: memref<1x16x16x128xbf16, #tpu.memory_space<vmem>>, %arg3: memref<1x128xf32, #tpu.memory_space<vmem>>, %arg4: memref<1x128xf32, #tpu.memory_space<vmem>>, %arg5: memref<1x16x16x4xf32, #tpu.memory_space<vmem>>, %arg6: memref<1x16x16x4xf32, #tpu.memory_space<vmem>>) attributes {dimension_semantics = [#tpu.dimension_semantics<parallel>, #tpu.dimension_semantics<parallel>], iteration_bounds = array<i64: 2, 1>, scalar_prefetch = 0 : i64, scratch_operands = 0 : i64, tpu.core_type = #tpu.core_type<tc>, window_params = [{transform_indices = @transform_0, window_bounds = array<i64: 1, 16, 16, 128>}, {pipeline_mode = #tpu.pipeline_mode<synchronous>, transform_indices = @transform_1, window_bounds = array<i64: 1, 128>}, {pipeline_mode = #tpu.pipeline_mode<synchronous>, transform_indices = @transform_2, window_bounds = array<i64: 1, 128>}, {transform_indices = @transform_3, window_bounds = array<i64: 1, 16, 16, 4>}, {transform_indices = @transform_4, window_bounds = array<i64: 1, 16, 16, 4>}]} {
    %c0 = arith.constant 0 : index
    %c0_0 = arith.constant 0 : index
    %c0_1 = arith.constant 0 : index
    %c0_2 = arith.constant 0 : index
    %0 = vector.load %arg2[%c0, %c0_0, %c0_1, %c0_2] : memref<1x16x16x128xbf16, #tpu.memory_space<vmem>>, vector<1x16x16x128xbf16>
    %1 = arith.extf %0 : vector<1x16x16x128xbf16> to vector<1x16x16x128xf32>
    %c0_3 = arith.constant 0 : index
    %c0_4 = arith.constant 0 : index
    %2 = vector.load %arg3[%c0_3, %c0_4] : memref<1x128xf32, #tpu.memory_space<vmem>>, vector<1x128xf32>
    %3 = vector.shape_cast %2 : vector<1x128xf32> to vector<1x1x1x128xf32>
    %4 = vector.broadcast %3 : vector<1x1x1x128xf32> to vector<1x16x16x128xf32>
    %5 = arith.mulf %1, %4 : vector<1x16x16x128xf32>
    %c0_5 = arith.constant 0 : index
    %c0_6 = arith.constant 0 : index
    %6 = vector.load %arg4[%c0_5, %c0_6] : memref<1x128xf32, #tpu.memory_space<vmem>>, vector<1x128xf32>
    %7 = vector.shape_cast %6 : vector<1x128xf32> to vector<1x1x1x128xf32>
    %8 = vector.broadcast %7 : vector<1x1x1x128xf32> to vector<1x16x16x128xf32>
    %9 = arith.addf %5, %8 : vector<1x16x16x128xf32>
    %10 = vector.extract_strided_slice %9 {offsets = [0, 0, 0, 0], sizes = [1, 16, 16, 4], strides = [1, 1, 1, 1]} : vector<1x16x16x128xf32> to vector<1x16x16x4xf32>
    %c0_7 = arith.constant 0 : index
    %c0_8 = arith.constant 0 : index
    %c0_9 = arith.constant 0 : index
    %c0_10 = arith.constant 0 : index
    %11 = vector.load %arg5[%c0_7, %c0_8, %c0_9, %c0_10] : memref<1x16x16x4xf32, #tpu.memory_space<vmem>>, vector<1x16x16x4xf32>
    %12 = arith.addf %10, %11 : vector<1x16x16x4xf32>
    %c0_11 = arith.constant 0 : index
    %c0_12 = arith.constant 0 : index
    %c0_13 = arith.constant 0 : index
    %c0_14 = arith.constant 0 : index
    %13 = vector.load %arg6[%c0_11, %c0_12, %c0_13, %c0_14] : memref<1x16x16x4xf32, #tpu.memory_space<vmem>>, vector<1x16x16x4xf32>
    tpu.vector_store %arg6[%c0_11, %c0_12, %c0_13, %c0_14], %12 {strides = array<i32>} : memref<1x16x16x4xf32, #tpu.memory_space<vmem>>, vector<1x16x16x4xf32>,
    return
  }
  func.func @transform_0(%arg0: i32, %arg1: i32) -> (i32, i32, i32, i32) {
    %c0_i32 = arith.constant 0 : i32
    %c0_i32_0 = arith.constant 0 : i32
    %c0_i32_1 = arith.constant 0 : i32
    return %arg0, %arg1, %c0_i32, %c0_i32_0 : i32, i32, i32, i32
  }
  func.func @transform_1(%arg0: i32, %arg1: i32) -> (i32, i32) {
    %c0_i32 = arith.constant 0 : i32
    %c0_i32_0 = arith.constant 0 : i32
    %c0_i32_1 = arith.constant 0 : i32
    return %c0_i32, %c0_i32_0 : i32, i32
  }
  func.func @transform_2(%arg0: i32, %arg1: i32) -> (i32, i32) {
    %c0_i32 = arith.constant 0 : i32
    %c0_i32_0 = arith.constant 0 : i32
    %c0_i32_1 = arith.constant 0 : i32
    return %c0_i32, %c0_i32_0 : i32, i32
  }
  func.func @transform_3(%arg0: i32, %arg1: i32) -> (i32, i32, i32, i32) {
    %c0_i32 = arith.constant 0 : i32
    %c0_i32_0 = arith.constant 0 : i32
    %c0_i32_1 = arith.constant 0 : i32
    return %arg0, %arg1, %c0_i32, %c0_i32_0 : i32, i32, i32, i32
  }
  func.func @transform_4(%arg0: i32, %arg1: i32) -> (i32, i32, i32, i32) {
    %c0_i32 = arith.constant 0 : i32
    %c0_i32_0 = arith.constant 0 : i32
    %c0_i32_1 = arith.constant 0 : i32
    return %arg0, %arg1, %c0_i32, %c0_i32_0 : i32, i32, i32, i32
  }
}

module attributes {stable_mosaic.version = 11 : i64} {
  func.func @_conv_stats_kernel(%arg0: i32, %arg1: i32, %arg2: memref<1x1x16x128xbf16, #tpu.memory_space<vmem>>, %arg3: memref<1x16x16x128xbf16, #tpu.memory_space<vmem>>, %arg4: memref<1x1x16x128xbf16, #tpu.memory_space<vmem>>, %arg5: memref<3x384x128xbf16, #tpu.memory_space<vmem>>, %arg6: memref<1x128xf32, #tpu.memory_space<vmem>>, %arg7: memref<1x128xf32, #tpu.memory_space<vmem>>, %arg8: memref<1x16x16x128xbf16, #tpu.memory_space<vmem>>, %arg9: memref<1x1x2x128xf32, #tpu.memory_space<vmem>>, %arg10: memref<18x18x128xbf16, #tpu.memory_space<vmem>>) attributes {dimension_semantics = [#tpu.dimension_semantics<parallel>, #tpu.dimension_semantics<parallel>], iteration_bounds = array<i64: 2, 1>, scalar_prefetch = 0 : i64, scratch_operands = 1 : i64, tpu.core_type = #tpu.core_type<tc>, window_params = [{transform_indices = @transform_0, window_bounds = array<i64: 1, 1, 16, 128>}, {transform_indices = @transform_1, window_bounds = array<i64: 1, 16, 16, 128>}, {transform_indices = @transform_2, window_bounds = array<i64: 1, 1, 16, 128>}, {pipeline_mode = #tpu.pipeline_mode<synchronous>, transform_indices = @transform_3, window_bounds = array<i64: 3, 384, 128>}, {pipeline_mode = #tpu.pipeline_mode<synchronous>, transform_indices = @transform_4, window_bounds = array<i64: 1, 128>}, {pipeline_mode = #tpu.pipeline_mode<synchronous>, transform_indices = @transform_5, window_bounds = array<i64: 1, 128>}, {transform_indices = @transform_6, window_bounds = array<i64: 1, 16, 16, 128>}, {transform_indices = @transform_7, window_bounds = array<i64: 1, 1, 2, 128>}]} {
    %c0 = arith.constant 0 : index
    %c0_0 = arith.constant 0 : index
    %c0_1 = arith.constant 0 : index
    %c0_2 = arith.constant 0 : index
    %0 = vector.load %arg2[%c0, %c0_0, %c0_1, %c0_2] : memref<1x1x16x128xbf16, #tpu.memory_space<vmem>>, vector<1x1x16x128xbf16>
    %1 = vector.shape_cast %0 : vector<1x1x16x128xbf16> to vector<1x16x128xbf16>
    %c0_3 = arith.constant 0 : index
    %c0_4 = arith.constant 0 : index
    %c0_5 = arith.constant 0 : index
    %c0_6 = arith.constant 0 : index
    %2 = vector.load %arg3[%c0_3, %c0_4, %c0_5, %c0_6] : memref<1x16x16x128xbf16, #tpu.memory_space<vmem>>, vector<1x16x16x128xbf16>
    %3 = vector.shape_cast %2 : vector<1x16x16x128xbf16> to vector<16x16x128xbf16>
    %c0_7 = arith.constant 0 : index
    %c0_8 = arith.constant 0 : index
    %c0_9 = arith.constant 0 : index
    %c0_10 = arith.constant 0 : index
    %4 = vector.load %arg4[%c0_7, %c0_8, %c0_9, %c0_10] : memref<1x1x16x128xbf16, #tpu.memory_space<vmem>>, vector<1x1x16x128xbf16>
    %5 = vector.shape_cast %4 : vector<1x1x16x128xbf16> to vector<1x16x128xbf16>
    %6 = tpu.concatenate %1, %3, %5 in 0 : vector<1x16x128xbf16>, vector<16x16x128xbf16>, vector<1x16x128xbf16> -> vector<18x16x128xbf16>
    %7 = arith.extf %6 : vector<18x16x128xbf16> to vector<18x16x128xf32>
    %c0_11 = arith.constant 0 : index
    %c0_12 = arith.constant 0 : index
    %8 = vector.load %arg6[%c0_11, %c0_12] : memref<1x128xf32, #tpu.memory_space<vmem>>, vector<1x128xf32>
    %9 = vector.shape_cast %8 : vector<1x128xf32> to vector<1x1x128xf32>
    %10 = vector.broadcast %9 : vector<1x1x128xf32> to vector<18x16x128xf32>
    %11 = arith.mulf %7, %10 : vector<18x16x128xf32>
    %c0_13 = arith.constant 0 : index
    %c0_14 = arith.constant 0 : index
    %12 = vector.load %arg7[%c0_13, %c0_14] : memref<1x128xf32, #tpu.memory_space<vmem>>, vector<1x128xf32>
    %13 = vector.shape_cast %12 : vector<1x128xf32> to vector<1x1x128xf32>
    %14 = vector.broadcast %13 : vector<1x1x128xf32> to vector<18x16x128xf32>
    %15 = arith.addf %11, %14 : vector<18x16x128xf32>
    %cst = arith.constant 0.000000e+00 : f32
    %16 = vector.broadcast %cst : f32 to vector<18x16x128xf32>
    %17 = arith.maximumf %15, %16 : vector<18x16x128xf32>
    %18 = arith.truncf %17 : vector<18x16x128xf32> to vector<18x16x128xbf16>
    %c0_15 = arith.constant 0 : index
    %c1 = arith.constant 1 : index
    %c0_16 = arith.constant 0 : index
    %19 = vector.load %arg10[%c0_15, %c1, %c0_16] : memref<18x18x128xbf16, #tpu.memory_space<vmem>>, vector<18x16x128xbf16>
    tpu.vector_store %arg10[%c0_15, %c1, %c0_16], %18 {strides = array<i32>} : memref<18x18x128xbf16, #tpu.memory_space<vmem>>, vector<18x16x128xbf16>,
    %20 = vector.extract_strided_slice %18 {offsets = [0, 1, 0], sizes = [18, 1, 128], strides = [1, 1, 1]} : vector<18x16x128xbf16> to vector<18x1x128xbf16>
    %c0_17 = arith.constant 0 : index
    %c0_18 = arith.constant 0 : index
    %c0_19 = arith.constant 0 : index
    %21 = vector.load %arg10[%c0_17, %c0_18, %c0_19] : memref<18x18x128xbf16, #tpu.memory_space<vmem>>, vector<18x1x128xbf16>
    tpu.vector_store %arg10[%c0_17, %c0_18, %c0_19], %20 {strides = array<i32>} : memref<18x18x128xbf16, #tpu.memory_space<vmem>>, vector<18x1x128xbf16>,
    %22 = vector.extract_strided_slice %18 {offsets = [0, 14, 0], sizes = [18, 1, 128], strides = [1, 1, 1]} : vector<18x16x128xbf16> to vector<18x1x128xbf16>
    %c0_20 = arith.constant 0 : index
    %c17 = arith.constant 17 : index
    %c0_21 = arith.constant 0 : index
    %23 = vector.load %arg10[%c0_20, %c17, %c0_21] : memref<18x18x128xbf16, #tpu.memory_space<vmem>>, vector<18x1x128xbf16>
    tpu.vector_store %arg10[%c0_20, %c17, %c0_21], %22 {strides = array<i32>} : memref<18x18x128xbf16, #tpu.memory_space<vmem>>, vector<18x1x128xbf16>,
    %c0_22 = arith.constant 0 : index
    %c0_23 = arith.constant 0 : index
    %c0_24 = arith.constant 0 : index
    %24 = vector.load %arg10[%c0_22, %c0_23, %c0_24] : memref<18x18x128xbf16, #tpu.memory_space<vmem>>, vector<18x16x128xbf16>
    %c0_25 = arith.constant 0 : index
    %c1_26 = arith.constant 1 : index
    %c0_27 = arith.constant 0 : index
    %25 = vector.load %arg10[%c0_25, %c1_26, %c0_27] : memref<18x18x128xbf16, #tpu.memory_space<vmem>>, vector<18x16x128xbf16>
    %c0_28 = arith.constant 0 : index
    %c2 = arith.constant 2 : index
    %c0_29 = arith.constant 0 : index
    %26 = vector.load %arg10[%c0_28, %c2, %c0_29] : memref<18x18x128xbf16, #tpu.memory_space<vmem>>, vector<18x16x128xbf16>
    %27 = tpu.concatenate %24, %25, %26 in 2 : vector<18x16x128xbf16>, vector<18x16x128xbf16>, vector<18x16x128xbf16> -> vector<18x16x384xbf16>
    %cst_30 = arith.constant 0.000000e+00 : f32
    %28 = vector.broadcast %cst_30 : f32 to vector<256x128xf32>
    %29 = vector.extract_strided_slice %27 {offsets = [0, 0, 0], sizes = [16, 16, 384], strides = [1, 1, 1]} : vector<18x16x384xbf16> to vector<16x16x384xbf16>
    %30 = vector.shape_cast %29 : vector<16x16x384xbf16> to vector<256x384xbf16>
    %c0_31 = arith.constant 0 : index
    %c0_32 = arith.constant 0 : index
    %c0_33 = arith.constant 0 : index
    %31 = vector.load %arg5[%c0_31, %c0_32, %c0_33] : memref<3x384x128xbf16, #tpu.memory_space<vmem>>, vector<1x384x128xbf16>
    %32 = vector.shape_cast %31 : vector<1x384x128xbf16> to vector<384x128xbf16>
    %cst_34 = arith.constant dense<0.000000e+00> : vector<256x128xf32>
    %33 = tpu.matmul %30, %32, %cst_34 {dimension_numbers = #tpu.dot_dimension_numbers<[1], [0], [0], [1], [0, 0, 1, 1], [], []>} : vector<256x384xbf16>, vector<384x128xbf16>, vector<256x128xf32> -> vector<256x128xf32>
    %34 = arith.addf %28, %33 : vector<256x128xf32>
    %35 = vector.extract_strided_slice %27 {offsets = [1, 0, 0], sizes = [16, 16, 384], strides = [1, 1, 1]} : vector<18x16x384xbf16> to vector<16x16x384xbf16>
    %36 = vector.shape_cast %35 : vector<16x16x384xbf16> to vector<256x384xbf16>
    %c1_35 = arith.constant 1 : index
    %c0_36 = arith.constant 0 : index
    %c0_37 = arith.constant 0 : index
    %37 = vector.load %arg5[%c1_35, %c0_36, %c0_37] : memref<3x384x128xbf16, #tpu.memory_space<vmem>>, vector<1x384x128xbf16>
    %38 = vector.shape_cast %37 : vector<1x384x128xbf16> to vector<384x128xbf16>
    %cst_38 = arith.constant dense<0.000000e+00> : vector<256x128xf32>
    %39 = tpu.matmul %36, %38, %cst_38 {dimension_numbers = #tpu.dot_dimension_numbers<[1], [0], [0], [1], [0, 0, 1, 1], [], []>} : vector<256x384xbf16>, vector<384x128xbf16>, vector<256x128xf32> -> vector<256x128xf32>
    %40 = arith.addf %34, %39 : vector<256x128xf32>
    %41 = vector.extract_strided_slice %27 {offsets = [2, 0, 0], sizes = [16, 16, 384], strides = [1, 1, 1]} : vector<18x16x384xbf16> to vector<16x16x384xbf16>
    %42 = vector.shape_cast %41 : vector<16x16x384xbf16> to vector<256x384xbf16>
    %c2_39 = arith.constant 2 : index
    %c0_40 = arith.constant 0 : index
    %c0_41 = arith.constant 0 : index
    %43 = vector.load %arg5[%c2_39, %c0_40, %c0_41] : memref<3x384x128xbf16, #tpu.memory_space<vmem>>, vector<1x384x128xbf16>
    %44 = vector.shape_cast %43 : vector<1x384x128xbf16> to vector<384x128xbf16>
    %cst_42 = arith.constant dense<0.000000e+00> : vector<256x128xf32>
    %45 = tpu.matmul %42, %44, %cst_42 {dimension_numbers = #tpu.dot_dimension_numbers<[1], [0], [0], [1], [0, 0, 1, 1], [], []>} : vector<256x384xbf16>, vector<384x128xbf16>, vector<256x128xf32> -> vector<256x128xf32>
    %46 = arith.addf %40, %45 : vector<256x128xf32>
    %47 = vector.shape_cast %46 : vector<256x128xf32> to vector<1x16x16x128xf32>
    %48 = arith.truncf %47 : vector<1x16x16x128xf32> to vector<1x16x16x128xbf16>
    %c0_43 = arith.constant 0 : index
    %c0_44 = arith.constant 0 : index
    %c0_45 = arith.constant 0 : index
    %c0_46 = arith.constant 0 : index
    %49 = vector.load %arg8[%c0_43, %c0_44, %c0_45, %c0_46] : memref<1x16x16x128xbf16, #tpu.memory_space<vmem>>, vector<1x16x16x128xbf16>
    tpu.vector_store %arg8[%c0_43, %c0_44, %c0_45, %c0_46], %48 {strides = array<i32>} : memref<1x16x16x128xbf16, #tpu.memory_space<vmem>>, vector<1x16x16x128xbf16>,
    %cst_47 = arith.constant dense<0.000000e+00> : vector<128xf32>
    %50 = vector.multi_reduction <add>, %46, %cst_47 [0] : vector<256x128xf32> to vector<128xf32>
    %51 = vector.shape_cast %50 : vector<128xf32> to vector<1x128xf32>
    %52 = arith.mulf %46, %46 : vector<256x128xf32>
    %cst_48 = arith.constant dense<0.000000e+00> : vector<128xf32>
    %53 = vector.multi_reduction <add>, %52, %cst_48 [0] : vector<256x128xf32> to vector<128xf32>
    %54 = vector.shape_cast %53 : vector<128xf32> to vector<1x128xf32>
    %55 = vector.shape_cast %51 : vector<1x128xf32> to vector<1x1x1x128xf32>
    %c0_49 = arith.constant 0 : index
    %c0_50 = arith.constant 0 : index
    %c0_51 = arith.constant 0 : index
    %c0_52 = arith.constant 0 : index
    %56 = vector.load %arg9[%c0_49, %c0_50, %c0_51, %c0_52] : memref<1x1x2x128xf32, #tpu.memory_space<vmem>>, vector<1x1x1x128xf32>
    tpu.vector_store %arg9[%c0_49, %c0_50, %c0_51, %c0_52], %55 {strides = array<i32>} : memref<1x1x2x128xf32, #tpu.memory_space<vmem>>, vector<1x1x1x128xf32>,
    %57 = vector.shape_cast %54 : vector<1x128xf32> to vector<1x1x1x128xf32>
    %c0_53 = arith.constant 0 : index
    %c0_54 = arith.constant 0 : index
    %c1_55 = arith.constant 1 : index
    %c0_56 = arith.constant 0 : index
    %58 = vector.load %arg9[%c0_53, %c0_54, %c1_55, %c0_56] : memref<1x1x2x128xf32, #tpu.memory_space<vmem>>, vector<1x1x1x128xf32>
    tpu.vector_store %arg9[%c0_53, %c0_54, %c1_55, %c0_56], %57 {strides = array<i32>} : memref<1x1x2x128xf32, #tpu.memory_space<vmem>>, vector<1x1x1x128xf32>,
    return
  }
  func.func @transform_0(%arg0: i32, %arg1: i32) -> (i32, i32, i32, i32) {
    %c0_i32 = arith.constant 0 : i32
    %0 = arith.cmpi eq, %arg1, %c0_i32 : i32
    %c16_i32 = arith.constant 16 : i32
    %1 = arith.muli %arg1, %c16_i32 : i32
    %c1_i32 = arith.constant 1 : i32
    %2 = arith.subi %1, %c1_i32 : i32
    %c1_i32_0 = arith.constant 1 : i32
    %3 = arith.select %0, %c1_i32_0, %2 : i32
    %c0_i32_1 = arith.constant 0 : i32
    %c0_i32_2 = arith.constant 0 : i32
    %c0_i32_3 = arith.constant 0 : i32
    return %arg0, %3, %c0_i32_1, %c0_i32_2 : i32, i32, i32, i32
  }
  func.func @transform_1(%arg0: i32, %arg1: i32) -> (i32, i32, i32, i32) {
    %c0_i32 = arith.constant 0 : i32
    %c0_i32_0 = arith.constant 0 : i32
    %c0_i32_1 = arith.constant 0 : i32
    return %arg0, %arg1, %c0_i32, %c0_i32_0 : i32, i32, i32, i32
  }
  func.func @transform_2(%arg0: i32, %arg1: i32) -> (i32, i32, i32, i32) {
    %c0_i32 = arith.constant 0 : i32
    %0 = arith.cmpi eq, %arg1, %c0_i32 : i32
    %c1_i32 = arith.constant 1 : i32
    %1 = arith.addi %arg1, %c1_i32 : i32
    %c16_i32 = arith.constant 16 : i32
    %2 = arith.muli %1, %c16_i32 : i32
    %c14_i32 = arith.constant 14 : i32
    %3 = arith.select %0, %c14_i32, %2 : i32
    %c0_i32_0 = arith.constant 0 : i32
    %c0_i32_1 = arith.constant 0 : i32
    %c0_i32_2 = arith.constant 0 : i32
    return %arg0, %3, %c0_i32_0, %c0_i32_1 : i32, i32, i32, i32
  }
  func.func @transform_3(%arg0: i32, %arg1: i32) -> (i32, i32, i32) {
    %c0_i32 = arith.constant 0 : i32
    %c0_i32_0 = arith.constant 0 : i32
    %c0_i32_1 = arith.constant 0 : i32
    %c0_i32_2 = arith.constant 0 : i32
    return %c0_i32, %c0_i32_0, %c0_i32_1 : i32, i32, i32
  }
  func.func @transform_4(%arg0: i32, %arg1: i32) -> (i32, i32) {
    %c0_i32 = arith.constant 0 : i32
    %c0_i32_0 = arith.constant 0 : i32
    %c0_i32_1 = arith.constant 0 : i32
    return %c0_i32, %c0_i32_0 : i32, i32
  }
  func.func @transform_5(%arg0: i32, %arg1: i32) -> (i32, i32) {
    %c0_i32 = arith.constant 0 : i32
    %c0_i32_0 = arith.constant 0 : i32
    %c0_i32_1 = arith.constant 0 : i32
    return %c0_i32, %c0_i32_0 : i32, i32
  }
  func.func @transform_6(%arg0: i32, %arg1: i32) -> (i32, i32, i32, i32) {
    %c0_i32 = arith.constant 0 : i32
    %c0_i32_0 = arith.constant 0 : i32
    %c0_i32_1 = arith.constant 0 : i32
    return %arg0, %arg1, %c0_i32, %c0_i32_0 : i32, i32, i32, i32
  }
  func.func @transform_7(%arg0: i32, %arg1: i32) -> (i32, i32, i32, i32) {
    %c0_i32 = arith.constant 0 : i32
    %c0_i32_0 = arith.constant 0 : i32
    %c0_i32_1 = arith.constant 0 : i32
    return %arg0, %arg1, %c0_i32, %c0_i32_0 : i32, i32, i32, i32
  }
}

</mosaic_0001>

<bundles_post_ra>
// kernel: _lambda_.5
= control target key start
LH: loop header
LB: loop body
LE: loop exit
PB: predicated region body
PF: predicated region fallthrough
CT: control target
= control target key end

     0   :  { %s801_s15 = smov 0   ;;  %s803_s16 = smov 0   ;;  %s1037_s0 = inlined_call_operand.vmem [shape: bf16[2,16,16,128], index: 0, kind: input, shape index: {}]   ;;  %s1038_s1 = inlined_call_operand.vmem [shape: f32[1,128], index: 1, kind: input, shape index: {}]   ;;  %s1039_s2 = inlined_call_operand.vmem [shape: f32[1,128], index: 2, kind: input, shape index: {}]   ;;  %s1040_s3 = inlined_call_operand.vmem [shape: f32[2,16,16,4], index: 3, kind: input, shape index: {}]   ;;  %s1041_s4 = inlined_call_operand.vmem [shape: f32[2,16,16,4], index: 4, kind: output, shape index: {}]  }
   0x1   :  { %s805_s17 = smov 0  }
   0x2 LB: > { %s26_s18 = sadd.s32 1, %s770_s16  ;;  %p635_p0 = scmp.ge.s32.totalorder %s774_s17, 1  ;;  %s774_s17 = sphi %s805_s17, %s14_s17   ;;  %s770_s16 = sphi %s803_s16, %s1043_s16   ;;  %s766_s15 = sphi %s801_s15, %s1042_s15  }
   0x3   : > { %p28_p1 = scmp.ge.s32.totalorder %s26_s18, 2  ;;  %p202_p2 = scmp.lt.s32.totalorder %s774_s17, 3 }
   0x5   : > { %s1045_s18 = smov (%p28_p1, %s26_s18), 0  ;;  %p203_p3 = pnand %p635_p0, %p202_p2 }
   0x6   : > { %p249_p4 = scmp.lt.s32.totalorder (!%p203_p3), %s766_s15, 1 }
   0x7   : > { %206 = sbr.rel (%p203_p3) target bundleno = 56 (0x38), region = 36 }
   0xc   : > { %s1047_s15 = smov (!%p249_p4, %s766_s15), 1  ;;  %v831_v0 = vld [vmem:[%s1038_s1] ss:$0 sm:$0xff]  ;;  %vm481_vm0 = vcmask 31744  }
   0xd   : > { %s644_s19 = sshll.u32 %s1047_s15, 7  ;;  %s645_s20 = sshll.u32 %s1047_s15, 8  ;;  %v844_v3 = vld [vmem:[%s1039_s2] ss:$0 sm:$0xff] }
   0xe   : > { %s826_s23 = scalar_lea.vmem %s1037_s0, %s644_s19  ;;  %s839_s28 = scalar_lea.vmem %s1040_s3, %s645_s20 }
   0xf   : > { %v648_v1 = vld [vmem:[%s826_s23] sm:$0xff]   ;;  %v711_v5 = vld [vmem:[%s826_s23 + $0x8] sm:$0xff]   ;;  %v712_v8 = vld [vmem:[%s826_s23 + $0x10] sm:$0xff]   ;;  %s866_s7 = scalar_lea.vmem %s1041_s4, %s645_s20 }
  0x10   : > { %v649_v2 = vunpack.c.l.bf16 %v648_v1  ;;  %v650_v4 = vunpack.c.h.bf16 %v648_v1  ;;  %v653_v6 = vunpack.c.l.bf16 %v711_v5  ;;  %v654_v7 = vunpack.c.h.bf16 %v711_v5  ;;  %v713_v13 = vld [vmem:[%s826_s23 + $0x18] sm:$0xff]   ;;  %v417_v14 = vld [vmem:[%s839_s28] sm:$0xff]  ;;  %v418_v15 = vld [vmem:[%s839_s28 + $0x8] sm:$0xff] }
  0x11   : > { %v657_v11 = vunpack.c.l.bf16 %v712_v8  ;;  %v658_v12 = vunpack.c.h.bf16 %v712_v8  ;;  %v661_v18 = vunpack.c.l.bf16 %v713_v13  ;;  %v662_v19 = vunpack.c.h.bf16 %v713_v13  ;;  %v419_v22 = vld [vmem:[%s839_s28 + $0x10] sm:$0xff]  ;;  %v420_v23 = vld [vmem:[%s839_s28 + $0x18] sm:$0xff]  ;;  %v421_v28 = vld [vmem:[%s839_s28 + $0x20] sm:$0xff] }
  0x12   : > { %v349_v9 = vmul.f32 %v831_v0, %v649_v2  ;;  %v350_v10 = vmul.f32 %v831_v0, %v650_v4  ;;  %v351_v16 = vmul.f32 %v831_v0, %v653_v6  ;;  %v352_v17 = vmul.f32 %v831_v0, %v654_v7  ;;  %v422_v29 = vld [vmem:[%s839_s28 + $0x28] sm:$0xff]  ;;  %v714_v32 = vld [vmem:[%s826_s23 + $0x20] sm:$0xff]   ;;  %v423_v37 = vld [vmem:[%s839_s28 + $0x30] sm:$0xff] }
  0x13   : > { %v353_v24 = vmul.f32 %v831_v0, %v657_v11  ;;  %v354_v25 = vmul.f32 %v831_v0, %v658_v12  ;;  %v355_v30 = vmul.f32 %v831_v0, %v661_v18  ;;  %v356_v31 = vmul.f32 %v831_v0, %v662_v19  ;;  %v424_v38 = vld [vmem:[%s839_s28 + $0x38] sm:$0xff]  ;;  %v715_v39 = vld [vmem:[%s826_s23 + $0x28] sm:$0xff]   ;;  %v716_v44 = vld [vmem:[%s826_s23 + $0x30] sm:$0xff]  }
  0x14   : > { %v385_v20 = vadd.f32 %v844_v3, %v349_v9  ;;  %v386_v21 = vadd.f32 %v844_v3, %v350_v10  ;;  %v387_v26 = vadd.f32 %v844_v3, %v351_v16  ;;  %v388_v27 = vadd.f32 %v844_v3, %v352_v17  ;;  %v717_v49 = vld [vmem:[%s826_s23 + $0x38] sm:$0xff]   ;;  %v425_v58 = vld [vmem:[%s839_s28 + $0x40] sm:$0xff]  ;;  %v426_v59 = vld [vmem:[%s839_s28 + $0x48] sm:$0xff] }
  0x15   : > { %v389_v35 = vadd.f32 %v844_v3, %v353_v24  ;;  %v390_v36 = vadd.f32 %v844_v3, %v354_v25  ;;  %v391_v42 = vadd.f32 %v844_v3, %v355_v30  ;;  %v392_v43 = vadd.f32 %v844_v3, %v356_v31  ;;  %v427_v4 = vld [vmem:[%s839_s28 + $0x50] sm:$0xff]  ;;  %v428_v5 = vld [vmem:[%s839_s28 + $0x58] sm:$0xff]  ;;  %v429_v10 = vld [vmem:[%s839_s28 + $0x60] sm:$0xff] }
  0x16   : > { %v449_v33 = vadd.f32 %v417_v14, %v385_v20  ;;  %v450_v34 = vadd.f32 %v418_v15, %v386_v21  ;;  %v451_v40 = vadd.f32 %v419_v22, %v387_v26  ;;  %v452_v41 = vadd.f32 %v420_v23, %v388_v27  ;;  %v430_v11 = vld [vmem:[%s839_s28 + $0x68] sm:$0xff]  ;;  %v718_v14 = vld [vmem:[%s826_s23 + $0x40] sm:$0xff]   ;;  %v431_v19 = vld [vmem:[%s839_s28 + $0x70] sm:$0xff] }
  0x17   : > { %v453_v45 = vadd.f32 %v421_v28, %v389_v35  ;;  %v454_v46 = vadd.f32 %v422_v29, %v390_v36  ;;  %v665_v47 = vunpack.c.l.bf16 %v714_v32  ;;  %v666_v48 = vunpack.c.h.bf16 %v714_v32  ;;  %v432_v20 = vld [vmem:[%s839_s28 + $0x78] sm:$0xff]  ;;  %v719_v21 = vld [vmem:[%s826_s23 + $0x48] sm:$0xff]   ;;  %v720_v26 = vld [vmem:[%s826_s23 + $0x50] sm:$0xff]  }
  0x18   : > { %482 = vst.msk [vmem:[%s866_s7] sm:$0xff] %vm481_vm0, %v449_v33  ;;  %v455_v50 = vadd.f32 %v423_v37, %v391_v42  ;;  %v456_v51 = vadd.f32 %v424_v38, %v392_v43  ;;  %v669_v52 = vunpack.c.l.bf16 %v715_v39  ;;  %v670_v53 = vunpack.c.h.bf16 %v715_v39  ;;  %v721_v31 = vld [vmem:[%s826_s23 + $0x58] sm:$0xff]  }
  0x19   : > { %483 = vst.msk [vmem:[%s866_s7 + $0x8] sm:$0xff] %vm481_vm0, %v450_v34  ;;  %v357_v54 = vmul.f32 %v831_v0, %v665_v47  ;;  %v358_v55 = vmul.f32 %v831_v0, %v666_v48  ;;  %v673_v56 = vunpack.c.l.bf16 %v716_v44  ;;  %v674_v57 = vunpack.c.h.bf16 %v716_v44  ;;  %v435_v48 = vld [vmem:[%s839_s28 + $0x90] sm:$0xff] }
  0x1a   : > { %484 = vst.msk [vmem:[%s866_s7 + $0x10] sm:$0xff] %vm481_vm0, %v451_v40  ;;  %v359_v60 = vmul.f32 %v831_v0, %v669_v52  ;;  %v360_v61 = vmul.f32 %v831_v0, %v670_v53  ;;  %v677_v62 = vunpack.c.l.bf16 %v717_v49  ;;  %v678_v63 = vunpack.c.h.bf16 %v717_v49  ;;  %v433_v40 = vld [vmem:[%s839_s28 + $0x80] sm:$0xff]  ;;  %v436_v49 = vld [vmem:[%s839_s28 + $0x98] sm:$0xff] }
  0x1b   : > { %485 = vst.msk [vmem:[%s866_s7 + $0x18] sm:$0xff] %vm481_vm0, %v452_v41  ;;  %v393_v1 = vadd.f32 %v844_v3, %v357_v54  ;;  %v394_v2 = vadd.f32 %v844_v3, %v358_v55  ;;  %v361_v6 = vmul.f32 %v831_v0, %v673_v56  ;;  %v362_v7 = vmul.f32 %v831_v0, %v674_v57  ;;  %v434_v41 = vld [vmem:[%s839_s28 + $0x88] sm:$0xff]  ;;  %v437_v54 = vld [vmem:[%s839_s28 + $0xa0] sm:$0xff] }
  0x1c   : > { %486 = vst.msk [vmem:[%s866_s7 + $0x20] sm:$0xff] %vm481_vm0, %v453_v45  ;;  %v395_v8 = vadd.f32 %v844_v3, %v359_v60  ;;  %v396_v9 = vadd.f32 %v844_v3, %v360_v61  ;;  %v363_v12 = vmul.f32 %v831_v0, %v677_v62  ;;  %v364_v13 = vmul.f32 %v831_v0, %v678_v63  ;;  %v438_v55 = vld [vmem:[%s839_s28 + $0xa8] sm:$0xff]  ;;  %v439_v63 = vld [vmem:[%s839_s28 + $0xb0] sm:$0xff] }
  0x1d   : > { %487 = vst.msk [vmem:[%s866_s7 + $0x28] sm:$0xff] %vm481_vm0, %v454_v46  ;;  %v457_v15 = vadd.f32 %v425_v58, %v393_v1  ;;  %v458_v16 = vadd.f32 %v426_v59, %v394_v2  ;;  %v397_v17 = vadd.f32 %v844_v3, %v361_v6  ;;  %v398_v18 = vadd.f32 %v844_v3, %v362_v7  ;;  %v722_v58 = vld [vmem:[%s826_s23 + $0x60] sm:$0xff]   ;;  %v440_v1 = vld [vmem:[%s839_s28 + $0xb8] sm:$0xff]  ;;  %v723_v2 = vld [vmem:[%s826_s23 + $0x68] sm:$0xff]  }
  0x1e   : > { %488 = vst.msk [vmem:[%s866_s7 + $0x30] sm:$0xff] %vm481_vm0, %v455_v50  ;;  %v459_v22 = vadd.f32 %v427_v4, %v395_v8  ;;  %v460_v23 = vadd.f32 %v428_v5, %v396_v9  ;;  %v399_v24 = vadd.f32 %v844_v3, %v363_v12  ;;  %v400_v25 = vadd.f32 %v844_v3, %v364_v13  ;;  %v724_v8 = vld [vmem:[%s826_s23 + $0x70] sm:$0xff]   ;;  %v725_v13 = vld [vmem:[%s826_s23 + $0x78] sm:$0xff]  }
  0x1f   : > { %489 = vst.msk [vmem:[%s866_s7 + $0x38] sm:$0xff] %vm481_vm0, %v456_v51  ;;  %v461_v27 = vadd.f32 %v429_v10, %v397_v17  ;;  %v462_v28 = vadd.f32 %v430_v11, %v398_v18  ;;  %v681_v29 = vunpack.c.l.bf16 %v718_v14  ;;  %v682_v30 = vunpack.c.h.bf16 %v718_v14 }
  0x20   : > { %490 = vst.msk [vmem:[%s866_s7 + $0x40] sm:$0xff] %vm481_vm0, %v457_v15  ;;  %v463_v32 = vadd.f32 %v431_v19, %v399_v24  ;;  %v464_v33 = vadd.f32 %v432_v20, %v400_v25  ;;  %v685_v34 = vunpack.c.l.bf16 %v719_v21  ;;  %v686_v35 = vunpack.c.h.bf16 %v719_v21 }
  0x21   : > { %491 = vst.msk [vmem:[%s866_s7 + $0x48] sm:$0xff] %vm481_vm0, %v458_v16  ;;  %v365_v36 = vmul.f32 %v831_v0, %v681_v29  ;;  %v366_v37 = vmul.f32 %v831_v0, %v682_v30  ;;  %v689_v38 = vunpack.c.l.bf16 %v720_v26  ;;  %v690_v39 = vunpack.c.h.bf16 %v720_v26  ;;  %v443_v30 = vld [vmem:[%s839_s28 + $0xd0] sm:$0xff] }
  0x22   : > { %492 = vst.msk [vmem:[%s866_s7 + $0x50] sm:$0xff] %vm481_vm0, %v459_v22  ;;  %v367_v42 = vmul.f32 %v831_v0, %v685_v34  ;;  %v368_v43 = vmul.f32 %v831_v0, %v686_v35  ;;  %v693_v44 = vunpack.c.l.bf16 %v721_v31  ;;  %v694_v45 = vunpack.c.h.bf16 %v721_v31  ;;  %v441_v22 = vld [vmem:[%s839_s28 + $0xc0] sm:$0xff]  ;;  %v444_v31 = vld [vmem:[%s839_s28 + $0xd8] sm:$0xff] }
  0x23   : > { %493 = vst.msk [vmem:[%s866_s7 + $0x58] sm:$0xff] %vm481_vm0, %v460_v23  ;;  %v401_v46 = vadd.f32 %v844_v3, %v365_v36  ;;  %v402_v47 = vadd.f32 %v844_v3, %v366_v37  ;;  %v369_v50 = vmul.f32 %v831_v0, %v689_v38  ;;  %v370_v51 = vmul.f32 %v831_v0, %v690_v39  ;;  %v442_v23 = vld [vmem:[%s839_s28 + $0xc8] sm:$0xff]  ;;  %v445_v36 = vld [vmem:[%s839_s28 + $0xe0] sm:$0xff] }
  0x24   : > { %494 = vst.msk [vmem:[%s866_s7 + $0x60] sm:$0xff] %vm481_vm0, %v461_v27  ;;  %v403_v52 = vadd.f32 %v844_v3, %v367_v42  ;;  %v404_v53 = vadd.f32 %v844_v3, %v368_v43  ;;  %v371_v56 = vmul.f32 %v831_v0, %v693_v44  ;;  %v372_v57 = vmul.f32 %v831_v0, %v694_v45  ;;  %v446_v43 = vld [vmem:[%s839_s28 + $0xe8] sm:$0xff] }
  0x25   : > { %495 = vst.msk [vmem:[%s866_s7 + $0x68] sm:$0xff] %vm481_vm0, %v462_v28  ;;  %v465_v59 = vadd.f32 %v433_v40, %v401_v46  ;;  %v466_v60 = vadd.f32 %v434_v41, %v402_v47  ;;  %v405_v61 = vadd.f32 %v844_v3, %v369_v50  ;;  %v406_v62 = vadd.f32 %v844_v3, %v370_v51  ;;  %v447_v46 = vld [vmem:[%s839_s28 + $0xf0] sm:$0xff] }
  0x26   : > { %496 = vst.msk [vmem:[%s866_s7 + $0x70] sm:$0xff] %vm481_vm0, %v463_v32  ;;  %v467_v4 = vadd.f32 %v435_v48, %v403_v52  ;;  %v468_v5 = vadd.f32 %v436_v49, %v404_v53  ;;  %v407_v6 = vadd.f32 %v844_v3, %v371_v56  ;;  %v408_v7 = vadd.f32 %v844_v3, %v372_v57  ;;  %v448_v49 = vld [vmem:[%s839_s28 + $0xf8] sm:$0xff] }
  0x27   : > { %497 = vst.msk [vmem:[%s866_s7 + $0x78] sm:$0xff] %vm481_vm0, %v464_v33  ;;  %v469_v9 = vadd.f32 %v437_v54, %v405_v61  ;;  %v470_v10 = vadd.f32 %v438_v55, %v406_v62  ;;  %v697_v11 = vunpack.c.l.bf16 %v722_v58  ;;  %v698_v12 = vunpack.c.h.bf16 %v722_v58 }
  0x28   : > { %498 = vst.msk [vmem:[%s866_s7 + $0x80] sm:$0xff] %vm481_vm0, %v465_v59  ;;  %v471_v14 = vadd.f32 %v439_v63, %v407_v6  ;;  %v472_v15 = vadd.f32 %v440_v1, %v408_v7  ;;  %v701_v16 = vunpack.c.l.bf16 %v723_v2  ;;  %v702_v17 = vunpack.c.h.bf16 %v723_v2 }
  0x29   : > { %499 = vst.msk [vmem:[%s866_s7 + $0x88] sm:$0xff] %vm481_vm0, %v466_v60  ;;  %v373_v18 = vmul.f32 %v831_v0, %v697_v11  ;;  %v374_v19 = vmul.f32 %v831_v0, %v698_v12  ;;  %v705_v20 = vunpack.c.l.bf16 %v724_v8  ;;  %v706_v21 = vunpack.c.h.bf16 %v724_v8 }
  0x2a   : > { %500 = vst.msk [vmem:[%s866_s7 + $0x90] sm:$0xff] %vm481_vm0, %v467_v4  ;;  %v375_v24 = vmul.f32 %v831_v0, %v701_v16  ;;  %v376_v25 = vmul.f32 %v831_v0, %v702_v17  ;;  %v709_v26 = vunpack.c.l.bf16 %v725_v13  ;;  %v710_v27 = vunpack.c.h.bf16 %v725_v13 }
  0x2b   : > { %501 = vst.msk [vmem:[%s866_s7 + $0x98] sm:$0xff] %vm481_vm0, %v468_v5  ;;  %v409_v28 = vadd.f32 %v844_v3, %v373_v18  ;;  %v410_v29 = vadd.f32 %v844_v3, %v374_v19  ;;  %v377_v32 = vmul.f32 %v831_v0, %v705_v20  ;;  %v378_v33 = vmul.f32 %v831_v0, %v706_v21 }
  0x2c   : > { %502 = vst.msk [vmem:[%s866_s7 + $0xa0] sm:$0xff] %vm481_vm0, %v469_v9  ;;  %v411_v34 = vadd.f32 %v844_v3, %v375_v24  ;;  %v412_v35 = vadd.f32 %v844_v3, %v376_v25  ;;  %v379_v37 = vmul.f32 %v831_v0, %v709_v26  ;;  %v380_v38 = vmul.f32 %v831_v0, %v710_v27 }
  0x2d   : > { %503 = vst.msk [vmem:[%s866_s7 + $0xa8] sm:$0xff] %vm481_vm0, %v470_v10  ;;  %v473_v39 = vadd.f32 %v441_v22, %v409_v28  ;;  %v474_v40 = vadd.f32 %v442_v23, %v410_v29  ;;  %v413_v41 = vadd.f32 %v844_v3, %v377_v32  ;;  %v414_v42 = vadd.f32 %v844_v3, %v378_v33 }
  0x2e   : > { %504 = vst.msk [vmem:[%s866_s7 + $0xb0] sm:$0xff] %vm481_vm0, %v471_v14  ;;  %v475_v44 = vadd.f32 %v443_v30, %v411_v34  ;;  %v476_v45 = vadd.f32 %v444_v31, %v412_v35  ;;  %v415_v0 = vadd.f32 %v844_v3, %v379_v37  ;;  %v416_v47 = vadd.f32 %v844_v3, %v380_v38 }
  0x2f   : > { %505 = vst.msk [vmem:[%s866_s7 + $0xb8] sm:$0xff] %vm481_vm0, %v472_v15  ;;  %v477_v48 = vadd.f32 %v445_v36, %v413_v41  ;;  %v478_v50 = vadd.f32 %v446_v43, %v414_v42 }
  0x30   : > { %506 = vst.msk [vmem:[%s866_s7 + $0xc0] sm:$0xff] %vm481_vm0, %v473_v39  ;;  %v479_v51 = vadd.f32 %v447_v46, %v415_v0  ;;  %v480_v52 = vadd.f32 %v448_v49, %v416_v47 }
  0x31   : > { %507 = vst.msk [vmem:[%s866_s7 + $0xc8] sm:$0xff] %vm481_vm0, %v474_v40 }
  0x32   : > { %508 = vst.msk [vmem:[%s866_s7 + $0xd0] sm:$0xff] %vm481_vm0, %v475_v44 }
  0x33   : > { %509 = vst.msk [vmem:[%s866_s7 + $0xd8] sm:$0xff] %vm481_vm0, %v476_v45 }
  0x34   : > { %510 = vst.msk [vmem:[%s866_s7 + $0xe0] sm:$0xff] %vm481_vm0, %v477_v48 }
  0x35   : > { %511 = vst.msk [vmem:[%s866_s7 + $0xe8] sm:$0xff] %vm481_vm0, %v478_v50 }
  0x36   : > { %512 = vst.msk [vmem:[%s866_s7 + $0xf0] sm:$0xff] %vm481_vm0, %v479_v51 }
  0x37   : > { %513 = vst.msk [vmem:[%s866_s7 + $0xf8] sm:$0xff] %vm481_vm0, %v480_v52 }
  0x38 PF: > { %s14_s17 = sadd.s32 1, %s774_s17   ;;  %s1042_s15 = smov %s770_s16 }
  0x39   : > { %p11_p5 = scmp.ge.s32.totalorder %s14_s17, 4   ;;  %s1043_s16 = smov %s1045_s18 }
  0x3b   :  { %13 = sbr.rel (!%p11_p5) target bundleno = 2 (0x2), region = 69 }

// kernel: _lambda_.3
= control target key start
LH: loop header
LB: loop body
LE: loop exit
PB: predicated region body
PF: predicated region fallthrough
CT: control target
= control target key end

     0   :  { %s4372_s18 = smov 0   ;;  %s4374_s19 = smov 0   ;;  %s5737_s0 = inlined_call_operand.vmem [shape: f32[2,16,16,128], index: 0, kind: input, shape index: {}, may-alias: {0,1,2}]   ;;  %s5738_s1 = inlined_call_operand.vmem [shape: f32[2,16,16,128], index: 1, kind: input, shape index: {}, may-alias: {0,1,2}]   ;;  %s5739_s2 = inlined_call_operand.vmem [shape: f32[2,16,16,128], index: 2, kind: input, shape index: {}, may-alias: {0,1,2}]   ;;  %s5740_s3 = inlined_call_operand.vmem [shape: bf16[3,384,128], index: 3, kind: input, shape index: {}]   ;;  %s5741_s4 = inlined_call_operand.vmem [shape: bf16[2,16,16,128], index: 4, kind: output, shape index: {0}]   ;;  %s5742_s5 = inlined_call_operand.vmem [shape: f32[2,1,2,128], index: 5, kind: output, shape index: {1}]  }
   0x1   :  { %s4376_s20 = smov 0  }
   0x2 LB: > { %s28_s21 = sadd.s32 1, %s4336_s19  ;;  %p3557_p0 = scmp.ge.s32.totalorder %s4340_s20, 1  ;;  %s4340_s20 = sphi %s4376_s20, %s16_s20   ;;  %s4336_s19 = sphi %s4374_s19, %s5925_s19   ;;  %s4332_s18 = sphi %s4372_s18, %s5924_s18  }
   0x3   : > { %p30_p1 = scmp.ge.s32.totalorder %s28_s21, 2  ;;  %p278_p2 = scmp.lt.s32.totalorder %s4340_s20, 3 }
   0x5   : > { %s5927_s21 = smov (%p30_p1, %s28_s21), 0  ;;  %p279_p3 = pnand %p3557_p0, %p278_p2 }
   0x7   : > { %282 = sbr.rel (%p279_p3) target bundleno = 783 (0x30f), region = 36 }
   0xc   : > { %v4026_v0 = vld [vmem:[%s5740_s3 + $0xf8] sm:$0xff]  ;;  %p353_p4 = scmp.lt.s32.totalorder %s4332_s18, 1  ;;  %v4025_v1 = vld [vmem:[%s5740_s3 + $0xf0] sm:$0xff]  ;;  %v4024_v2 = vld [vmem:[%s5740_s3 + $0xe8] sm:$0xff]  ;;  %vm484_vm0 = vsmask.f32 256 }
   0xd   : > { %2032 = vmatpush.bf16.msra.mxu0 %v4026_v0  ;;  %4235 = vmatpush.bf16.msra.mxu1 %v4026_v0  ;;  %vm485_vm1 = vsmask.f32 4368  ;;  %vm847_vm2 = vcmask 1043456   ;;  %vm848_vm3 = vsmask.f32 7938  ;;  %v4023_v19 = vld [vmem:[%s5740_s3 + $0xe0] sm:$0xff] }
   0xe   : > { %s5929_s18 = smov (!%p353_p4, %s4332_s18), 1  ;;  %4236 = vmatpush.bf16.msra.mxu2 %v4026_v0  ;;  %4237 = vmatpush.bf16.msra.mxu3 %v4026_v0  ;;  %vm4441_vm4 = vmor %vm484_vm0, %vm485_vm1  ;;  %v5798_v24 = vmov 0  ;;  %v859_v27 = vld [vmem:[#allocation2 + $0xc] sm:$0xf]  ;;  %v5801_v29 = vmov 0  ;;  %v4022_v40 = vld [vmem:[%s5740_s3 + $0xd8] sm:$0xff] }
   0xf   : > { %s4399_s26 = sshll.u32 %s5929_s18, 8  ;;  %v5799_v24 = vsel %vm4441_vm4, 4294967295, %v5798_v24  ;;  %vm4452_vm5 = vmand %vm847_vm2, %vm848_vm3  ;;  %v887_v38 = vld [vmem:[#allocation2 + $0x3c] sm:$0xf]  ;;  %v915_v49 = vld [vmem:[#allocation2 + $0x6c] sm:$0xf] }
  0x10   : > { %s4408_s6 = scalar_lea.vmem %s5738_s1, %s4399_s26  ;;  %5800 = vst [vmem:[#allocation3_spill] sm:$0xff] %v5799_v24  ;;  %v5802_v29 = vsel %vm4452_vm5, 4294967295, %v5801_v29  ;;  %v4021_v57 = vld [vmem:[%s5740_s3 + $0xd0] sm:$0xff]  ;;  %vm854_vm6 = vcmask 1040384   ;;  %v943_v63 = vld [vmem:[#allocation2 + $0x9c] sm:$0xf] }
  0x11   : > { %2033 = vmatpush.bf16.msra.mxu0 %v4025_v1  ;;  %4238 = vmatpush.bf16.msra.mxu1 %v4025_v1  ;;  %v414_v3 = vld [vmem:[%s4408_s6] sm:$0xff]  ;;  %v415_v4 = vld [vmem:[%s4408_s6 + $0x8] sm:$0xff]  ;;  %5803 = vst [vmem:[#allocation4_spill] sm:$0xff] %v5802_v29  ;;  %v416_v51 = vld [vmem:[%s4408_s6 + $0x10] sm:$0xff]  ;;  %s3990_s17 = sadd.s32 16, %s4399_s26  ;;  %vm1718_vm10 = vcmask 1046528  }
  0x12   : > { %v422_v5 = vld [vmem:[%s4408_s6 + $0x40] sm:$0xff]  ;;  %4239 = vmatpush.bf16.msra.mxu2 %v4025_v1  ;;  %4240 = vmatpush.bf16.msra.mxu3 %v4025_v1  ;;  %v4413_v6 = vpack.c.bf16 %v414_v3, %v414_v3  ;;  %v4415_v7 = vpack.c.bf16 %v415_v4, %v415_v4  ;;  %v423_v8 = vld [vmem:[%s4408_s6 + $0x48] sm:$0xff]  ;;  %v417_v52 = vld [vmem:[%s4408_s6 + $0x18] sm:$0xff]  ;;  %v4502_v0 = vpack.c.bf16 %v416_v51, %v416_v51  ;;  %s361_s28 = scalar_lea.vmem %s5737_s0, %s3990_s17  ;;  %vm1429_vm9 = vsmask.f32 7424  ;;  %s3994_s11 = sshll.u32 %s5929_s18, 7 }
  0x13   : > { %v4418_v9 = vpack.c.bf16 %v422_v5, %v422_v5  ;;  %v430_v10 = vld [vmem:[%s4408_s6 + $0x80] sm:$0xff]  ;;  %v431_v11 = vld [vmem:[%s4408_s6 + $0x88] sm:$0xff]  ;;  %v4422_v12 = vpack.c.bf16 %v423_v8, %v423_v8  ;;  %v4504_v1 = vpack.c.bf16 %v417_v52, %v417_v52  ;;  %vm4520_vm7 = vmand %vm854_vm6, %vm484_vm0  ;;  %s5638_s14 = scalar_lea.vmem %s5741_s4, %s3994_s11  ;;  %s3993_s15 = sadd.s32 224, %s4399_s26 }
  0x14   : > { %v4424_v13 = vpack.c.bf16 %v430_v10, %v430_v10  ;;  %v4426_v14 = vpack.c.bf16 %v431_v11, %v431_v11  ;;  %v505_v15 = vshrl.u32 %v4413_v6, 16  ;;  %v508_v16 = vshll.u32 %v4413_v6, 16  ;;  %v438_v34 = vld [vmem:[%s4408_s6 + $0xc0] sm:$0xff]  ;;  %v439_v45 = vld [vmem:[%s4408_s6 + $0xc8] sm:$0xff]  ;;  %v425_v10 = vld [vmem:[%s4408_s6 + $0x58] sm:$0xff]  ;;  %s389_s22 = scalar_lea.vmem %s5739_s2, %s3993_s15  ;;  %s3566_s26 = sshll.u32 %s5929_s18, 1 }
  0x15   : > { %v513_v17 = vshrl.u32 %v4415_v7, 16  ;;  %v5752_v18 = vshll.u32 %v4415_v7, 16  ;;  %2034 = vmatpush.bf16.msra.mxu0 %v4024_v2  ;;  %4241 = vmatpush.bf16.msra.mxu1 %v4024_v2  ;;  %v573_v20 = vshrl.u32 %v4418_v9, 16  ;;  %v576_v21 = vshll.u32 %v4418_v9, 16  ;;  %v433_v51 = vld [vmem:[%s4408_s6 + $0x98] sm:$0xff]  ;;  %v4019_v52 = vld [vmem:[%s5740_s3 + $0xc0] sm:$0xff]  ;;  %vm4996_vm8 = vmand %vm854_vm6, %vm848_vm3  ;;  %s411_s25 = scalar_lea.vmem %s5742_s5, %s3566_s26 }
  0x16   : > { %v581_v22 = vshrl.u32 %v4422_v12, 16  ;;  %v5749_v23 = vshll.u32 %v4422_v12, 16  ;;  %4242 = vmatpush.bf16.msra.mxu2 %v4024_v2  ;;  %4243 = vmatpush.bf16.msra.mxu3 %v4024_v2  ;;  %v507_v25 = vrot.slane %v505_v15, 7  ;;  %v641_v28 = vshrl.u32 %v4424_v13, 16  ;;  %v424_v2 = vld [vmem:[%s4408_s6 + $0x50] sm:$0xff] }
  0x17   : > { %v4447_v26 = vrot.slane %v513_v17, 7  ;;  %v575_v30 = vrot.slane %v573_v20, 7  ;;  %v644_v32 = vshll.u32 %v4424_v13, 16  ;;  %v649_v33 = vshrl.u32 %v4426_v14, 16 }
  0x18   : > { %v4458_v31 = vrot.slane %v581_v22, 7  ;;  %v510_v35 = vor.u32 %v508_v16, %v507_v25  ;;  %v511_v36 = vrot.slane %v507_v25, 4  ;;  %v5746_v39 = vshll.u32 %v4426_v14, 16 }
  0x19   : > { %v518_v37 = vor.u32 %v5752_v18, %v4447_v26  ;;  %2035 = vmatpush.bf16.msra.mxu0 %v4023_v19  ;;  %4244 = vmatpush.bf16.msra.mxu1 %v4023_v19  ;;  %v578_v41 = vor.u32 %v576_v21, %v575_v30  ;;  %v579_v42 = vrot.slane %v575_v30, 4  ;;  %v643_v44 = vrot.slane %v641_v28, 7 }
  0x1a   : > { %v586_v43 = vor.u32 %v5749_v23, %v4458_v31  ;;  %4245 = vmatpush.bf16.msra.mxu2 %v4023_v19  ;;  %4246 = vmatpush.bf16.msra.mxu3 %v4023_v19  ;;  %v860_v47 = vsel %vm4452_vm5, %v510_v35, %v859_v27  ;;  %v4480_v48 = vrot.slane %v649_v33, 7  ;;  %v4482_v50 = vpack.c.bf16 %v438_v34, %v438_v34  ;;  %v4037_v23 = vld [vmem:[%s5740_s3 + $0x150] sm:$0xff] }
  0x1b   : > { %v519_v46 = vsel %vm4441_vm4, %v511_v36, %v518_v37  ;;  %861 = vst [vmem:[#allocation2 + $0xc] sm:$0xf] %v860_v47  ;;  %v888_v54 = vsel %vm4452_vm5, %v578_v41, %v887_v38  ;;  %v646_v55 = vor.u32 %v644_v32, %v643_v44  ;;  %v647_v56 = vrot.slane %v643_v44, 4  ;;  %v4020_v32 = vld [vmem:[%s5740_s3 + $0xc8] sm:$0xff]  ;;  %v432_v36 = vld [vmem:[%s4408_s6 + $0x90] sm:$0xff] }
  0x1c   : > { %v587_v53 = vsel %vm4441_vm4, %v579_v42, %v586_v43  ;;  %862 = vst [vmem:[#allocation2 + $0x10] sm:$0xf] %v519_v46  ;;  %v654_v58 = vor.u32 %v5746_v39, %v4480_v48  ;;  %v4496_v59 = vpack.c.bf16 %v439_v45, %v439_v45  ;;  %v709_v60 = vshrl.u32 %v4482_v50, 16  ;;  %v866_v41 = vld [vmem:[#allocation2 + $0x18] sm:$0xf] }
  0x1d   : > { %v712_v61 = vshll.u32 %v4482_v50, 16  ;;  %2036 = vmatpush.bf16.msra.mxu0 %v4022_v40  ;;  %4247 = vmatpush.bf16.msra.mxu1 %v4022_v40  ;;  %889 = vst [vmem:[#allocation2 + $0x3c] sm:$0xf] %v888_v54  ;;  %v916_v62 = vsel %vm4452_vm5, %v646_v55, %v915_v49  ;;  %v522_v11 = vshrl.u32 %v4502_v0, 16  ;;  %v525_v16 = vshll.u32 %v4502_v0, 16  ;;  %v4032_v0 = vld [vmem:[%s5740_s3 + $0x128] sm:$0xff] }
  0x1e   : > { %4248 = vmatpush.bf16.msra.mxu2 %v4022_v40  ;;  %4249 = vmatpush.bf16.msra.mxu3 %v4022_v40  ;;  %890 = vst [vmem:[#allocation2 + $0x40] sm:$0xf] %v587_v53  ;;  %v655_v3 = vsel %vm4441_vm4, %v647_v56, %v654_v58  ;;  %v711_v4 = vrot.slane %v709_v60, 7  ;;  %v717_v5 = vshrl.u32 %v4496_v59, 16  ;;  %v5744_v8 = vshll.u32 %v4496_v59, 16  ;;  %v4042_v56 = vld [vmem:[%s5740_s3 + $0x178] sm:$0xff] }
  0x1f   : > { %917 = vst [vmem:[#allocation2 + $0x6c] sm:$0xf] %v916_v62  ;;  %v530_v17 = vshrl.u32 %v4504_v1, 16  ;;  %v5751_v19 = vshll.u32 %v4504_v1, 16  ;;  %v4526_v30 = vpack.c.bf16 %v424_v2, %v424_v2  ;;  %v524_v33 = vrot.slane %v522_v11, 7  ;;  %v440_v62 = vld [vmem:[%s4408_s6 + $0xd0] sm:$0xff] }
  0x20   : > { %918 = vst [vmem:[#allocation2 + $0x70] sm:$0xf] %v655_v3  ;;  %v714_v22 = vor.u32 %v712_v61, %v711_v4  ;;  %v715_v25 = vrot.slane %v711_v4, 4  ;;  %v4524_v27 = vrot.slane %v717_v5, 7  ;;  %v4535_v35 = vpack.c.bf16 %v425_v10, %v425_v10  ;;  %v894_v49 = vld [vmem:[#allocation2 + $0x48] sm:$0xf] }
  0x21   : > { %2037 = vmatpush.bf16.msra.mxu0 %v4021_v57  ;;  %4250 = vmatpush.bf16.msra.mxu1 %v4021_v57  ;;  %v4533_v34 = vrot.slane %v530_v17, 7  ;;  %v590_v42 = vshrl.u32 %v4526_v30, 16  ;;  %v593_v43 = vshll.u32 %v4526_v30, 16  ;;  %v527_v45 = vor.u32 %v525_v16, %v524_v33  ;;  %v4010_v10 = vld [vmem:[%s5740_s3 + $0x78] sm:$0xff]  ;;  %v929_v39 = vld [vmem:[#allocation2 + $0x84] sm:$0xf] }
  0x22   : > { %4251 = vmatpush.bf16.msra.mxu2 %v4021_v57  ;;  %4252 = vmatpush.bf16.msra.mxu3 %v4021_v57  ;;  %v1035_v37 = vld [vmem:[#allocation2 + $0xc] sm:$0x1]  ;;  %v722_v38 = vor.u32 %v5744_v8, %v4524_v27  ;;  %v944_v40 = vsel %vm4452_vm5, %v714_v22, %v943_v63  ;;  %v528_v46 = vrot.slane %v524_v33, 4  ;;  %v4560_v54 = vpack.c.bf16 %v432_v36, %v432_v36  ;;  %v4002_v57 = vld [vmem:[%s5740_s3 + $0x38] sm:$0xff] }
  0x23   : > { %v1036_v44 = vsel %vm4520_vm7, %v505_v15, %v1035_v37  ;;  %945 = vst [vmem:[#allocation2 + $0x9c] sm:$0xf] %v944_v40  ;;  %v535_v47 = vor.u32 %v5751_v19, %v4533_v34  ;;  %v592_v15 = vrot.slane %v590_v42, 7  ;;  %v867_v61 = vsel %vm4452_vm5, %v527_v45, %v866_v41  ;;  %v441_v33 = vld [vmem:[%s4408_s6 + $0xd8] sm:$0xff]  ;;  %v3997_v19 = vld [vmem:[%s5740_s3 + $0x10] sm:$0xff] }
  0x24   : > { %1037 = vst [vmem:[#allocation2 + $0xc] sm:$0x1] %v1036_v44  ;;  %v1047_v53 = vld [vmem:[#allocation2 + $0x3c] sm:$0x1]  ;;  %v723_v6 = vsel %vm4441_vm4, %v715_v25, %v722_v38  ;;  %v598_v3 = vshrl.u32 %v4535_v35, 16  ;;  %v4581_v4 = vpack.c.bf16 %v433_v51, %v433_v51  ;;  %v5747_v16 = vshll.u32 %v4535_v35, 16 }
  0x25   : > { %2038 = vmatpush.bf16.msra.mxu0 %v4020_v32  ;;  %4253 = vmatpush.bf16.msra.mxu1 %v4020_v32  ;;  %v1048_v55 = vsel %vm4520_vm7, %v573_v20, %v1047_v53  ;;  %946 = vst [vmem:[#allocation2 + $0xa0] sm:$0xf] %v723_v6  ;;  %v536_v58 = vsel %vm4441_vm4, %v528_v46, %v535_v47  ;;  %v4034_v20 = vld [vmem:[%s5740_s3 + $0x138] sm:$0xff]  ;;  %v596_v2 = vrot.slane %v592_v15, 4  ;;  %v658_v17 = vshrl.u32 %v4560_v54, 16  ;;  %v418_v44 = vld [vmem:[%s4408_s6 + $0x20] sm:$0xff] }
  0x26   : > { %4254 = vmatpush.bf16.msra.mxu2 %v4020_v32  ;;  %4255 = vmatpush.bf16.msra.mxu3 %v4020_v32  ;;  %1049 = vst [vmem:[#allocation2 + $0x3c] sm:$0x1] %v1048_v55  ;;  %v1059_v9 = vld [vmem:[#allocation2 + $0x6c] sm:$0x1]  ;;  %v595_v63 = vor.u32 %v593_v43, %v592_v15  ;;  %v661_v22 = vshll.u32 %v4560_v54, 16  ;;  %v4593_v25 = vrot.slane %v598_v3, 7  ;;  %v4602_v38 = vpack.c.bf16 %v440_v62, %v440_v62 }
  0x27   : > { %v1060_v5 = vsel %vm4520_vm7, %v641_v28, %v1059_v9  ;;  %868 = vst [vmem:[#allocation2 + $0x18] sm:$0xf] %v867_v61  ;;  %v666_v28 = vshrl.u32 %v4581_v4, 16  ;;  %v5745_v32 = vshll.u32 %v4581_v4, 16  ;;  %v660_v36 = vrot.slane %v658_v17, 7  ;;  %v4001_v51 = vld [vmem:[%s5740_s3 + $0x30] sm:$0xff] }
  0x28   : > { %1061 = vst [vmem:[#allocation2 + $0x6c] sm:$0x1] %v1060_v5  ;;  %v895_v13 = vsel %vm4452_vm5, %v595_v63, %v894_v49  ;;  %v922_v37 = vld [vmem:[#allocation2 + $0x78] sm:$0xf]  ;;  %v603_v41 = vor.u32 %v5747_v16, %v4593_v25  ;;  %v4612_v46 = vld [vmem:[#allocation2 + $0xc] sm:$0xf0]  ;;  %v4624_v6 = vpack.c.bf16 %v441_v33, %v441_v33 }
  0x29   : > { %2039 = vmatpush.bf16.msra.mxu0 %v4019_v52  ;;  %4256 = vmatpush.bf16.msra.mxu1 %v4019_v52  ;;  %869 = vst [vmem:[#allocation2 + $0x1c] sm:$0xf] %v536_v58  ;;  %v4607_v43 = vrot.slane %v666_v28, 7  ;;  %v4041_v49 = vld [vmem:[%s5740_s3 + $0x170] sm:$0xff]  ;;  %v664_v53 = vrot.slane %v660_v36, 4  ;;  %v419_v55 = vld [vmem:[%s4408_s6 + $0x28] sm:$0xff] }
  0x2a   : > { %4257 = vmatpush.bf16.msra.mxu2 %v4019_v52  ;;  %4258 = vmatpush.bf16.msra.mxu3 %v4019_v52  ;;  %v1071_v40 = vld [vmem:[#allocation2 + $0x9c] sm:$0x1]  ;;  %896 = vst [vmem:[#allocation2 + $0x48] sm:$0xf] %v895_v13  ;;  %v663_v52 = vor.u32 %v661_v22, %v660_v36  ;;  %v604_v50 = vsel %vm4441_vm4, %v596_v2, %v603_v41  ;;  %v4033_v15 = vld [vmem:[%s5740_s3 + $0x130] sm:$0xff]  ;;  %v726_v61 = vshrl.u32 %v4602_v38, 16 }
  0x2b   : > { %v4610_v45 = vld [vmem:[#allocation2 + $0xc] sm:$0xff]   ;;  %v1072_v47 = vsel %vm4520_vm7, %v709_v60, %v1071_v40  ;;  %5806 = vst [vmem:[#allocation5_spill] sm:$0xff] %v4624_v6  ;;  %v671_v60 = vor.u32 %v5745_v32, %v4607_v43  ;;  %v729_v62 = vshll.u32 %v4602_v38, 16  ;;  %v734_v33 = vshrl.u32 %v4624_v6, 16  ;;  %v4007_v16 = vld [vmem:[%s5740_s3 + $0x60] sm:$0xff] }
  0x2c   : > { %1073 = vst [vmem:[#allocation2 + $0x9c] sm:$0x1] %v1072_v47  ;;  %v923_v58 = vsel %vm4452_vm5, %v663_v52, %v922_v37  ;;  %v4009_v9 = vld [vmem:[%s5740_s3 + $0x70] sm:$0xff]  ;;  %v4040_v3 = vld [vmem:[%s5740_s3 + $0x168] sm:$0xff]  ;;  %v728_v28 = vrot.slane %v726_v61, 7  ;;  %v5743_v36 = vshll.u32 %v4624_v6, 16  ;;  %2040 = vmatmul.bf16.vlgmr.msra.gmra.mxu0 %v4610_v45 }
  0x2d   : > { %2121 = vmatpush.bf16.msrb.mxu1 %v4034_v20  ;;  %2532 = vmatpush.bf16.msrb.mxu0 %v4010_v10  ;;  %897 = vst [vmem:[#allocation2 + $0x4c] sm:$0xf] %v604_v50  ;;  %v4646_v20 = vpack.c.bf16 %v418_v44, %v418_v44  ;;  %v672_v2 = vsel %vm4441_vm4, %v664_v53, %v671_v60  ;;  %v4000_v5 = vld [vmem:[%s5740_s3 + $0x28] sm:$0xff]  ;;  %v4658_v22 = vld [vmem:[#allocation2 + $0x6c] sm:$0xf0]  ;;  %v4674_v47 = vrot.slane %v734_v33, 7 }
  0x2e   : > { %2210 = vmatpush.bf16.msrb.mxu2 %v4042_v56  ;;  %2443 = vmatpush.bf16.msrb.mxu3 %v4002_v57  ;;  %v4635_v56 = vld [vmem:[#allocation2 + $0x3c] sm:$0xff]   ;;  %v1038_v63 = vld [vmem:[#allocation2 + $0x18] sm:$0x1]  ;;  %924 = vst [vmem:[#allocation2 + $0x78] sm:$0xf] %v923_v58  ;;  %v731_v41 = vor.u32 %v729_v62, %v728_v28  ;;  %v732_v44 = vrot.slane %v728_v28, 4 }
  0x2f   : > { %5807 = vst [vmem:[#allocation6_spill] sm:$0xff] %v4635_v56  ;;  %v4637_v57 = vld [vmem:[#allocation2 + $0x3c] sm:$0xf0]  ;;  %v4656_v10 = vld [vmem:[#allocation2 + $0x6c] sm:$0xff]   ;;  %v1039_v13 = vsel %vm4520_vm7, %v522_v11, %v1038_v63  ;;  %v950_v37 = vld [vmem:[#allocation2 + $0xa8] sm:$0xf]  ;;  %v4672_v11 = vpack.c.bf16 %v419_v55, %v419_v55  ;;  %2060 = vmatmul.bf16.vlgmr.msra.gmra.mxu1 %v4635_v56  ;;  %v739_v58 = vor.u32 %v5743_v36, %v4674_v47 }
  0x30   : > { %925 = vst [vmem:[#allocation2 + $0x7c] sm:$0xf] %v672_v2  ;;  %v5757_v52 = vshrl.u32 %v4646_v20, 16  ;;  %v542_v53 = vshll.u32 %v4646_v20, 16  ;;  %v426_v50 = vld [vmem:[%s4408_s6 + $0x60] sm:$0xff]  ;;  %v427_v60 = vld [vmem:[%s4408_s6 + $0x68] sm:$0xff]  ;;  %v951_v30 = vsel %vm4452_vm5, %v731_v41, %v950_v37  ;;  %2080 = vmatmul.bf16.vlgmr.msra.gmra.mxu2 %v4656_v10 }
  0x31   : > { %1040 = vst [vmem:[#allocation2 + $0x18] sm:$0x1] %v1039_v13  ;;  %2122 = vmatpush.bf16.msrb.mxu1 %v4033_v15  ;;  %v1050_v40 = vld [vmem:[#allocation2 + $0x48] sm:$0x1]  ;;  %2533 = vmatpush.bf16.msrb.mxu0 %v4009_v9  ;;  %v4690_v55 = vld [vmem:[#allocation2 + $0x9c] sm:$0xf0]  ;;  %v740_v13 = vsel %vm4441_vm4, %v732_v44, %v739_v58  ;;  %v4713_v37 = vpack.c.bf16 %v426_v50, %v426_v50 }
  0x32   : > { %2211 = vmatpush.bf16.msrb.mxu2 %v4041_v49  ;;  %2444 = vmatpush.bf16.msrb.mxu3 %v4001_v51  ;;  %5808 = vst [vmem:[#allocation7_spill] sm:$0xff] %v4674_v47  ;;  %v4008_v49 = vld [vmem:[%s5740_s3 + $0x68] sm:$0xff]  ;;  %v1051_v51 = vsel %vm4520_vm7, %v590_v42, %v1050_v40  ;;  %v4039_v42 = vld [vmem:[%s5740_s3 + $0x160] sm:$0xff]  ;;  %v547_v9 = vshrl.u32 %v4672_v11, 16  ;;  %v541_v63 = vrot.slane %v5757_v52, 7  ;;  %v5750_v2 = vshll.u32 %v4672_v11, 16 }
  0x33   : > { %v4688_v15 = vld [vmem:[#allocation2 + $0x9c] sm:$0xff]   ;;  %5810 = vst [vmem:[#allocation9_spill] sm:$0xff] %v4690_v55  ;;  %v873_v33 = vld [vmem:[#allocation2 + $0x24] sm:$0xf]  ;;  %v4715_v40 = vpack.c.bf16 %v427_v60, %v427_v60  ;;  %v610_v50 = vshll.u32 %v4713_v37, 16  ;;  %v443_v60 = vld [vmem:[%s4408_s6 + $0xe8] sm:$0xff] }
  0x34   : > { %5809 = vst [vmem:[#allocation8_spill] sm:$0xff] %v4688_v15  ;;  %v3999_v62 = vld [vmem:[%s5740_s3 + $0x20] sm:$0xff]  ;;  %v4711_v28 = vrot.slane %v547_v9, 7  ;;  %2100 = vmatmul.bf16.vlgmr.msra.gmra.mxu3 %v4688_v15  ;;  %v901_v58 = vld [vmem:[#allocation2 + $0x54] sm:$0xf]  ;;  %v429_v52 = vld [vmem:[%s4408_s6 + $0x78] sm:$0xff] }
  0x35   : > { %1052 = vst [vmem:[#allocation2 + $0x48] sm:$0x1] %v1051_v51  ;;  %2123 = vmatpush.bf16.msrb.mxu1 %v4032_v0  ;;  %2534 = vmatpush.bf16.msrb.mxu0 %v4008_v49  ;;  %v435_v0 = vld [vmem:[%s4408_s6 + $0xa8] sm:$0xff]  ;;  %v544_v51 = vor.u32 %v542_v53, %v541_v63  ;;  %v442_v36 = vld [vmem:[%s4408_s6 + $0xe0] sm:$0xff]  ;;  %v5756_v49 = vshrl.u32 %v4713_v37, 16  ;;  %v615_v54 = vshrl.u32 %v4715_v40, 16 }
  0x36   : > { %2212 = vmatpush.bf16.msrb.mxu2 %v4040_v3  ;;  %2445 = vmatpush.bf16.msrb.mxu3 %v4000_v5  ;;  %952 = vst [vmem:[#allocation2 + $0xa8] sm:$0xf] %v951_v30  ;;  %v434_v3 = vld [vmem:[%s4408_s6 + $0xa0] sm:$0xff]  ;;  %v1062_v5 = vld [vmem:[#allocation2 + $0x78] sm:$0x1]  ;;  %v545_v30 = vrot.slane %v541_v63, 4  ;;  %v552_v44 = vor.u32 %v5750_v2, %v4711_v28 }
  0x37   : > { %v1063_v41 = vsel %vm4520_vm7, %v658_v17, %v1062_v5  ;;  %953 = vst [vmem:[#allocation2 + $0xac] sm:$0xf] %v740_v13  ;;  %v874_v17 = vsel %vm4452_vm5, %v544_v51, %v873_v33  ;;  %v5748_v53 = vshll.u32 %v4715_v40, 16  ;;  %v609_v63 = vrot.slane %v5756_v49, 7  ;;  %v4031_v33 = vld [vmem:[%s5740_s3 + $0x120] sm:$0xff]  ;;  %v421_v2 = vld [vmem:[%s4408_s6 + $0x38] sm:$0xff] }
  0x38   : > { %1064 = vst [vmem:[#allocation2 + $0x78] sm:$0x1] %v1063_v41  ;;  %v553_v9 = vsel %vm4441_vm4, %v545_v30, %v552_v44  ;;  %v4742_v5 = vrot.slane %v615_v54, 7  ;;  %v4744_v13 = vpack.c.bf16 %v442_v36, %v442_v36  ;;  %v4755_v30 = vpack.c.bf16 %v443_v60, %v443_v60  ;;  %v420_v44 = vld [vmem:[%s4408_s6 + $0x30] sm:$0xff]  ;;  %v4758_v36 = vld [vmem:[#allocation2 + $0x18] sm:$0xff]  }
  0x39   : > { %875 = vst [vmem:[#allocation2 + $0x24] sm:$0xf] %v874_v17  ;;  %v612_v17 = vor.u32 %v610_v50, %v609_v63  ;;  %v613_v8 = vrot.slane %v609_v63, 4  ;;  %2124 = vmatpush.bf16.msrb.mxu1 %v4031_v33  ;;  %v3998_v60 = vld [vmem:[%s5740_s3 + $0x18] sm:$0xff]  ;;  %2535 = vmatpush.bf16.msrb.mxu0 %v4007_v16  ;;  %v957_v16 = vld [vmem:[#allocation2 + $0xb4] sm:$0xf] }
  0x3a   : > { %2213 = vmatpush.bf16.msrb.mxu2 %v4039_v42  ;;  %2446 = vmatpush.bf16.msrb.mxu3 %v3999_v62  ;;  %v4734_v42 = vpack.c.bf16 %v434_v3, %v434_v3  ;;  %v4736_v62 = vpack.c.bf16 %v435_v0, %v435_v0  ;;  %v4038_v3 = vld [vmem:[%s5740_s3 + $0x158] sm:$0xff]  ;;  %876 = vst [vmem:[#allocation2 + $0x28] sm:$0xf] %v553_v9  ;;  %v5755_v33 = vshrl.u32 %v4744_v13, 16  ;;  %v964_v47 = vld [vmem:[#allocation2 + $0xc0] sm:$0xf] }
  0x3b   : > { %5811 = vst [vmem:[#allocation10_spill] sm:$0xff] %v4755_v30  ;;  %v620_v32 = vor.u32 %v5748_v53, %v4742_v5 }
  0x3c   : > { %v5753_v0 = vshrl.u32 %v4734_v42, 16  ;;  %v678_v41 = vshll.u32 %v4734_v42, 16  ;;  %v683_v51 = vshrl.u32 %v4736_v62, 16  ;;  %v5754_v9 = vshll.u32 %v4736_v62, 16  ;;  %2045 = vmatmul.bf16.gmra.mxu0 %v4758_v36 }
  0x3d   : > { %v1074_v54 = vld [vmem:[#allocation2 + $0xa8] sm:$0x1]  ;;  %v621_v38 = vsel %vm4441_vm4, %v613_v8, %v620_v32 }
  0x3e   : > { %2214 = vmatpush.bf16.msrb.mxu2 %v4038_v3  ;;  %v1075_v50 = vsel %vm4520_vm7, %v726_v61, %v1074_v54  ;;  %v677_v63 = vrot.slane %v5753_v0, 7  ;;  %v4776_v53 = vrot.slane %v683_v51, 7  ;;  %v4030_v3 = vld [vmem:[%s5740_s3 + $0x118] sm:$0xff]  ;;  %v902_v61 = vsel %vm4452_vm5, %v612_v17, %v901_v58  ;;  %2447 = vmatpush.bf16.msrb.mxu3 %v3998_v60  ;;  %v4803_v60 = vld [vmem:[#allocation2 + $0x48] sm:$0xff]   ;;  %904 = vst [vmem:[#allocation2 + $0x58] sm:$0xf] %v621_v38 }
  0x3f   : > { %1076 = vst [vmem:[#allocation2 + $0xa8] sm:$0x1] %v1075_v50  ;;  %v746_v51 = vshll.u32 %v4744_v13, 16  ;;  %v751_v54 = vshrl.u32 %v4755_v30, 16  ;;  %v4006_v50 = vld [vmem:[%s5740_s3 + $0x58] sm:$0xff]  ;;  %v745_v17 = vrot.slane %v5755_v33, 7  ;;  %2125 = vmatpush.bf16.msrb.mxu1 %v4030_v3 }
  0x40   : > { %903 = vst [vmem:[#allocation2 + $0x54] sm:$0xf] %v902_v61  ;;  %v680_v8 = vor.u32 %v678_v41, %v677_v63  ;;  %v681_v32 = vrot.slane %v677_v63, 4  ;;  %v688_v58 = vor.u32 %v5754_v9, %v4776_v53  ;;  %v4808_v41 = vpack.c.bf16 %v420_v44, %v420_v44  ;;  %v428_v61 = vld [vmem:[%s4408_s6 + $0x70] sm:$0xff]  ;;  %v1041_v9 = vld [vmem:[#allocation2 + $0x24] sm:$0x1]  ;;  %2536 = vmatpush.bf16.msrb.mxu0 %v4006_v50 }
  0x41   : > { %v4805_v18 = vrot.slane %v751_v54, 7  ;;  %v4810_v63 = vpack.c.bf16 %v421_v2, %v421_v2  ;;  %v748_v54 = vor.u32 %v746_v51, %v745_v17  ;;  %v749_v49 = vrot.slane %v745_v17, 4  ;;  %v436_v0 = vld [vmem:[%s4408_s6 + $0xb0] sm:$0xff]  ;;  %v4189_v3 = vld [vmem:[#allocation2 + $0x78] sm:$0xff]   ;;  %2065 = vmatmul.bf16.gmra.mxu1 %v4803_v60 }
  0x42   : > { %2215 = vmatpush.bf16.msrb.mxu2 %v4037_v23  ;;  %v689_v33 = vsel %vm4441_vm4, %v681_v32, %v688_v58  ;;  %v930_v38 = vsel %vm4452_vm5, %v680_v8, %v929_v39  ;;  %v5813_v23 = vshrl.u32 %v4646_v20, 16  ;;  %v5814_v44 = vshll.u32 %v4755_v30, 16  ;;  %2448 = vmatpush.bf16.msrb.mxu3 %v3997_v19  ;;  %v880_v58 = vld [vmem:[#allocation2 + $0x30] sm:$0xf] }
  0x43   : > { %5812 = vst [vmem:[#allocation11_spill] sm:$0xff] %v4805_v18  ;;  %v5758_v39 = vshrl.u32 %v4808_v41, 16  ;;  %v559_v51 = vshll.u32 %v4808_v41, 16  ;;  %v958_v20 = vsel %vm4452_vm5, %v748_v54, %v957_v16  ;;  %v5759_v8 = vshll.u32 %v4810_v63, 16  ;;  %2085 = vmatmul.bf16.gmra.mxu2 %v4189_v3 }
  0x44   : > { %v1042_v2 = vsel %vm4520_vm7, %v5813_v23, %v1041_v9  ;;  %931 = vst [vmem:[#allocation2 + $0x84] sm:$0xf] %v930_v38  ;;  %v756_v55 = vor.u32 %v5814_v44, %v4805_v18  ;;  %v564_v9 = vshrl.u32 %v4810_v63, 16  ;;  %v4834_v32 = vpack.c.bf16 %v428_v61, %v428_v61  ;;  %v437_v38 = vld [vmem:[%s4408_s6 + $0xb8] sm:$0xff] }
  0x45   : > { %1043 = vst [vmem:[#allocation2 + $0x24] sm:$0x1] %v1042_v2  ;;  %v558_v50 = vrot.slane %v5758_v39, 7  ;;  %v4840_v17 = vpack.c.bf16 %v429_v52, %v429_v52  ;;  %v4843_v23 = vpack.c.bf16 %v436_v0, %v436_v0  ;;  %v5815_v52 = vshrl.u32 %v4713_v37, 16 }
  0x46   : > { %932 = vst [vmem:[#allocation2 + $0x88] sm:$0xf] %v689_v33  ;;  %v757_v19 = vsel %vm4441_vm4, %v749_v49, %v756_v55  ;;  %v4191_v16 = vld [vmem:[#allocation2 + $0xa8] sm:$0xff]   ;;  %v4845_v54 = vrot.slane %v564_v9, 7  ;;  %v5760_v61 = vshrl.u32 %v4834_v32, 16  ;;  %v444_v33 = vld [vmem:[%s4408_s6 + $0xf0] sm:$0xff]  ;;  %v4859_v39 = vpack.c.bf16 %v437_v38, %v437_v38 }
  0x47   : > { %959 = vst [vmem:[#allocation2 + $0xb4] sm:$0xf] %v958_v20  ;;  %v1053_v2 = vld [vmem:[#allocation2 + $0x54] sm:$0x1]  ;;  %v561_v55 = vor.u32 %v559_v51, %v558_v50  ;;  %v562_v49 = vrot.slane %v558_v50, 4  ;;  %v627_v44 = vshll.u32 %v4834_v32, 16  ;;  %2105 = vmatmul.bf16.gmra.mxu3 %v4191_v16  ;;  %v4870_v30 = vpack.c.bf16 %v444_v33, %v444_v33 }
  0x48   : > { %960 = vst [vmem:[#allocation2 + $0xb8] sm:$0xf] %v757_v19  ;;  %v1054_v0 = vsel %vm4520_vm7, %v5815_v52, %v1053_v2  ;;  %v569_v3 = vor.u32 %v5759_v8, %v4845_v54  ;;  %v626_v20 = vrot.slane %v5760_v61, 7  ;;  %v908_v9 = vld [vmem:[#allocation2 + $0x60] sm:$0xf]  ;;  %v632_v37 = vshrl.u32 %v4840_v17, 16 }
  0x49   : > { %1055 = vst [vmem:[#allocation2 + $0x54] sm:$0x1] %v1054_v0  ;;  %v881_v51 = vsel %vm4452_vm5, %v561_v55, %v880_v58  ;;  %v695_v38 = vshll.u32 %v4843_v23, 16  ;;  %v936_v61 = vld [vmem:[#allocation2 + $0x90] sm:$0xf]  ;;  %v445_v0 = vld [vmem:[%s4408_s6 + $0xf8] sm:$0xff] }
  0x4a   : > { %v570_v52 = vsel %vm4441_vm4, %v562_v49, %v569_v3  ;;  %882 = vst [vmem:[#allocation2 + $0x30] sm:$0xf] %v881_v51  ;;  %v629_v8 = vor.u32 %v627_v44, %v626_v20  ;;  %v4874_v55 = vld [vmem:[#allocation2 + $0x24] sm:$0xf0]  ;;  %v5816_v19 = vshrl.u32 %v4734_v42, 16  ;;  %v630_v50 = vrot.slane %v626_v20, 4 }
  0x4b   : > { %v1065_v2 = vld [vmem:[#allocation2 + $0x84] sm:$0x1]  ;;  %883 = vst [vmem:[#allocation2 + $0x34] sm:$0xf] %v570_v52  ;;  %v4880_v49 = vrot.slane %v632_v37, 7  ;;  %v5817_v44 = vshrl.u32 %v4843_v23, 16 }
  0x4c   : > { %v4872_v58 = vld [vmem:[#allocation2 + $0x24] sm:$0xff]   ;;  %v1066_v16 = vsel %vm4520_vm7, %v5816_v19, %v1065_v2  ;;  %v909_v33 = vsel %vm4452_vm5, %v629_v8, %v908_v9  ;;  %v700_v51 = vshrl.u32 %v4859_v39, 16  ;;  %v4029_v42 = vld [vmem:[%s5740_s3 + $0x110] sm:$0xff]  ;;  %v520_v37 = vrot.slane %v4447_v26, 4 }
  0x4d   : > { %v694_v3 = vrot.slane %v5817_v44, 7  ;;  %1067 = vst [vmem:[#allocation2 + $0x84] sm:$0x1] %v1066_v16  ;;  %v4036_v19 = vld [vmem:[%s5740_s3 + $0x148] sm:$0xff]  ;;  %v5818_v8 = vshll.u32 %v4840_v17, 16  ;;  %v5819_v44 = vshrl.u32 %v4744_v13, 16  ;;  %2126 = vmatpush.bf16.msrb.mxu1 %v4029_v42  ;;  %2050 = vmatmul.bf16.gmra.mxu0 %v4872_v58 }
  0x4e   : > { %v3996_v20 = vld [vmem:[%s5740_s3 + $0x8] sm:$0xff]  ;;  %v1077_v2 = vld [vmem:[#allocation2 + $0xb4] sm:$0x1]  ;;  %910 = vst [vmem:[#allocation2 + $0x60] sm:$0xf] %v909_v33  ;;  %v4904_v18 = vrot.slane %v700_v51, 7  ;;  %2216 = vmatpush.bf16.msrb.mxu2 %v4036_v19  ;;  %v4917_v51 = vpack.c.bf16 %v445_v0, %v445_v0 }
  0x4f   : > { %v637_v9 = vor.u32 %v5818_v8, %v4880_v49  ;;  %v697_v52 = vor.u32 %v695_v38, %v694_v3  ;;  %v698_v16 = vrot.slane %v694_v3, 4  ;;  %v1078_v15 = vsel %vm4520_vm7, %v5819_v44, %v1077_v2  ;;  %v4005_v26 = vld [vmem:[%s5740_s3 + $0x50] sm:$0xff]  ;;  %v4028_v38 = vld [vmem:[%s5740_s3 + $0x108] sm:$0xff]  ;;  %2449 = vmatpush.bf16.msrb.mxu3 %v3996_v20  ;;  %v4035_v19 = vld [vmem:[%s5740_s3 + $0x140] sm:$0xff] }
  0x50   : > { %v5766_v6 = vshll.u32 %v4859_v39, 16  ;;  %v863_v3 = vld [vmem:[#allocation2 + $0x14] sm:$0x1]  ;;  %1079 = vst [vmem:[#allocation2 + $0xb4] sm:$0x1] %v1078_v15  ;;  %v5768_v42 = vshrl.u32 %v4870_v30, 16  ;;  %2537 = vmatpush.bf16.msrb.mxu0 %v4005_v26 }
  0x51   : > { %v638_v13 = vsel %vm4441_vm4, %v630_v50, %v637_v9  ;;  %v937_v33 = vsel %vm4452_vm5, %v697_v52, %v936_v61  ;;  %5820 = vst [vmem:[#allocation12_spill] sm:$0xff] %v4917_v51  ;;  %v3995_v2 = vld [vmem:[%s5740_s3] sm:$0xff]  ;;  %v4927_v15 = vld [vmem:[#allocation2 + $0x54] sm:$0xff]   ;;  %v763_v0 = vshll.u32 %v4870_v30, 16  ;;  %v4004_v20 = vld [vmem:[%s5740_s3 + $0x48] sm:$0xff]  ;;  %v768_v52 = vshrl.u32 %v4917_v51, 16  ;;  %2127 = vmatpush.bf16.msrb.mxu1 %v4028_v38 }
  0x52   : > { %5821 = vst [vmem:[#allocation13_spill] sm:$0xff] %v4927_v15  ;;  %v4929_v50 = vld [vmem:[#allocation2 + $0x54] sm:$0xf0]  ;;  %v705_v61 = vor.u32 %v5766_v6, %v4904_v18  ;;  %v1044_v8 = vld [vmem:[#allocation2 + $0x30] sm:$0x1]  ;;  %v762_v9 = vrot.slane %v5768_v42, 7  ;;  %v864_v42 = vsel %vm4520_vm7, %v520_v37, %v863_v3  ;;  %2217 = vmatpush.bf16.msrb.mxu2 %v4035_v19  ;;  %2070 = vmatmul.bf16.gmra.mxu1 %v4927_v15 }
  0x53   : > { %911 = vst [vmem:[#allocation2 + $0x64] sm:$0xf] %v638_v13  ;;  %v5822_v44 = vshrl.u32 %v4808_v41, 16  ;;  %2450 = vmatpush.bf16.msrb.mxu3 %v3995_v2  ;;  %v4003_v37 = vld [vmem:[%s5740_s3 + $0x40] sm:$0xff]  ;;  %v537_v3 = vrot.slane %v4533_v34, 4  ;;  %v5823_v6 = vshrl.u32 %v4834_v32, 16 }
  0x54   : > { %938 = vst [vmem:[#allocation2 + $0x90] sm:$0xf] %v937_v33  ;;  %v706_v26 = vsel %vm4441_vm4, %v698_v16, %v705_v61  ;;  %v4027_v33 = vld [vmem:[%s5740_s3 + $0x100] sm:$0xff]  ;;  %v765_v16 = vor.u32 %v763_v0, %v762_v9  ;;  %v766_v61 = vrot.slane %v762_v9, 4  ;;  %2538 = vmatpush.bf16.msrb.mxu0 %v4004_v20  ;;  %v5824_v19 = vshll.u32 %v4917_v51, 16 }
  0x55   : > { %v1045_v13 = vsel %vm4520_vm7, %v5822_v44, %v1044_v8  ;;  %v4957_v41 = vld [vmem:[#allocation2 + $0x84] sm:$0xff]   ;;  %v4961_v44 = vrot.slane %v768_v52, 7  ;;  %v1056_v38 = vld [vmem:[#allocation2 + $0x60] sm:$0x1]  ;;  %939 = vst [vmem:[#allocation2 + $0x94] sm:$0xf] %v706_v26  ;;  %2128 = vmatpush.bf16.msrb.mxu1 %v4027_v33 }
  0x56   : > { %v4959_v8 = vld [vmem:[#allocation2 + $0x84] sm:$0xf0]  ;;  %1046 = vst [vmem:[#allocation2 + $0x30] sm:$0x1] %v1045_v13  ;;  %v1057_v0 = vsel %vm4520_vm7, %v5823_v6, %v1056_v38  ;;  %v965_v20 = vsel %vm4452_vm5, %v765_v16, %v964_v47  ;;  %v412_v9 = vld [vmem:[%s361_s28] sm:$0xff]  ;;  %2090 = vmatmul.bf16.gmra.mxu2 %v4957_v41  ;;  %v5827_v16 = vshrl.u32 %v4843_v23, 16 }
  0x57   : > { %v773_v2 = vor.u32 %v5824_v19, %v4961_v44  ;;  %865 = vst [vmem:[#allocation2 + $0x14] sm:$0x1] %v864_v42  ;;  %v413_v52 = vld [vmem:[%s361_s28 + $0x8] sm:$0xff]  ;;  %v4977_v13 = vld [vmem:[#allocation2 + $0xb4] sm:$0xff]   ;;  %v870_v32 = vld [vmem:[#allocation2 + $0x20] sm:$0x1]  ;;  %v4984_v47 = vpack.c.bf16 %v412_v9, %v412_v9 }
  0x58   : > { %5825 = vst [vmem:[#allocation14_spill] sm:$0xff] %v4977_v13  ;;  %v4979_v34 = vld [vmem:[#allocation2 + $0xb4] sm:$0xf0]  ;;  %2539 = vmatpush.bf16.msrb.mxu0 %v4003_v37  ;;  %v449_v42 = vpack.c.bf16 %v413_v52, %v413_v52  ;;  %v5828_v33 = vshll.u32 %v4415_v7, 16  ;;  %v5829_v19 = vmov 0  ;;  %2110 = vmatmul.bf16.gmra.mxu3 %v4977_v13  ;;  %v5833_v13 = vshrl.u32 %v4870_v30, 16 }
  0x59   : > { %5826 = vst [vmem:[#allocation15_spill] sm:$0xff] %v4979_v34  ;;  %v774_v6 = vsel %vm4441_vm4, %v766_v61, %v773_v2  ;;  %v871_v61 = vsel %vm4520_vm7, %v537_v3, %v870_v32  ;;  %v5830_v19 = vsel %vm4996_vm8, 4294967295, %v5829_v19  ;;  %v488_v37 = vshrl.u32 %v4984_v47, 16  ;;  %v850_v9 = vld [vmem:[#allocation2] sm:$0xf] }
  0x5a   : > { %1058 = vst [vmem:[#allocation2 + $0x60] sm:$0x1] %v1057_v0  ;;  %v3586_v0 = vrot.slane %v5828_v33, 11  ;;  %v491_v23 = vshll.u32 %v4984_v47, 16  ;;  %v496_v2 = vshrl.u32 %v449_v42, 16  ;;  %v4050_v47 = vld [vmem:[%s5740_s3 + $0x1b8] sm:$0xff] }
  0x5b   : > { %966 = vst [vmem:[#allocation2 + $0xc0] sm:$0xf] %v965_v20  ;;  %v1068_v26 = vld [vmem:[#allocation2 + $0x90] sm:$0x1]  ;;  %v490_v20 = vrot.slane %v488_v37, 7  ;;  %2903 = vmatpush.bf16.msra.mxu2 %v4050_v47 }
  0x5c   : > { %967 = vst [vmem:[#allocation2 + $0xc4] sm:$0xf] %v774_v6  ;;  %v1069_v38 = vsel %vm4520_vm7, %v5827_v16, %v1068_v26  ;;  %v498_v32 = vrot.slane %v496_v2, 7  ;;  %v499_v6 = vshll.u32 %v449_v42, 16  ;;  %v856_v26 = vld [vmem:[#allocation2 + $0x8] sm:$0x1] }
  0x5d   : > { %5831 = vst [vmem:[#allocation16_spill] sm:$0xff] %v5830_v19  ;;  %v5003_v52 = vld [vmem:[#allocation2 + $0x30] sm:$0xff]   ;;  %v494_v33 = vrot.slane %v490_v20, 4  ;;  %v4058_v42 = vld [vmem:[%s5740_s3 + $0x1f8] sm:$0xff]  ;;  %v4292_v47 = vld [vmem:[#allocation2 + $0xc] sm:$0xe] }
  0x5e   : > { %1070 = vst [vmem:[#allocation2 + $0x90] sm:$0x1] %v1069_v38  ;;  %v1144_v7 = vld [vmem:[#allocation2 + $0x14] sm:$0x1]  ;;  %v493_v38 = vor.u32 %v491_v23, %v490_v20  ;;  %v503_v2 = vrot.slane %v498_v32, 4  ;;  %v4018_v23 = vld [vmem:[%s5740_s3 + $0xb8] sm:$0xff]  ;;  %2992 = vmatpush.bf16.msra.mxu3 %v4058_v42  ;;  %2055 = vmatmul.bf16.gmra.mxu0 %v5003_v52 }
  0x5f   : > { %872 = vst [vmem:[#allocation2 + $0x20] sm:$0x1] %v871_v61  ;;  %v1145_v3 = vsel %vm4996_vm8, %v3586_v0, %v1144_v7  ;;  %v5832_v61 = vshll.u32 %v4504_v1, 16  ;;  %v501_v0 = vor.u32 %v499_v6, %v498_v32  ;;  %v4066_v1 = vld [vmem:[%s5740_s3 + $0x238] sm:$0xff]  ;;  %2621 = vmatpush.bf16.msra.mxu1 %v4018_v23  ;;  %v554_v20 = vrot.slane %v4711_v28, 4 }
  0x60   : > { %1146 = vst [vmem:[#allocation2 + $0x14] sm:$0x1] %v1145_v3  ;;  %v851_v30 = vsel %vm4452_vm5, %v493_v38, %v850_v9  ;;  %v857_v7 = vsel %vm4520_vm7, %v503_v2, %v856_v26  ;;  %3081 = vmatpush.bf16.msra.mxu0 %v4066_v1  ;;  %v877_v32 = vld [vmem:[#allocation2 + $0x2c] sm:$0x1]  ;;  %v3585_v2 = vrot.slane %v499_v6, 11  ;;  %v1443_v23 = vshrl.u32 %v4610_v45, 16 }
  0x61   : > { %v3587_v34 = vrot.slane %v5832_v61, 11  ;;  %852 = vst [vmem:[#allocation2] sm:$0xf] %v851_v30  ;;  %v5033_v3 = vld [vmem:[#allocation2 + $0x60] sm:$0xff]   ;;  %v878_v26 = vsel %vm4520_vm7, %v554_v20, %v877_v32  ;;  %v571_v32 = vrot.slane %v4845_v54, 4 }
  0x62   : > { %v1080_v16 = vld [vmem:[#allocation2 + $0xc0] sm:$0x1]  ;;  %858 = vst [vmem:[#allocation2 + $0x8] sm:$0x1] %v857_v7  ;;  %2075 = vmatmul.bf16.gmra.mxu1 %v5033_v3 }
  0x63   : > { %v1081_v51 = vsel %vm4520_vm7, %v5833_v13, %v1080_v16  ;;  %v502_v13 = vsel %vm4441_vm4, %v494_v33, %v501_v0  ;;  %v1445_v33 = vshll.u32 %v4610_v45, 16  ;;  %879 = vst [vmem:[#allocation2 + $0x2c] sm:$0x1] %v878_v26 }
  0x64   : > { %1082 = vst [vmem:[#allocation2 + $0xc0] sm:$0x1] %v1081_v51 }
  0x65   : > { %853 = vst [vmem:[#allocation2 + $0x4] sm:$0xf] %v502_v13  ;;  %v5040_v16 = vld [vmem:[#allocation2 + $0x90] sm:$0xff]   ;;  %v1447_v1 = vrot.slane %v1445_v33, 1  ;;  %v5834_v13 = vshll.u32 %v4672_v11, 16 }
  0x66   : > { %v1147_v51 = vld [vmem:[#allocation2 + $0x20] sm:$0x1]  ;;  %2095 = vmatmul.bf16.gmra.mxu2 %v5040_v16 }
  0x67   : > { %v1148_v9 = vsel %vm4996_vm8, %v3587_v34, %v1147_v51  ;;  %v1232_v28 = vld [vmem:[#allocation2 + $0x14] sm:$0x1]  ;;  %v3588_v7 = vrot.slane %v5834_v13, 11 }
  0x68   : > { %1149 = vst [vmem:[#allocation2 + $0x20] sm:$0x1] %v1148_v9  ;;  %v1394_v38 = vunpack.c.l.b16 %v1232_v28  ;;  %v1032_v34 = vld [vmem:[#allocation2] sm:$0x1]  ;;  %v4293_v9 = vor.u32 %v4292_v47, %v4612_v46 }
  0x69   : > { %v1033_v42 = vsel %vm4520_vm7, %v488_v37, %v1032_v34  ;;  %v1141_v20 = vld [vmem:[#allocation2 + $0x8] sm:$0x1]  ;;  %v1448_v37 = vor.u32 %v1447_v1, %v1443_v23 }
  0x6a   : > { %v1412_v0 = vpack.c.b16 %v1394_v38, %v1394_v38  ;;  %1034 = vst [vmem:[#allocation2] sm:$0x1] %v1033_v42  ;;  %v1142_v51 = vsel %vm4996_vm8, %v3585_v2, %v1141_v20  ;;  %v1150_v6 = vld [vmem:[#allocation2 + $0x2c] sm:$0x1]  ;;  %v1722_v11 = vrot.slane %v4293_v9, 1 }
  0x6b   : > { %v4192_v61 = vld [vmem:[#allocation2 + $0xc0] sm:$0xff]   ;;  %1143 = vst [vmem:[#allocation2 + $0x8] sm:$0x1] %v1142_v51  ;;  %v1151_v28 = vsel %vm4996_vm8, %v3588_v7, %v1150_v6  ;;  %v884_v2 = vld [vmem:[#allocation2 + $0x38] sm:$0x1]  ;;  %v1457_v7 = vshll.u32 %v4758_v36, 16 }
  0x6c   : > { %v1450_v30 = vshll.u32 %v1412_v0, 16  ;;  %2115 = vmatmul.bf16.gmra.mxu3 %v4192_v61  ;;  %1152 = vst [vmem:[#allocation2 + $0x2c] sm:$0x1] %v1151_v28  ;;  %v1723_v33 = vrot.slane %v1412_v0, 1  ;;  %v885_v54 = vsel %vm4520_vm7, %v571_v32, %v884_v2  ;;  %v5835_v51 = vshll.u32 %v4810_v63, 16 }
  0x6d   : > { %886 = vst [vmem:[#allocation2 + $0x38] sm:$0x1] %v885_v54 }
  0x6e   : > { %v1452_v26 = vrot.slane %v1450_v30, 1  ;;  %v5062_v23 = vsel %vm1718_vm10, %v1722_v11, %v1723_v33  ;;  %v3589_v9 = vrot.slane %v5835_v51, 11  ;;  %v4197_v11 = vld [vmem:[#allocation2 + $0x18] sm:$0xe] }
  0x6f   : > { %v1233_v38 = vld [vmem:[#allocation2 + $0x20] sm:$0x1] }
  0x70   : > { %v5056_v34 = vsel %vm1429_vm9, %v1448_v37, %v1452_v26  ;;  %v1395_v47 = vunpack.c.l.b16 %v1233_v38  ;;  %v1455_v37 = vshrl.u32 %v4758_v36, 16  ;;  %v1459_v26 = vrot.slane %v1457_v7, 1  ;;  %v4196_v38 = vld [vmem:[#allocation2 + $0x18] sm:$0xf0]  ;;  %v4065_v7 = vld [vmem:[%s5740_s3 + $0x230] sm:$0xff] }
  0x71   : > { %v4068_v61 = vld [vmem:[#allocation2] sm:$0xff]   ;;  %v4198_v2 = vor.u32 %v4197_v11, %v4196_v38  ;;  %3082 = vmatpush.bf16.msra.mxu0 %v4065_v7 }
  0x72   : > { %v1433_v46 = vshll.u32 %v4068_v61, 16  ;;  %v1231_v42 = vld [vmem:[#allocation2 + $0x8] sm:$0x1]  ;;  %2129 = vmatmul.bf16.vlgmr.msrb.gmra.mxu1 %v5056_v34  ;;  %v1431_v1 = vshrl.u32 %v4068_v61, 16  ;;  %v1413_v13 = vpack.c.b16 %v1395_v47, %v1395_v47  ;;  %v1460_v54 = vor.u32 %v1459_v26, %v1455_v37  ;;  %v891_v26 = vld [vmem:[#allocation2 + $0x44] sm:$0x1] }
  0x73   : > { %v1393_v30 = vunpack.c.l.b16 %v1231_v42  ;;  %v1725_v51 = vrot.slane %v4198_v2, 1 }
  0x74   : > { %v1435_v0 = vrot.slane %v1433_v46, 1  ;;  %v1462_v28 = vshll.u32 %v1413_v13, 16  ;;  %v1153_v46 = vld [vmem:[#allocation2 + $0x38] sm:$0x1] }
  0x75   : > { %v5065_v20 = vpack.c.b16 %v1393_v30, %v1393_v30  ;;  %v1154_v47 = vsel %vm4996_vm8, %v3589_v9, %v1153_v46  ;;  %v1234_v30 = vld [vmem:[#allocation2 + $0x2c] sm:$0x1]  ;;  %v1726_v9 = vrot.slane %v1413_v13, 1  ;;  %v1469_v13 = vshll.u32 %v4872_v58, 16 }
  0x76   : > { %2218 = vmatmul.bf16.vlgmr.msrb.gmra.mxu2 %v5062_v23  ;;  %v1436_v6 = vor.u32 %v1435_v0, %v1431_v1  ;;  %1155 = vst [vmem:[#allocation2 + $0x38] sm:$0x1] %v1154_v47  ;;  %v1464_v42 = vrot.slane %v1462_v28, 1  ;;  %v4049_v1 = vld [vmem:[%s5740_s3 + $0x1b0] sm:$0xff]  ;;  %v1396_v37 = vunpack.c.l.b16 %v1234_v30  ;;  %v605_v30 = vrot.slane %v4593_v25, 4 }
  0x77   : > { %v1438_v32 = vshll.u32 %v5065_v20, 16  ;;  %v4017_v0 = vld [vmem:[%s5740_s3 + $0xb0] sm:$0xff]  ;;  %2904 = vmatpush.bf16.msra.mxu2 %v4049_v1  ;;  %v5095_v38 = vsel %vm1718_vm10, %v1725_v51, %v1726_v9  ;;  %v1471_v46 = vrot.slane %v1469_v13, 1  ;;  %v1481_v25 = vshll.u32 %v5003_v52, 16 }
  0x78   : > { %2622 = vmatpush.bf16.msra.mxu1 %v4017_v0  ;;  %v1414_v11 = vpack.c.b16 %v1396_v37, %v1396_v37 }
  0x79   : > { %v1440_v33 = vrot.slane %v1438_v32, 1  ;;  %v5089_v32 = vsel %vm1429_vm9, %v1460_v54, %v1464_v42  ;;  %v1483_v13 = vrot.slane %v1481_v25, 1 }
  0x7a   : > { %v1474_v47 = vshll.u32 %v1414_v11, 16  ;;  %v1729_v9 = vrot.slane %v1414_v11, 1  ;;  %v1479_v11 = vshrl.u32 %v5003_v52, 16 }
  0x7b   : > { %v1441_v63 = vsel %vm1429_vm9, %v1436_v6, %v1440_v33  ;;  %v588_v6 = vrot.slane %v4458_v31, 4  ;;  %v4295_v33 = vld [vmem:[#allocation2 + $0x24] sm:$0xe]  ;;  %v1467_v31 = vshrl.u32 %v4872_v58, 16 }
  0x7c   : > { %2451 = vmatmul.bf16.vlgmr.msrb.gmra.mxu3 %v4068_v61  ;;  %2540 = vmatmul.bf16.vlgmr.msrb.gmra.mxu0 %v1441_v63  ;;  %v4057_v61 = vld [vmem:[%s5740_s3 + $0x1f0] sm:$0xff]  ;;  %v5836_v63 = vshll.u32 %v4422_v12, 16  ;;  %v4296_v1 = vor.u32 %v4295_v33, %v4874_v55  ;;  %v1476_v0 = vrot.slane %v1474_v47, 1 }
  0x7d   : > { %2993 = vmatpush.bf16.msra.mxu3 %v4057_v61  ;;  %v892_v28 = vsel %vm4520_vm7, %v588_v6, %v891_v26  ;;  %v1472_v61 = vor.u32 %v1471_v46, %v1467_v31  ;;  %v1235_v7 = vld [vmem:[#allocation2 + $0x38] sm:$0x1]  ;;  %v898_v6 = vld [vmem:[#allocation2 + $0x50] sm:$0x1]  ;;  %v5837_v26 = vshll.u32 %v4535_v35, 16  ;;  %v1484_v35 = vor.u32 %v1483_v13, %v1479_v11 }
  0x7e   : > { %893 = vst [vmem:[#allocation2 + $0x44] sm:$0x1] %v892_v28  ;;  %v3590_v2 = vrot.slane %v5836_v63, 11  ;;  %v1728_v51 = vrot.slane %v4296_v1, 1  ;;  %v899_v37 = vsel %vm4520_vm7, %v605_v30, %v898_v6  ;;  %v4199_v31 = vld [vmem:[#allocation2 + $0x30] sm:$0xf0] }
  0x7f   : > { %v5109_v12 = vsel %vm1429_vm9, %v1472_v61, %v1476_v0  ;;  %900 = vst [vmem:[#allocation2 + $0x50] sm:$0x1] %v899_v37  ;;  %v3591_v28 = vrot.slane %v5837_v26, 11  ;;  %v4200_v46 = vld [vmem:[#allocation2 + $0x30] sm:$0xe]  ;;  %v4056_v1 = vld [vmem:[%s5740_s3 + $0x1e8] sm:$0xff] }
  0x80   : > { %v5115_v55 = vsel %vm1718_vm10, %v1728_v51, %v1729_v9  ;;  %v4064_v0 = vld [vmem:[%s5740_s3 + $0x228] sm:$0xff]  ;;  %v622_v51 = vrot.slane %v4742_v5, 4  ;;  %v905_v6 = vld [vmem:[#allocation2 + $0x5c] sm:$0x1]  ;;  %v1491_v5 = vshrl.u32 %v4635_v56, 16 }
  0x81   : > { %2994 = vmatpush.bf16.msra.mxu3 %v4056_v1  ;;  %3083 = vmatpush.bf16.msra.mxu0 %v4064_v0 }
  0x82   : > { %2134 = vmatmul.bf16.gmra.mxu1 %v5089_v32  ;;  %v906_v37 = vsel %vm4520_vm7, %v622_v51, %v905_v6 }
  0x83   : > { %907 = vst [vmem:[#allocation2 + $0x5c] sm:$0x1] %v906_v37  ;;  %v5841_v37 = vshll.u32 %v4840_v17, 16 }
  0x85   : > { %v1156_v54 = vld [vmem:[#allocation2 + $0x44] sm:$0x1] }
  0x86   : > { %2223 = vmatmul.bf16.gmra.mxu2 %v5095_v38  ;;  %v1157_v42 = vsel %vm4996_vm8, %v3590_v2, %v1156_v54  ;;  %v1159_v47 = vld [vmem:[#allocation2 + $0x50] sm:$0x1]  ;;  %v4201_v2 = vor.u32 %v4200_v46, %v4199_v31 }
  0x87   : > { %1158 = vst [vmem:[#allocation2 + $0x44] sm:$0x1] %v1157_v42  ;;  %v1160_v63 = vsel %vm4996_vm8, %v3591_v28, %v1159_v47  ;;  %v4048_v42 = vld [vmem:[%s5740_s3 + $0x1a8] sm:$0xff]  ;;  %v4298_v28 = vld [vmem:[#allocation2 + $0x3c] sm:$0xe] }
  0x88   : > { %1161 = vst [vmem:[#allocation2 + $0x50] sm:$0x1] %v1160_v63  ;;  %2905 = vmatpush.bf16.msra.mxu2 %v4048_v42  ;;  %v1731_v30 = vrot.slane %v4201_v2, 1  ;;  %v4299_v63 = vor.u32 %v4298_v28, %v4637_v57 }
  0x8a   : > { %v1162_v46 = vld [vmem:[#allocation2 + $0x5c] sm:$0x1] }
  0x8c   : > { %2456 = vmatmul.bf16.gmra.mxu3 %v4610_v45  ;;  %2545 = vmatmul.bf16.gmra.mxu0 %v5056_v34  ;;  %v1397_v45 = vunpack.c.l.b16 %v1235_v7 }
  0x8e   : > { %v1415_v34 = vpack.c.b16 %v1397_v45, %v1397_v45  ;;  %v1236_v61 = vld [vmem:[#allocation2 + $0x44] sm:$0x1] }
  0x8f   : > { %v1398_v45 = vunpack.c.l.b16 %v1236_v61  ;;  %v1237_v1 = vld [vmem:[#allocation2 + $0x50] sm:$0x1] }
  0x90   : > { %v1486_v33 = vshll.u32 %v1415_v34, 16  ;;  %v1732_v7 = vrot.slane %v1415_v34, 1  ;;  %v1493_v34 = vshll.u32 %v4635_v56, 16 }
  0x91   : > { %v1416_v26 = vpack.c.b16 %v1398_v45, %v1398_v45  ;;  %v1505_v45 = vshll.u32 %v4803_v60, 16 }
  0x92   : > { %2139 = vmatmul.bf16.gmra.mxu1 %v5109_v12  ;;  %v1488_v54 = vrot.slane %v1486_v33, 1  ;;  %v5146_v25 = vsel %vm1718_vm10, %v1731_v30, %v1732_v7  ;;  %v1495_v11 = vrot.slane %v1493_v34, 1  ;;  %v5838_v33 = vshll.u32 %v4715_v40, 16  ;;  %v912_v7 = vld [vmem:[#allocation2 + $0x68] sm:$0x1] }
  0x93   : > { %v1498_v13 = vshll.u32 %v1416_v26, 16  ;;  %v1735_v61 = vrot.slane %v1416_v26, 1  ;;  %v1399_v30 = vunpack.c.l.b16 %v1237_v1  ;;  %v3593_v26 = vrot.slane %v5841_v37, 11  ;;  %v4015_v1 = vld [vmem:[%s5740_s3 + $0xa0] sm:$0xff] }
  0x94   : > { %v5140_v9 = vsel %vm1429_vm9, %v1484_v35, %v1488_v54  ;;  %v3592_v31 = vrot.slane %v5838_v33, 11  ;;  %v1496_v2 = vor.u32 %v1495_v11, %v1491_v5  ;;  %v639_v54 = vrot.slane %v4880_v49, 4  ;;  %v4202_v33 = vld [vmem:[#allocation2 + $0x48] sm:$0xf0] }
  0x95   : > { %v1500_v35 = vrot.slane %v1498_v13, 1  ;;  %v1417_v51 = vpack.c.b16 %v1399_v30, %v1399_v30  ;;  %v1503_v5 = vshrl.u32 %v4803_v60, 16  ;;  %v1507_v11 = vrot.slane %v1505_v45, 1  ;;  %v4063_v30 = vld [vmem:[%s5740_s3 + $0x220] sm:$0xff] }
  0x96   : > { %2228 = vmatmul.bf16.gmra.mxu2 %v5115_v55  ;;  %v1163_v47 = vsel %vm4996_vm8, %v3592_v31, %v1162_v46  ;;  %v913_v57 = vsel %vm4520_vm7, %v639_v54, %v912_v7  ;;  %v4203_v31 = vld [vmem:[#allocation2 + $0x48] sm:$0xe]  ;;  %v4047_v54 = vld [vmem:[%s5740_s3 + $0x1a0] sm:$0xff]  ;;  %3084 = vmatpush.bf16.msra.mxu0 %v4063_v30 }
  0x97   : > { %1164 = vst [vmem:[#allocation2 + $0x5c] sm:$0x1] %v1163_v47  ;;  %v5164_v0 = vsel %vm1429_vm9, %v1496_v2, %v1500_v35  ;;  %v1510_v13 = vshll.u32 %v1417_v51, 16  ;;  %v1508_v2 = vor.u32 %v1507_v11, %v1503_v5  ;;  %2906 = vmatpush.bf16.msra.mxu2 %v4047_v54  ;;  %v1738_v37 = vrot.slane %v1417_v51, 1 }
  0x98   : > { %5839 = vst [vmem:[#allocation17_spill] sm:$0xff] %v5164_v0  ;;  %v1515_v54 = vshrl.u32 %v4927_v15, 16 }
  0x99   : > { %914 = vst [vmem:[#allocation2 + $0x68] sm:$0x1] %v913_v57  ;;  %v1512_v35 = vrot.slane %v1510_v13, 1  ;;  %v919_v13 = vld [vmem:[#allocation2 + $0x74] sm:$0x1] }
  0x9b   : > { %v5209_v5 = vsel %vm1429_vm9, %v1508_v2, %v1512_v35 }
  0x9c   : > { %2461 = vmatmul.bf16.gmra.mxu3 %v4758_v36  ;;  %2550 = vmatmul.bf16.gmra.mxu0 %v5089_v32  ;;  %v4016_v36 = vld [vmem:[%s5740_s3 + $0xa8] sm:$0xff]  ;;  %5843 = vst [vmem:[#allocation20_spill] sm:$0xff] %v5209_v5 }
  0x9d   : > { %2623 = vmatpush.bf16.msra.mxu1 %v4016_v36  ;;  %v1734_v36 = vrot.slane %v4299_v63, 1  ;;  %v4204_v63 = vor.u32 %v4203_v31, %v4202_v33 }
  0x9f   : > { %v5170_v49 = vsel %vm1718_vm10, %v1734_v36, %v1735_v61  ;;  %v1238_v61 = vld [vmem:[#allocation2 + $0x5c] sm:$0x1]  ;;  %v1737_v45 = vrot.slane %v4204_v63, 1 }
  0xa0   : > { %5840 = vst [vmem:[#allocation18_spill] sm:$0xff] %v5170_v49  ;;  %v1165_v46 = vld [vmem:[#allocation2 + $0x68] sm:$0x1]  ;;  %v1400_v11 = vunpack.c.l.b16 %v1238_v61  ;;  %v5846_v61 = vshll.u32 %v4426_v14, 16 }
  0xa1   : > { %v1166_v47 = vsel %vm4996_vm8, %v3593_v26, %v1165_v46  ;;  %2624 = vmatpush.bf16.msra.mxu1 %v4015_v1  ;;  %v656_v26 = vrot.slane %v4480_v48, 4  ;;  %v5217_v46 = vsel %vm1718_vm10, %v1737_v45, %v1738_v37  ;;  %v4301_v48 = vld [vmem:[#allocation2 + $0x54] sm:$0xe] }
  0xa2   : > { %2144 = vmatmul.bf16.gmra.mxu1 %v5140_v9  ;;  %1167 = vst [vmem:[#allocation2 + $0x68] sm:$0x1] %v1166_v47  ;;  %v1418_v51 = vpack.c.b16 %v1400_v11, %v1400_v11  ;;  %v1517_v47 = vshll.u32 %v4927_v15, 16  ;;  %v3594_v30 = vrot.slane %v5846_v61, 11  ;;  %v4302_v11 = vor.u32 %v4301_v48, %v4929_v50 }
  0xa3   : > { %v920_v33 = vsel %vm4520_vm7, %v656_v26, %v919_v13  ;;  %5845 = vst [vmem:[#allocation22_spill] sm:$0xff] %v5217_v46 }
  0xa4   : > { %921 = vst [vmem:[#allocation2 + $0x74] sm:$0x1] %v920_v33  ;;  %v1522_v1 = vshll.u32 %v1418_v51, 16  ;;  %v1740_v61 = vrot.slane %v4302_v11, 1  ;;  %v1741_v29 = vrot.slane %v1418_v51, 1 }
  0xa6   : > { %2233 = vmatmul.bf16.gmra.mxu2 %v5146_v25  ;;  %v1524_v33 = vrot.slane %v1522_v1, 1  ;;  %v5851_v1 = vshll.u32 %v4581_v4, 16 }
  0xa9   : > { %v5159_v42 = vpop.f32.mrf.mxu0  ;;  %v1239_v24 = vld [vmem:[#allocation2 + $0x68] sm:$0x1] }
  0xab   : > { %v1168_v45 = vld [vmem:[#allocation2 + $0x74] sm:$0x1] }
  0xac   : > { %2466 = vmatmul.bf16.gmra.mxu3 %v4872_v58  ;;  %2555 = vmatmul.bf16.gmra.mxu0 %v5109_v12  ;;  %v5161_v40 = vpop.f32.mrf.mxu1  ;;  %v1169_v37 = vsel %vm4996_vm8, %v3594_v30, %v1168_v45  ;;  %v1401_v45 = vunpack.c.l.b16 %v1239_v24  ;;  %v3595_v24 = vrot.slane %v5851_v1, 11 }
  0xad   : > { %1170 = vst [vmem:[#allocation2 + $0x74] sm:$0x1] %v1169_v37  ;;  %v1527_v37 = vshrl.u32 %v5033_v3, 16 }
  0xae   : > { %v1419_v51 = vpack.c.b16 %v1401_v45, %v1401_v45 }
  0xb1   : > { %v5173_v6 = vpop.f32.mrf.mxu0 }
  0xb2   : > { %2149 = vmatmul.bf16.gmra.mxu1 %v5164_v0 }
  0xb3   : > { %v5178_v34 = vpop.f32.mrf.mxu2 }
  0xb4   : > { %v5180_v28 = vpop.f32.mrf.mxu1 }
  0xb6   : > { %2238 = vmatmul.bf16.gmra.mxu2 %v5170_v49 }
  0xb7   : > { %v5186_v17 = vpop.f32.mrf.mxu3 }
  0xb8   : > { %5842 = vst [vmem:[#allocation19_spill] sm:$0xff] %v5186_v17 }
  0xb9   : > { %v5198_v36 = vpop.f32.mrf.mxu0 }
  0xbb   : > { %v5203_v7 = vpop.f32.mrf.mxu2 }
  0xbc   : > { %2471 = vmatmul.bf16.gmra.mxu3 %v5003_v52  ;;  %2560 = vmatmul.bf16.gmra.mxu0 %v5140_v9  ;;  %v4055_v52 = vld [vmem:[%s5740_s3 + $0x1e0] sm:$0xff] }
  0xbd   : > { %2995 = vmatpush.bf16.msra.mxu3 %v4055_v52  ;;  %v1519_v52 = vrot.slane %v1517_v47, 1  ;;  %v673_v47 = vrot.slane %v4607_v43, 4  ;;  %v5253_v43 = vsel %vm1718_vm10, %v1740_v61, %v1741_v29 }
  0xbe   : > { %v5205_v57 = vpop.f32.mrf.mxu1  ;;  %5850 = vst [vmem:[#allocation26_spill] sm:$0xff] %v5253_v43 }
  0xbf   : > { %v5213_v31 = vpop.f32.mrf.mxu3  ;;  %v1520_v13 = vor.u32 %v1519_v52, %v1515_v54  ;;  %v1529_v52 = vshll.u32 %v5033_v3, 16 }
  0xc0   : > { %5844 = vst [vmem:[#allocation21_spill] sm:$0xff] %v5213_v31 }
  0xc1   : > { %v5221_v63 = vpop.f32.mrf.mxu0  ;;  %v5243_v30 = vsel %vm1429_vm9, %v1520_v13, %v1524_v33  ;;  %v1534_v13 = vshll.u32 %v1419_v51, 16  ;;  %v4205_v33 = vld [vmem:[#allocation2 + $0x60] sm:$0xf0] }
  0xc2   : > { %2154 = vmatmul.bf16.gmra.mxu1 %v5209_v5  ;;  %5848 = vst [vmem:[#allocation24_spill] sm:$0xff] %v5243_v30 }
  0xc6   : > { %2243 = vmatmul.bf16.gmra.mxu2 %v5217_v46  ;;  %v5223_v2 = vpop.f32.mrf.mxu2  ;;  %v5225_v35 = vpop.f32.mrf.mxu1  ;;  %v1240_v46 = vld [vmem:[#allocation2 + $0x74] sm:$0x1] }
  0xca   : > { %v5233_v26 = vpop.f32.mrf.mxu3  ;;  %v5245_v50 = vpop.f32.mrf.mxu0 }
  0xcb   : > { %5847 = vst [vmem:[#allocation23_spill] sm:$0xff] %v5233_v26  ;;  %v926_v26 = vld [vmem:[#allocation2 + $0x80] sm:$0x1] }
  0xcc   : > { %2476 = vmatmul.bf16.gmra.mxu3 %v4635_v56  ;;  %2565 = vmatmul.bf16.gmra.mxu0 %v5164_v0  ;;  %v927_v48 = vsel %vm4520_vm7, %v673_v47, %v926_v26  ;;  %v1531_v26 = vrot.slane %v1529_v52, 1  ;;  %v4206_v47 = vld [vmem:[#allocation2 + $0x60] sm:$0xe] }
  0xcd   : > { %928 = vst [vmem:[#allocation2 + $0x80] sm:$0x1] %v927_v48  ;;  %v4207_v48 = vor.u32 %v4206_v47, %v4205_v33  ;;  %v1744_v33 = vrot.slane %v1419_v51, 1  ;;  %v690_v47 = vrot.slane %v4776_v53, 4 }
  0xce   : > { %v5238_v14 = vpop.f32.mrf.mxu2  ;;  %v1532_v52 = vor.u32 %v1531_v26, %v1527_v37  ;;  %v1402_v26 = vunpack.c.l.b16 %v1240_v46 }
  0xcf   : > { %v5240_v31 = vpop.f32.mrf.mxu1 }
  0xd0   : > { %v1420_v51 = vpack.c.b16 %v1402_v26, %v1402_v26 }
  0xd2   : > { %v5249_v54 = vpop.f32.mrf.mxu3  ;;  %2159 = vmatmul.bf16.gmra.mxu1 %v5243_v30  ;;  %v5267_v4 = vpop.f32.mrf.mxu0  ;;  %v1747_v0 = vrot.slane %v1420_v51, 1 }
  0xd3   : > { %5849 = vst [vmem:[#allocation25_spill] sm:$0xff] %v5249_v54  ;;  %v1536_v54 = vrot.slane %v1534_v13, 1  ;;  %v933_v13 = vld [vmem:[#allocation2 + $0x8c] sm:$0x1] }
  0xd4   : > { %v1171_v61 = vld [vmem:[#allocation2 + $0x80] sm:$0x1]  ;;  %v934_v53 = vsel %vm4520_vm7, %v690_v47, %v933_v13  ;;  %v1539_v47 = vshrl.u32 %v4656_v10, 16 }
  0xd5   : > { %v1172_v45 = vsel %vm4996_vm8, %v3595_v24, %v1171_v61  ;;  %v1743_v24 = vrot.slane %v4207_v48, 1  ;;  %v5282_v37 = vsel %vm1429_vm9, %v1532_v52, %v1536_v54  ;;  %935 = vst [vmem:[#allocation2 + $0x8c] sm:$0x1] %v934_v53  ;;  %v1541_v48 = vshll.u32 %v4656_v10, 16  ;;  %v4304_v52 = vld [vmem:[#allocation2 + $0x6c] sm:$0xe] }
  0xd6   : > { %2248 = vmatmul.bf16.gmra.mxu2 %v5253_v43  ;;  %1173 = vst [vmem:[#allocation2 + $0x80] sm:$0x1] %v1172_v45  ;;  %v4054_v43 = vld [vmem:[%s5740_s3 + $0x1d8] sm:$0xff]  ;;  %v1546_v53 = vshll.u32 %v1420_v51, 16 }
  0xd7   : > { %v5260_v11 = vpop.f32.mrf.mxu1  ;;  %2996 = vmatpush.bf16.msra.mxu3 %v4054_v43  ;;  %5853 = vst [vmem:[#allocation28_spill] sm:$0xff] %v5282_v37  ;;  %v4062_v43 = vld [vmem:[%s5740_s3 + $0x218] sm:$0xff]  ;;  %v5296_v54 = vsel %vm1718_vm10, %v1743_v24, %v1744_v33  ;;  %v1543_v13 = vrot.slane %v1541_v48, 1  ;;  %v5856_v24 = vshll.u32 %v4736_v62, 16  ;;  %v707_v62 = vrot.slane %v4904_v18, 4 }
  0xd8   : > { %5854 = vst [vmem:[#allocation29_spill] sm:$0xff] %v5296_v54  ;;  %3085 = vmatpush.bf16.msra.mxu0 %v4062_v43  ;;  %v1548_v17 = vrot.slane %v1546_v53, 1  ;;  %v5861_v53 = vshll.u32 %v4859_v39, 16 }
  0xd9   : > { %v5263_v29 = vpop.f32.mrf.mxu2  ;;  %v3596_v33 = vrot.slane %v5856_v24, 11  ;;  %v1544_v48 = vor.u32 %v1543_v13, %v1539_v47 }
  0xdb   : > { %v5270_v1 = vpop.f32.mrf.mxu3  ;;  %v5322_v56 = vsel %vm1429_vm9, %v1544_v48, %v1548_v17  ;;  %v5335_v17 = vld [vmem:[#allocation2 + $0x78] sm:$0xff]  }
  0xdc   : > { %2481 = vmatmul.bf16.gmra.mxu3 %v4803_v60  ;;  %2570 = vmatmul.bf16.gmra.mxu0 %v5209_v5  ;;  %5852 = vst [vmem:[#allocation27_spill] sm:$0xff] %v5270_v1  ;;  %v4046_v60 = vld [vmem:[%s5740_s3 + $0x198] sm:$0xff]  ;;  %v1174_v43 = vld [vmem:[#allocation2 + $0x8c] sm:$0x1]  ;;  %v1553_v13 = vshll.u32 %v5335_v17, 16  ;;  %v1551_v48 = vshrl.u32 %v5335_v17, 16 }
  0xdd   : > { %2907 = vmatpush.bf16.msra.mxu2 %v4046_v60  ;;  %v4014_v1 = vld [vmem:[%s5740_s3 + $0x98] sm:$0xff]  ;;  %v5301_v60 = vpop.f32.mrf.mxu0  ;;  %v1241_v24 = vld [vmem:[#allocation2 + $0x80] sm:$0x1] }
  0xde   : > { %2625 = vmatpush.bf16.msra.mxu1 %v4014_v1  ;;  %v1175_v1 = vsel %vm4996_vm8, %v3596_v33, %v1174_v43  ;;  %v1403_v33 = vunpack.c.l.b16 %v1241_v24 }
  0xdf   : > { %v5279_v61 = vpop.f32.mrf.mxu1  ;;  %1176 = vst [vmem:[#allocation2 + $0x8c] sm:$0x1] %v1175_v1  ;;  %v3597_v1 = vrot.slane %v5861_v53, 11 }
  0xe0   : > { %v1421_v51 = vpack.c.b16 %v1403_v33, %v1403_v33 }
  0xe1   : > { %v5284_v45 = vpop.f32.mrf.mxu2 }
  0xe2   : > { %2164 = vmatmul.bf16.gmra.mxu1 %v5282_v37  ;;  %v1558_v24 = vshll.u32 %v1421_v51, 16 }
  0xe3   : > { %v5298_v46 = vpop.f32.mrf.mxu3 }
  0xe4   : > { %5855 = vst [vmem:[#allocation30_spill] sm:$0xff] %v5298_v46  ;;  %v4305_v46 = vor.u32 %v4304_v52, %v4658_v22  ;;  %v940_v22 = vld [vmem:[#allocation2 + $0x98] sm:$0x1] }
  0xe5   : > { %v5319_v49 = vpop.f32.mrf.mxu0  ;;  %v941_v47 = vsel %vm4520_vm7, %v707_v62, %v940_v22  ;;  %v1555_v62 = vrot.slane %v1553_v13, 1  ;;  %v1560_v13 = vrot.slane %v1558_v24, 1 }
  0xe6   : > { %2253 = vmatmul.bf16.gmra.mxu2 %v5296_v54  ;;  %942 = vst [vmem:[#allocation2 + $0x98] sm:$0x1] %v941_v47 }
  0xe7   : > { %v5304_v5 = vpop.f32.mrf.mxu1 }
  0xe9   : > { %v5310_v26 = vpop.f32.mrf.mxu2 }
  0xea   : > { %5857 = vst [vmem:[#allocation31_spill] sm:$0xff] %v5310_v26 }
  0xec   : > { %2486 = vmatmul.bf16.gmra.mxu3 %v4927_v15  ;;  %2575 = vmatmul.bf16.gmra.mxu0 %v5243_v30  ;;  %v1746_v15 = vrot.slane %v4305_v46, 1  ;;  %v4045_v30 = vld [vmem:[%s5740_s3 + $0x190] sm:$0xff] }
  0xed   : > { %v1177_v47 = vld [vmem:[#allocation2 + $0x98] sm:$0x1]  ;;  %2908 = vmatpush.bf16.msra.mxu2 %v4045_v30  ;;  %v4013_v30 = vld [vmem:[%s5740_s3 + $0x90] sm:$0xff] }
  0xee   : > { %v5331_v18 = vsel %vm1718_vm10, %v1746_v15, %v1747_v0  ;;  %v4209_v15 = vld [vmem:[#allocation2 + $0x78] sm:$0xe]  ;;  %v1178_v39 = vsel %vm4996_vm8, %v3597_v1, %v1177_v47  ;;  %2626 = vmatpush.bf16.msra.mxu1 %v4013_v30 }
  0xef   : > { %v5316_v54 = vpop.f32.mrf.mxu3  ;;  %v2130_v26 = vpop.f32.mrf.mxu1  ;;  %5859 = vst [vmem:[#allocation33_spill] sm:$0xff] %v5331_v18 }
  0xf0   : > { %5858 = vst [vmem:[#allocation32_spill] sm:$0xff] %v5316_v54  ;;  %v2131_v43 = vadd.f32 %v2130_v26, %v5159_v42  ;;  %v4208_v42 = vld [vmem:[#allocation2 + $0x78] sm:$0xf0]  ;;  %v1556_v54 = vor.u32 %v1555_v62, %v1551_v48 }
  0xf1   : > { %v5324_v52 = vpop.f32.mrf.mxu2  ;;  %v4210_v53 = vor.u32 %v4209_v15, %v4208_v42  ;;  %1179 = vst [vmem:[#allocation2 + $0x98] sm:$0x1] %v1178_v39  ;;  %v1750_v42 = vrot.slane %v1421_v51, 1 }
  0xf2   : > { %2169 = vmatmul.bf16.gmra.mxu1 %v5322_v56  ;;  %v5357_v62 = vsel %vm1429_vm9, %v1556_v54, %v1560_v13 }
  0xf3   : > { %v1749_v1 = vrot.slane %v4210_v53, 1  ;;  %v4307_v53 = vld [vmem:[#allocation2 + $0x84] sm:$0xe] }
  0xf5   : > { %v5370_v54 = vsel %vm1718_vm10, %v1749_v1, %v1750_v42 }
  0xf6   : > { %2258 = vmatmul.bf16.gmra.mxu2 %v5331_v18 }
  0xf7   : > { %v5333_v46 = vpop.f32.mrf.mxu3  ;;  %v2132_v26 = vpop.f32.mrf.mxu1 }
  0xf8   : > { %5860 = vst [vmem:[#allocation34_spill] sm:$0xff] %v5333_v46  ;;  %v2133_v22 = vadd.f32 %v2132_v26, %v5173_v6  ;;  %v724_v26 = vrot.slane %v4524_v27, 4  ;;  %v4061_v27 = vld [vmem:[%s5740_s3 + $0x210] sm:$0xff] }
  0xf9   : > { %v2541_v0 = vpop.f32.mrf.mxu0  ;;  %v2219_v33 = vpop.f32.mrf.mxu2  ;;  %3086 = vmatpush.bf16.msra.mxu0 %v4061_v27 }
  0xfa   : > { %v2220_v46 = vadd.f32 %v2219_v33, %v2131_v43  ;;  %v1242_v43 = vld [vmem:[#allocation2 + $0x8c] sm:$0x1]  ;;  %v947_v33 = vld [vmem:[#allocation2 + $0xa4] sm:$0x1] }
  0xfb   : > { %v1404_v24 = vunpack.c.l.b16 %v1242_v43 }
  0xfc   : > { %2491 = vmatmul.bf16.gmra.mxu3 %v5033_v3  ;;  %2580 = vmatmul.bf16.gmra.mxu0 %v5282_v37  ;;  %v4053_v3 = vld [vmem:[%s5740_s3 + $0x1d0] sm:$0xff] }
  0xfd   : > { %2997 = vmatpush.bf16.msra.mxu3 %v4053_v3  ;;  %v1422_v51 = vpack.c.b16 %v1404_v24, %v1404_v24  ;;  %v1563_v3 = vshrl.u32 %v4957_v41, 16 }
  0xff   : > { %v2452_v18 = vpop.f32.mrf.mxu3  ;;  %v2135_v48 = vpop.f32.mrf.mxu1  ;;  %v1570_v43 = vshll.u32 %v1422_v51, 16 }
 0x100   : > { %v2453_v6 = vadd.f32 %v2452_v18, %v2220_v46  ;;  %v2136_v37 = vadd.f32 %v2135_v48, %v5198_v36  ;;  %v948_v18 = vsel %vm4520_vm7, %v724_v26, %v947_v33  ;;  %v5863_v26 = vshll.u32 %v4496_v59, 16 }
 0x101   : > { %v2543_v47 = vpop.f32.mrf.mxu0  ;;  %v2221_v39 = vpop.f32.mrf.mxu2  ;;  %949 = vst [vmem:[#allocation2 + $0xa4] sm:$0x1] %v948_v18  ;;  %v4308_v18 = vor.u32 %v4307_v53, %v4959_v8  ;;  %v954_v8 = vld [vmem:[#allocation2 + $0xb0] sm:$0x1] }
 0x102   : > { %v5354_v15 = vadd.f32 %v2541_v0, %v2453_v6  ;;  %v2222_v46 = vadd.f32 %v2221_v39, %v2133_v22  ;;  %2174 = vmatmul.bf16.gmra.mxu1 %v5357_v62  ;;  %v1565_v0 = vshll.u32 %v4957_v41, 16  ;;  %v3598_v48 = vrot.slane %v5863_v26, 11  ;;  %v1243_v26 = vld [vmem:[#allocation2 + $0x98] sm:$0x1] }
 0x104   : > { %5862 = vst [vmem:[#allocation35_spill] sm:$0xff] %v5354_v15  ;;  %v1567_v22 = vrot.slane %v1565_v0, 1  ;;  %v1753_v15 = vrot.slane %v1422_v51, 1 }
 0x106   : > { %2263 = vmatmul.bf16.gmra.mxu2 %v5370_v54 }
 0x107   : > { %v2454_v36 = vpop.f32.mrf.mxu3  ;;  %v2137_v6 = vpop.f32.mrf.mxu1 }
 0x108   : > { %v2455_v13 = vadd.f32 %v2454_v36, %v2222_v46  ;;  %v2138_v33 = vadd.f32 %v2137_v6, %v5221_v63  ;;  %v1180_v39 = vld [vmem:[#allocation2 + $0xa4] sm:$0x1]  ;;  %v1568_v46 = vor.u32 %v1567_v22, %v1563_v3  ;;  %v5865_v36 = vld [vmem:[#allocation7_spill] sm:$0xff] }
 0x109   : > { %v2546_v42 = vpop.f32.mrf.mxu0  ;;  %v2224_v24 = vpop.f32.mrf.mxu2  ;;  %v1181_v27 = vsel %vm4996_vm8, %v3598_v48, %v1180_v39  ;;  %v741_v0 = vrot.slane %v5865_v36, 4  ;;  %v1405_v48 = vunpack.c.l.b16 %v1243_v26 }
 0x10a   : > { %v5377_v1 = vadd.f32 %v2543_v47, %v2455_v13  ;;  %v2225_v30 = vadd.f32 %v2224_v24, %v2136_v37  ;;  %1182 = vst [vmem:[#allocation2 + $0xa4] sm:$0x1] %v1181_v27  ;;  %v1572_v47 = vrot.slane %v1570_v43, 1 }
 0x10b   : > { %v955_v3 = vsel %vm4520_vm7, %v741_v0, %v954_v8 }
 0x10c   : > { %5864 = vst [vmem:[#allocation36_spill] sm:$0xff] %v5377_v1  ;;  %2496 = vmatmul.bf16.gmra.mxu3 %v4656_v10  ;;  %2585 = vmatmul.bf16.gmra.mxu0 %v5322_v56  ;;  %v1752_v1 = vrot.slane %v4308_v18, 1  ;;  %v5389_v6 = vsel %vm1429_vm9, %v1568_v46, %v1572_v47  ;;  %v5866_v18 = vld [vmem:[#allocation5_spill] sm:$0xff] }
 0x10d   : > { %956 = vst [vmem:[#allocation2 + $0xb0] sm:$0x1] %v955_v3 }
 0x10e   : > { %v5396_v51 = vsel %vm1718_vm10, %v1752_v1, %v1753_v15 }
 0x10f   : > { %v2457_v59 = vpop.f32.mrf.mxu3  ;;  %v2140_v37 = vpop.f32.mrf.mxu1 }
 0x110   : > { %v2458_v13 = vadd.f32 %v2457_v59, %v2225_v30  ;;  %v2141_v39 = vadd.f32 %v2140_v37, %v5245_v50  ;;  %v1577_v30 = vshll.u32 %v5040_v16, 16  ;;  %v5867_v59 = vshll.u32 %v5866_v18, 16  ;;  %v4211_v50 = vld [vmem:[#allocation2 + $0x90] sm:$0xf0] }
 0x111   : > { %v2548_v53 = vpop.f32.mrf.mxu0  ;;  %v2226_v24 = vpop.f32.mrf.mxu2 }
 0x112   : > { %v5386_v63 = vadd.f32 %v2546_v42, %v2458_v13  ;;  %v2227_v22 = vadd.f32 %v2226_v24, %v2138_v33  ;;  %2179 = vmatmul.bf16.gmra.mxu1 %v5389_v6  ;;  %v1423_v42 = vpack.c.b16 %v1405_v48, %v1405_v48  ;;  %v3599_v46 = vrot.slane %v5867_v59, 11  ;;  %v4212_v13 = vld [vmem:[#allocation2 + $0x90] sm:$0xe]  ;;  %v5868_v59 = vld [vmem:[#allocation11_spill] sm:$0xff] }
 0x113   : > { %v1575_v33 = vshrl.u32 %v5040_v16, 16  ;;  %v1579_v36 = vrot.slane %v1577_v30, 1  ;;  %v4213_v3 = vor.u32 %v4212_v13, %v4211_v50 }
 0x114   : > { %v1582_v0 = vshll.u32 %v1423_v42, 16  ;;  %v1183_v48 = vld [vmem:[#allocation2 + $0xb0] sm:$0x1]  ;;  %v1756_v18 = vrot.slane %v1423_v42, 1  ;;  %v4060_v42 = vld [vmem:[%s5740_s3 + $0x208] sm:$0xff] }
 0x115   : > { %v1184_v24 = vsel %vm4996_vm8, %v3599_v46, %v1183_v48  ;;  %v758_v46 = vrot.slane %v5868_v59, 4  ;;  %3087 = vmatpush.bf16.msra.mxu0 %v4060_v42 }
 0x116   : > { %2268 = vmatmul.bf16.gmra.mxu2 %v5396_v51  ;;  %1185 = vst [vmem:[#allocation2 + $0xb0] sm:$0x1] %v1184_v24 }
 0x117   : > { %v2459_v43 = vpop.f32.mrf.mxu3  ;;  %v2142_v47 = vpop.f32.mrf.mxu1 }
 0x118   : > { %v2460_v27 = vadd.f32 %v2459_v43, %v2227_v22  ;;  %v2143_v37 = vadd.f32 %v2142_v47, %v5267_v4  ;;  %v1580_v22 = vor.u32 %v1579_v36, %v1575_v33  ;;  %v1584_v43 = vrot.slane %v1582_v0, 1  ;;  %v4052_v4 = vld [vmem:[%s5740_s3 + $0x1c8] sm:$0xff]  ;;  %v961_v0 = vld [vmem:[#allocation2 + $0xbc] sm:$0x1] }
 0x119   : > { %v2551_v15 = vpop.f32.mrf.mxu0  ;;  %v2229_v1 = vpop.f32.mrf.mxu2  ;;  %2998 = vmatpush.bf16.msra.mxu3 %v4052_v4 }
 0x11a   : > { %v5403_v26 = vadd.f32 %v2548_v53, %v2460_v27  ;;  %v2230_v8 = vadd.f32 %v2229_v1, %v2141_v39  ;;  %v4044_v53 = vld [vmem:[%s5740_s3 + $0x188] sm:$0xff]  ;;  %v1244_v39 = vld [vmem:[#allocation2 + $0xa4] sm:$0x1]  ;;  %v1755_v27 = vrot.slane %v4213_v3, 1  ;;  %v5420_v33 = vsel %vm1429_vm9, %v1580_v22, %v1584_v43 }
 0x11b   : > { %2909 = vmatpush.bf16.msra.mxu2 %v4044_v53  ;;  %v1406_v36 = vunpack.c.l.b16 %v1244_v39  ;;  %v5871_v22 = vld [vmem:[#allocation8_spill] sm:$0xff]  ;;  %v4310_v53 = vld [vmem:[#allocation2 + $0x9c] sm:$0xe] }
 0x11c   : > { %2501 = vmatmul.bf16.gmra.mxu3 %v5335_v17  ;;  %2590 = vmatmul.bf16.gmra.mxu0 %v5357_v62  ;;  %v5433_v3 = vsel %vm1718_vm10, %v1755_v27, %v1756_v18  ;;  %v1589_v43 = vshll.u32 %v5871_v22, 16 }
 0x11d   : > { %5870 = vst [vmem:[#allocation5_spill] sm:$0xff] %v5433_v3 }
 0x11f   : > { %v2462_v16 = vpop.f32.mrf.mxu3  ;;  %v2145_v47 = vpop.f32.mrf.mxu1 }
 0x120   : > { %v2463_v30 = vadd.f32 %v2462_v16, %v2230_v8  ;;  %v2146_v48 = vadd.f32 %v2145_v47, %v5301_v60  ;;  %v4012_v8 = vld [vmem:[%s5740_s3 + $0x88] sm:$0xff]  ;;  %v1424_v16 = vpack.c.b16 %v1406_v36, %v1406_v36 }
 0x121   : > { %v2553_v13 = vpop.f32.mrf.mxu0  ;;  %v2231_v1 = vpop.f32.mrf.mxu2  ;;  %2627 = vmatpush.bf16.msra.mxu1 %v4012_v8 }
 0x122   : > { %v5417_v50 = vadd.f32 %v2551_v15, %v2463_v30  ;;  %v962_v15 = vsel %vm4520_vm7, %v758_v46, %v961_v0  ;;  %v2232_v24 = vadd.f32 %v2231_v1, %v2143_v37  ;;  %2184 = vmatmul.bf16.gmra.mxu1 %v5420_v33  ;;  %v1587_v30 = vshrl.u32 %v5871_v22, 16  ;;  %v5872_v46 = vld [vmem:[#allocation10_spill] sm:$0xff] }
 0x123   : > { %963 = vst [vmem:[#allocation2 + $0xbc] sm:$0x1] %v962_v15  ;;  %v1591_v37 = vrot.slane %v1589_v43, 1  ;;  %v1594_v59 = vshll.u32 %v1424_v16, 16  ;;  %v5873_v47 = vshll.u32 %v5872_v46, 16 }
 0x124   : > { %5869 = vst [vmem:[#allocation7_spill] sm:$0xff] %v5417_v50 }
 0x125   : > { %v3600_v0 = vrot.slane %v5873_v47, 11  ;;  %v1592_v46 = vor.u32 %v1591_v37, %v1587_v30 }
 0x126   : > { %2273 = vmatmul.bf16.gmra.mxu2 %v5433_v3  ;;  %v1759_v3 = vrot.slane %v1424_v16, 1 }
 0x127   : > { %v2464_v60 = vpop.f32.mrf.mxu3  ;;  %v2147_v39 = vpop.f32.mrf.mxu1 }
 0x128   : > { %v2465_v4 = vadd.f32 %v2464_v60, %v2232_v24  ;;  %v2148_v1 = vadd.f32 %v2147_v39, %v5319_v49  ;;  %v5875_v24 = vld [vmem:[#allocation9_spill] sm:$0xff] }
 0x129   : > { %v2556_v18 = vpop.f32.mrf.mxu0  ;;  %v2234_v36 = vpop.f32.mrf.mxu2  ;;  %v4311_v60 = vor.u32 %v4310_v53, %v5875_v24  ;;  %v968_v53 = vld [vmem:[#allocation2 + $0xc8] sm:$0x1] }
 0x12a   : > { %v5440_v27 = vadd.f32 %v2553_v13, %v2465_v4  ;;  %v1186_v8 = vld [vmem:[#allocation2 + $0xbc] sm:$0x1]  ;;  %v2235_v42 = vadd.f32 %v2234_v36, %v2146_v48  ;;  %v1596_v13 = vrot.slane %v1594_v59, 1  ;;  %v775_v4 = vrot.slane %v4961_v44, 4 }
 0x12b   : > { %v1187_v15 = vsel %vm4996_vm8, %v3600_v0, %v1186_v8  ;;  %v1758_v50 = vrot.slane %v4311_v60, 1 }
 0x12c   : > { %5874 = vst [vmem:[#allocation11_spill] sm:$0xff] %v5440_v27  ;;  %2506 = vmatmul.bf16.gmra.mxu3 %v4957_v41  ;;  %2595 = vmatmul.bf16.gmra.mxu0 %v5389_v6  ;;  %v1245_v27 = vld [vmem:[#allocation2 + $0xb0] sm:$0x1]  ;;  %v5452_v39 = vsel %vm1429_vm9, %v1592_v46, %v1596_v13  ;;  %v969_v30 = vsel %vm4520_vm7, %v775_v4, %v968_v53  ;;  %v4215_v4 = vld [vmem:[#allocation2 + $0xa8] sm:$0xe] }
 0x12d   : > { %1188 = vst [vmem:[#allocation2 + $0xbc] sm:$0x1] %v1187_v15  ;;  %v1407_v0 = vunpack.c.l.b16 %v1245_v27  ;;  %v5458_v44 = vsel %vm1718_vm10, %v1758_v50, %v1759_v3  ;;  %v5876_v15 = vld [vmem:[#allocation12_spill] sm:$0xff]  ;;  %v4214_v3 = vld [vmem:[#allocation2 + $0xa8] sm:$0xf0]  ;;  %v5470_v53 = vld [vmem:[#allocation2 + $0x90] sm:$0xff]  }
 0x12e   : > { %970 = vst [vmem:[#allocation2 + $0xc8] sm:$0x1] %v969_v30  ;;  %v5877_v24 = vshll.u32 %v5876_v15, 16  ;;  %v4216_v15 = vor.u32 %v4215_v4, %v4214_v3 }
 0x12f   : > { %v2467_v43 = vpop.f32.mrf.mxu3  ;;  %v2150_v48 = vpop.f32.mrf.mxu1  ;;  %v1425_v59 = vpack.c.b16 %v1407_v0, %v1407_v0 }
 0x130   : > { %v2468_v47 = vadd.f32 %v2467_v43, %v2235_v42  ;;  %v3601_v60 = vrot.slane %v5877_v24, 11  ;;  %v2151_v43 = vadd.f32 %v2150_v48, %v5161_v40 }
 0x131   : > { %v2558_v36 = vpop.f32.mrf.mxu0  ;;  %v2236_v8 = vpop.f32.mrf.mxu2  ;;  %v1606_v50 = vshll.u32 %v1425_v59, 16  ;;  %v1762_v3 = vrot.slane %v1425_v59, 1 }
 0x132   : > { %v5449_v49 = vadd.f32 %v2556_v18, %v2468_v47  ;;  %v2237_v37 = vadd.f32 %v2236_v8, %v2148_v1  ;;  %2189 = vmatmul.bf16.gmra.mxu1 %v5452_v39  ;;  %v5460_v18 = vld [vmem:[#allocation2 + $0xa8] sm:$0xff]  }
 0x133   : > { %v1601_v42 = vshll.u32 %v5460_v18, 16  ;;  %v1599_v1 = vshrl.u32 %v5460_v18, 16 }
 0x135   : > { %v1603_v13 = vrot.slane %v1601_v42, 1  ;;  %v1189_v30 = vld [vmem:[#allocation2 + $0xc8] sm:$0x1]  ;;  %v1608_v42 = vrot.slane %v1606_v50, 1 }
 0x136   : > { %2278 = vmatmul.bf16.gmra.mxu2 %v5458_v44 }
 0x137   : > { %v2469_v16 = vpop.f32.mrf.mxu3  ;;  %v2152_v46 = vpop.f32.mrf.mxu1  ;;  %v1604_v48 = vor.u32 %v1603_v13, %v1599_v1 }
 0x138   : > { %v2470_v27 = vadd.f32 %v2469_v16, %v2237_v37  ;;  %v1190_v16 = vsel %vm4996_vm8, %v3601_v60, %v1189_v30  ;;  %v1761_v60 = vrot.slane %v4216_v15, 1  ;;  %v4059_v15 = vld [vmem:[%s5740_s3 + $0x200] sm:$0xff] }
 0x139   : > { %v2561_v0 = vpop.f32.mrf.mxu0  ;;  %v2239_v8 = vpop.f32.mrf.mxu2  ;;  %1191 = vst [vmem:[#allocation2 + $0xc8] sm:$0x1] %v1190_v16  ;;  %v5486_v13 = vsel %vm1429_vm9, %v1604_v48, %v1608_v42  ;;  %3088 = vmatpush.bf16.msra.mxu0 %v4059_v15  ;;  %v4313_v42 = vld [vmem:[#allocation2 + $0xb4] sm:$0xe] }
 0x13a   : > { %v5468_v47 = vadd.f32 %v2558_v36, %v2470_v27  ;;  %v2240_v37 = vadd.f32 %v2239_v8, %v2151_v43  ;;  %v4043_v36 = vld [vmem:[%s5740_s3 + $0x180] sm:$0xff]  ;;  %v1246_v43 = vld [vmem:[#allocation2 + $0xbc] sm:$0x1]  ;;  %v2153_v8 = vadd.f32 %v2152_v46, %v5180_v28  ;;  %v5496_v28 = vsel %vm1718_vm10, %v1761_v60, %v1762_v3 }
 0x13b   : > { %v4051_v27 = vld [vmem:[%s5740_s3 + $0x1c0] sm:$0xff]  ;;  %2910 = vmatpush.bf16.msra.mxu2 %v4043_v36  ;;  %v1408_v50 = vunpack.c.l.b16 %v1246_v43  ;;  %5880 = vst [vmem:[#allocation9_spill] sm:$0xff] %v5496_v28 }
 0x13c   : > { %5878 = vst [vmem:[#allocation8_spill] sm:$0xff] %v5468_v47  ;;  %2511 = vmatmul.bf16.gmra.mxu3 %v5470_v53  ;;  %2600 = vmatmul.bf16.gmra.mxu0 %v5420_v33 }
 0x13d   : > { %2999 = vmatpush.bf16.msra.mxu3 %v4051_v27 }
 0x13f   : > { %v2472_v40 = vpop.f32.mrf.mxu3  ;;  %v2155_v1 = vpop.f32.mrf.mxu1 }
 0x140   : > { %v2473_v24 = vadd.f32 %v2472_v40, %v2240_v37  ;;  %v4011_v37 = vld [vmem:[%s5740_s3 + $0x80] sm:$0xff]  ;;  %v5881_v40 = vld [vmem:[#allocation14_spill] sm:$0xff] }
 0x141   : > { %v2563_v30 = vpop.f32.mrf.mxu0  ;;  %v2241_v16 = vpop.f32.mrf.mxu2  ;;  %v1613_v48 = vshll.u32 %v5881_v40, 16  ;;  %2628 = vmatpush.bf16.msra.mxu1 %v4011_v37 }
 0x142   : > { %v5482_v4 = vadd.f32 %v2561_v0, %v2473_v24  ;;  %v2242_v59 = vadd.f32 %v2241_v16, %v2153_v8  ;;  %2194 = vmatmul.bf16.gmra.mxu1 %v5486_v13  ;;  %v1426_v0 = vpack.c.b16 %v1408_v50, %v1408_v50  ;;  %v2156_v24 = vadd.f32 %v2155_v1, %v5205_v57 }
 0x143   : > { %v1611_v8 = vshrl.u32 %v5881_v40, 16  ;;  %v1615_v16 = vrot.slane %v1613_v48, 1 }
 0x144   : > { %5879 = vst [vmem:[#allocation10_spill] sm:$0xff] %v5482_v4  ;;  %v1618_v60 = vshll.u32 %v1426_v0, 16  ;;  %v5883_v4 = vld [vmem:[#allocation15_spill] sm:$0xff]  ;;  %v1765_v1 = vrot.slane %v1426_v0, 1 }
 0x145   : > { %v4314_v19 = vor.u32 %v4313_v42, %v5883_v4 }
 0x146   : > { %2283 = vmatmul.bf16.gmra.mxu2 %v5496_v28 }
 0x147   : > { %v2474_v46 = vpop.f32.mrf.mxu3  ;;  %v2157_v43 = vpop.f32.mrf.mxu1  ;;  %v1764_v57 = vrot.slane %v4314_v19, 1 }
 0x148   : > { %v2475_v36 = vadd.f32 %v2474_v46, %v2242_v59  ;;  %v1616_v59 = vor.u32 %v1615_v16, %v1611_v8  ;;  %v2158_v48 = vadd.f32 %v2157_v43, %v5225_v35  ;;  %v5517_v16 = vld [vmem:[#allocation2 + $0xc0] sm:$0xff]  }
 0x149   : > { %v2566_v3 = vpop.f32.mrf.mxu0  ;;  %v2244_v50 = vpop.f32.mrf.mxu2  ;;  %v5515_v8 = vsel %vm1718_vm10, %v1764_v57, %v1765_v1  ;;  %5886 = vst [vmem:[#allocation37_spill] sm:$0xff] %v5517_v16  ;;  %v1625_v19 = vshll.u32 %v5517_v16, 16  ;;  %v1623_v43 = vshrl.u32 %v5517_v16, 16 }
 0x14a   : > { %v5500_v27 = vadd.f32 %v2563_v30, %v2475_v36  ;;  %v2245_v15 = vadd.f32 %v2244_v50, %v2156_v24  ;;  %v1620_v30 = vrot.slane %v1618_v60, 1  ;;  %v1247_v36 = vld [vmem:[#allocation2 + $0xc8] sm:$0x1]  ;;  %5885 = vst [vmem:[#allocation15_spill] sm:$0xff] %v5515_v8 }
 0x14b   : > { %v1409_v24 = vunpack.c.l.b16 %v1247_v36  ;;  %v4218_v36 = vld [vmem:[#allocation2 + $0xc0] sm:$0xe] }
 0x14c   : > { %5882 = vst [vmem:[#allocation12_spill] sm:$0xff] %v5500_v27  ;;  %2516 = vmatmul.bf16.gmra.mxu3 %v5871_v22  ;;  %2605 = vmatmul.bf16.gmra.mxu0 %v5452_v39  ;;  %v5511_v47 = vsel %vm1429_vm9, %v1616_v59, %v1620_v30 }
 0x14d   : > { %v1427_v60 = vpack.c.b16 %v1409_v24, %v1409_v24 }
 0x14f   : > { %v2477_v37 = vpop.f32.mrf.mxu3  ;;  %v2160_v28 = vpop.f32.mrf.mxu1  ;;  %v1630_v30 = vshll.u32 %v1427_v60, 16 }
 0x150   : > { %v2478_v46 = vadd.f32 %v2477_v37, %v2245_v15  ;;  %v1627_v15 = vrot.slane %v1625_v19, 1  ;;  %v2161_v37 = vadd.f32 %v2160_v28, %v5240_v31  ;;  %v1768_v19 = vrot.slane %v1427_v60, 1  ;;  %v4194_v60 = vld [vmem:[#allocation2] sm:$0xe] }
 0x151   : > { %v2568_v50 = vpop.f32.mrf.mxu0  ;;  %v2246_v4 = vpop.f32.mrf.mxu2 }
 0x152   : > { %v5507_v27 = vadd.f32 %v2566_v3, %v2478_v46  ;;  %v2247_v42 = vadd.f32 %v2246_v4, %v2158_v48  ;;  %2199 = vmatmul.bf16.gmra.mxu1 %v5511_v47  ;;  %v4217_v46 = vld [vmem:[#allocation2 + $0xc0] sm:$0xf0] }
 0x153   : > { %v4219_v24 = vor.u32 %v4218_v36, %v4217_v46 }
 0x154   : > { %5884 = vst [vmem:[#allocation14_spill] sm:$0xff] %v5507_v27 }
 0x156   : > { %2288 = vmatmul.bf16.gmra.mxu2 %v5515_v8 }
 0x157   : > { %v2479_v0 = vpop.f32.mrf.mxu3  ;;  %v2162_v59 = vpop.f32.mrf.mxu1 }
 0x158   : > { %v2480_v35 = vadd.f32 %v2479_v0, %v2247_v42  ;;  %v1628_v42 = vor.u32 %v1627_v15, %v1623_v43  ;;  %v1632_v0 = vrot.slane %v1630_v30, 1  ;;  %v2163_v31 = vadd.f32 %v2162_v59, %v5260_v11  ;;  %v4193_v30 = vld [vmem:[#allocation2] sm:$0xf0] }
 0x159   : > { %v2571_v57 = vpop.f32.mrf.mxu0  ;;  %v2249_v1 = vpop.f32.mrf.mxu2 }
 0x15a   : > { %v5522_v3 = vadd.f32 %v2568_v50, %v2480_v35  ;;  %v2250_v48 = vadd.f32 %v2249_v1, %v2161_v37  ;;  %v1767_v35 = vrot.slane %v4219_v24, 1  ;;  %v5531_v16 = vsel %vm1429_vm9, %v1628_v42, %v1632_v0 }
 0x15b   : > { %v1720_v42 = vrot.slane %v5065_v20, 1 }
 0x15c   : > { %5887 = vst [vmem:[#allocation38_spill] sm:$0xff] %v5522_v3  ;;  %2521 = vmatmul.bf16.gmra.mxu3 %v5460_v18  ;;  %2610 = vmatmul.bf16.gmra.mxu0 %v5486_v13  ;;  %v5535_v46 = vsel %vm1718_vm10, %v1767_v35, %v1768_v19 }
 0x15f   : > { %v2482_v4 = vpop.f32.mrf.mxu3  ;;  %v2165_v28 = vpop.f32.mrf.mxu1 }
 0x160   : > { %v2483_v50 = vadd.f32 %v2482_v4, %v2250_v48  ;;  %v2166_v11 = vadd.f32 %v2165_v28, %v5279_v61 }
 0x161   : > { %v2573_v27 = vpop.f32.mrf.mxu0  ;;  %v2251_v8 = vpop.f32.mrf.mxu2 }
 0x162   : > { %v5527_v3 = vadd.f32 %v2571_v57, %v2483_v50  ;;  %v2252_v37 = vadd.f32 %v2251_v8, %v2163_v31  ;;  %2204 = vmatmul.bf16.gmra.mxu1 %v5531_v16  ;;  %v4195_v57 = vor.u32 %v4194_v60, %v4193_v30 }
 0x164   : > { %v1719_v4 = vrot.slane %v4195_v57, 1 }
 0x166   : > { %2293 = vmatmul.bf16.gmra.mxu2 %v5535_v46  ;;  %v1721_v61 = vsel %vm1718_vm10, %v1719_v4, %v1720_v42 }
 0x167   : > { %v2484_v43 = vpop.f32.mrf.mxu3  ;;  %v2167_v59 = vpop.f32.mrf.mxu1 }
 0x168   : > { %v2485_v15 = vadd.f32 %v2484_v43, %v2252_v37 }
 0x169   : > { %v2576_v1 = vpop.f32.mrf.mxu0  ;;  %v2254_v8 = vpop.f32.mrf.mxu2 }
 0x16a   : > { %v5538_v36 = vadd.f32 %v2573_v27, %v2485_v15  ;;  %v2255_v48 = vadd.f32 %v2254_v8, %v2166_v11  ;;  %v2168_v27 = vadd.f32 %v2167_v59, %v5304_v5  ;;  %v4287_v15 = vld [vmem:[#allocation2 + $0x18] sm:$0xff]  }
 0x16c   : > { %2526 = vmatmul.bf16.gmra.mxu3 %v5881_v40  ;;  %2615 = vmatmul.bf16.gmra.mxu0 %v5511_v47 }
 0x16f   : > { %v2487_v24 = vpop.f32.mrf.mxu3  ;;  %v2170_v35 = vpop.f32.mrf.mxu1 }
 0x170   : > { %v2488_v0 = vadd.f32 %v2487_v24, %v2255_v48  ;;  %v2171_v20 = vadd.f32 %v2170_v35, %v5178_v34 }
 0x171   : > { %v2578_v19 = vpop.f32.mrf.mxu0  ;;  %v2256_v31 = vpop.f32.mrf.mxu2 }
 0x172   : > { %v5544_v50 = vadd.f32 %v2576_v1, %v2488_v0  ;;  %v2257_v28 = vadd.f32 %v2256_v31, %v2168_v27  ;;  %2629 = vmatmul.bf16.vlgmr.msra.gmra.mxu1 %v1721_v61 }
 0x176   : > { %2911 = vmatmul.bf16.vlgmr.msra.gmra.mxu2 %v4287_v15 }
 0x177   : > { %v2489_v37 = vpop.f32.mrf.mxu3  ;;  %v2172_v60 = vpop.f32.mrf.mxu1 }
 0x178   : > { %v2490_v43 = vadd.f32 %v2489_v37, %v2257_v28  ;;  %v2173_v48 = vadd.f32 %v2172_v60, %v5203_v7 }
 0x179   : > { %v2581_v11 = vpop.f32.mrf.mxu0  ;;  %v2259_v5 = vpop.f32.mrf.mxu2 }
 0x17a   : > { %v5548_v30 = vadd.f32 %v2578_v19, %v2490_v43  ;;  %v2260_v59 = vadd.f32 %v2259_v5, %v2171_v20  ;;  %v4288_v5 = vld [vmem:[#allocation2 + $0x30] sm:$0xff]  }
 0x17c   : > { %3000 = vmatmul.bf16.vlgmr.msra.gmra.mxu3 %v5089_v32  ;;  %3089 = vmatmul.bf16.vlgmr.msra.gmra.mxu0 %v5095_v38 }
 0x17f   : > { %v2492_v57 = vpop.f32.mrf.mxu3  ;;  %v2175_v24 = vpop.f32.mrf.mxu1 }
 0x180   : > { %v2493_v1 = vadd.f32 %v2492_v57, %v2260_v59  ;;  %v2176_v35 = vadd.f32 %v2175_v24, %v5223_v2 }
 0x181   : > { %v2583_v4 = vpop.f32.mrf.mxu0  ;;  %v2261_v42 = vpop.f32.mrf.mxu2 }
 0x182   : > { %v5553_v8 = vadd.f32 %v2581_v11, %v2493_v1  ;;  %v2262_v0 = vadd.f32 %v2261_v42, %v2173_v48  ;;  %2634 = vmatmul.bf16.gmra.mxu1 %v5062_v23 }
 0x186   : > { %2916 = vmatmul.bf16.gmra.mxu2 %v4872_v58 }
 0x187   : > { %v2494_v34 = vpop.f32.mrf.mxu3  ;;  %v2177_v61 = vpop.f32.mrf.mxu1 }
 0x188   : > { %v2495_v27 = vadd.f32 %v2494_v34, %v2262_v0  ;;  %v2178_v23 = vadd.f32 %v2177_v61, %v5238_v14 }
 0x189   : > { %v2586_v19 = vpop.f32.mrf.mxu0  ;;  %v2264_v31 = vpop.f32.mrf.mxu2 }
 0x18a   : > { %v5558_v32 = vadd.f32 %v2583_v4, %v2495_v27  ;;  %v2265_v7 = vadd.f32 %v2264_v31, %v2176_v35  ;;  %v5889_v31 = vld [vmem:[#allocation31_spill] sm:$0xff] }
 0x18c   : > { %3005 = vmatmul.bf16.gmra.mxu3 %v5109_v12  ;;  %3094 = vmatmul.bf16.gmra.mxu0 %v5115_v55 }
 0x18f   : > { %v2497_v28 = vpop.f32.mrf.mxu3  ;;  %v2180_v15 = vpop.f32.mrf.mxu1 }
 0x190   : > { %v2498_v37 = vadd.f32 %v2497_v28, %v2265_v7  ;;  %v2181_v59 = vadd.f32 %v2180_v15, %v5263_v29 }
 0x191   : > { %v2588_v58 = vpop.f32.mrf.mxu0  ;;  %v2266_v20 = vpop.f32.mrf.mxu2 }
 0x192   : > { %v5563_v43 = vadd.f32 %v2586_v19, %v2498_v37  ;;  %v2267_v60 = vadd.f32 %v2266_v20, %v2178_v23  ;;  %2639 = vmatmul.bf16.gmra.mxu1 %v5095_v38  ;;  %v5888_v19 = vld [vmem:[#allocation6_spill] sm:$0xff]  ;;  %v5890_v23 = vld [vmem:[#allocation17_spill] sm:$0xff] }
 0x196   : > { %2921 = vmatmul.bf16.gmra.mxu2 %v4288_v5 }
 0x197   : > { %v2499_v2 = vpop.f32.mrf.mxu3  ;;  %v2182_v57 = vpop.f32.mrf.mxu1 }
 0x198   : > { %v2500_v11 = vadd.f32 %v2499_v2, %v2267_v60  ;;  %v2183_v38 = vadd.f32 %v2182_v57, %v5284_v45 }
 0x199   : > { %v2591_v1 = vpop.f32.mrf.mxu0  ;;  %v2269_v48 = vpop.f32.mrf.mxu2 }
 0x19a   : > { %v5567_v12 = vadd.f32 %v2588_v58, %v2500_v11  ;;  %v2270_v14 = vadd.f32 %v2269_v48, %v2181_v59  ;;  %v5891_v58 = vld [vmem:[#allocation18_spill] sm:$0xff] }
 0x19c   : > { %3010 = vmatmul.bf16.gmra.mxu3 %v5140_v9  ;;  %3099 = vmatmul.bf16.gmra.mxu0 %v5146_v25 }
 0x19f   : > { %v2502_v24 = vpop.f32.mrf.mxu3  ;;  %v2185_v0 = vpop.f32.mrf.mxu1 }
 0x1a0   : > { %v2503_v4 = vadd.f32 %v2502_v24, %v2270_v14  ;;  %v2186_v7 = vadd.f32 %v2185_v0, %v5889_v31  ;;  %v4289_v14 = vld [vmem:[#allocation2 + $0x48] sm:$0xff]  }
 0x1a1   : > { %v2593_v34 = vpop.f32.mrf.mxu0  ;;  %v2271_v27 = vpop.f32.mrf.mxu2 }
 0x1a2   : > { %v5572_v42 = vadd.f32 %v2591_v1, %v2503_v4  ;;  %v2272_v35 = vadd.f32 %v2271_v27, %v2183_v38  ;;  %2644 = vmatmul.bf16.gmra.mxu1 %v5115_v55  ;;  %v5892_v4 = vld [vmem:[#allocation19_spill] sm:$0xff]  ;;  %v5893_v27 = vld [vmem:[#allocation20_spill] sm:$0xff] }
 0x1a6   : > { %2926 = vmatmul.bf16.gmra.mxu2 %v5888_v19 }
 0x1a7   : > { %v2504_v29 = vpop.f32.mrf.mxu3  ;;  %v2187_v28 = vpop.f32.mrf.mxu1 }
 0x1a8   : > { %v2505_v61 = vadd.f32 %v2504_v29, %v2272_v35  ;;  %v2188_v55 = vadd.f32 %v2187_v28, %v5324_v52  ;;  %v5894_v29 = vld [vmem:[#allocation22_spill] sm:$0xff] }
 0x1a9   : > { %v2596_v37 = vpop.f32.mrf.mxu0  ;;  %v2274_v15 = vpop.f32.mrf.mxu2 }
 0x1aa   : > { %v5577_v9 = vadd.f32 %v2593_v34, %v2505_v61  ;;  %v2275_v45 = vadd.f32 %v2274_v15, %v2186_v7 }
 0x1ac   : > { %3015 = vmatmul.bf16.gmra.mxu3 %v5890_v23  ;;  %3104 = vmatmul.bf16.gmra.mxu0 %v5891_v58 }
 0x1af   : > { %v2507_v20 = vpop.f32.mrf.mxu3  ;;  %v2190_v11 = vpop.f32.mrf.mxu1 }
 0x1b0   : > { %v2508_v60 = vadd.f32 %v2507_v20, %v2275_v45  ;;  %v2191_v38 = vadd.f32 %v2190_v11, %v5892_v4  ;;  %v5897_v11 = vld [vmem:[#allocation23_spill] sm:$0xff]  ;;  %v5899_v4 = vld [vmem:[#allocation26_spill] sm:$0xff] }
 0x1b1   : > { %v2598_v5 = vpop.f32.mrf.mxu0  ;;  %v2276_v59 = vpop.f32.mrf.mxu2 }
 0x1b2   : > { %v5582_v2 = vadd.f32 %v2596_v37, %v2508_v60  ;;  %v2277_v57 = vadd.f32 %v2276_v59, %v2188_v55  ;;  %2649 = vmatmul.bf16.gmra.mxu1 %v5146_v25  ;;  %v5895_v25 = vld [vmem:[#allocation21_spill] sm:$0xff] }
 0x1b3   : > { %v5896_v60 = vld [vmem:[#allocation13_spill] sm:$0xff] }
 0x1b6   : > { %2931 = vmatmul.bf16.gmra.mxu2 %v4289_v14 }
 0x1b7   : > { %v2509_v1 = vpop.f32.mrf.mxu3  ;;  %v2192_v0 = vpop.f32.mrf.mxu1 }
 0x1b8   : > { %v2510_v48 = vadd.f32 %v2509_v1, %v2277_v57  ;;  %v2193_v7 = vadd.f32 %v2192_v0, %v5895_v25  ;;  %v5898_v1 = vld [vmem:[#allocation24_spill] sm:$0xff] }
 0x1b9   : > { %v2601_v34 = vpop.f32.mrf.mxu0  ;;  %v2279_v35 = vpop.f32.mrf.mxu2 }
 0x1ba   : > { %v5586_v24 = vadd.f32 %v2598_v5, %v2510_v48  ;;  %v2280_v52 = vadd.f32 %v2279_v35, %v2191_v38 }
 0x1bc   : > { %3020 = vmatmul.bf16.gmra.mxu3 %v5893_v27  ;;  %3109 = vmatmul.bf16.gmra.mxu0 %v5894_v29 }
 0x1bf   : > { %v2512_v61 = vpop.f32.mrf.mxu3  ;;  %v2195_v28 = vpop.f32.mrf.mxu1 }
 0x1c0   : > { %v2513_v19 = vadd.f32 %v2512_v61, %v2280_v52  ;;  %v2196_v5 = vadd.f32 %v2195_v28, %v5897_v11  ;;  %v4290_v28 = vld [vmem:[#allocation2 + $0x60] sm:$0xff]  }
 0x1c1   : > { %v2603_v37 = vpop.f32.mrf.mxu0  ;;  %v2281_v23 = vpop.f32.mrf.mxu2 }
 0x1c2   : > { %v5591_v31 = vadd.f32 %v2601_v34, %v2513_v19  ;;  %v2282_v15 = vadd.f32 %v2281_v23, %v2193_v7  ;;  %2654 = vmatmul.bf16.gmra.mxu1 %v5891_v58  ;;  %v5900_v58 = vld [vmem:[#allocation25_spill] sm:$0xff]  ;;  %v5901_v23 = vld [vmem:[#allocation27_spill] sm:$0xff] }
 0x1c6   : > { %2936 = vmatmul.bf16.gmra.mxu2 %v5896_v60  ;;  %v5902_v60 = vld [vmem:[#allocation28_spill] sm:$0xff] }
 0x1c7   : > { %v2514_v45 = vpop.f32.mrf.mxu3  ;;  %v2197_v59 = vpop.f32.mrf.mxu1 }
 0x1c8   : > { %v2515_v20 = vadd.f32 %v2514_v45, %v2282_v15  ;;  %v2198_v27 = vadd.f32 %v2197_v59, %v5900_v58  ;;  %v5903_v59 = vld [vmem:[#allocation29_spill] sm:$0xff] }
 0x1c9   : > { %v2606_v57 = vpop.f32.mrf.mxu0  ;;  %v2284_v48 = vpop.f32.mrf.mxu2 }
 0x1ca   : > { %v5596_v55 = vadd.f32 %v2603_v37, %v2515_v20  ;;  %v2285_v14 = vadd.f32 %v2284_v48, %v2196_v5 }
 0x1cc   : > { %3025 = vmatmul.bf16.gmra.mxu3 %v5898_v1  ;;  %3114 = vmatmul.bf16.gmra.mxu0 %v5899_v4 }
 0x1cf   : > { %v2517_v38 = vpop.f32.mrf.mxu3  ;;  %v2200_v35 = vpop.f32.mrf.mxu1 }
 0x1d0   : > { %v2518_v0 = vadd.f32 %v2517_v38, %v2285_v14  ;;  %v2201_v15 = vadd.f32 %v2200_v35, %v5901_v23 }
 0x1d1   : > { %v2608_v52 = vpop.f32.mrf.mxu0  ;;  %v2286_v61 = vpop.f32.mrf.mxu2 }
 0x1d2   : > { %v5601_v34 = vadd.f32 %v2606_v57, %v2518_v0  ;;  %v2287_v19 = vadd.f32 %v2286_v61, %v2198_v27  ;;  %2659 = vmatmul.bf16.gmra.mxu1 %v5894_v29  ;;  %v5904_v29 = vld [vmem:[#allocation30_spill] sm:$0xff] }
 0x1d6   : > { %2941 = vmatmul.bf16.gmra.mxu2 %v4290_v28 }
 0x1d7   : > { %v2519_v25 = vpop.f32.mrf.mxu3  ;;  %v2202_v45 = vpop.f32.mrf.mxu1 }
 0x1d8   : > { %v2520_v7 = vadd.f32 %v2519_v25, %v2287_v19  ;;  %v2203_v14 = vadd.f32 %v2202_v45, %v5904_v29  ;;  %v5905_v19 = vld [vmem:[#allocation32_spill] sm:$0xff]  ;;  %v5906_v45 = vld [vmem:[#allocation33_spill] sm:$0xff] }
 0x1d9   : > { %v2611_v20 = vpop.f32.mrf.mxu0  ;;  %v2289_v11 = vpop.f32.mrf.mxu2 }
 0x1da   : > { %v5605_v37 = vadd.f32 %v2608_v52, %v2520_v7  ;;  %v2290_v5 = vadd.f32 %v2289_v11, %v2201_v15 }
 0x1dc   : > { %3030 = vmatmul.bf16.gmra.mxu3 %v5902_v60  ;;  %3119 = vmatmul.bf16.gmra.mxu0 %v5903_v59 }
 0x1df   : > { %v2522_v57 = vpop.f32.mrf.mxu3  ;;  %v2205_v38 = vpop.f32.mrf.mxu1 }
 0x1e0   : > { %v2523_v1 = vadd.f32 %v2522_v57, %v2290_v5  ;;  %v2206_v25 = vadd.f32 %v2205_v38, %v5905_v19 }
 0x1e1   : > { %v2613_v0 = vpop.f32.mrf.mxu0  ;;  %v2291_v58 = vpop.f32.mrf.mxu2 }
 0x1e2   : > { %v5610_v48 = vadd.f32 %v2611_v20, %v2523_v1  ;;  %v2292_v27 = vadd.f32 %v2291_v58, %v2203_v14  ;;  %2664 = vmatmul.bf16.gmra.mxu1 %v5899_v4  ;;  %v5907_v4 = vld [vmem:[#allocation34_spill] sm:$0xff] }
 0x1e6   : > { %2946 = vmatmul.bf16.gmra.mxu2 %v4656_v10 }
 0x1e7   : > { %v2524_v35 = vpop.f32.mrf.mxu3  ;;  %v2207_v7 = vpop.f32.mrf.mxu1 }
 0x1e8   : > { %v2525_v52 = vadd.f32 %v2524_v35, %v2292_v27  ;;  %v2208_v5 = vadd.f32 %v2207_v7, %v5907_v4 }
 0x1e9   : > { %v2616_v28 = vpop.f32.mrf.mxu0  ;;  %v2294_v23 = vpop.f32.mrf.mxu2 }
 0x1ea   : > { %v5615_v61 = vadd.f32 %v2613_v0, %v2525_v52  ;;  %v2295_v15 = vadd.f32 %v2294_v23, %v2206_v25 }
 0x1ec   : > { %3035 = vmatmul.bf16.gmra.mxu3 %v5322_v56  ;;  %3124 = vmatmul.bf16.gmra.mxu0 %v5906_v45 }
 0x1ef   : > { %v2527_v20 = vpop.f32.mrf.mxu3  ;;  %v2630_v57 = vpop.f32.mrf.mxu1 }
 0x1f0   : > { %v2528_v60 = vadd.f32 %v2527_v20, %v2295_v15 }
 0x1f1   : > { %v2618_v10 = vpop.f32.mrf.mxu0  ;;  %v2296_v1 = vpop.f32.mrf.mxu2 }
 0x1f2   : > { %v5620_v11 = vadd.f32 %v2616_v28, %v2528_v60  ;;  %v2297_v29 = vadd.f32 %v2296_v1, %v2208_v5  ;;  %2669 = vmatmul.bf16.gmra.mxu1 %v5903_v59 }
 0x1f6   : > { %2951 = vmatmul.bf16.gmra.mxu2 %v5335_v17  ;;  %v5908_v17 = vld [vmem:[#allocation35_spill] sm:$0xff] }
 0x1f7   : > { %v2529_v14 = vpop.f32.mrf.mxu3  ;;  %v2632_v0 = vpop.f32.mrf.mxu1  ;;  %v2631_v23 = vadd.f32 %v2630_v57, %v5908_v17 }
 0x1f8   : > { %v2530_v38 = vadd.f32 %v2529_v14, %v2297_v29 }
 0x1f9   : > { %v3090_v58 = vpop.f32.mrf.mxu0  ;;  %v2912_v27 = vpop.f32.mrf.mxu2 }
 0x1fa   : > { %v5625_v56 = vadd.f32 %v2618_v10, %v2530_v38 }
 0x1fc   : > { %3040 = vmatmul.bf16.gmra.mxu3 %v5357_v62  ;;  %3129 = vmatmul.bf16.gmra.mxu0 %v5370_v54  ;;  %v5909_v62 = vld [vmem:[#allocation36_spill] sm:$0xff] }
 0x1fd   : > { %v2633_v60 = vadd.f32 %v2632_v0, %v5909_v62 }
 0x1ff   : > { %v3001_v35 = vpop.f32.mrf.mxu3  ;;  %v2635_v19 = vpop.f32.mrf.mxu1 }
 0x200   : > { %v3002_v52 = vadd.f32 %v3001_v35, %v2912_v27  ;;  %v2636_v27 = vadd.f32 %v2635_v19, %v5386_v63 }
 0x201   : > { %v3092_v25 = vpop.f32.mrf.mxu0  ;;  %v2914_v7 = vpop.f32.mrf.mxu2 }
 0x202   : > { %v3091_v59 = vadd.f32 %v3090_v58, %v3002_v52  ;;  %2674 = vmatmul.bf16.gmra.mxu1 %v5906_v45 }
 0x204   : > { %v3170_v20 = vadd.f32 %v3091_v59, %v2631_v23 }
 0x206   : > { %2956 = vmatmul.bf16.gmra.mxu2 %v4957_v41  ;;  %v3303_v45 = vmul.f32 %v3170_v20, %v3170_v20 }
 0x207   : > { %v3003_v28 = vpop.f32.mrf.mxu3  ;;  %v2637_v5 = vpop.f32.mrf.mxu1 }
 0x208   : > { %v3004_v15 = vadd.f32 %v3003_v28, %v2914_v7 }
 0x209   : > { %v3095_v1 = vpop.f32.mrf.mxu0  ;;  %v2917_v29 = vpop.f32.mrf.mxu2 }
 0x20a   : > { %v3093_v4 = vadd.f32 %v3092_v25, %v3004_v15 }
 0x20c   : > { %v3171_v10 = vadd.f32 %v3093_v4, %v2633_v60  ;;  %3045 = vmatmul.bf16.gmra.mxu3 %v5389_v6  ;;  %3134 = vmatmul.bf16.gmra.mxu0 %v5396_v51 }
 0x20e   : > { %v4106_v57 = vpack.c.bf16 %v3171_v10, %v3170_v20  ;;  %v3266_v41 = vadd.f32 %v3171_v10, %v3170_v20  ;;  %v3304_v14 = vmul.f32 %v3171_v10, %v3171_v10  ;;  %v2638_v20 = vadd.f32 %v2637_v5, %v5403_v26 }
 0x20f   : > { %v3006_v38 = vpop.f32.mrf.mxu3  ;;  %v2640_v35 = vpop.f32.mrf.mxu1 }
 0x210   : > { %4107 = vst [vmem:[%s5638_s14] sm:$0xff] %v4106_v57   ;;  %v3335_v0 = vadd.f32 %v3304_v14, %v3303_v45  ;;  %v3007_v58 = vadd.f32 %v3006_v38, %v2917_v29 }
 0x211   : > { %v3097_v25 = vpop.f32.mrf.mxu0  ;;  %v2919_v7 = vpop.f32.mrf.mxu2 }
 0x212   : > { %v3096_v6 = vadd.f32 %v3095_v1, %v3007_v58  ;;  %2679 = vmatmul.bf16.gmra.mxu1 %v5370_v54  ;;  %v5910_v54 = vld [vmem:[#allocation5_spill] sm:$0xff] }
 0x214   : > { %v3172_v52 = vadd.f32 %v3096_v6, %v2636_v27 }
 0x216   : > { %v3267_v59 = vadd.f32 %v3266_v41, %v3172_v52  ;;  %v3305_v28 = vmul.f32 %v3172_v52, %v3172_v52  ;;  %2961 = vmatmul.bf16.gmra.mxu2 %v5470_v53  ;;  %v5911_v53 = vld [vmem:[#allocation7_spill] sm:$0xff] }
 0x217   : > { %v3008_v17 = vpop.f32.mrf.mxu3  ;;  %v2642_v60 = vpop.f32.mrf.mxu1  ;;  %v2641_v14 = vadd.f32 %v2640_v35, %v5911_v53  ;;  %v446_v35 = vld [vmem:[%s389_s22] sm:$0xff] }
 0x218   : > { %v3336_v23 = vadd.f32 %v3335_v0, %v3305_v28  ;;  %v3009_v15 = vadd.f32 %v3008_v17, %v2919_v7  ;;  %v5912_v7 = vld [vmem:[#allocation11_spill] sm:$0xff]  ;;  %v482_v17 = vpack.c.bf16 %v446_v35, %v446_v35 }
 0x219   : > { %v3100_v19 = vpop.f32.mrf.mxu0  ;;  %v2922_v4 = vpop.f32.mrf.mxu2 }
 0x21a   : > { %v3098_v62 = vadd.f32 %v3097_v25, %v3009_v15  ;;  %v447_v15 = vld [vmem:[%s389_s22 + $0x8] sm:$0xff] }
 0x21c   : > { %v3173_v63 = vadd.f32 %v3098_v62, %v2638_v20  ;;  %3050 = vmatmul.bf16.gmra.mxu3 %v5420_v33  ;;  %3139 = vmatmul.bf16.gmra.mxu0 %v5910_v54 }
 0x21e   : > { %v4111_v10 = vpack.c.bf16 %v3173_v63, %v3172_v52  ;;  %v3268_v1 = vadd.f32 %v3267_v59, %v3173_v63  ;;  %v3306_v29 = vmul.f32 %v3173_v63, %v3173_v63  ;;  %v2643_v59 = vadd.f32 %v2642_v60, %v5912_v7 }
 0x21f   : > { %v3011_v45 = vpop.f32.mrf.mxu3  ;;  %v2645_v5 = vpop.f32.mrf.mxu1  ;;  %v483_v63 = vpack.c.bf16 %v447_v15, %v447_v15  ;;  %v780_v60 = vshll.u32 %v482_v17, 16 }
 0x220   : > { %4220 = vst [vmem:[%s5638_s14 + $0x8] sm:$0xff] %v4111_v10   ;;  %v3337_v57 = vadd.f32 %v3336_v23, %v3306_v29  ;;  %v3012_v41 = vadd.f32 %v3011_v45, %v2922_v4 }
 0x221   : > { %v3102_v0 = vpop.f32.mrf.mxu0  ;;  %v2924_v58 = vpop.f32.mrf.mxu2  ;;  %v785_v45 = vshrl.u32 %v483_v63, 16 }
 0x222   : > { %v3101_v26 = vadd.f32 %v3100_v19, %v3012_v41  ;;  %2684 = vmatmul.bf16.gmra.mxu1 %v5396_v51  ;;  %v777_v19 = vshrl.u32 %v482_v17, 16 }
 0x224   : > { %v3174_v38 = vadd.f32 %v3101_v26, %v2641_v14  ;;  %v779_v29 = vrot.slane %v777_v19, 7  ;;  %v787_v14 = vrot.slane %v785_v45, 7  ;;  %v971_v26 = vld [vmem:[#allocation2 + $0xcc] sm:$0xf] }
 0x226   : > { %v3269_v27 = vadd.f32 %v3268_v1, %v3174_v38  ;;  %v3307_v33 = vmul.f32 %v3174_v38, %v3174_v38  ;;  %2966 = vmatmul.bf16.gmra.mxu2 %v5871_v22  ;;  %v782_v53 = vor.u32 %v780_v60, %v779_v29 }
 0x227   : > { %v3013_v6 = vpop.f32.mrf.mxu3  ;;  %v2647_v23 = vpop.f32.mrf.mxu1 }
 0x228   : > { %v3338_v52 = vadd.f32 %v3337_v57, %v3307_v33  ;;  %v3014_v25 = vadd.f32 %v3013_v6, %v2924_v58  ;;  %v792_v33 = vrot.slane %v787_v14, 4  ;;  %v975_v6 = vld [vmem:[#allocation2 + $0xd4] sm:$0x1] }
 0x229   : > { %v3105_v62 = vpop.f32.mrf.mxu0  ;;  %v2927_v51 = vpop.f32.mrf.mxu2 }
 0x22a   : > { %v3103_v28 = vadd.f32 %v3102_v0, %v3014_v25 }
 0x22c   : > { %v3175_v20 = vadd.f32 %v3103_v28, %v2643_v59  ;;  %3055 = vmatmul.bf16.gmra.mxu3 %v5452_v39  ;;  %3144 = vmatmul.bf16.gmra.mxu0 %v5458_v44  ;;  %v2646_v39 = vadd.f32 %v2645_v5, %v5449_v49  ;;  %v788_v5 = vshll.u32 %v483_v63, 16 }
 0x22e   : > { %v4116_v4 = vpack.c.bf16 %v3175_v20, %v3174_v38  ;;  %v3270_v10 = vadd.f32 %v3269_v27, %v3175_v20  ;;  %v3308_v1 = vmul.f32 %v3175_v20, %v3175_v20  ;;  %v972_v27 = vsel %vm4452_vm5, %v782_v53, %v971_v26 }
 0x22f   : > { %v3016_v22 = vpop.f32.mrf.mxu3  ;;  %v2650_v58 = vpop.f32.mrf.mxu1  ;;  %973 = vst [vmem:[#allocation2 + $0xcc] sm:$0xf] %v972_v27  ;;  %v783_v20 = vrot.slane %v779_v29, 4  ;;  %v5918_v27 = vld [vmem:[#allocation10_spill] sm:$0xff] }
 0x230   : > { %4221 = vst [vmem:[%s5638_s14 + $0x10] sm:$0xff] %v4116_v4   ;;  %v3339_v57 = vadd.f32 %v3338_v52, %v3308_v1  ;;  %v3017_v41 = vadd.f32 %v3016_v22, %v2927_v51  ;;  %v976_v52 = vsel %vm4520_vm7, %v792_v33, %v975_v6  ;;  %v5914_v51 = vld [vmem:[#allocation8_spill] sm:$0xff]  ;;  %v2651_v6 = vadd.f32 %v2650_v58, %v5918_v27  ;;  %v5922_v27 = vld [vmem:[#allocation37_spill] sm:$0xff] }
 0x231   : > { %v3107_v35 = vpop.f32.mrf.mxu0  ;;  %v2929_v7 = vpop.f32.mrf.mxu2  ;;  %977 = vst [vmem:[#allocation2 + $0xd4] sm:$0x1] %v976_v52  ;;  %v2648_v4 = vadd.f32 %v2647_v23, %v5914_v51 }
 0x232   : > { %v3106_v0 = vadd.f32 %v3105_v62, %v3017_v41  ;;  %2689 = vmatmul.bf16.gmra.mxu1 %v5910_v54  ;;  %v790_v62 = vor.u32 %v788_v5, %v787_v14  ;;  %v3602_v41 = vrot.slane %v788_v5, 11 }
 0x234   : > { %v3176_v25 = vadd.f32 %v3106_v0, %v2646_v39  ;;  %v791_v45 = vsel %vm4441_vm4, %v783_v20, %v790_v62  ;;  %v5917_v0 = vld [vmem:[#allocation9_spill] sm:$0xff] }
 0x235   : > { %974 = vst [vmem:[#allocation2 + $0xd0] sm:$0xf] %v791_v45 }
 0x236   : > { %v3271_v59 = vadd.f32 %v3270_v10, %v3176_v25  ;;  %v3309_v28 = vmul.f32 %v3176_v25, %v3176_v25  ;;  %2971 = vmatmul.bf16.gmra.mxu2 %v5460_v18  ;;  %v1083_v10 = vld [vmem:[#allocation2 + $0xcc] sm:$0x1] }
 0x237   : > { %v3018_v49 = vpop.f32.mrf.mxu3  ;;  %v2652_v22 = vpop.f32.mrf.mxu1  ;;  %v1084_v18 = vsel %vm4520_vm7, %v777_v19, %v1083_v10  ;;  %v5920_v10 = vld [vmem:[#allocation15_spill] sm:$0xff] }
 0x238   : > { %v3340_v17 = vadd.f32 %v3339_v57, %v3309_v28  ;;  %v3019_v15 = vadd.f32 %v3018_v49, %v2929_v7  ;;  %1085 = vst [vmem:[#allocation2 + $0xcc] sm:$0x1] %v1084_v18  ;;  %v1192_v29 = vld [vmem:[#allocation2 + $0xd4] sm:$0x1] }
 0x239   : > { %v3110_v53 = vpop.f32.mrf.mxu0  ;;  %v2932_v63 = vpop.f32.mrf.mxu2  ;;  %v1193_v39 = vsel %vm4996_vm8, %v3602_v41, %v1192_v29 }
 0x23a   : > { %v3108_v1 = vadd.f32 %v3107_v35, %v3019_v15  ;;  %1194 = vst [vmem:[#allocation2 + $0xd4] sm:$0x1] %v1193_v39  ;;  %v5919_v15 = vld [vmem:[#allocation12_spill] sm:$0xff] }
 0x23c   : > { %v3177_v54 = vadd.f32 %v3108_v1, %v2648_v4  ;;  %3060 = vmatmul.bf16.gmra.mxu3 %v5486_v13  ;;  %3149 = vmatmul.bf16.gmra.mxu0 %v5917_v0  ;;  %v4315_v18 = vld [vmem:[#allocation2 + $0xcc] sm:$0xf0] }
 0x23e   : > { %v4121_v23 = vpack.c.bf16 %v3177_v54, %v3176_v25  ;;  %v3272_v57 = vadd.f32 %v3271_v59, %v3177_v54  ;;  %v3310_v14 = vmul.f32 %v3177_v54, %v3177_v54 }
 0x23f   : > { %v3021_v33 = vpop.f32.mrf.mxu3  ;;  %v2655_v21 = vpop.f32.mrf.mxu1 }
 0x240   : > { %4222 = vst [vmem:[%s5638_s14 + $0x18] sm:$0xff] %v4121_v23   ;;  %v3341_v38 = vadd.f32 %v3340_v17, %v3310_v14  ;;  %v3022_v13 = vadd.f32 %v3021_v33, %v2932_v63  ;;  %v2653_v17 = vadd.f32 %v2652_v22, %v5919_v15  ;;  %v1229_v22 = vld [vmem:[#allocation2 + $0xcc] sm:$0xff]  }
 0x241   : > { %v3112_v7 = vpop.f32.mrf.mxu0  ;;  %v2934_v52 = vpop.f32.mrf.mxu2  ;;  %v1248_v39 = vld [vmem:[#allocation2 + $0xd4] sm:$0x1] }
 0x242   : > { %v3111_v35 = vadd.f32 %v3110_v53, %v3022_v13  ;;  %2694 = vmatmul.bf16.gmra.mxu1 %v5458_v44  ;;  %v5921_v53 = vld [vmem:[#allocation14_spill] sm:$0xff] }
 0x244   : > { %v3178_v19 = vadd.f32 %v3111_v35, %v2651_v6  ;;  %v1410_v6 = vunpack.c.l.b16 %v1248_v39  ;;  %v5923_v35 = vld [vmem:[#allocation38_spill] sm:$0xff] }
 0x246   : > { %v3273_v25 = vadd.f32 %v3272_v57, %v3178_v19  ;;  %v3311_v59 = vmul.f32 %v3178_v19, %v3178_v19  ;;  %2976 = vmatmul.bf16.gmra.mxu2 %v5881_v40  ;;  %v2656_v40 = vadd.f32 %v2655_v21, %v5921_v53 }
 0x247   : > { %v3023_v28 = vpop.f32.mrf.mxu3  ;;  %v2657_v62 = vpop.f32.mrf.mxu1 }
 0x248   : > { %v3342_v49 = vadd.f32 %v3341_v38, %v3311_v59  ;;  %v3024_v5 = vadd.f32 %v3023_v28, %v2934_v52  ;;  %v2658_v21 = vadd.f32 %v2657_v62, %v5923_v35  ;;  %v1637_v28 = vshll.u32 %v1229_v22, 16 }
 0x249   : > { %v3115_v51 = vpop.f32.mrf.mxu0  ;;  %v2937_v4 = vpop.f32.mrf.mxu2  ;;  %v1635_v62 = vshrl.u32 %v1229_v22, 16 }
 0x24a   : > { %v3113_v20 = vadd.f32 %v3112_v7, %v3024_v5 }
 0x24c   : > { %v3179_v58 = vadd.f32 %v3113_v20, %v2653_v17  ;;  %3065 = vmatmul.bf16.gmra.mxu3 %v5511_v47  ;;  %3154 = vmatmul.bf16.gmra.mxu0 %v5920_v10 }
 0x24e   : > { %v4126_v1 = vpack.c.bf16 %v3179_v58, %v3178_v19  ;;  %v3274_v60 = vadd.f32 %v3273_v25, %v3179_v58  ;;  %v3312_v45 = vmul.f32 %v3179_v58, %v3179_v58 }
 0x24f   : > { %v3026_v44 = vpop.f32.mrf.mxu3  ;;  %v2660_v29 = vpop.f32.mrf.mxu1 }
 0x250   : > { %4223 = vst [vmem:[%s5638_s14 + $0x20] sm:$0xff] %v4126_v1   ;;  %v3343_v41 = vadd.f32 %v3342_v49, %v3312_v45  ;;  %v3027_v54 = vadd.f32 %v3026_v44, %v2937_v4  ;;  %v1428_v49 = vpack.c.b16 %v1410_v6, %v1410_v6  ;;  %v1639_v4 = vrot.slane %v1637_v28, 1 }
 0x251   : > { %v3117_v57 = vpop.f32.mrf.mxu0  ;;  %v2939_v14 = vpop.f32.mrf.mxu2 }
 0x252   : > { %v3116_v63 = vadd.f32 %v3115_v51, %v3027_v54  ;;  %2699 = vmatmul.bf16.gmra.mxu1 %v5917_v0  ;;  %v4316_v0 = vld [vmem:[#allocation2 + $0xcc] sm:$0xe]  ;;  %v1642_v1 = vshll.u32 %v1428_v49, 16  ;;  %v1771_v39 = vrot.slane %v1428_v49, 1 }
 0x253   : > { %v4317_v53 = vor.u32 %v4316_v0, %v4315_v18 }
 0x254   : > { %v3180_v23 = vadd.f32 %v3116_v63, %v2656_v40  ;;  %v1640_v40 = vor.u32 %v1639_v4, %v1635_v62  ;;  %v1644_v63 = vrot.slane %v1642_v1, 1 }
 0x256   : > { %v3275_v47 = vadd.f32 %v3274_v60, %v3180_v23  ;;  %v3313_v26 = vmul.f32 %v3180_v23, %v3180_v23  ;;  %2981 = vmatmul.bf16.gmra.mxu2 %v5922_v27  ;;  %v2661_v60 = vadd.f32 %v2660_v29, %v5527_v3  ;;  %v1645_v3 = vsel %vm1429_vm9, %v1640_v40, %v1644_v63 }
 0x257   : > { %v3028_v33 = vpop.f32.mrf.mxu3  ;;  %v2662_v7 = vpop.f32.mrf.mxu1 }
 0x258   : > { %v3344_v38 = vadd.f32 %v3343_v41, %v3313_v26  ;;  %v3029_v13 = vadd.f32 %v3028_v33, %v2939_v14  ;;  %v1770_v26 = vrot.slane %v4317_v53, 1  ;;  %v2663_v29 = vadd.f32 %v2662_v7, %v5538_v36 }
 0x259   : > { %v3120_v25 = vpop.f32.mrf.mxu0  ;;  %v2942_v59 = vpop.f32.mrf.mxu2 }
 0x25a   : > { %v3118_v19 = vadd.f32 %v3117_v57, %v3029_v13  ;;  %v1772_v27 = vsel %vm1718_vm10, %v1770_v26, %v1771_v39 }
 0x25c   : > { %v3181_v52 = vadd.f32 %v3118_v19, %v2658_v21  ;;  %3070 = vmatmul.bf16.gmra.mxu3 %v5531_v16  ;;  %3159 = vmatmul.bf16.gmra.mxu0 %v5535_v46 }
 0x25e   : > { %v4131_v5 = vpack.c.bf16 %v3181_v52, %v3180_v23  ;;  %v3276_v15 = vadd.f32 %v3275_v47, %v3181_v52  ;;  %v3314_v17 = vmul.f32 %v3181_v52, %v3181_v52 }
 0x25f   : > { %v3031_v20 = vpop.f32.mrf.mxu3  ;;  %v2665_v16 = vpop.f32.mrf.mxu1 }
 0x260   : > { %4224 = vst [vmem:[%s5638_s14 + $0x28] sm:$0xff] %v4131_v5   ;;  %v3345_v58 = vadd.f32 %v3344_v38, %v3314_v17  ;;  %v3032_v51 = vadd.f32 %v3031_v20, %v2942_v59 }
 0x261   : > { %v3122_v41 = vpop.f32.mrf.mxu0  ;;  %v2944_v54 = vpop.f32.mrf.mxu2 }
 0x262   : > { %v3121_v45 = vadd.f32 %v3120_v25, %v3032_v51  ;;  %2704 = vmatmul.bf16.gmra.mxu1 %v5920_v10  ;;  %v2666_v25 = vadd.f32 %v2665_v16, %v5544_v50 }
 0x264   : > { %v3182_v44 = vadd.f32 %v3121_v45, %v2661_v60 }
 0x266   : > { %v3277_v23 = vadd.f32 %v3276_v15, %v3182_v44  ;;  %v3315_v57 = vmul.f32 %v3182_v44, %v3182_v44  ;;  %2986 = vmatmul.bf16.gmra.mxu2 %v1229_v22 }
 0x267   : > { %v3033_v46 = vpop.f32.mrf.mxu3  ;;  %v2667_v38 = vpop.f32.mrf.mxu1 }
 0x268   : > { %v3346_v14 = vadd.f32 %v3345_v58, %v3315_v57  ;;  %v3034_v47 = vadd.f32 %v3033_v46, %v2944_v54  ;;  %v2668_v58 = vadd.f32 %v2667_v38, %v5548_v30 }
 0x269   : > { %v3125_v13 = vpop.f32.mrf.mxu0  ;;  %v2947_v6 = vpop.f32.mrf.mxu2 }
 0x26a   : > { %v3123_v33 = vadd.f32 %v3122_v41, %v3034_v47 }
 0x26c   : > { %v3183_v18 = vadd.f32 %v3123_v33, %v2663_v29  ;;  %3075 = vmatmul.bf16.gmra.mxu3 %v1645_v3  ;;  %3164 = vmatmul.bf16.gmra.mxu0 %v1772_v27 }
 0x26e   : > { %v4136_v10 = vpack.c.bf16 %v3183_v18, %v3182_v44  ;;  %v3278_v35 = vadd.f32 %v3277_v23, %v3183_v18  ;;  %v3316_v21 = vmul.f32 %v3183_v18, %v3183_v18 }
 0x26f   : > { %v3036_v19 = vpop.f32.mrf.mxu3  ;;  %v2670_v36 = vpop.f32.mrf.mxu1 }
 0x270   : > { %4225 = vst [vmem:[%s5638_s14 + $0x30] sm:$0xff] %v4136_v10   ;;  %v3347_v52 = vadd.f32 %v3346_v14, %v3316_v21  ;;  %v3037_v22 = vadd.f32 %v3036_v19, %v2947_v6  ;;  %v2671_v53 = vadd.f32 %v2670_v36, %v5553_v8 }
 0x271   : > { %v3127_v28 = vpop.f32.mrf.mxu0  ;;  %v2949_v49 = vpop.f32.mrf.mxu2 }
 0x272   : > { %v3126_v59 = vadd.f32 %v3125_v13, %v3037_v22 }
 0x274   : > { %v3184_v7 = vadd.f32 %v3126_v59, %v2666_v25 }
 0x276   : > { %v3279_v0 = vadd.f32 %v3278_v35, %v3184_v7  ;;  %v3317_v5 = vmul.f32 %v3184_v7, %v3184_v7 }
 0x277   : > { %v3038_v15 = vpop.f32.mrf.mxu3  ;;  %v2672_v62 = vpop.f32.mrf.mxu1 }
 0x278   : > { %v3348_v17 = vadd.f32 %v3347_v52, %v3317_v5  ;;  %v3039_v20 = vadd.f32 %v3038_v15, %v2949_v49  ;;  %v2673_v3 = vadd.f32 %v2672_v62, %v5558_v32 }
 0x279   : > { %v3130_v1 = vpop.f32.mrf.mxu0  ;;  %v2952_v60 = vpop.f32.mrf.mxu2 }
 0x27a   : > { %v3128_v51 = vadd.f32 %v3127_v28, %v3039_v20 }
 0x27c   : > { %v3185_v4 = vadd.f32 %v3128_v51, %v2668_v58 }
 0x27e   : > { %v4141_v45 = vpack.c.bf16 %v3185_v4, %v3184_v7  ;;  %v3280_v50 = vadd.f32 %v3279_v0, %v3185_v4  ;;  %v3318_v16 = vmul.f32 %v3185_v4, %v3185_v4 }
 0x27f   : > { %v3041_v44 = vpop.f32.mrf.mxu3  ;;  %v2675_v63 = vpop.f32.mrf.mxu1 }
 0x280   : > { %4226 = vst [vmem:[%s5638_s14 + $0x38] sm:$0xff] %v4141_v45   ;;  %v3349_v41 = vadd.f32 %v3348_v17, %v3318_v16  ;;  %v3042_v54 = vadd.f32 %v3041_v44, %v2952_v60  ;;  %v2676_v19 = vadd.f32 %v2675_v63, %v5563_v43 }
 0x281   : > { %v3132_v57 = vpop.f32.mrf.mxu0  ;;  %v2954_v46 = vpop.f32.mrf.mxu2 }
 0x282   : > { %v3131_v40 = vadd.f32 %v3130_v1, %v3042_v54 }
 0x284   : > { %v3186_v23 = vadd.f32 %v3131_v40, %v2671_v53 }
 0x286   : > { %v3281_v30 = vadd.f32 %v3280_v50, %v3186_v23  ;;  %v3319_v14 = vmul.f32 %v3186_v23, %v3186_v23 }
 0x287   : > { %v3043_v47 = vpop.f32.mrf.mxu3  ;;  %v2677_v33 = vpop.f32.mrf.mxu1 }
 0x288   : > { %v3350_v26 = vadd.f32 %v3349_v41, %v3319_v14  ;;  %v3044_v39 = vadd.f32 %v3043_v47, %v2954_v46  ;;  %v2678_v5 = vadd.f32 %v2677_v33, %v5567_v12 }
 0x289   : > { %v3135_v18 = vpop.f32.mrf.mxu0  ;;  %v2957_v13 = vpop.f32.mrf.mxu2 }
 0x28a   : > { %v3133_v29 = vadd.f32 %v3132_v57, %v3044_v39 }
 0x28c   : > { %v3187_v38 = vadd.f32 %v3133_v29, %v2673_v3 }
 0x28e   : > { %v4146_v27 = vpack.c.bf16 %v3187_v38, %v3186_v23  ;;  %v3282_v8 = vadd.f32 %v3281_v30, %v3187_v38  ;;  %v3320_v6 = vmul.f32 %v3187_v38, %v3187_v38 }
 0x28f   : > { %v3046_v10 = vpop.f32.mrf.mxu3  ;;  %v2680_v22 = vpop.f32.mrf.mxu1 }
 0x290   : > { %4227 = vst [vmem:[%s5638_s14 + $0x40] sm:$0xff] %v4146_v27   ;;  %v3351_v35 = vadd.f32 %v3350_v26, %v3320_v6  ;;  %v3047_v21 = vadd.f32 %v3046_v10, %v2957_v13  ;;  %v2681_v50 = vadd.f32 %v2680_v22, %v5572_v42 }
 0x291   : > { %v3137_v59 = vpop.f32.mrf.mxu0  ;;  %v2959_v36 = vpop.f32.mrf.mxu2 }
 0x292   : > { %v3136_v52 = vadd.f32 %v3135_v18, %v3047_v21 }
 0x294   : > { %v3188_v25 = vadd.f32 %v3136_v52, %v2676_v19 }
 0x296   : > { %v3283_v32 = vadd.f32 %v3282_v8, %v3188_v25  ;;  %v3321_v7 = vmul.f32 %v3188_v25, %v3188_v25 }
 0x297   : > { %v3048_v28 = vpop.f32.mrf.mxu3  ;;  %v2682_v17 = vpop.f32.mrf.mxu1 }
 0x298   : > { %v3352_v49 = vadd.f32 %v3351_v35, %v3321_v7  ;;  %v3049_v0 = vadd.f32 %v3048_v28, %v2959_v36  ;;  %v2683_v46 = vadd.f32 %v2682_v17, %v5577_v9 }
 0x299   : > { %v3140_v58 = vpop.f32.mrf.mxu0  ;;  %v2962_v51 = vpop.f32.mrf.mxu2 }
 0x29a   : > { %v3138_v15 = vadd.f32 %v3137_v59, %v3049_v0 }
 0x29c   : > { %v3189_v20 = vadd.f32 %v3138_v15, %v2678_v5 }
 0x29e   : > { %v4151_v62 = vpack.c.bf16 %v3189_v20, %v3188_v25  ;;  %v3284_v43 = vadd.f32 %v3283_v32, %v3189_v20  ;;  %v3322_v4 = vmul.f32 %v3189_v20, %v3189_v20 }
 0x29f   : > { %v3051_v1 = vpop.f32.mrf.mxu3  ;;  %v2685_v44 = vpop.f32.mrf.mxu1 }
 0x2a0   : > { %4228 = vst [vmem:[%s5638_s14 + $0x48] sm:$0xff] %v4151_v62   ;;  %v3353_v60 = vadd.f32 %v3352_v49, %v3322_v4  ;;  %v3052_v45 = vadd.f32 %v3051_v1, %v2962_v51  ;;  %v2686_v13 = vadd.f32 %v2685_v44, %v5582_v2 }
 0x2a1   : > { %v3142_v54 = vpop.f32.mrf.mxu0  ;;  %v2964_v53 = vpop.f32.mrf.mxu2 }
 0x2a2   : > { %v3141_v16 = vadd.f32 %v3140_v58, %v3052_v45 }
 0x2a4   : > { %v3190_v41 = vadd.f32 %v3141_v16, %v2681_v50 }
 0x2a6   : > { %v3285_v12 = vadd.f32 %v3284_v43, %v3190_v41  ;;  %v3323_v40 = vmul.f32 %v3190_v41, %v3190_v41 }
 0x2a7   : > { %v3053_v63 = vpop.f32.mrf.mxu3  ;;  %v2687_v14 = vpop.f32.mrf.mxu1 }
 0x2a8   : > { %v3354_v23 = vadd.f32 %v3353_v60, %v3323_v40  ;;  %v3054_v57 = vadd.f32 %v3053_v63, %v2964_v53  ;;  %v2688_v25 = vadd.f32 %v2687_v14, %v5586_v24 }
 0x2a9   : > { %v3145_v26 = vpop.f32.mrf.mxu0  ;;  %v2967_v39 = vpop.f32.mrf.mxu2 }
 0x2aa   : > { %v3143_v30 = vadd.f32 %v3142_v54, %v3054_v57 }
 0x2ac   : > { %v3191_v47 = vadd.f32 %v3143_v30, %v2683_v46 }
 0x2ae   : > { %v4156_v3 = vpack.c.bf16 %v3191_v47, %v3190_v41  ;;  %v3286_v42 = vadd.f32 %v3285_v12, %v3191_v47  ;;  %v3324_v29 = vmul.f32 %v3191_v47, %v3191_v47 }
 0x2af   : > { %v3056_v33 = vpop.f32.mrf.mxu3  ;;  %v2690_v8 = vpop.f32.mrf.mxu1 }
 0x2b0   : > { %4229 = vst [vmem:[%s5638_s14 + $0x50] sm:$0xff] %v4156_v3   ;;  %v3355_v38 = vadd.f32 %v3354_v23, %v3324_v29  ;;  %v3057_v18 = vadd.f32 %v3056_v33, %v2967_v39  ;;  %v2691_v20 = vadd.f32 %v2690_v8, %v5591_v31 }
 0x2b1   : > { %v3147_v10 = vpop.f32.mrf.mxu0  ;;  %v2969_v35 = vpop.f32.mrf.mxu2 }
 0x2b2   : > { %v3146_v27 = vadd.f32 %v3145_v26, %v3057_v18 }
 0x2b4   : > { %v3192_v6 = vadd.f32 %v3146_v27, %v2686_v13 }
 0x2b6   : > { %v3287_v9 = vadd.f32 %v3286_v42, %v3192_v6  ;;  %v3325_v21 = vmul.f32 %v3192_v6, %v3192_v6 }
 0x2b7   : > { %v3058_v19 = vpop.f32.mrf.mxu3  ;;  %v2692_v36 = vpop.f32.mrf.mxu1 }
 0x2b8   : > { %v3356_v52 = vadd.f32 %v3355_v38, %v3325_v21  ;;  %v3059_v22 = vadd.f32 %v3058_v19, %v2969_v35  ;;  %v2693_v16 = vadd.f32 %v2692_v36, %v5596_v55 }
 0x2b9   : > { %v3150_v7 = vpop.f32.mrf.mxu0  ;;  %v2972_v28 = vpop.f32.mrf.mxu2 }
 0x2ba   : > { %v3148_v59 = vadd.f32 %v3147_v10, %v3059_v22 }
 0x2bc   : > { %v3193_v32 = vadd.f32 %v3148_v59, %v2688_v25 }
 0x2be   : > { %v4161_v49 = vpack.c.bf16 %v3193_v32, %v3192_v6  ;;  %v3288_v2 = vadd.f32 %v3287_v9, %v3193_v32  ;;  %v3326_v0 = vmul.f32 %v3193_v32, %v3193_v32 }
 0x2bf   : > { %v3061_v5 = vpop.f32.mrf.mxu3  ;;  %v2695_v4 = vpop.f32.mrf.mxu1 }
 0x2c0   : > { %4230 = vst [vmem:[%s5638_s14 + $0x58] sm:$0xff] %v4161_v49   ;;  %v3357_v15 = vadd.f32 %v3356_v52, %v3326_v0  ;;  %v3062_v17 = vadd.f32 %v3061_v5, %v2972_v28  ;;  %v2696_v30 = vadd.f32 %v2695_v4, %v5601_v34 }
 0x2c1   : > { %v3152_v62 = vpop.f32.mrf.mxu0  ;;  %v2974_v43 = vpop.f32.mrf.mxu2 }
 0x2c2   : > { %v3151_v58 = vadd.f32 %v3150_v7, %v3062_v17 }
 0x2c4   : > { %v3194_v51 = vadd.f32 %v3151_v58, %v2691_v20 }
 0x2c6   : > { %v3289_v24 = vadd.f32 %v3288_v2, %v3194_v51  ;;  %v3327_v1 = vmul.f32 %v3194_v51, %v3194_v51 }
 0x2c7   : > { %v3063_v60 = vpop.f32.mrf.mxu3  ;;  %v2697_v23 = vpop.f32.mrf.mxu1 }
 0x2c8   : > { %v3358_v45 = vadd.f32 %v3357_v15, %v3327_v1  ;;  %v3064_v50 = vadd.f32 %v3063_v60, %v2974_v43  ;;  %v2698_v18 = vadd.f32 %v2697_v23, %v5605_v37 }
 0x2c9   : > { %v3155_v54 = vpop.f32.mrf.mxu0  ;;  %v2977_v53 = vpop.f32.mrf.mxu2 }
 0x2ca   : > { %v3153_v44 = vadd.f32 %v3152_v62, %v3064_v50 }
 0x2cc   : > { %v3195_v41 = vadd.f32 %v3153_v44, %v2693_v16 }
 0x2ce   : > { %v4166_v12 = vpack.c.bf16 %v3195_v41, %v3194_v51  ;;  %v3290_v40 = vadd.f32 %v3289_v24, %v3195_v41  ;;  %v3328_v31 = vmul.f32 %v3195_v41, %v3195_v41 }
 0x2cf   : > { %v3066_v63 = vpop.f32.mrf.mxu3  ;;  %v2700_v38 = vpop.f32.mrf.mxu1 }
 0x2d0   : > { %4231 = vst [vmem:[%s5638_s14 + $0x60] sm:$0xff] %v4166_v12   ;;  %v3359_v57 = vadd.f32 %v3358_v45, %v3328_v31  ;;  %v3067_v46 = vadd.f32 %v3066_v63, %v2977_v53  ;;  %v2701_v52 = vadd.f32 %v2700_v38, %v5610_v48 }
 0x2d1   : > { %v3157_v26 = vpop.f32.mrf.mxu0  ;;  %v2979_v39 = vpop.f32.mrf.mxu2 }
 0x2d2   : > { %v3156_v14 = vadd.f32 %v3155_v54, %v3067_v46 }
 0x2d4   : > { %v3196_v47 = vadd.f32 %v3156_v14, %v2696_v30 }
 0x2d6   : > { %v3291_v55 = vadd.f32 %v3290_v40, %v3196_v47  ;;  %v3329_v3 = vmul.f32 %v3196_v47, %v3196_v47 }
 0x2d7   : > { %v3068_v42 = vpop.f32.mrf.mxu3  ;;  %v2702_v25 = vpop.f32.mrf.mxu1 }
 0x2d8   : > { %v3360_v29 = vadd.f32 %v3359_v57, %v3329_v3  ;;  %v3069_v33 = vadd.f32 %v3068_v42, %v2979_v39  ;;  %v2703_v0 = vadd.f32 %v2702_v25, %v5615_v61 }
 0x2d9   : > { %v3160_v8 = vpop.f32.mrf.mxu0  ;;  %v2982_v6 = vpop.f32.mrf.mxu2 }
 0x2da   : > { %v3158_v13 = vadd.f32 %v3157_v26, %v3069_v33 }
 0x2dc   : > { %v3197_v27 = vadd.f32 %v3158_v13, %v2698_v18 }
 0x2de   : > { %v4171_v10 = vpack.c.bf16 %v3197_v27, %v3196_v47  ;;  %v3292_v35 = vadd.f32 %v3291_v55, %v3197_v27  ;;  %v3330_v34 = vmul.f32 %v3197_v27, %v3197_v27 }
 0x2df   : > { %v3071_v9 = vpop.f32.mrf.mxu3  ;;  %v2705_v20 = vpop.f32.mrf.mxu1 }
 0x2e0   : > { %4232 = vst [vmem:[%s5638_s14 + $0x68] sm:$0xff] %v4171_v10   ;;  %v3361_v21 = vadd.f32 %v3360_v29, %v3330_v34  ;;  %v3072_v19 = vadd.f32 %v3071_v9, %v2982_v6  ;;  %v2706_v1 = vadd.f32 %v2705_v20, %v5620_v11 }
 0x2e1   : > { %v2984_v36 = vpop.f32.mrf.mxu2  ;;  %v3162_v32 = vpop.f32.mrf.mxu0 }
 0x2e2   : > { %v3161_v22 = vadd.f32 %v3160_v8, %v3072_v19 }
 0x2e4   : > { %v3198_v59 = vadd.f32 %v3161_v22, %v2701_v52 }
 0x2e6   : > { %v3293_v37 = vadd.f32 %v3292_v35, %v3198_v59  ;;  %v3331_v7 = vmul.f32 %v3198_v59, %v3198_v59 }
 0x2e7   : > { %v3073_v28 = vpop.f32.mrf.mxu3  ;;  %v2707_v44 = vpop.f32.mrf.mxu1 }
 0x2e8   : > { %v3362_v49 = vadd.f32 %v3361_v21, %v3331_v7  ;;  %v3074_v2 = vadd.f32 %v3073_v28, %v2984_v36  ;;  %v2708_v40 = vadd.f32 %v2707_v44, %v5625_v56 }
 0x2e9   : > { %v2987_v17 = vpop.f32.mrf.mxu2  ;;  %v3165_v62 = vpop.f32.mrf.mxu0 }
 0x2ea   : > { %v3163_v5 = vadd.f32 %v3162_v32, %v3074_v2 }
 0x2ec   : > { %v3199_v15 = vadd.f32 %v3163_v5, %v2703_v0 }
 0x2ee   : > { %v4176_v58 = vpack.c.bf16 %v3199_v15, %v3198_v59  ;;  %v3294_v51 = vadd.f32 %v3293_v37, %v3199_v15  ;;  %v3332_v48 = vmul.f32 %v3199_v15, %v3199_v15 }
 0x2ef   : > { %v3076_v43 = vpop.f32.mrf.mxu3 }
 0x2f0   : > { %4233 = vst [vmem:[%s5638_s14 + $0x70] sm:$0xff] %v4176_v58   ;;  %v3363_v4 = vadd.f32 %v3362_v49, %v3332_v48  ;;  %v3077_v24 = vadd.f32 %v3076_v43, %v2987_v17 }
 0x2f1   : > { %v2989_v50 = vpop.f32.mrf.mxu2  ;;  %v3167_v12 = vpop.f32.mrf.mxu0 }
 0x2f2   : > { %v3166_v60 = vadd.f32 %v3165_v62, %v3077_v24 }
 0x2f4   : > { %v3200_v45 = vadd.f32 %v3166_v60, %v2706_v1 }
 0x2f6   : > { %v3295_v16 = vadd.f32 %v3294_v51, %v3200_v45  ;;  %v3333_v61 = vmul.f32 %v3200_v45, %v3200_v45 }
 0x2f7   : > { %v3078_v41 = vpop.f32.mrf.mxu3 }
 0x2f8   : > { %v3364_v54 = vadd.f32 %v3363_v4, %v3333_v61  ;;  %v3079_v53 = vadd.f32 %v3078_v41, %v2989_v50 }
 0x2fa   : > { %v3168_v31 = vadd.f32 %v3167_v12, %v3079_v53 }
 0x2fc   : > { %v3201_v63 = vadd.f32 %v3168_v31, %v2708_v40 }
 0x2fe   : > { %v4181_v23 = vpack.c.bf16 %v3201_v63, %v3200_v45  ;;  %v3296_v57 = vadd.f32 %v3295_v16, %v3201_v63  ;;  %v3334_v46 = vmul.f32 %v3201_v63, %v3201_v63 }
 0x300   : > { %4234 = vst [vmem:[%s5638_s14 + $0x78] sm:$0xff] %v4181_v23   ;;  %v3297_v11 = vrot.slane %v3296_v57, 4  ;;  %v3365_v30 = vadd.f32 %v3364_v54, %v3334_v46 }
 0x302   : > { %v3298_v14 = vadd.f32 %v3297_v11, %v3296_v57  ;;  %v3366_v47 = vrot.slane %v3365_v30, 4 }
 0x304   : > { %v3299_v26 = vrot.slane %v3298_v14, 2  ;;  %v3367_v39 = vadd.f32 %v3366_v47, %v3365_v30 }
 0x306   : > { %v3300_v55 = vadd.f32 %v3299_v26, %v3298_v14  ;;  %v3368_v3 = vrot.slane %v3367_v39, 2 }
 0x308   : > { %v3301_v42 = vrot.slane %v3300_v55, 1  ;;  %v3369_v29 = vadd.f32 %v3368_v3, %v3367_v39 }
 0x30a   : > { %v3302_v56 = vadd.f32 %v3301_v42, %v3300_v55  ;;  %v3370_v33 = vrot.slane %v3369_v29, 1 }
 0x30c   : > { %v3371_v38 = vadd.f32 %v3370_v33, %v3369_v29  ;;  %3372 = vst [vmem:[%s411_s25] sm:$0x1] %v3302_v56 }
 0x30e   : > { %3373 = vst [vmem:[%s411_s25 + $0x1] sm:$0x1] %v3371_v38 }
 0x30f PF: > { %s16_s20 = sadd.s32 1, %s4340_s20   ;;  %s5924_s18 = smov %s4336_s19 }
 0x310   : > { %p13_p5 = scmp.ge.s32.totalorder %s16_s20, 4   ;;  %s5925_s19 = smov %s5927_s21 }
 0x312   :  { %15 = sbr.rel (!%p13_p5) target bundleno = 2 (0x2), region = 86 }

// kernel: _lambda_.4
= control target key start
LH: loop header
LB: loop body
LE: loop exit
PB: predicated region body
PF: predicated region fallthrough
CT: control target
= control target key end

     0   :  { %s4682_s24 = smov 0   ;;  %s4684_s25 = smov 0   ;;  %s6161_s0 = inlined_call_operand.vmem [shape: bf16[2,16,16,128], index: 0, kind: input, shape index: {}, may-alias: {0,1,2}]   ;;  %s6162_s1 = inlined_call_operand.vmem [shape: bf16[2,16,16,128], index: 1, kind: input, shape index: {}, may-alias: {0,1,2}]   ;;  %s6163_s2 = inlined_call_operand.vmem [shape: bf16[2,16,16,128], index: 2, kind: input, shape index: {}, may-alias: {0,1,2}]   ;;  %s6164_s3 = inlined_call_operand.vmem [shape: bf16[3,384,128], index: 3, kind: input, shape index: {}]   ;;  %s6165_s4 = inlined_call_operand.vmem [shape: f32[1,128], index: 4, kind: input, shape index: {}]   ;;  %s6166_s5 = inlined_call_operand.vmem [shape: f32[1,128], index: 5, kind: input, shape index: {}]   ;;  %s6167_s6 = inlined_call_operand.vmem [shape: bf16[2,16,16,128], index: 6, kind: output, shape index: {0}]   ;;  %s6168_s7 = inlined_call_operand.vmem [shape: f32[2,1,2,128], index: 7, kind: output, shape index: {1}]  }
   0x1   :  { %s4686_s26 = smov 0  }
   0x2 LB: > { %s30_s27 = sadd.s32 1, %s4636_s25  ;;  %p3763_p0 = scmp.ge.s32.totalorder %s4640_s26, 1  ;;  %s4640_s26 = sphi %s4686_s26, %s18_s26   ;;  %s4636_s25 = sphi %s4684_s25, %s6352_s25   ;;  %s4632_s24 = sphi %s4682_s24, %s6351_s24  }
   0x3   : > { %p32_p1 = scmp.ge.s32.totalorder %s30_s27, 2  ;;  %p328_p2 = scmp.lt.s32.totalorder %s4640_s26, 3 }
   0x5   : > { %s6354_s27 = smov (%p32_p1, %s30_s27), 0  ;;  %p329_p3 = pnand %p3763_p0, %p328_p2 }
   0x7   : > { %332 = sbr.rel (%p329_p3) target bundleno = 809 (0x329), region = 44 }
   0xc   : > { %v4232_v0 = vld [vmem:[%s6164_s3 + $0xf8] sm:$0xff]  ;;  %p407_p4 = scmp.lt.s32.totalorder %s4632_s24, 1  ;;  %v4231_v1 = vld [vmem:[%s6164_s3 + $0xf0] sm:$0xff]  ;;  %v4230_v2 = vld [vmem:[%s6164_s3 + $0xe8] sm:$0xff]  ;;  %vm1060_vm0 = vcmask 1040384   ;;  %vm1053_vm5 = vcmask 1043456  }
   0xd   : > { %2238 = vmatpush.bf16.msra.mxu0 %v4232_v0  ;;  %4528 = vmatpush.bf16.msra.mxu1 %v4232_v0  ;;  %v4723_v3 = vld [vmem:[%s6165_s4] ss:$0 sm:$0xff]  ;;  %vm1054_vm1 = vsmask.f32 7938  ;;  %vm690_vm3 = vsmask.f32 256 }
   0xe   : > { %s6356_s24 = smov (!%p407_p4, %s4632_s24), 1  ;;  %4529 = vmatpush.bf16.msra.mxu2 %v4232_v0  ;;  %4530 = vmatpush.bf16.msra.mxu3 %v4232_v0  ;;  %v4729_v5 = vld [vmem:[%s6166_s5] ss:$0 sm:$0xff]  ;;  %vm4734_vm2 = vmand %vm1060_vm0, %vm1054_vm1  ;;  %vm691_vm4 = vsmask.f32 4368  ;;  %v4228_v40 = vld [vmem:[%s6164_s3 + $0xd8] sm:$0xff] }
   0xf   : > { %s4709_s9 = sshll.u32 %s6356_s24, 7  ;;  %v4229_v23 = vld [vmem:[%s6164_s3 + $0xe0] sm:$0xff]  ;;  %v4227_v57 = vld [vmem:[%s6164_s3 + $0xd0] sm:$0xff]  ;;  %vm4795_vm6 = vmor %vm690_vm3, %vm691_vm4  ;;  %v6228_v62 = vmov 0  ;;  %vm1635_vm9 = vsmask.f32 7424 }
  0x10   : > { %s4718_s14 = scalar_lea.vmem %s6162_s1, %s4709_s9  ;;  %v6229_v62 = vsel %vm4795_vm6, 4294967295, %v6228_v62  ;;  %vm4806_vm7 = vmand %vm1053_vm5, %vm1054_vm1  ;;  %vm1924_vm10 = vcmask 1046528   ;;  %s6050_s29 = scalar_lea.vmem %s6167_s6, %s4709_s9 }
  0x11   : > { %2239 = vmatpush.bf16.msra.mxu0 %v4231_v1  ;;  %4531 = vmatpush.bf16.msra.mxu1 %v4231_v1  ;;  %v4278_v4 = vld [vmem:[%s4718_s14] sm:$0xff]   ;;  %v4741_v18 = vld [vmem:[%s4718_s14 + $0x8] sm:$0xff]   ;;  %6230 = vst [vmem:[#allocation3_spill] sm:$0xff] %v6229_v62  ;;  %vm4878_vm8 = vmand %vm1060_vm0, %vm690_vm3  ;;  %s4199_s30 = sadd.s32 112, %s4709_s9  ;;  %s3772_s16 = sshll.u32 %s6356_s24, 1 }
  0x12   : > { %v4466_v6 = vld [vmem:[%s4718_s14 + $0x20] sm:$0xff]   ;;  %4532 = vmatpush.bf16.msra.mxu2 %v4231_v1  ;;  %4533 = vmatpush.bf16.msra.mxu3 %v4231_v1  ;;  %v4279_v7 = vunpack.c.l.bf16 %v4278_v4  ;;  %v4280_v8 = vunpack.c.h.bf16 %v4278_v4  ;;  %v4283_v30 = vunpack.c.l.bf16 %v4741_v18  ;;  %v4762_v35 = vld [vmem:[%s4718_s14 + $0x28] sm:$0xff]   ;;  %v6231_v4 = vmov 0  ;;  %s443_s11 = scalar_lea.vmem %s6163_s2, %s4199_s30  ;;  %s465_s19 = scalar_lea.vmem %s6168_s7, %s3772_s16 }
  0x13   : > { %v4295_v10 = vunpack.c.l.bf16 %v4466_v6  ;;  %v4296_v11 = vunpack.c.h.bf16 %v4466_v6  ;;  %v4470_v12 = vld [vmem:[%s4718_s14 + $0x40] sm:$0xff]   ;;  %v4299_v48 = vunpack.c.l.bf16 %v4762_v35  ;;  %v6232_v4 = vsel %vm4806_vm7, 4294967295, %v6231_v4  ;;  %v1065_v6 = vld [vmem:[#allocation2 + $0xc] sm:$0xf] }
  0x14   : > { %v4474_v13 = vld [vmem:[%s4718_s14 + $0x60] sm:$0xff]   ;;  %v4311_v14 = vunpack.c.l.bf16 %v4470_v12  ;;  %v4312_v15 = vunpack.c.h.bf16 %v4470_v12  ;;  %v544_v19 = vmul.f32 %v4723_v3, %v4279_v7  ;;  %v545_v20 = vmul.f32 %v4723_v3, %v4280_v8  ;;  %6233 = vst [vmem:[#allocation4_spill] sm:$0xff] %v6232_v4 }
  0x15   : > { %v4327_v16 = vunpack.c.l.bf16 %v4474_v13  ;;  %v4328_v17 = vunpack.c.h.bf16 %v4474_v13  ;;  %v552_v21 = vmul.f32 %v4723_v3, %v4295_v10  ;;  %v553_v22 = vmul.f32 %v4723_v3, %v4296_v11  ;;  %2240 = vmatpush.bf16.msra.mxu0 %v4230_v2  ;;  %4534 = vmatpush.bf16.msra.mxu1 %v4230_v2 }
  0x16   : > { %v560_v24 = vmul.f32 %v4723_v3, %v4311_v14  ;;  %v561_v25 = vmul.f32 %v4723_v3, %v4312_v15  ;;  %4535 = vmatpush.bf16.msra.mxu2 %v4230_v2  ;;  %4536 = vmatpush.bf16.msra.mxu3 %v4230_v2  ;;  %v584_v27 = vadd.f32 %v4729_v5, %v544_v19  ;;  %v1093_v15 = vld [vmem:[#allocation2 + $0x3c] sm:$0xf] }
  0x17   : > { %v568_v26 = vmul.f32 %v4723_v3, %v4327_v16  ;;  %v585_v28 = vadd.f32 %v4729_v5, %v545_v20  ;;  %v592_v29 = vadd.f32 %v4729_v5, %v552_v21  ;;  %v593_v31 = vadd.f32 %v4729_v5, %v553_v22 }
  0x18   : > { %v600_v32 = vadd.f32 %v4729_v5, %v560_v24  ;;  %v601_v33 = vadd.f32 %v4729_v5, %v561_v25  ;;  %v569_v34 = vmul.f32 %v4723_v3, %v4328_v17  ;;  %v620_v36 = vmax.f32 %v584_v27, 0.0  ;;  %v4226_v17 = vld [vmem:[%s6164_s3 + $0xc8] sm:$0xff] }
  0x19   : > { %v621_v37 = vmax.f32 %v585_v28, 0.0  ;;  %v628_v38 = vmax.f32 %v592_v29, 0.0  ;;  %v608_v39 = vadd.f32 %v4729_v5, %v568_v26  ;;  %2241 = vmatpush.bf16.msra.mxu0 %v4229_v23  ;;  %4537 = vmatpush.bf16.msra.mxu1 %v4229_v23  ;;  %v629_v41 = vmax.f32 %v593_v31, 0.0  ;;  %v1121_v26 = vld [vmem:[#allocation2 + $0x6c] sm:$0xf] }
  0x1a   : > { %v636_v42 = vmax.f32 %v600_v32, 0.0  ;;  %v637_v43 = vmax.f32 %v601_v33, 0.0  ;;  %v609_v44 = vadd.f32 %v4729_v5, %v569_v34  ;;  %4538 = vmatpush.bf16.msra.mxu2 %v4229_v23  ;;  %4539 = vmatpush.bf16.msra.mxu3 %v4229_v23  ;;  %v4769_v45 = vpack.c.bf16 %v620_v36, %v620_v36 }
  0x1b   : > { %v4771_v46 = vpack.c.bf16 %v621_v37, %v621_v37  ;;  %v4773_v47 = vpack.c.bf16 %v628_v38, %v628_v38  ;;  %v4776_v49 = vpack.c.bf16 %v629_v41, %v629_v41  ;;  %v644_v52 = vmax.f32 %v608_v39, 0.0  ;;  %v4225_v38 = vld [vmem:[%s6164_s3 + $0xc0] sm:$0xff] }
  0x1c   : > { %v4778_v50 = vpack.c.bf16 %v636_v42, %v636_v42  ;;  %v4780_v51 = vpack.c.bf16 %v637_v43, %v637_v43  ;;  %v711_v53 = vshrl.u32 %v4769_v45, 16  ;;  %v714_v54 = vshll.u32 %v4769_v45, 16  ;;  %v4471_v43 = vld [vmem:[%s4718_s14 + $0x48] sm:$0xff]  }
  0x1d   : > { %v719_v55 = vshrl.u32 %v4771_v46, 16  ;;  %v6176_v56 = vshll.u32 %v4771_v46, 16  ;;  %2242 = vmatpush.bf16.msra.mxu0 %v4228_v40  ;;  %4540 = vmatpush.bf16.msra.mxu1 %v4228_v40  ;;  %v779_v58 = vshrl.u32 %v4773_v47, 16  ;;  %v782_v59 = vshll.u32 %v4773_v47, 16 }
  0x1e   : > { %v787_v60 = vshrl.u32 %v4776_v49, 16  ;;  %v6174_v61 = vshll.u32 %v4776_v49, 16  ;;  %4541 = vmatpush.bf16.msra.mxu2 %v4228_v40  ;;  %4542 = vmatpush.bf16.msra.mxu3 %v4228_v40  ;;  %v713_v63 = vrot.slane %v711_v53, 7  ;;  %v847_v1 = vshrl.u32 %v4778_v50, 16 }
  0x1f   : > { %v4801_v0 = vrot.slane %v719_v55, 7  ;;  %v645_v2 = vmax.f32 %v609_v44, 0.0  ;;  %v781_v7 = vrot.slane %v779_v58, 7  ;;  %v850_v10 = vshll.u32 %v4778_v50, 16 }
  0x20   : > { %v4812_v8 = vrot.slane %v787_v60, 7  ;;  %v855_v11 = vshrl.u32 %v4780_v51, 16  ;;  %v716_v12 = vor.u32 %v714_v54, %v713_v63  ;;  %v717_v13 = vrot.slane %v713_v63, 4 }
  0x21   : > { %v724_v14 = vor.u32 %v6176_v56, %v4801_v0  ;;  %v6172_v16 = vshll.u32 %v4780_v51, 16  ;;  %2243 = vmatpush.bf16.msra.mxu0 %v4227_v57  ;;  %4543 = vmatpush.bf16.msra.mxu1 %v4227_v57  ;;  %v784_v19 = vor.u32 %v782_v59, %v781_v7  ;;  %v785_v20 = vrot.slane %v781_v7, 4 }
  0x22   : > { %v792_v21 = vor.u32 %v6174_v61, %v4812_v8  ;;  %v849_v22 = vrot.slane %v847_v1, 7  ;;  %4544 = vmatpush.bf16.msra.mxu2 %v4227_v57  ;;  %4545 = vmatpush.bf16.msra.mxu3 %v4227_v57  ;;  %v1066_v24 = vsel %vm4806_vm7, %v716_v12, %v1065_v6  ;;  %v4832_v25 = vrot.slane %v855_v11, 7  ;;  %v4208_v57 = vld [vmem:[%s6164_s3 + $0x38] sm:$0xff] }
  0x23   : > { %v725_v23 = vsel %vm4795_vm6, %v717_v13, %v724_v14  ;;  %v4834_v27 = vpack.c.bf16 %v644_v52, %v644_v52  ;;  %1067 = vst [vmem:[#allocation2 + $0xc] sm:$0xf] %v1066_v24  ;;  %v1094_v29 = vsel %vm4806_vm7, %v784_v19, %v1093_v15  ;;  %v4843_v34 = vpack.c.bf16 %v645_v2, %v645_v2  ;;  %v4240_v12 = vld [vmem:[%s6164_s3 + $0x138] sm:$0xff] }
  0x24   : > { %v793_v28 = vsel %vm4795_vm6, %v785_v20, %v792_v21  ;;  %v852_v31 = vor.u32 %v850_v10, %v849_v22  ;;  %v853_v32 = vrot.slane %v849_v22, 4  ;;  %1068 = vst [vmem:[#allocation2 + $0x10] sm:$0xf] %v725_v23  ;;  %v860_v33 = vor.u32 %v6172_v16, %v4832_v25  ;;  %v1107_v16 = vld [vmem:[#allocation2 + $0x54] sm:$0xf] }
  0x25   : > { %6234 = vst [vmem:[#allocation5_spill] sm:$0xff] %v4843_v34  ;;  %v915_v36 = vshrl.u32 %v4834_v27, 16  ;;  %v918_v37 = vshll.u32 %v4834_v27, 16  ;;  %2244 = vmatpush.bf16.msra.mxu0 %v4226_v17  ;;  %4546 = vmatpush.bf16.msra.mxu1 %v4226_v17  ;;  %v4284_v40 = vunpack.c.h.bf16 %v4741_v18  ;;  %v546_v41 = vmul.f32 %v4723_v3, %v4283_v30  ;;  %v1149_v18 = vld [vmem:[#allocation2 + $0x9c] sm:$0xf] }
  0x26   : > { %1095 = vst [vmem:[#allocation2 + $0x3c] sm:$0xf] %v1094_v29  ;;  %v1122_v39 = vsel %vm4806_vm7, %v852_v31, %v1121_v26  ;;  %v4300_v42 = vunpack.c.h.bf16 %v4762_v35  ;;  %4547 = vmatpush.bf16.msra.mxu2 %v4226_v17  ;;  %4548 = vmatpush.bf16.msra.mxu3 %v4226_v17  ;;  %v861_v44 = vsel %vm4795_vm6, %v853_v32, %v860_v33  ;;  %v923_v54 = vshrl.u32 %v4843_v34, 16  ;;  %v4248_v30 = vld [vmem:[%s6164_s3 + $0x178] sm:$0xff]  ;;  %v4247_v26 = vld [vmem:[%s6164_s3 + $0x170] sm:$0xff] }
  0x27   : > { %1096 = vst [vmem:[#allocation2 + $0x40] sm:$0xf] %v793_v28  ;;  %v917_v52 = vrot.slane %v915_v36, 7  ;;  %v6170_v55 = vshll.u32 %v4843_v34, 16  ;;  %v547_v59 = vmul.f32 %v4723_v3, %v4284_v40  ;;  %v586_v60 = vadd.f32 %v4729_v5, %v546_v41  ;;  %v4216_v35 = vld [vmem:[%s6164_s3 + $0x78] sm:$0xff]  ;;  %v4207_v28 = vld [vmem:[%s6164_s3 + $0x30] sm:$0xff] }
  0x28   : > { %1123 = vst [vmem:[#allocation2 + $0x6c] sm:$0xf] %v1122_v39  ;;  %v554_v63 = vmul.f32 %v4723_v3, %v4299_v48  ;;  %v555_v2 = vmul.f32 %v4723_v3, %v4300_v42  ;;  %v4882_v11 = vrot.slane %v923_v54, 7  ;;  %v4315_v48 = vunpack.c.l.bf16 %v4471_v43 }
  0x29   : > { %1124 = vst [vmem:[#allocation2 + $0x70] sm:$0xf] %v861_v44  ;;  %v920_v7 = vor.u32 %v918_v37, %v917_v52  ;;  %v921_v10 = vrot.slane %v917_v52, 4  ;;  %2245 = vmatpush.bf16.msra.mxu0 %v4225_v38  ;;  %4549 = vmatpush.bf16.msra.mxu1 %v4225_v38  ;;  %v587_v13 = vadd.f32 %v4729_v5, %v547_v59  ;;  %v622_v14 = vmax.f32 %v586_v60, 0.0 }
  0x2a   : > { %6237 = vst [vmem:[#allocation6_spill] sm:$0xff] %v4882_v11  ;;  %v594_v15 = vadd.f32 %v4729_v5, %v554_v63  ;;  %v595_v17 = vadd.f32 %v4729_v5, %v555_v2  ;;  %4550 = vmatpush.bf16.msra.mxu2 %v4225_v38  ;;  %4551 = vmatpush.bf16.msra.mxu3 %v4225_v38  ;;  %v1241_v19 = vld [vmem:[#allocation2 + $0xc] sm:$0x1]  ;;  %v4316_v22 = vunpack.c.h.bf16 %v4471_v43 }
  0x2b   : > { %v928_v20 = vor.u32 %v6170_v55, %v4882_v11  ;;  %v1150_v21 = vsel %vm4806_vm7, %v920_v7, %v1149_v18  ;;  %v562_v23 = vmul.f32 %v4723_v3, %v4315_v48  ;;  %v1242_v24 = vsel %vm4878_vm8, %v711_v53, %v1241_v19 }
  0x2c   : > { %1151 = vst [vmem:[#allocation2 + $0x9c] sm:$0xf] %v1150_v21  ;;  %v623_v29 = vmax.f32 %v587_v13, 0.0  ;;  %v4909_v31 = vpack.c.bf16 %v622_v14, %v622_v14  ;;  %v630_v32 = vmax.f32 %v594_v15, 0.0  ;;  %v631_v33 = vmax.f32 %v595_v17, 0.0 }
  0x2d   : > { %1243 = vst [vmem:[#allocation2 + $0xc] sm:$0x1] %v1242_v24  ;;  %v1253_v45 = vld [vmem:[#allocation2 + $0x3c] sm:$0x1]  ;;  %v929_v53 = vsel %vm4795_vm6, %v921_v10, %v928_v20  ;;  %2327 = vmatpush.bf16.msrb.mxu1 %v4240_v12  ;;  %2738 = vmatpush.bf16.msrb.mxu0 %v4216_v35  ;;  %v563_v37 = vmul.f32 %v4723_v3, %v4316_v22  ;;  %v4949_v15 = vld [vmem:[#allocation2 + $0xc] sm:$0xf0] }
  0x2e   : > { %2416 = vmatpush.bf16.msrb.mxu2 %v4248_v30  ;;  %2649 = vmatpush.bf16.msrb.mxu3 %v4208_v57  ;;  %v1254_v38 = vsel %vm4878_vm8, %v779_v58, %v1253_v45  ;;  %1152 = vst [vmem:[#allocation2 + $0xa0] sm:$0xf] %v929_v53  ;;  %v4918_v39 = vpack.c.bf16 %v623_v29, %v623_v29  ;;  %v728_v40 = vshrl.u32 %v4909_v31, 16  ;;  %v731_v41 = vshll.u32 %v4909_v31, 16  ;;  %v1072_v30 = vld [vmem:[#allocation2 + $0x18] sm:$0xf] }
  0x2f   : > { %1255 = vst [vmem:[#allocation2 + $0x3c] sm:$0x1] %v1254_v38  ;;  %v1265_v42 = vld [vmem:[#allocation2 + $0x6c] sm:$0x1]  ;;  %v4922_v43 = vpack.c.bf16 %v630_v32, %v630_v32  ;;  %v4924_v44 = vpack.c.bf16 %v631_v33, %v631_v33  ;;  %v602_v52 = vadd.f32 %v4729_v5, %v562_v23  ;;  %v1100_v21 = vld [vmem:[#allocation2 + $0x48] sm:$0xf] }
  0x30   : > { %v1266_v47 = vsel %vm4878_vm8, %v847_v1, %v1265_v42  ;;  %v730_v58 = vrot.slane %v728_v40, 7  ;;  %v736_v54 = vshrl.u32 %v4918_v39, 16  ;;  %v6175_v18 = vshll.u32 %v4918_v39, 16  ;;  %v4475_v57 = vld [vmem:[%s4718_s14 + $0x68] sm:$0xff]   ;;  %v4973_v53 = vld [vmem:[#allocation2 + $0x6c] sm:$0xf0] }
  0x31   : > { %1267 = vst [vmem:[#allocation2 + $0x6c] sm:$0x1] %v1266_v47  ;;  %v796_v59 = vshrl.u32 %v4922_v43, 16  ;;  %v799_v60 = vshll.u32 %v4922_v43, 16  ;;  %v804_v50 = vshrl.u32 %v4924_v44, 16  ;;  %v603_v1 = vadd.f32 %v4729_v5, %v563_v37  ;;  %v4464_v42 = vld [vmem:[%s4718_s14 + $0x10] sm:$0xff]  }
  0x32   : > { %2417 = vmatpush.bf16.msrb.mxu2 %v4247_v26  ;;  %2650 = vmatpush.bf16.msrb.mxu3 %v4207_v28  ;;  %v733_v63 = vor.u32 %v731_v41, %v730_v58  ;;  %v734_v2 = vrot.slane %v730_v58, 4  ;;  %v4940_v7 = vrot.slane %v736_v54, 7  ;;  %v6173_v10 = vshll.u32 %v4924_v44, 16  ;;  %v4962_v28 = vld [vmem:[#allocation2 + $0x3c] sm:$0xf0]  ;;  %v4239_v47 = vld [vmem:[%s6164_s3 + $0x130] sm:$0xff] }
  0x33   : > { %v1277_v12 = vld [vmem:[#allocation2 + $0x9c] sm:$0x1]  ;;  %v798_v35 = vrot.slane %v796_v59, 7  ;;  %v4945_v48 = vrot.slane %v804_v50, 7  ;;  %v4331_v13 = vunpack.c.l.bf16 %v4475_v57  ;;  %v638_v22 = vmax.f32 %v602_v52, 0.0  ;;  %v4246_v58 = vld [vmem:[%s6164_s3 + $0x168] sm:$0xff]  ;;  %2328 = vmatpush.bf16.msrb.mxu1 %v4239_v47 }
  0x34   : > { %v4947_v14 = vld [vmem:[#allocation2 + $0xc] sm:$0xff]   ;;  %v1278_v17 = vsel %vm4878_vm8, %v915_v36, %v1277_v12  ;;  %v741_v19 = vor.u32 %v6175_v18, %v4940_v7  ;;  %v1073_v20 = vsel %vm4806_vm7, %v733_v63, %v1072_v30  ;;  %v639_v29 = vmax.f32 %v603_v1, 0.0  ;;  %v1128_v63 = vld [vmem:[#allocation2 + $0x78] sm:$0xf] }
  0x35   : > { %1279 = vst [vmem:[#allocation2 + $0x9c] sm:$0x1] %v1278_v17  ;;  %v801_v23 = vor.u32 %v799_v60, %v798_v35  ;;  %v802_v24 = vrot.slane %v798_v35, 4  ;;  %v809_v36 = vor.u32 %v6173_v10, %v4945_v48  ;;  %v4977_v37 = vpack.c.bf16 %v638_v22, %v638_v22  ;;  %2246 = vmatmul.bf16.vlgmr.msra.gmra.mxu0 %v4947_v14  ;;  %v4206_v54 = vld [vmem:[%s6164_s3 + $0x28] sm:$0xff]  ;;  %v4215_v1 = vld [vmem:[%s6164_s3 + $0x70] sm:$0xff]  ;;  %v4245_v35 = vld [vmem:[%s6164_s3 + $0x160] sm:$0xff] }
  0x36   : > { %v4960_v26 = vld [vmem:[#allocation2 + $0x3c] sm:$0xff]   ;;  %v742_v27 = vsel %vm4795_vm6, %v734_v2, %v741_v19  ;;  %1074 = vst [vmem:[#allocation2 + $0x18] sm:$0xf] %v1073_v20  ;;  %v4979_v38 = vpack.c.bf16 %v639_v29, %v639_v29  ;;  %v4332_v41 = vunpack.c.h.bf16 %v4475_v57  ;;  %v570_v52 = vmul.f32 %v4723_v3, %v4331_v13  ;;  %2418 = vmatpush.bf16.msrb.mxu2 %v4246_v58 }
  0x37   : > { %1075 = vst [vmem:[#allocation2 + $0x1c] sm:$0xf] %v742_v27  ;;  %v1101_v32 = vsel %vm4806_vm7, %v801_v23, %v1100_v21  ;;  %v810_v33 = vsel %vm4795_vm6, %v802_v24, %v809_v36  ;;  %v864_v30 = vshrl.u32 %v4977_v37, 16  ;;  %v867_v57 = vshll.u32 %v4977_v37, 16  ;;  %2266 = vmatmul.bf16.vlgmr.msra.gmra.mxu1 %v4960_v26  ;;  %v5008_v17 = vld [vmem:[#allocation2 + $0x9c] sm:$0xf0]  ;;  %2651 = vmatpush.bf16.msrb.mxu3 %v4206_v54 }
  0x38   : > { %v4971_v45 = vld [vmem:[#allocation2 + $0x6c] sm:$0xff]   ;;  %1102 = vst [vmem:[#allocation2 + $0x48] sm:$0xf] %v1101_v32  ;;  %v872_v60 = vshrl.u32 %v4979_v38, 16  ;;  %v6171_v50 = vshll.u32 %v4979_v38, 16  ;;  %v571_v2 = vmul.f32 %v4723_v3, %v4332_v41  ;;  %v610_v12 = vadd.f32 %v4729_v5, %v570_v52  ;;  %v4205_v22 = vld [vmem:[%s6164_s3 + $0x20] sm:$0xff]  ;;  %2739 = vmatpush.bf16.msrb.mxu0 %v4215_v1 }
  0x39   : > { %1103 = vst [vmem:[#allocation2 + $0x4c] sm:$0xf] %v810_v33  ;;  %v866_v19 = vrot.slane %v864_v30, 7  ;;  %v4238_v21 = vld [vmem:[%s6164_s3 + $0x128] sm:$0xff]  ;;  %v4287_v23 = vunpack.c.l.bf16 %v4464_v42  ;;  %v4288_v24 = vunpack.c.h.bf16 %v4464_v42  ;;  %2286 = vmatmul.bf16.vlgmr.msra.gmra.mxu2 %v4971_v45  ;;  %v4468_v33 = vld [vmem:[%s4718_s14 + $0x30] sm:$0xff]  }
  0x3a   : > { %6239 = vst [vmem:[#allocation8_spill] sm:$0xff] %v5008_v17  ;;  %v5012_v20 = vrot.slane %v872_v60, 7  ;;  %v611_v36 = vadd.f32 %v4729_v5, %v571_v2  ;;  %v646_v29 = vmax.f32 %v610_v12, 0.0  ;;  %v4214_v32 = vld [vmem:[%s6164_s3 + $0x68] sm:$0xff]  ;;  %2419 = vmatpush.bf16.msrb.mxu2 %v4245_v35  ;;  %v4472_v1 = vld [vmem:[%s4718_s14 + $0x50] sm:$0xff]   ;;  %2329 = vmatpush.bf16.msrb.mxu1 %v4238_v21  ;;  %v4303_v2 = vunpack.c.l.bf16 %v4468_v33 }
  0x3b   : > { %v869_v52 = vor.u32 %v867_v57, %v866_v19  ;;  %v870_v42 = vrot.slane %v866_v19, 4  ;;  %2652 = vmatpush.bf16.msrb.mxu3 %v4205_v22  ;;  %v549_v19 = vmul.f32 %v4723_v3, %v4288_v24  ;;  %v4319_v21 = vunpack.c.l.bf16 %v4472_v1 }
  0x3c   : > { %v5006_v13 = vld [vmem:[#allocation2 + $0x9c] sm:$0xff]   ;;  %v877_v47 = vor.u32 %v6171_v50, %v5012_v20  ;;  %v647_v54 = vmax.f32 %v611_v36, 0.0  ;;  %v5033_v60 = vpack.c.bf16 %v646_v29, %v646_v29  ;;  %2740 = vmatpush.bf16.msrb.mxu0 %v4214_v32 }
  0x3d   : > { %6238 = vst [vmem:[#allocation7_spill] sm:$0xff] %v5006_v13  ;;  %v1244_v27 = vld [vmem:[#allocation2 + $0x18] sm:$0x1]  ;;  %v1129_v57 = vsel %vm4806_vm7, %v869_v52, %v1128_v63  ;;  %2306 = vmatmul.bf16.vlgmr.msra.gmra.mxu3 %v5006_v13  ;;  %v556_v63 = vmul.f32 %v4723_v3, %v4303_v2 }
  0x3e   : > { %v1245_v41 = vsel %vm4878_vm8, %v728_v40, %v1244_v27  ;;  %v878_v40 = vsel %vm4795_vm6, %v870_v42, %v877_v47  ;;  %v5045_v12 = vpack.c.bf16 %v647_v54, %v647_v54  ;;  %v932_v35 = vshrl.u32 %v5033_v60, 16  ;;  %1130 = vst [vmem:[#allocation2 + $0x78] sm:$0xf] %v1129_v57 }
  0x3f   : > { %1246 = vst [vmem:[#allocation2 + $0x18] sm:$0x1] %v1245_v41  ;;  %v1256_v58 = vld [vmem:[#allocation2 + $0x48] sm:$0x1]  ;;  %v935_v43 = vshll.u32 %v5033_v60, 16  ;;  %v4304_v27 = vunpack.c.h.bf16 %v4468_v33  ;;  %v596_v33 = vadd.f32 %v4729_v5, %v556_v63 }
  0x40   : > { %v1257_v31 = vsel %vm4878_vm8, %v796_v59, %v1256_v58  ;;  %6240 = vst [vmem:[#allocation9_spill] sm:$0xff] %v5045_v12  ;;  %v548_v59 = vmul.f32 %v4723_v3, %v4287_v23  ;;  %v934_v22 = vrot.slane %v932_v35, 7  ;;  %v940_v36 = vshrl.u32 %v5045_v12, 16  ;;  %v1156_v41 = vld [vmem:[#allocation2 + $0xa8] sm:$0xf] }
  0x41   : > { %1258 = vst [vmem:[#allocation2 + $0x48] sm:$0x1] %v1257_v31  ;;  %v6169_v29 = vshll.u32 %v5045_v12, 16  ;;  %v589_v23 = vadd.f32 %v4729_v5, %v549_v19  ;;  %v557_v24 = vmul.f32 %v4723_v3, %v4304_v27  ;;  %v4320_v58 = vunpack.c.h.bf16 %v4472_v1  ;;  %v1163_v12 = vld [vmem:[#allocation2 + $0xb4] sm:$0xf] }
  0x42   : > { %1131 = vst [vmem:[#allocation2 + $0x7c] sm:$0xf] %v878_v40  ;;  %v588_v32 = vadd.f32 %v4729_v5, %v548_v59  ;;  %v937_v52 = vor.u32 %v935_v43, %v934_v22  ;;  %v938_v42 = vrot.slane %v934_v22, 4  ;;  %v5060_v47 = vrot.slane %v940_v36, 7  ;;  %v5066_v59 = vld [vmem:[%s4718_s14 + $0x70] sm:$0xff]  }
  0x43   : > { %v625_v40 = vmax.f32 %v589_v23, 0.0  ;;  %v597_v57 = vadd.f32 %v4729_v5, %v557_v24  ;;  %v632_v2 = vmax.f32 %v596_v33, 0.0  ;;  %v564_v27 = vmul.f32 %v4723_v3, %v4319_v21 }
  0x44   : > { %6241 = vst [vmem:[#allocation10_spill] sm:$0xff] %v5060_v47  ;;  %v624_v31 = vmax.f32 %v588_v32, 0.0  ;;  %v945_v19 = vor.u32 %v6169_v29, %v5060_v47  ;;  %v1157_v43 = vsel %vm4806_vm7, %v937_v52, %v1156_v41  ;;  %v565_v41 = vmul.f32 %v4723_v3, %v4320_v58 }
  0x45   : > { %1158 = vst [vmem:[#allocation2 + $0xa8] sm:$0xf] %v1157_v43  ;;  %v5078_v22 = vpack.c.bf16 %v625_v40, %v625_v40  ;;  %v633_v36 = vmax.f32 %v597_v57, 0.0  ;;  %v5080_v32 = vpack.c.bf16 %v632_v2, %v632_v2  ;;  %v1268_v23 = vld [vmem:[#allocation2 + $0x78] sm:$0x1]  ;;  %v604_v21 = vadd.f32 %v4729_v5, %v564_v27 }
  0x46   : > { %v5062_v54 = vld [vmem:[#allocation2 + $0x18] sm:$0xff]   ;;  %v5076_v1 = vpack.c.bf16 %v624_v31, %v624_v31  ;;  %v946_v24 = vsel %vm4795_vm6, %v938_v42, %v945_v19  ;;  %v4335_v33 = vunpack.c.l.bf16 %v5066_v59  ;;  %v1269_v52 = vsel %vm4878_vm8, %v864_v30, %v1268_v23  ;;  %v1079_v23 = vld [vmem:[#allocation2 + $0x24] sm:$0xf] }
  0x47   : > { %2251 = vmatmul.bf16.gmra.mxu0 %v5062_v54  ;;  %1159 = vst [vmem:[#allocation2 + $0xac] sm:$0xf] %v946_v24  ;;  %v753_v57 = vshrl.u32 %v5078_v22, 16  ;;  %v6177_v42 = vshll.u32 %v5078_v22, 16  ;;  %v5097_v58 = vpack.c.bf16 %v633_v36, %v633_v36  ;;  %v6180_v2 = vshrl.u32 %v5080_v32, 16 }
  0x48   : > { %v5074_v63 = vld [vmem:[#allocation2 + $0x48] sm:$0xff]   ;;  %v745_v31 = vshrl.u32 %v5076_v1, 16  ;;  %v748_v40 = vshll.u32 %v5076_v1, 16  ;;  %1270 = vst [vmem:[#allocation2 + $0x78] sm:$0x1] %v1269_v52  ;;  %v816_v37 = vshll.u32 %v5080_v32, 16  ;;  %v605_v43 = vadd.f32 %v4729_v5, %v565_v41 }
  0x49   : > { %2271 = vmatmul.bf16.gmra.mxu1 %v5074_v63  ;;  %v5103_v19 = vrot.slane %v753_v57, 7  ;;  %v640_v27 = vmax.f32 %v604_v21, 0.0  ;;  %v815_v24 = vrot.slane %v6180_v2, 7  ;;  %v821_v52 = vshrl.u32 %v5097_v58, 16  ;;  %v5155_v2 = vld [vmem:[%s4718_s14 + $0x58] sm:$0xff]  }
  0x4a   : > { %v747_v30 = vrot.slane %v745_v31, 7  ;;  %v6178_v36 = vshll.u32 %v5097_v58, 16  ;;  %v4336_v29 = vunpack.c.h.bf16 %v5066_v59  ;;  %v641_v41 = vmax.f32 %v605_v43, 0.0  ;;  %v4212_v1 = vld [vmem:[%s6164_s3 + $0x58] sm:$0xff] }
  0x4b   : > { %v758_v57 = vor.u32 %v6177_v42, %v5103_v19  ;;  %v818_v10 = vor.u32 %v816_v37, %v815_v24  ;;  %v819_v61 = vrot.slane %v815_v24, 4  ;;  %v5114_v18 = vrot.slane %v821_v52, 7  ;;  %v4465_v42 = vld [vmem:[%s4718_s14 + $0x18] sm:$0xff]  }
  0x4c   : > { %v750_v55 = vor.u32 %v748_v40, %v747_v30  ;;  %v751_v50 = vrot.slane %v747_v30, 4  ;;  %v1280_v21 = vld [vmem:[#allocation2 + $0xa8] sm:$0x1]  ;;  %v5116_v56 = vpack.c.bf16 %v640_v27, %v640_v27  ;;  %v5126_v43 = vpack.c.bf16 %v641_v41, %v641_v41  ;;  %v4469_v24 = vld [vmem:[%s4718_s14 + $0x38] sm:$0xff]  }
  0x4d   : > { %v1281_v59 = vsel %vm4878_vm8, %v932_v35, %v1280_v21  ;;  %v826_v37 = vor.u32 %v6178_v36, %v5114_v18  ;;  %v1108_v60 = vsel %vm4806_vm7, %v818_v10, %v1107_v16  ;;  %v572_v52 = vmul.f32 %v4723_v3, %v4335_v33 }
  0x4e   : > { %v759_v40 = vsel %vm4795_vm6, %v751_v50, %v758_v57  ;;  %v1080_v30 = vsel %vm4806_vm7, %v750_v55, %v1079_v23  ;;  %6242 = vst [vmem:[#allocation11_spill] sm:$0xff] %v5126_v43  ;;  %v6179_v27 = vshrl.u32 %v5116_v56, 16  ;;  %v884_v35 = vshll.u32 %v5116_v56, 16 }
  0x4f   : > { %1282 = vst [vmem:[#allocation2 + $0xa8] sm:$0x1] %v1281_v59  ;;  %v4482_v50 = vld [vmem:[#allocation2 + $0x78] sm:$0xff]   ;;  %v889_v55 = vshrl.u32 %v5126_v43, 16  ;;  %v6181_v23 = vshll.u32 %v5126_v43, 16  ;;  %v573_v57 = vmul.f32 %v4723_v3, %v4336_v29  ;;  %v827_v16 = vsel %vm4795_vm6, %v819_v61, %v826_v37 }
  0x50   : > { %1081 = vst [vmem:[#allocation2 + $0x24] sm:$0xf] %v1080_v30  ;;  %2291 = vmatmul.bf16.gmra.mxu2 %v4482_v50  ;;  %v883_v10 = vrot.slane %v6179_v27, 7  ;;  %v4291_v41 = vunpack.c.l.bf16 %v4465_v42  ;;  %v4292_v21 = vunpack.c.h.bf16 %v4465_v42  ;;  %v1135_v30 = vld [vmem:[#allocation2 + $0x84] sm:$0xf]  ;;  %v612_v36 = vadd.f32 %v4729_v5, %v572_v52 }
  0x51   : > { %1082 = vst [vmem:[#allocation2 + $0x28] sm:$0xf] %v759_v40  ;;  %v5145_v59 = vrot.slane %v889_v55, 7  ;;  %v613_v33 = vadd.f32 %v4729_v5, %v573_v57  ;;  %v4307_v29 = vunpack.c.l.bf16 %v4469_v24  ;;  %v4308_v27 = vunpack.c.h.bf16 %v4469_v24  ;;  %v4244_v57 = vld [vmem:[%s6164_s3 + $0x158] sm:$0xff] }
  0x52   : > { %1109 = vst [vmem:[#allocation2 + $0x54] sm:$0xf] %v1108_v60  ;;  %v886_v40 = vor.u32 %v884_v35, %v883_v10  ;;  %v887_v50 = vrot.slane %v883_v10, 4  ;;  %v550_v61 = vmul.f32 %v4723_v3, %v4291_v41  ;;  %v551_v37 = vmul.f32 %v4723_v3, %v4292_v21  ;;  %v4237_v35 = vld [vmem:[%s6164_s3 + $0x120] sm:$0xff]  ;;  %2420 = vmatpush.bf16.msrb.mxu2 %v4244_v57 }
  0x53   : > { %1110 = vst [vmem:[#allocation2 + $0x58] sm:$0xf] %v827_v16  ;;  %v894_v42 = vor.u32 %v6181_v23, %v5145_v59  ;;  %v648_v60 = vmax.f32 %v612_v36, 0.0  ;;  %v649_v55 = vmax.f32 %v613_v33, 0.0  ;;  %v4204_v16 = vld [vmem:[%s6164_s3 + $0x18] sm:$0xff]  ;;  %v558_v10 = vmul.f32 %v4723_v3, %v4307_v29  ;;  %2330 = vmatpush.bf16.msrb.mxu1 %v4237_v35  ;;  %v4203_v35 = vld [vmem:[%s6164_s3 + $0x10] sm:$0xff] }
  0x54   : > { %v1136_v52 = vsel %vm4806_vm7, %v886_v40, %v1135_v30  ;;  %v590_v36 = vadd.f32 %v4729_v5, %v550_v61  ;;  %v591_v24 = vadd.f32 %v4729_v5, %v551_v37  ;;  %v4213_v40 = vld [vmem:[%s6164_s3 + $0x60] sm:$0xff]  ;;  %v559_v23 = vmul.f32 %v4723_v3, %v4308_v27  ;;  %v4236_v29 = vld [vmem:[%s6164_s3 + $0x118] sm:$0xff]  ;;  %2653 = vmatpush.bf16.msrb.mxu3 %v4204_v16 }
  0x55   : > { %v895_v21 = vsel %vm4795_vm6, %v887_v50, %v894_v42  ;;  %1137 = vst [vmem:[#allocation2 + $0x84] sm:$0xf] %v1136_v52  ;;  %v5173_v30 = vpack.c.bf16 %v648_v60, %v648_v60  ;;  %v5175_v33 = vpack.c.bf16 %v649_v55, %v649_v55  ;;  %v598_v50 = vadd.f32 %v4729_v5, %v558_v10  ;;  %v4243_v52 = vld [vmem:[%s6164_s3 + $0x150] sm:$0xff] }
  0x56   : > { %v4484_v41 = vld [vmem:[#allocation2 + $0xa8] sm:$0xff]   ;;  %1138 = vst [vmem:[#allocation2 + $0x88] sm:$0xf] %v895_v21  ;;  %v4323_v37 = vunpack.c.l.bf16 %v5155_v2  ;;  %2741 = vmatpush.bf16.msrb.mxu0 %v4213_v40  ;;  %v599_v57 = vadd.f32 %v4729_v5, %v559_v23  ;;  %v4324_v16 = vunpack.c.h.bf16 %v5155_v2  ;;  %v6244_v21 = vshrl.u32 %v5080_v32, 16  ;;  %2421 = vmatpush.bf16.msrb.mxu2 %v4243_v52 }
  0x57   : > { %6243 = vst [vmem:[#allocation12_spill] sm:$0xff] %v5175_v33  ;;  %2311 = vmatmul.bf16.gmra.mxu3 %v4484_v41  ;;  %v1247_v61 = vld [vmem:[#allocation2 + $0x24] sm:$0x1]  ;;  %v6186_v60 = vshrl.u32 %v5173_v30, 16  ;;  %v952_v27 = vshll.u32 %v5173_v30, 16  ;;  %v957_v55 = vshrl.u32 %v5175_v33, 16  ;;  %2331 = vmatpush.bf16.msrb.mxu1 %v4236_v29 }
  0x58   : > { %v1248_v42 = vsel %vm4878_vm8, %v745_v31, %v1247_v61  ;;  %v626_v41 = vmax.f32 %v590_v36, 0.0  ;;  %v634_v36 = vmax.f32 %v598_v50, 0.0  ;;  %v635_v23 = vmax.f32 %v599_v57, 0.0  ;;  %2654 = vmatpush.bf16.msrb.mxu3 %v4203_v35  ;;  %v1086_v57 = vld [vmem:[#allocation2 + $0x30] sm:$0xf] }
  0x59   : > { %1249 = vst [vmem:[#allocation2 + $0x24] sm:$0x1] %v1248_v42  ;;  %v1259_v31 = vld [vmem:[#allocation2 + $0x54] sm:$0x1]  ;;  %v951_v17 = vrot.slane %v6186_v60, 7  ;;  %v5211_v13 = vrot.slane %v957_v55, 7  ;;  %v566_v2 = vmul.f32 %v4723_v3, %v4323_v37 }
  0x5a   : > { %v1260_v61 = vsel %vm4878_vm8, %v6244_v21, %v1259_v31  ;;  %v627_v42 = vmax.f32 %v591_v24, 0.0  ;;  %v5213_v40 = vpack.c.bf16 %v626_v41, %v626_v41  ;;  %v6246_v31 = vshll.u32 %v5175_v33, 16  ;;  %2742 = vmatpush.bf16.msrb.mxu0 %v4212_v1 }
  0x5b   : > { %6245 = vst [vmem:[#allocation13_spill] sm:$0xff] %v5211_v13  ;;  %v954_v10 = vor.u32 %v952_v27, %v951_v17  ;;  %v955_v32 = vrot.slane %v951_v17, 4  ;;  %v5223_v41 = vpack.c.bf16 %v634_v36, %v634_v36  ;;  %v5225_v37 = vpack.c.bf16 %v635_v23, %v635_v23  ;;  %v4477_v23 = vld [vmem:[%s4718_s14 + $0x78] sm:$0xff]   ;;  %s4196_s14 = sadd.s32 8, %s4709_s9 }
  0x5c   : > { %1261 = vst [vmem:[#allocation2 + $0x54] sm:$0x1] %v1260_v61  ;;  %v962_v21 = vor.u32 %v6246_v31, %v5211_v13  ;;  %v5219_v55 = vpack.c.bf16 %v627_v42, %v627_v42  ;;  %v1271_v24 = vld [vmem:[#allocation2 + $0x84] sm:$0x1]  ;;  %v6185_v29 = vshrl.u32 %v5213_v40, 16  ;;  %v765_v50 = vshll.u32 %v5213_v40, 16  ;;  %s415_s28 = scalar_lea.vmem %s6161_s0, %s4196_s14 }
  0x5d   : > { %v6247_v17 = vshrl.u32 %v5116_v56, 16  ;;  %v1164_v35 = vsel %vm4806_vm7, %v954_v10, %v1163_v12  ;;  %v6190_v56 = vshrl.u32 %v5223_v41, 16  ;;  %v567_v36 = vmul.f32 %v4723_v3, %v4324_v16  ;;  %v5253_v3 = vld [vmem:[#allocation2 + $0x54] sm:$0xf0] }
  0x5e   : > { %v963_v52 = vsel %vm4795_vm6, %v955_v32, %v962_v21  ;;  %v770_v1 = vshrl.u32 %v5219_v55, 16  ;;  %v764_v61 = vrot.slane %v6185_v29, 7  ;;  %v6189_v42 = vshll.u32 %v5219_v55, 16  ;;  %v5244_v32 = vld [vmem:[#allocation2 + $0x24] sm:$0xf0] }
  0x5f   : > { %v1272_v27 = vsel %vm4878_vm8, %v6247_v17, %v1271_v24  ;;  %1165 = vst [vmem:[#allocation2 + $0xb4] sm:$0xf] %v1164_v35  ;;  %v833_v10 = vshll.u32 %v5223_v41, 16  ;;  %v838_v21 = vshrl.u32 %v5225_v37, 16  ;;  %v606_v24 = vadd.f32 %v4729_v5, %v566_v2 }
  0x60   : > { %1273 = vst [vmem:[#allocation2 + $0x84] sm:$0x1] %v1272_v27  ;;  %v5242_v31 = vld [vmem:[#allocation2 + $0x24] sm:$0xff]   ;;  %v5246_v12 = vrot.slane %v770_v1, 7  ;;  %v767_v17 = vor.u32 %v765_v50, %v764_v61  ;;  %v768_v27 = vrot.slane %v764_v61, 4  ;;  %v832_v35 = vrot.slane %v6190_v56, 7 }
  0x61   : > { %1166 = vst [vmem:[#allocation2 + $0xb8] sm:$0xf] %v963_v52  ;;  %v4339_v60 = vunpack.c.l.bf16 %v4477_v23  ;;  %v1114_v52 = vld [vmem:[#allocation2 + $0x60] sm:$0xf]  ;;  %v5266_v13 = vrot.slane %v838_v21, 7  ;;  %2256 = vmatmul.bf16.gmra.mxu0 %v5242_v31  ;;  %v642_v56 = vmax.f32 %v606_v24, 0.0  ;;  %v4340_v21 = vunpack.c.h.bf16 %v4477_v23 }
  0x62   : > { %v775_v16 = vor.u32 %v6189_v42, %v5246_v12  ;;  %v1087_v2 = vsel %vm4806_vm7, %v767_v17, %v1086_v57  ;;  %v835_v61 = vor.u32 %v833_v10, %v832_v35  ;;  %v836_v33 = vrot.slane %v832_v35, 4  ;;  %v5273_v57 = vld [vmem:[#allocation2 + $0x84] sm:$0xf0]  ;;  %v5295_v23 = vld [vmem:[%s6165_s4] ss:$0 sm:$0xff] }
  0x63   : > { %v5251_v29 = vld [vmem:[#allocation2 + $0x54] sm:$0xff]   ;;  %1088 = vst [vmem:[#allocation2 + $0x30] sm:$0xf] %v1087_v2  ;;  %v607_v42 = vadd.f32 %v4729_v5, %v567_v36  ;;  %v726_v1 = vrot.slane %v4801_v0, 4  ;;  %v6251_v17 = vshll.u32 %v5225_v37, 16  ;;  %v5284_v36 = vpack.c.bf16 %v642_v56, %v642_v56 }
  0x64   : > { %6248 = vst [vmem:[#allocation14_spill] sm:$0xff] %v5251_v29  ;;  %v776_v50 = vsel %vm4795_vm6, %v768_v27, %v775_v16  ;;  %v1115_v10 = vsel %vm4806_vm7, %v835_v61, %v1114_v52  ;;  %2276 = vmatmul.bf16.gmra.mxu1 %v5251_v29  ;;  %v6252_v24 = vshrl.u32 %v5173_v30, 16  ;;  %v574_v2 = vmul.f32 %v5295_v23, %v4339_v60  ;;  %v5303_v61 = vld [vmem:[%s415_s28] sm:$0xff]  }
  0x65   : > { %1089 = vst [vmem:[#allocation2 + $0x34] sm:$0xf] %v776_v50  ;;  %v843_v27 = vor.u32 %v6251_v17, %v5266_v13  ;;  %v643_v0 = vmax.f32 %v607_v42, 0.0  ;;  %v575_v52 = vmul.f32 %v5295_v23, %v4340_v21  ;;  %v1069_v42 = vld [vmem:[#allocation2 + $0x14] sm:$0x1]  ;;  %v6196_v30 = vshrl.u32 %v5284_v36, 16 }
  0x66   : > { %6250 = vst [vmem:[#allocation16_spill] sm:$0xff] %v5273_v57  ;;  %v1283_v5 = vld [vmem:[#allocation2 + $0xb4] sm:$0x1]  ;;  %v901_v50 = vshll.u32 %v5284_v36, 16  ;;  %v4202_v21 = vld [vmem:[%s6164_s3 + $0x8] sm:$0xff] }
  0x67   : > { %v5271_v47 = vld [vmem:[#allocation2 + $0x84] sm:$0xff]   ;;  %1116 = vst [vmem:[#allocation2 + $0x60] sm:$0xf] %v1115_v10  ;;  %v1284_v16 = vsel %vm4878_vm8, %v6252_v24, %v1283_v5  ;;  %v844_v35 = vsel %vm4795_vm6, %v836_v33, %v843_v27  ;;  %v5299_v56 = vpack.c.bf16 %v643_v0, %v643_v0  ;;  %v5308_v33 = vld [vmem:[%s6166_s5] ss:$0 sm:$0xff]  ;;  %v4235_v27 = vld [vmem:[%s6164_s3 + $0x110] sm:$0xff]  ;;  %2655 = vmatpush.bf16.msrb.mxu3 %v4202_v21 }
  0x68   : > { %6249 = vst [vmem:[#allocation15_spill] sm:$0xff] %v5271_v47  ;;  %v614_v60 = vadd.f32 %v5308_v33, %v574_v2  ;;  %v615_v17 = vadd.f32 %v5308_v33, %v575_v52  ;;  %v4242_v10 = vld [vmem:[%s6164_s3 + $0x148] sm:$0xff]  ;;  %2296 = vmatmul.bf16.gmra.mxu2 %v5271_v47  ;;  %v900_v0 = vrot.slane %v6196_v30, 7  ;;  %v1070_v2 = vsel %vm4878_vm8, %v726_v1, %v1069_v42  ;;  %v1142_v57 = vld [vmem:[#allocation2 + $0x90] sm:$0xf] }
  0x69   : > { %1285 = vst [vmem:[#allocation2 + $0xb4] sm:$0x1] %v1284_v16  ;;  %v906_v24 = vshrl.u32 %v5299_v56, 16  ;;  %v6253_v52 = vshrl.u32 %v5213_v40, 16  ;;  %2332 = vmatpush.bf16.msrb.mxu1 %v4235_v27  ;;  %2422 = vmatpush.bf16.msrb.mxu2 %v4242_v10  ;;  %v4234_v30 = vld [vmem:[%s6164_s3 + $0x108] sm:$0xff]  ;;  %v4241_v16 = vld [vmem:[%s6164_s3 + $0x140] sm:$0xff]  ;;  %v4275_v1 = vunpack.c.l.bf16 %v5303_v61 }
  0x6a   : > { %1117 = vst [vmem:[#allocation2 + $0x64] sm:$0xf] %v844_v35  ;;  %v1250_v5 = vld [vmem:[#allocation2 + $0x30] sm:$0x1]  ;;  %v650_v11 = vmax.f32 %v614_v60, 0.0  ;;  %v651_v47 = vmax.f32 %v615_v17, 0.0  ;;  %v903_v40 = vor.u32 %v901_v50, %v900_v0 }
  0x6b   : > { %v4211_v35 = vld [vmem:[%s6164_s3 + $0x50] sm:$0xff]  ;;  %v1251_v34 = vsel %vm4878_vm8, %v6253_v52, %v1250_v5  ;;  %v904_v42 = vrot.slane %v900_v0, 4  ;;  %v5342_v43 = vrot.slane %v906_v24, 7  ;;  %v4201_v60 = vld [vmem:[%s6164_s3] sm:$0xff]  ;;  %v4210_v17 = vld [vmem:[%s6164_s3 + $0x48] sm:$0xff]  ;;  %v6255_v21 = vshll.u32 %v5299_v56, 16 }
  0x6c   : > { %1252 = vst [vmem:[#allocation2 + $0x30] sm:$0x1] %v1251_v34  ;;  %2743 = vmatpush.bf16.msrb.mxu0 %v4211_v35  ;;  %v5350_v10 = vpack.c.bf16 %v650_v11, %v650_v11  ;;  %v5352_v5 = vpack.c.bf16 %v651_v47, %v651_v47  ;;  %v6254_v34 = vshrl.u32 %v5223_v41, 16  ;;  %v1143_v24 = vsel %vm4806_vm7, %v903_v40, %v1142_v57  ;;  %v4233_v11 = vld [vmem:[%s6164_s3 + $0x100] sm:$0xff] }
  0x6d   : > { %1071 = vst [vmem:[#allocation2 + $0x14] sm:$0x1] %v1070_v2  ;;  %v911_v0 = vor.u32 %v6255_v21, %v5342_v43  ;;  %v4276_v47 = vunpack.c.h.bf16 %v5303_v61  ;;  %v5369_v2 = vld [vmem:[#allocation2 + $0xb4] sm:$0xf0]  ;;  %2333 = vmatpush.bf16.msrb.mxu1 %v4234_v30  ;;  %2423 = vmatpush.bf16.msrb.mxu2 %v4241_v16  ;;  %v542_v57 = vmul.f32 %v5295_v23, %v4275_v1  ;;  %v6258_v30 = vshll.u32 %v4771_v46, 16 }
  0x6e   : > { %v1262_v27 = vld [vmem:[#allocation2 + $0x60] sm:$0x1]  ;;  %6257 = vst [vmem:[#allocation18_spill] sm:$0xff] %v5369_v2  ;;  %v966_v41 = vshrl.u32 %v5350_v10, 16  ;;  %v969_v52 = vshll.u32 %v5350_v10, 16  ;;  %v6198_v61 = vshll.u32 %v5352_v5, 16  ;;  %2656 = vmatpush.bf16.msrb.mxu3 %v4201_v60 }
  0x6f   : > { %v1263_v50 = vsel %vm4878_vm8, %v6254_v34, %v1262_v27  ;;  %v974_v27 = vshrl.u32 %v5352_v5, 16  ;;  %v912_v40 = vsel %vm4795_vm6, %v904_v42, %v911_v0  ;;  %1144 = vst [vmem:[#allocation2 + $0x90] sm:$0xf] %v1143_v24  ;;  %v4209_v10 = vld [vmem:[%s6164_s3 + $0x40] sm:$0xff]  ;;  %v3792_v16 = vrot.slane %v6258_v30, 11 }
  0x70   : > { %v5367_v35 = vld [vmem:[#allocation2 + $0xb4] sm:$0xff]   ;;  %1264 = vst [vmem:[#allocation2 + $0x60] sm:$0x1] %v1263_v50  ;;  %2744 = vmatpush.bf16.msrb.mxu0 %v4210_v17  ;;  %v968_v34 = vrot.slane %v966_v41, 7  ;;  %v1170_v1 = vld [vmem:[#allocation2 + $0xc0] sm:$0xf]  ;;  %v543_v46 = vmul.f32 %v5295_v23, %v4276_v47 }
  0x71   : > { %6256 = vst [vmem:[#allocation17_spill] sm:$0xff] %v5367_v35  ;;  %v5378_v50 = vrot.slane %v974_v27, 7  ;;  %v743_v21 = vrot.slane %v4940_v7, 4  ;;  %2334 = vmatpush.bf16.msrb.mxu1 %v4233_v11  ;;  %2316 = vmatmul.bf16.gmra.mxu3 %v5367_v35  ;;  %v582_v27 = vadd.f32 %v5308_v33, %v542_v57  ;;  %v6259_v57 = vshrl.u32 %v5284_v36, 16  ;;  %v4499_v4 = vld [vmem:[#allocation2 + $0x60] sm:$0xe] }
  0x72   : > { %1145 = vst [vmem:[#allocation2 + $0x94] sm:$0xf] %v912_v40  ;;  %v971_v0 = vor.u32 %v969_v52, %v968_v34  ;;  %v972_v24 = vrot.slane %v968_v34, 4  ;;  %v1076_v40 = vld [vmem:[#allocation2 + $0x20] sm:$0x1]  ;;  %v583_v30 = vadd.f32 %v5308_v33, %v543_v46 }
  0x73   : > { %v5386_v42 = vld [vmem:[#allocation2 + $0x30] sm:$0xff]   ;;  %v979_v60 = vor.u32 %v6198_v61, %v5378_v50  ;;  %v618_v61 = vmax.f32 %v582_v27, 0.0  ;;  %v1077_v47 = vsel %vm4878_vm8, %v743_v21, %v1076_v40  ;;  %v6260_v21 = vshll.u32 %v4918_v39, 16  ;;  %v1056_v27 = vld [vmem:[#allocation2] sm:$0xf]  ;;  %v4256_v39 = vld [vmem:[%s6164_s3 + $0x1b8] sm:$0xff] }
  0x74   : > { %2261 = vmatmul.bf16.gmra.mxu0 %v5386_v42  ;;  %v1350_v17 = vld [vmem:[#allocation2 + $0x14] sm:$0x1]  ;;  %v1171_v52 = vsel %vm4806_vm7, %v971_v0, %v1170_v1  ;;  %1078 = vst [vmem:[#allocation2 + $0x20] sm:$0x1] %v1077_v47  ;;  %3109 = vmatpush.bf16.msra.mxu2 %v4256_v39 }
  0x75   : > { %v980_v7 = vsel %vm4795_vm6, %v972_v24, %v979_v60  ;;  %2745 = vmatpush.bf16.msrb.mxu0 %v4209_v10  ;;  %v1351_v11 = vsel %vm4734_vm2, %v3792_v16, %v1350_v17  ;;  %1172 = vst [vmem:[#allocation2 + $0xc0] sm:$0xf] %v1171_v52  ;;  %v619_v16 = vmax.f32 %v583_v30, 0.0  ;;  %v5411_v1 = vpack.c.bf16 %v618_v61, %v618_v61  ;;  %v4592_v61 = vld [vmem:[#allocation2 + $0xc] sm:$0xe] }
  0x76   : > { %v1274_v23 = vld [vmem:[#allocation2 + $0x90] sm:$0x1]  ;;  %1173 = vst [vmem:[#allocation2 + $0xc4] sm:$0xf] %v980_v7  ;;  %v1651_v60 = vshll.u32 %v4947_v14, 16  ;;  %v3793_v17 = vrot.slane %v6260_v21, 11 }
  0x77   : > { %v5401_v34 = vld [vmem:[#allocation2 + $0x60] sm:$0xff]   ;;  %v1275_v10 = vsel %vm4878_vm8, %v6259_v57, %v1274_v23  ;;  %1352 = vst [vmem:[#allocation2 + $0x14] sm:$0x1] %v1351_v11  ;;  %v655_v0 = vpack.c.bf16 %v619_v16, %v619_v16  ;;  %v694_v33 = vshrl.u32 %v5411_v1, 16  ;;  %v697_v24 = vshll.u32 %v5411_v1, 16  ;;  %v4224_v16 = vld [vmem:[%s6164_s3 + $0xb8] sm:$0xff] }
  0x78   : > { %2281 = vmatmul.bf16.gmra.mxu1 %v5401_v34  ;;  %1276 = vst [vmem:[#allocation2 + $0x90] sm:$0x1] %v1275_v10  ;;  %v1649_v7 = vshrl.u32 %v4947_v14, 16  ;;  %v1062_v11 = vld [vmem:[#allocation2 + $0x8] sm:$0x1]  ;;  %v4264_v10 = vld [vmem:[%s6164_s3 + $0x1f8] sm:$0xff] }
  0x79   : > { %v696_v36 = vrot.slane %v694_v33, 7  ;;  %v702_v46 = vshrl.u32 %v655_v0, 16  ;;  %v705_v52 = vshll.u32 %v655_v0, 16  ;;  %v1653_v0 = vrot.slane %v1651_v60, 1  ;;  %3198 = vmatpush.bf16.msra.mxu3 %v4264_v10  ;;  %2827 = vmatpush.bf16.msra.mxu1 %v4224_v16 }
  0x7b   : > { %v699_v23 = vor.u32 %v697_v24, %v696_v36  ;;  %v700_v57 = vrot.slane %v696_v36, 4  ;;  %v704_v47 = vrot.slane %v702_v46, 7 }
  0x7c   : > { %v1286_v40 = vld [vmem:[#allocation2 + $0xc0] sm:$0x1] }
  0x7d   : > { %v1287_v30 = vsel %vm4878_vm8, %v966_v41, %v1286_v40  ;;  %v4272_v41 = vld [vmem:[%s6164_s3 + $0x238] sm:$0xff]  ;;  %v707_v36 = vor.u32 %v705_v52, %v704_v47  ;;  %v709_v46 = vrot.slane %v704_v47, 4  ;;  %v1057_v40 = vsel %vm4806_vm7, %v699_v23, %v1056_v27 }
  0x7e   : > { %1288 = vst [vmem:[#allocation2 + $0xc0] sm:$0x1] %v1287_v30  ;;  %v1438_v1 = vld [vmem:[#allocation2 + $0x14] sm:$0x1]  ;;  %v1353_v30 = vld [vmem:[#allocation2 + $0x20] sm:$0x1]  ;;  %3287 = vmatpush.bf16.msra.mxu0 %v4272_v41  ;;  %v1654_v23 = vor.u32 %v1653_v0, %v1649_v7 }
  0x7f   : > { %v5433_v24 = vld [vmem:[#allocation2 + $0x90] sm:$0xff]   ;;  %v1600_v21 = vunpack.c.l.b16 %v1438_v1  ;;  %1058 = vst [vmem:[#allocation2] sm:$0xf] %v1057_v40  ;;  %v708_v2 = vsel %vm4795_vm6, %v700_v57, %v707_v36  ;;  %v1063_v35 = vsel %vm4878_vm8, %v709_v46, %v1062_v11  ;;  %v1354_v47 = vsel %vm4734_vm2, %v3793_v17, %v1353_v30  ;;  %v1083_v1 = vld [vmem:[#allocation2 + $0x2c] sm:$0x1] }
  0x80   : > { %2301 = vmatmul.bf16.gmra.mxu2 %v5433_v24  ;;  %1059 = vst [vmem:[#allocation2 + $0x4] sm:$0xf] %v708_v2  ;;  %v760_v27 = vrot.slane %v5103_v19, 4  ;;  %v4593_v11 = vor.u32 %v4592_v61, %v4949_v15  ;;  %v3791_v41 = vrot.slane %v705_v52, 11  ;;  %v1663_v0 = vshll.u32 %v5062_v54, 16 }
  0x81   : > { %v1618_v60 = vpack.c.b16 %v1600_v21, %v1600_v21  ;;  %1064 = vst [vmem:[#allocation2 + $0x8] sm:$0x1] %v1063_v35  ;;  %v6261_v21 = vshll.u32 %v5078_v22, 16  ;;  %v777_v22 = vrot.slane %v5246_v12, 4 }
  0x82   : > { %1355 = vst [vmem:[#allocation2 + $0x20] sm:$0x1] %v1354_v47  ;;  %v1084_v10 = vsel %vm4878_vm8, %v760_v27, %v1083_v1  ;;  %v1928_v35 = vrot.slane %v4593_v11, 1  ;;  %v4489_v11 = vld [vmem:[#allocation2 + $0x18] sm:$0xf0] }
  0x83   : > { %v1656_v39 = vshll.u32 %v1618_v60, 16  ;;  %1085 = vst [vmem:[#allocation2 + $0x2c] sm:$0x1] %v1084_v10  ;;  %v1929_v7 = vrot.slane %v1618_v60, 1  ;;  %v3794_v15 = vrot.slane %v6261_v21, 11  ;;  %v1665_v60 = vrot.slane %v1663_v0, 1 }
  0x85   : > { %v4485_v57 = vld [vmem:[#allocation2 + $0xc0] sm:$0xff]   ;;  %v1658_v16 = vrot.slane %v1656_v39, 1  ;;  %v5460_v30 = vsel %vm1924_vm10, %v1928_v35, %v1929_v7 }
  0x86   : > { %2321 = vmatmul.bf16.gmra.mxu3 %v4485_v57  ;;  %v1238_v2 = vld [vmem:[#allocation2] sm:$0x1]  ;;  %v1090_v57 = vld [vmem:[#allocation2 + $0x38] sm:$0x1] }
  0x87   : > { %v5449_v17 = vsel %vm1635_vm9, %v1654_v23, %v1658_v16  ;;  %v1239_v19 = vsel %vm4878_vm8, %v694_v33, %v1238_v2  ;;  %v1661_v33 = vshrl.u32 %v5062_v54, 16  ;;  %v4490_v2 = vld [vmem:[#allocation2 + $0x18] sm:$0xe] }
  0x88   : > { %2335 = vmatmul.bf16.vlgmr.msrb.gmra.mxu1 %v5449_v17  ;;  %1240 = vst [vmem:[#allocation2] sm:$0x1] %v1239_v19  ;;  %v1347_v61 = vld [vmem:[#allocation2 + $0x8] sm:$0x1]  ;;  %v4491_v21 = vor.u32 %v4490_v2, %v4489_v11  ;;  %v1673_v11 = vshrl.u32 %v5242_v31, 16 }
  0x89   : > { %v1348_v36 = vsel %vm4734_vm2, %v3791_v41, %v1347_v61  ;;  %v1439_v46 = vld [vmem:[#allocation2 + $0x20] sm:$0x1]  ;;  %v1666_v10 = vor.u32 %v1665_v60, %v1661_v33  ;;  %v1091_v41 = vsel %vm4878_vm8, %v777_v22, %v1090_v57 }
  0x8a   : > { %1349 = vst [vmem:[#allocation2 + $0x8] sm:$0x1] %v1348_v36  ;;  %v1601_v52 = vunpack.c.l.b16 %v1439_v46  ;;  %v1356_v40 = vld [vmem:[#allocation2 + $0x2c] sm:$0x1]  ;;  %v6262_v46 = vshll.u32 %v5219_v55, 16  ;;  %v1931_v60 = vrot.slane %v4491_v21, 1 }
  0x8b   : > { %v1357_v47 = vsel %vm4734_vm2, %v3794_v15, %v1356_v40  ;;  %1092 = vst [vmem:[#allocation2 + $0x38] sm:$0x1] %v1091_v41  ;;  %v4255_v41 = vld [vmem:[%s6164_s3 + $0x1b0] sm:$0xff] }
  0x8c   : > { %v1619_v1 = vpack.c.b16 %v1601_v52, %v1601_v52  ;;  %1358 = vst [vmem:[#allocation2 + $0x2c] sm:$0x1] %v1357_v47  ;;  %v3795_v52 = vrot.slane %v6262_v46, 11  ;;  %3110 = vmatpush.bf16.msra.mxu2 %v4255_v41  ;;  %v1104_v41 = vld [vmem:[#allocation2 + $0x50] sm:$0x1] }
  0x8e   : > { %v1668_v23 = vshll.u32 %v1619_v1, 16  ;;  %v1932_v47 = vrot.slane %v1619_v1, 1 }
  0x8f   : > { %v4346_v27 = vld [vmem:[#allocation2] sm:$0xff]  }
  0x90   : > { %2424 = vmatmul.bf16.vlgmr.msrb.gmra.mxu2 %v5460_v30  ;;  %v1639_v39 = vshll.u32 %v4346_v27, 16  ;;  %v1670_v16 = vrot.slane %v1668_v23, 1  ;;  %v1637_v35 = vshrl.u32 %v4346_v27, 16  ;;  %v1675_v23 = vshll.u32 %v5242_v31, 16 }
  0x91   : > { %v1437_v19 = vld [vmem:[#allocation2 + $0x8] sm:$0x1]  ;;  %v5483_v55 = vsel %vm1924_vm10, %v1931_v60, %v1932_v47 }
  0x92   : > { %v1641_v7 = vrot.slane %v1639_v39, 1  ;;  %v1599_v12 = vunpack.c.l.b16 %v1437_v19  ;;  %v5470_v0 = vsel %vm1635_vm9, %v1666_v10, %v1670_v16  ;;  %v1359_v10 = vld [vmem:[#allocation2 + $0x38] sm:$0x1]  ;;  %v4595_v16 = vld [vmem:[#allocation2 + $0x24] sm:$0xe]  ;;  %v1677_v2 = vrot.slane %v1675_v23, 1 }
  0x93   : > { %v1440_v15 = vld [vmem:[#allocation2 + $0x2c] sm:$0x1]  ;;  %v4263_v19 = vld [vmem:[%s6164_s3 + $0x1f0] sm:$0xff] }
  0x94   : > { %v5472_v61 = vpack.c.b16 %v1599_v12, %v1599_v12  ;;  %v1602_v36 = vunpack.c.l.b16 %v1440_v15  ;;  %v1642_v40 = vor.u32 %v1641_v7, %v1637_v35  ;;  %v4223_v35 = vld [vmem:[%s6164_s3 + $0xb0] sm:$0xff]  ;;  %3199 = vmatpush.bf16.msra.mxu3 %v4263_v19  ;;  %v794_v12 = vrot.slane %v4812_v8, 4 }
  0x95   : > { %v4271_v7 = vld [vmem:[%s6164_s3 + $0x230] sm:$0xff]  ;;  %2828 = vmatpush.bf16.msra.mxu1 %v4223_v35  ;;  %v1678_v21 = vor.u32 %v1677_v2, %v1673_v11  ;;  %v811_v2 = vrot.slane %v4945_v48, 4  ;;  %v6264_v48 = vshll.u32 %v4924_v44, 16 }
  0x96   : > { %2657 = vmatmul.bf16.vlgmr.msrb.gmra.mxu3 %v4346_v27  ;;  %v1644_v33 = vshll.u32 %v5472_v61, 16  ;;  %v1620_v22 = vpack.c.b16 %v1602_v36, %v1602_v36  ;;  %v1360_v27 = vsel %vm4734_vm2, %v3795_v52, %v1359_v10  ;;  %3288 = vmatpush.bf16.msra.mxu0 %v4271_v7  ;;  %v1097_v36 = vld [vmem:[#allocation2 + $0x44] sm:$0x1]  ;;  %v6263_v10 = vshll.u32 %v4776_v49, 16  ;;  %v4492_v19 = vld [vmem:[#allocation2 + $0x30] sm:$0xf0] }
  0x97   : > { %1361 = vst [vmem:[#allocation2 + $0x38] sm:$0x1] %v1360_v27  ;;  %v1098_v46 = vsel %vm4878_vm8, %v794_v12, %v1097_v36  ;;  %v4493_v35 = vld [vmem:[#allocation2 + $0x30] sm:$0xe]  ;;  %v1105_v7 = vsel %vm4878_vm8, %v811_v2, %v1104_v41  ;;  %v3797_v36 = vrot.slane %v6264_v48, 11 }
  0x98   : > { %2340 = vmatmul.bf16.gmra.mxu1 %v5470_v0  ;;  %v1646_v39 = vrot.slane %v1644_v33, 1  ;;  %v1680_v1 = vshll.u32 %v1620_v22, 16  ;;  %1099 = vst [vmem:[#allocation2 + $0x44] sm:$0x1] %v1098_v46  ;;  %v1935_v47 = vrot.slane %v1620_v22, 1  ;;  %v3796_v27 = vrot.slane %v6263_v10, 11 }
  0x99   : > { %1106 = vst [vmem:[#allocation2 + $0x50] sm:$0x1] %v1105_v7  ;;  %v4598_v10 = vld [vmem:[#allocation2 + $0x3c] sm:$0xe] }
  0x9a   : > { %v1647_v57 = vsel %vm1635_vm9, %v1642_v40, %v1646_v39  ;;  %v1682_v15 = vrot.slane %v1680_v1, 1  ;;  %v4596_v40 = vor.u32 %v4595_v16, %v5244_v32  ;;  %v1687_v39 = vshll.u32 %v5386_v42, 16 }
  0x9b   : > { %2746 = vmatmul.bf16.vlgmr.msrb.gmra.mxu0 %v1647_v57 }
  0x9c   : > { %v5504_v33 = vsel %vm1635_vm9, %v1678_v21, %v1682_v15  ;;  %v1934_v8 = vrot.slane %v4596_v40, 1  ;;  %v1689_v11 = vrot.slane %v1687_v39, 1  ;;  %v4494_v21 = vor.u32 %v4493_v35, %v4492_v19 }
  0x9d   : > { %v4599_v35 = vor.u32 %v4598_v10, %v4962_v28 }
  0x9e   : > { %v1441_v52 = vld [vmem:[#allocation2 + $0x38] sm:$0x1]  ;;  %v5515_v16 = vsel %vm1924_vm10, %v1934_v8, %v1935_v47  ;;  %v1937_v46 = vrot.slane %v4494_v21, 1 }
  0x9f   : > { %v1603_v60 = vunpack.c.l.b16 %v1441_v52  ;;  %v1362_v57 = vld [vmem:[#allocation2 + $0x44] sm:$0x1] }
  0xa0   : > { %2429 = vmatmul.bf16.gmra.mxu2 %v5483_v55  ;;  %v1363_v32 = vsel %vm4734_vm2, %v3796_v27, %v1362_v57  ;;  %v1365_v47 = vld [vmem:[#allocation2 + $0x50] sm:$0x1]  ;;  %v4254_v57 = vld [vmem:[%s6164_s3 + $0x1a8] sm:$0xff] }
  0xa1   : > { %v1621_v23 = vpack.c.b16 %v1603_v60, %v1603_v60  ;;  %1364 = vst [vmem:[#allocation2 + $0x44] sm:$0x1] %v1363_v32  ;;  %v1699_v60 = vshll.u32 %v4960_v26, 16  ;;  %v1366_v39 = vsel %vm4734_vm2, %v3797_v36, %v1365_v47  ;;  %v4262_v32 = vld [vmem:[%s6164_s3 + $0x1e8] sm:$0xff]  ;;  %3111 = vmatpush.bf16.msra.mxu2 %v4254_v57 }
  0xa2   : > { %1367 = vst [vmem:[#allocation2 + $0x50] sm:$0x1] %v1366_v39  ;;  %3200 = vmatpush.bf16.msra.mxu3 %v4262_v32 }
  0xa3   : > { %v1692_v22 = vshll.u32 %v1621_v23, 16  ;;  %v1938_v52 = vrot.slane %v1621_v23, 1  ;;  %v1701_v27 = vrot.slane %v1699_v60, 1 }
  0xa5   : > { %v1694_v1 = vrot.slane %v1692_v22, 1  ;;  %v5536_v44 = vsel %vm1924_vm10, %v1937_v46, %v1938_v52  ;;  %v828_v22 = vrot.slane %v5114_v18, 4  ;;  %v1711_v46 = vshll.u32 %v5074_v63, 16 }
  0xa6   : > { %2662 = vmatmul.bf16.gmra.mxu3 %v4947_v14  ;;  %v1685_v14 = vshrl.u32 %v5386_v42, 16  ;;  %v6266_v52 = vshll.u32 %v5097_v58, 16  ;;  %v845_v58 = vrot.slane %v5266_v13, 4 }
  0xa7   : > { %v1713_v63 = vrot.slane %v1711_v46, 1 }
  0xa8   : > { %2345 = vmatmul.bf16.gmra.mxu1 %v5504_v33  ;;  %v1690_v49 = vor.u32 %v1689_v11, %v1685_v14  ;;  %v4222_v14 = vld [vmem:[%s6164_s3 + $0xa8] sm:$0xff]  ;;  %v3798_v28 = vrot.slane %v6266_v52, 11 }
  0xa9   : > { %v4270_v11 = vld [vmem:[%s6164_s3 + $0x228] sm:$0xff]  ;;  %2829 = vmatpush.bf16.msra.mxu1 %v4222_v14  ;;  %v1443_v19 = vld [vmem:[#allocation2 + $0x50] sm:$0x1] }
  0xaa   : > { %v5523_v12 = vsel %vm1635_vm9, %v1690_v49, %v1694_v1  ;;  %3289 = vmatpush.bf16.msra.mxu0 %v4270_v11  ;;  %v1111_v1 = vld [vmem:[#allocation2 + $0x5c] sm:$0x1]  ;;  %v1605_v21 = vunpack.c.l.b16 %v1443_v19 }
  0xab   : > { %2751 = vmatmul.bf16.gmra.mxu0 %v5449_v17  ;;  %v1442_v17 = vld [vmem:[#allocation2 + $0x44] sm:$0x1]  ;;  %v1112_v41 = vsel %vm4878_vm8, %v828_v22, %v1111_v1  ;;  %v1118_v22 = vld [vmem:[#allocation2 + $0x68] sm:$0x1] }
  0xac   : > { %v1604_v15 = vunpack.c.l.b16 %v1442_v17  ;;  %1113 = vst [vmem:[#allocation2 + $0x5c] sm:$0x1] %v1112_v41  ;;  %v1623_v36 = vpack.c.b16 %v1605_v21, %v1605_v21  ;;  %v1119_v1 = vsel %vm4878_vm8, %v845_v58, %v1118_v22  ;;  %v4601_v58 = vld [vmem:[#allocation2 + $0x54] sm:$0xe]  ;;  %v4253_v22 = vld [vmem:[%s6164_s3 + $0x1a0] sm:$0xff] }
  0xad   : > { %1120 = vst [vmem:[#allocation2 + $0x68] sm:$0x1] %v1119_v1  ;;  %3112 = vmatpush.bf16.msra.mxu2 %v4253_v22 }
  0xae   : > { %v1622_v40 = vpack.c.b16 %v1604_v15, %v1604_v15  ;;  %v1940_v15 = vrot.slane %v4599_v35, 1 }
  0xb0   : > { %2434 = vmatmul.bf16.gmra.mxu2 %v5515_v16  ;;  %v1704_v23 = vshll.u32 %v1622_v40, 16  ;;  %v1941_v48 = vrot.slane %v1622_v40, 1 }
  0xb2   : > { %v1706_v49 = vrot.slane %v1704_v23, 1  ;;  %v5568_v60 = vpop.f32.mrf.mxu0  ;;  %v5574_v10 = vsel %vm1924_vm10, %v1940_v15, %v1941_v48  ;;  %v6270_v15 = vshll.u32 %v5225_v37, 16 }
  0xb3   : > { %v1368_v47 = vld [vmem:[#allocation2 + $0x5c] sm:$0x1]  ;;  %6267 = vst [vmem:[#allocation20_spill] sm:$0xff] %v5574_v10 }
  0xb4   : > { %v5530_v8 = vpop.f32.mrf.mxu1  ;;  %v1369_v39 = vsel %vm4734_vm2, %v3798_v28, %v1368_v47  ;;  %v3799_v48 = vrot.slane %v6270_v15, 11  ;;  %v1944_v47 = vrot.slane %v1623_v36, 1 }
  0xb5   : > { %1370 = vst [vmem:[#allocation2 + $0x5c] sm:$0x1] %v1369_v39 }
  0xb6   : > { %2667 = vmatmul.bf16.gmra.mxu3 %v5062_v54  ;;  %v1697_v54 = vshrl.u32 %v4960_v26, 16 }
  0xb8   : > { %2350 = vmatmul.bf16.gmra.mxu1 %v5523_v12  ;;  %v1702_v2 = vor.u32 %v1701_v27, %v1697_v54  ;;  %v5576_v54 = vld [vmem:[#allocation2 + $0x48] sm:$0xff]   ;;  %v1716_v27 = vshll.u32 %v1623_v36, 16 }
  0xb9   : > { %v1709_v40 = vshrl.u32 %v5576_v54, 16 }
  0xba   : > { %v5559_v17 = vsel %vm1635_vm9, %v1702_v2, %v1706_v49  ;;  %v1718_v11 = vrot.slane %v1716_v27, 1  ;;  %v4495_v2 = vld [vmem:[#allocation2 + $0x48] sm:$0xf0]  ;;  %v4496_v49 = vld [vmem:[#allocation2 + $0x48] sm:$0xe]  ;;  %v5589_v19 = vpop.f32.mrf.mxu0 }
  0xbb   : > { %2756 = vmatmul.bf16.gmra.mxu0 %v5470_v0  ;;  %6265 = vst [vmem:[#allocation19_spill] sm:$0xff] %v5559_v17  ;;  %v1714_v14 = vor.u32 %v1713_v63, %v1709_v40  ;;  %v4497_v35 = vor.u32 %v4496_v49, %v4495_v2  ;;  %v1723_v40 = vshll.u32 %v5251_v29, 16  ;;  %v1371_v63 = vld [vmem:[#allocation2 + $0x68] sm:$0x1]  ;;  %v4261_v2 = vld [vmem:[%s6164_s3 + $0x1e0] sm:$0xff] }
  0xbc   : > { %v5556_v7 = vpop.f32.mrf.mxu1  ;;  %v5562_v18 = vpop.f32.mrf.mxu2  ;;  %v1444_v41 = vld [vmem:[#allocation2 + $0x5c] sm:$0x1]  ;;  %v4221_v49 = vld [vmem:[%s6164_s3 + $0xa0] sm:$0xff]  ;;  %3201 = vmatpush.bf16.msra.mxu3 %v4261_v2 }
  0xbd   : > { %v5592_v13 = vsel %vm1635_vm9, %v1714_v14, %v1718_v11  ;;  %v1606_v21 = vunpack.c.l.b16 %v1444_v41  ;;  %v1943_v28 = vrot.slane %v4497_v35, 1  ;;  %v1721_v14 = vshrl.u32 %v5251_v29, 16  ;;  %v4269_v41 = vld [vmem:[%s6164_s3 + $0x220] sm:$0xff]  ;;  %2830 = vmatpush.bf16.msra.mxu1 %v4221_v49 }
  0xbe   : > { %6269 = vst [vmem:[#allocation22_spill] sm:$0xff] %v5592_v13  ;;  %v1725_v11 = vrot.slane %v1723_v40, 1  ;;  %v862_v35 = vrot.slane %v4832_v25, 4  ;;  %3290 = vmatpush.bf16.msra.mxu0 %v4269_v41  ;;  %v1735_v41 = vshll.u32 %v5401_v34, 16 }
  0xbf   : > { %v1624_v39 = vpack.c.b16 %v1606_v21, %v1606_v21  ;;  %v5609_v37 = vsel %vm1924_vm10, %v1943_v28, %v1944_v47 }
  0xc0   : > { %2439 = vmatmul.bf16.gmra.mxu2 %v5536_v44  ;;  %v5580_v23 = vpop.f32.mrf.mxu3  ;;  %6272 = vst [vmem:[#allocation24_spill] sm:$0xff] %v5609_v37  ;;  %v1726_v21 = vor.u32 %v1725_v11, %v1721_v14 }
  0xc1   : > { %6268 = vst [vmem:[#allocation21_spill] sm:$0xff] %v5580_v23  ;;  %v1728_v36 = vshll.u32 %v1624_v39, 16 }
  0xc3   : > { %v1730_v15 = vrot.slane %v1728_v36, 1  ;;  %v1947_v36 = vrot.slane %v1624_v39, 1  ;;  %v1733_v39 = vshrl.u32 %v5401_v34, 16 }
  0xc4   : > { %v5585_v32 = vpop.f32.mrf.mxu2  ;;  %v5621_v1 = vpop.f32.mrf.mxu0 }
  0xc5   : > { %v5638_v2 = vsel %vm1635_vm9, %v1726_v21, %v1730_v15 }
  0xc6   : > { %2672 = vmatmul.bf16.gmra.mxu3 %v5242_v31  ;;  %v5582_v57 = vpop.f32.mrf.mxu1  ;;  %6274 = vst [vmem:[#allocation26_spill] sm:$0xff] %v5638_v2 }
  0xc8   : > { %2355 = vmatmul.bf16.gmra.mxu1 %v5559_v17  ;;  %v5597_v46 = vpop.f32.mrf.mxu3 }
  0xc9   : > { %6271 = vst [vmem:[#allocation23_spill] sm:$0xff] %v5597_v46 }
  0xcb   : > { %2761 = vmatmul.bf16.gmra.mxu0 %v5504_v33 }
  0xcc   : > { %v5641_v14 = vpop.f32.mrf.mxu0 }
  0xce   : > { %v5600_v52 = vpop.f32.mrf.mxu1 }
  0xd0   : > { %2444 = vmatmul.bf16.gmra.mxu2 %v5574_v10 }
  0xd3   : > { %v5603_v27 = vpop.f32.mrf.mxu2 }
  0xd6   : > { %2677 = vmatmul.bf16.gmra.mxu3 %v5386_v42  ;;  %v1372_v42 = vsel %vm4734_vm2, %v3799_v48, %v1371_v63  ;;  %v1125_v48 = vld [vmem:[#allocation2 + $0x74] sm:$0x1] }
  0xd7   : > { %1373 = vst [vmem:[#allocation2 + $0x68] sm:$0x1] %v1372_v42  ;;  %v1126_v40 = vsel %vm4878_vm8, %v862_v35, %v1125_v48  ;;  %v4602_v42 = vor.u32 %v4601_v58, %v5253_v3  ;;  %v6275_v35 = vshll.u32 %v4780_v51, 16  ;;  %v879_v51 = vrot.slane %v5012_v20, 4 }
  0xd8   : > { %2360 = vmatmul.bf16.gmra.mxu1 %v5592_v13  ;;  %1127 = vst [vmem:[#allocation2 + $0x74] sm:$0x1] %v1126_v40 }
  0xd9   : > { %v1946_v11 = vrot.slane %v4602_v42, 1  ;;  %v3800_v3 = vrot.slane %v6275_v35, 11 }
  0xda   : > { %v5628_v28 = vpop.f32.mrf.mxu3 }
  0xdb   : > { %2766 = vmatmul.bf16.gmra.mxu0 %v5523_v12  ;;  %6273 = vst [vmem:[#allocation25_spill] sm:$0xff] %v5628_v28  ;;  %v5635_v22 = vpop.f32.mrf.mxu2  ;;  %v5655_v40 = vsel %vm1924_vm10, %v1946_v11, %v1947_v36 }
  0xdc   : > { %6277 = vst [vmem:[#allocation28_spill] sm:$0xff] %v5655_v40 }
  0xde   : > { %v1445_v63 = vld [vmem:[#allocation2 + $0x68] sm:$0x1]  ;;  %v5662_v62 = vpop.f32.mrf.mxu0 }
  0xdf   : > { %v1607_v25 = vunpack.c.l.b16 %v1445_v63  ;;  %v1374_v48 = vld [vmem:[#allocation2 + $0x74] sm:$0x1]  ;;  %v1737_v63 = vrot.slane %v1735_v41, 1 }
  0xe0   : > { %2449 = vmatmul.bf16.gmra.mxu2 %v5609_v37  ;;  %v1375_v21 = vsel %vm4734_vm2, %v3800_v3, %v1374_v48  ;;  %v1132_v48 = vld [vmem:[#allocation2 + $0x80] sm:$0x1] }
  0xe1   : > { %v5630_v47 = vpop.f32.mrf.mxu1  ;;  %v1625_v49 = vpack.c.b16 %v1607_v25, %v1607_v25  ;;  %1376 = vst [vmem:[#allocation2 + $0x74] sm:$0x1] %v1375_v21  ;;  %v1738_v35 = vor.u32 %v1737_v63, %v1733_v39  ;;  %v4498_v21 = vld [vmem:[#allocation2 + $0x60] sm:$0xf0]  ;;  %v1133_v11 = vsel %vm4878_vm8, %v879_v51, %v1132_v48  ;;  %v6279_v63 = vshll.u32 %v4979_v38, 16 }
  0xe2   : > { %v5651_v15 = vpop.f32.mrf.mxu3  ;;  %1134 = vst [vmem:[#allocation2 + $0x80] sm:$0x1] %v1133_v11  ;;  %v1747_v11 = vshll.u32 %v4971_v45, 16 }
  0xe3   : > { %6276 = vst [vmem:[#allocation27_spill] sm:$0xff] %v5651_v15  ;;  %v1740_v42 = vshll.u32 %v1625_v49, 16  ;;  %v4500_v15 = vor.u32 %v4499_v4, %v4498_v21  ;;  %v1950_v48 = vrot.slane %v1625_v49, 1  ;;  %v4604_v21 = vld [vmem:[#allocation2 + $0x6c] sm:$0xe]  ;;  %v1745_v49 = vshrl.u32 %v4971_v45, 16 }
  0xe5   : > { %v1742_v3 = vrot.slane %v1740_v42, 1  ;;  %v3801_v42 = vrot.slane %v6279_v63, 11  ;;  %v1949_v51 = vrot.slane %v4500_v15, 1  ;;  %v4260_v63 = vld [vmem:[%s6164_s3 + $0x1d8] sm:$0xff] }
  0xe6   : > { %2682 = vmatmul.bf16.gmra.mxu3 %v4960_v26 }
  0xe7   : > { %v5669_v20 = vsel %vm1635_vm9, %v1738_v35, %v1742_v3  ;;  %v5688_v38 = vsel %vm1924_vm10, %v1949_v51, %v1950_v48  ;;  %3202 = vmatpush.bf16.msra.mxu3 %v4260_v63  ;;  %v896_v51 = vrot.slane %v5145_v59, 4  ;;  %v4605_v59 = vor.u32 %v4604_v21, %v4973_v53 }
  0xe8   : > { %2365 = vmatmul.bf16.gmra.mxu1 %v5638_v2  ;;  %v1446_v41 = vld [vmem:[#allocation2 + $0x74] sm:$0x1]  ;;  %6280 = vst [vmem:[#allocation30_spill] sm:$0xff] %v5688_v38 }
  0xe9   : > { %v5647_v58 = vpop.f32.mrf.mxu1  ;;  %v1608_v28 = vunpack.c.l.b16 %v1446_v41  ;;  %v1377_v35 = vld [vmem:[#allocation2 + $0x80] sm:$0x1]  ;;  %v4252_v41 = vld [vmem:[%s6164_s3 + $0x198] sm:$0xff] }
  0xea   : > { %v1378_v4 = vsel %vm4734_vm2, %v3801_v42, %v1377_v35  ;;  %3113 = vmatpush.bf16.msra.mxu2 %v4252_v41 }
  0xeb   : > { %2771 = vmatmul.bf16.gmra.mxu0 %v5559_v17  ;;  %v5659_v25 = vpop.f32.mrf.mxu2  ;;  %v1626_v37 = vpack.c.b16 %v1608_v28, %v1608_v28  ;;  %1379 = vst [vmem:[#allocation2 + $0x80] sm:$0x1] %v1378_v4  ;;  %v1749_v28 = vrot.slane %v1747_v11, 1  ;;  %v1139_v11 = vld [vmem:[#allocation2 + $0x8c] sm:$0x1]  ;;  %v4220_v4 = vld [vmem:[%s6164_s3 + $0x98] sm:$0xff] }
  0xec   : > { %2831 = vmatpush.bf16.msra.mxu1 %v4220_v4 }
  0xed   : > { %v1752_v15 = vshll.u32 %v1626_v37, 16  ;;  %v1750_v48 = vor.u32 %v1749_v28, %v1745_v49  ;;  %v1953_v46 = vrot.slane %v1626_v37, 1 }
  0xef   : > { %v1754_v35 = vrot.slane %v1752_v15, 1 }
  0xf0   : > { %2454 = vmatmul.bf16.gmra.mxu2 %v5655_v40 }
  0xf1   : > { %v5713_v28 = vsel %vm1635_vm9, %v1750_v48, %v1754_v35 }
  0xf2   : > { %v1447_v63 = vld [vmem:[#allocation2 + $0x80] sm:$0x1] }
  0xf3   : > { %v5677_v40 = vpop.f32.mrf.mxu2  ;;  %v1609_v15 = vunpack.c.l.b16 %v1447_v63 }
  0xf4   : > { %v5672_v39 = vpop.f32.mrf.mxu3 }
  0xf5   : > { %v5666_v36 = vpop.f32.mrf.mxu1  ;;  %6278 = vst [vmem:[#allocation29_spill] sm:$0xff] %v5672_v39  ;;  %v4268_v39 = vld [vmem:[%s6164_s3 + $0x218] sm:$0xff] }
  0xf6   : > { %2687 = vmatmul.bf16.gmra.mxu3 %v5576_v54  ;;  %v5684_v54 = vpop.f32.mrf.mxu0  ;;  %3291 = vmatpush.bf16.msra.mxu0 %v4268_v39  ;;  %v6284_v39 = vld [vmem:[#allocation11_spill] sm:$0xff] }
  0xf7   : > { %v6285_v21 = vshll.u32 %v6284_v39, 16  ;;  %v913_v39 = vrot.slane %v5342_v43, 4 }
  0xf8   : > { %2370 = vmatmul.bf16.gmra.mxu1 %v5669_v20 }
  0xf9   : > { %v3802_v48 = vrot.slane %v6285_v21, 11 }
  0xfb   : > { %2776 = vmatmul.bf16.gmra.mxu0 %v5592_v13  ;;  %v5721_v13 = vld [vmem:[#allocation2 + $0x78] sm:$0xff]  }
  0xfc   : > { %v5697_v42 = vpop.f32.mrf.mxu3  ;;  %v1759_v53 = vshll.u32 %v5721_v13, 16 }
  0xfd   : > { %v5680_v3 = vpop.f32.mrf.mxu1  ;;  %6281 = vst [vmem:[#allocation31_spill] sm:$0xff] %v5697_v42  ;;  %v1140_v42 = vsel %vm4878_vm8, %v896_v51, %v1139_v11  ;;  %v1952_v51 = vrot.slane %v4605_v59, 1 }
  0xfe   : > { %1141 = vst [vmem:[#allocation2 + $0x8c] sm:$0x1] %v1140_v42  ;;  %v1627_v42 = vpack.c.b16 %v1609_v15, %v1609_v15  ;;  %v1757_v15 = vshrl.u32 %v5721_v13, 16 }
  0xff   : > { %v5732_v59 = vsel %vm1924_vm10, %v1952_v51, %v1953_v46  ;;  %v4501_v46 = vld [vmem:[#allocation2 + $0x78] sm:$0xf0]  ;;  %v4502_v51 = vld [vmem:[#allocation2 + $0x78] sm:$0xe] }
 0x100   : > { %2459 = vmatmul.bf16.gmra.mxu2 %v5688_v38  ;;  %v5715_v38 = vpop.f32.mrf.mxu0  ;;  %6287 = vst [vmem:[#allocation34_spill] sm:$0xff] %v5732_v59 }
 0x103   : > { %v5709_v41 = vpop.f32.mrf.mxu2 }
 0x104   : > { %6282 = vst [vmem:[#allocation32_spill] sm:$0xff] %v5709_v41 }
 0x105   : > { %v2336_v49 = vpop.f32.mrf.mxu1  ;;  %v1380_v35 = vld [vmem:[#allocation2 + $0x8c] sm:$0x1] }
 0x106   : > { %2692 = vmatmul.bf16.gmra.mxu3 %v5251_v29  ;;  %v1381_v63 = vsel %vm4734_vm2, %v3802_v48, %v1380_v35  ;;  %v1764_v29 = vshll.u32 %v1627_v42, 16 }
 0x107   : > { %1382 = vst [vmem:[#allocation2 + $0x8c] sm:$0x1] %v1381_v63  ;;  %v1146_v63 = vld [vmem:[#allocation2 + $0x98] sm:$0x1] }
 0x108   : > { %2375 = vmatmul.bf16.gmra.mxu1 %v5713_v28  ;;  %v5736_v21 = vpop.f32.mrf.mxu0  ;;  %v1766_v35 = vrot.slane %v1764_v29, 1  ;;  %v1147_v10 = vsel %vm4878_vm8, %v913_v39, %v1146_v63  ;;  %v6289_v29 = vshll.u32 %v5299_v56, 16 }
 0x109   : > { %v5719_v11 = vpop.f32.mrf.mxu3  ;;  %1148 = vst [vmem:[#allocation2 + $0x98] sm:$0x1] %v1147_v10  ;;  %v6290_v10 = vld [vmem:[#allocation15_spill] sm:$0xff] }
 0x10a   : > { %6283 = vst [vmem:[#allocation33_spill] sm:$0xff] %v5719_v11  ;;  %v1761_v11 = vrot.slane %v1759_v53, 1 }
 0x10b   : > { %v5726_v4 = vpop.f32.mrf.mxu2  ;;  %2781 = vmatmul.bf16.gmra.mxu0 %v5638_v2  ;;  %v2337_v2 = vadd.f32 %v2336_v49, %v5568_v60  ;;  %v3803_v60 = vrot.slane %v6289_v29, 11  ;;  %v4259_v29 = vld [vmem:[%s6164_s3 + $0x1d0] sm:$0xff] }
 0x10c   : > { %6286 = vst [vmem:[#allocation11_spill] sm:$0xff] %v5726_v4  ;;  %v1762_v48 = vor.u32 %v1761_v11, %v1757_v15  ;;  %v1956_v15 = vrot.slane %v1627_v42, 1  ;;  %3203 = vmatpush.bf16.msra.mxu3 %v4259_v29 }
 0x10d   : > { %v2338_v37 = vpop.f32.mrf.mxu1 }
 0x10e   : > { %v1448_v4 = vld [vmem:[#allocation2 + $0x8c] sm:$0x1]  ;;  %v5745_v41 = vsel %vm1635_vm9, %v1762_v48, %v1766_v35  ;;  %v2339_v48 = vadd.f32 %v2338_v37, %v5589_v19  ;;  %v4251_v37 = vld [vmem:[%s6164_s3 + $0x190] sm:$0xff] }
 0x10f   : > { %3114 = vmatpush.bf16.msra.mxu2 %v4251_v37 }
 0x110   : > { %2464 = vmatmul.bf16.gmra.mxu2 %v5732_v59  ;;  %v4503_v59 = vor.u32 %v4502_v51, %v4501_v46  ;;  %v1383_v35 = vld [vmem:[#allocation2 + $0x98] sm:$0x1]  ;;  %v4607_v46 = vld [vmem:[#allocation2 + $0x84] sm:$0xe] }
 0x111   : > { %v5739_v23 = vpop.f32.mrf.mxu3 }
 0x112   : > { %6288 = vst [vmem:[#allocation35_spill] sm:$0xff] %v5739_v23  ;;  %v1610_v23 = vunpack.c.l.b16 %v1448_v4  ;;  %v1955_v11 = vrot.slane %v4503_v59, 1  ;;  %v1769_v59 = vshrl.u32 %v6290_v10, 16 }
 0x113   : > { %v2425_v53 = vpop.f32.mrf.mxu2 }
 0x114   : > { %v2426_v43 = vadd.f32 %v2425_v53, %v2337_v2  ;;  %v5751_v39 = vpack.c.b16 %v1610_v23, %v1610_v23  ;;  %v1771_v2 = vshll.u32 %v6290_v10, 16  ;;  %v5761_v23 = vsel %vm1924_vm10, %v1955_v11, %v1956_v15 }
 0x115   : > { %v2341_v17 = vpop.f32.mrf.mxu1 }
 0x116   : > { %2697 = vmatmul.bf16.gmra.mxu3 %v5401_v34  ;;  %v1384_v34 = vsel %vm4734_vm2, %v3803_v60, %v1383_v35  ;;  %v1776_v19 = vshll.u32 %v5751_v39, 16  ;;  %v6292_v60 = vld [vmem:[#allocation6_spill] sm:$0xff]  ;;  %v2342_v35 = vadd.f32 %v2341_v17, %v5621_v1 }
 0x117   : > { %1385 = vst [vmem:[#allocation2 + $0x98] sm:$0x1] %v1384_v34  ;;  %v4267_v34 = vld [vmem:[%s6164_s3 + $0x210] sm:$0xff] }
 0x118   : > { %2380 = vmatmul.bf16.gmra.mxu1 %v5745_v41  ;;  %v2747_v63 = vpop.f32.mrf.mxu0  ;;  %3292 = vmatpush.bf16.msra.mxu0 %v4267_v34 }
 0x119   : > { %v2658_v49 = vpop.f32.mrf.mxu3 }
 0x11a   : > { %v2659_v53 = vadd.f32 %v2658_v49, %v2426_v43  ;;  %v1773_v43 = vrot.slane %v1771_v2, 1  ;;  %v930_v49 = vrot.slane %v6292_v60, 4  ;;  %v1153_v2 = vld [vmem:[#allocation2 + $0xa4] sm:$0x1] }
 0x11b   : > { %v2427_v4 = vpop.f32.mrf.mxu2  ;;  %2786 = vmatmul.bf16.gmra.mxu0 %v5669_v20 }
 0x11c   : > { %v2428_v56 = vadd.f32 %v2427_v4, %v2339_v48  ;;  %v5757_v51 = vadd.f32 %v2747_v63, %v2659_v53  ;;  %v1774_v15 = vor.u32 %v1773_v43, %v1769_v59  ;;  %v1778_v63 = vrot.slane %v1776_v19, 1  ;;  %v4219_v4 = vld [vmem:[%s6164_s3 + $0x90] sm:$0xff]  ;;  %v6293_v43 = vld [vmem:[#allocation16_spill] sm:$0xff] }
 0x11d   : > { %v2343_v42 = vpop.f32.mrf.mxu1  ;;  %v1154_v37 = vsel %vm4878_vm8, %v930_v49, %v1153_v2  ;;  %v4608_v19 = vor.u32 %v4607_v46, %v6293_v43  ;;  %2832 = vmatpush.bf16.msra.mxu1 %v4219_v4  ;;  %v1783_v4 = vshll.u32 %v5433_v24, 16 }
 0x11e   : > { %6291 = vst [vmem:[#allocation15_spill] sm:$0xff] %v5757_v51  ;;  %v1449_v60 = vld [vmem:[#allocation2 + $0x98] sm:$0x1] }
 0x11f   : > { %1155 = vst [vmem:[#allocation2 + $0xa4] sm:$0x1] %v1154_v37  ;;  %v1958_v49 = vrot.slane %v4608_v19, 1 }
 0x120   : > { %2469 = vmatmul.bf16.gmra.mxu2 %v5761_v23  ;;  %v2749_v53 = vpop.f32.mrf.mxu0 }
 0x121   : > { %v2660_v11 = vpop.f32.mrf.mxu3 }
 0x122   : > { %v2661_v48 = vadd.f32 %v2660_v11, %v2428_v56  ;;  %v5786_v56 = vsel %vm1635_vm9, %v1774_v15, %v1778_v63  ;;  %v1611_v11 = vunpack.c.l.b16 %v1449_v60  ;;  %v2344_v63 = vadd.f32 %v2343_v42, %v5641_v14  ;;  %v6298_v14 = vld [vmem:[#allocation10_spill] sm:$0xff] }
 0x123   : > { %v2430_v29 = vpop.f32.mrf.mxu2  ;;  %v947_v42 = vrot.slane %v6298_v14, 4 }
 0x124   : > { %v2431_v59 = vadd.f32 %v2430_v29, %v2342_v35  ;;  %v5783_v17 = vadd.f32 %v2749_v53, %v2661_v48  ;;  %v1959_v35 = vrot.slane %v5751_v39, 1  ;;  %v1629_v46 = vpack.c.b16 %v1611_v11, %v1611_v11  ;;  %v6294_v53 = vld [vmem:[#allocation5_spill] sm:$0xff] }
 0x125   : > { %v2346_v1 = vpop.f32.mrf.mxu1  ;;  %v6295_v48 = vshll.u32 %v6294_v53, 16  ;;  %v1781_v11 = vshrl.u32 %v5433_v24, 16 }
 0x126   : > { %2702 = vmatmul.bf16.gmra.mxu3 %v4971_v45  ;;  %v2347_v51 = vadd.f32 %v2346_v1, %v5662_v62  ;;  %v1386_v29 = vld [vmem:[#allocation2 + $0xa4] sm:$0x1]  ;;  %v5802_v39 = vsel %vm1924_vm10, %v1958_v49, %v1959_v35 }
 0x127   : > { %v3804_v34 = vrot.slane %v6295_v48, 11  ;;  %6297 = vst [vmem:[#allocation16_spill] sm:$0xff] %v5802_v39 }
 0x128   : > { %2385 = vmatmul.bf16.gmra.mxu1 %v5786_v56  ;;  %v2752_v37 = vpop.f32.mrf.mxu0 }
 0x129   : > { %v2663_v2 = vpop.f32.mrf.mxu3  ;;  %v1387_v62 = vsel %vm4734_vm2, %v3804_v34, %v1386_v29  ;;  %v4504_v29 = vld [vmem:[#allocation2 + $0x90] sm:$0xf0] }
 0x12a   : > { %v2664_v15 = vadd.f32 %v2663_v2, %v2431_v59  ;;  %1388 = vst [vmem:[#allocation2 + $0xa4] sm:$0x1] %v1387_v62  ;;  %v1785_v59 = vrot.slane %v1783_v4, 1  ;;  %v1788_v2 = vshll.u32 %v1629_v46, 16 }
 0x12b   : > { %v2432_v60 = vpop.f32.mrf.mxu2  ;;  %2791 = vmatmul.bf16.gmra.mxu0 %v5713_v28 }
 0x12c   : > { %v2433_v43 = vadd.f32 %v2432_v60, %v2344_v63  ;;  %v5798_v19 = vadd.f32 %v2752_v37, %v2664_v15  ;;  %v1786_v48 = vor.u32 %v1785_v59, %v1781_v11  ;;  %v1790_v34 = vrot.slane %v1788_v2, 1  ;;  %v1160_v63 = vld [vmem:[#allocation2 + $0xb0] sm:$0x1]  ;;  %v4505_v60 = vld [vmem:[#allocation2 + $0x90] sm:$0xe]  ;;  %v6299_v2 = vld [vmem:[#allocation9_spill] sm:$0xff] }
 0x12d   : > { %v2348_v1 = vpop.f32.mrf.mxu1  ;;  %v1161_v49 = vsel %vm4878_vm8, %v947_v42, %v1160_v63  ;;  %v4506_v11 = vor.u32 %v4505_v60, %v4504_v29 }
 0x12e   : > { %6296 = vst [vmem:[#allocation6_spill] sm:$0xff] %v5798_v19  ;;  %v2349_v29 = vadd.f32 %v2348_v1, %v5684_v54  ;;  %v4258_v1 = vld [vmem:[%s6164_s3 + $0x1c8] sm:$0xff] }
 0x12f   : > { %1162 = vst [vmem:[#allocation2 + $0xb0] sm:$0x1] %v1161_v49  ;;  %v1961_v63 = vrot.slane %v4506_v11, 1  ;;  %3204 = vmatpush.bf16.msra.mxu3 %v4258_v1 }
 0x130   : > { %2474 = vmatmul.bf16.gmra.mxu2 %v5802_v39  ;;  %v2754_v37 = vpop.f32.mrf.mxu0  ;;  %v5812_v39 = vsel %vm1635_vm9, %v1786_v48, %v1790_v34 }
 0x131   : > { %v2665_v53 = vpop.f32.mrf.mxu3  ;;  %v1450_v62 = vld [vmem:[#allocation2 + $0xa4] sm:$0x1] }
 0x132   : > { %v2666_v15 = vadd.f32 %v2665_v53, %v2433_v43  ;;  %v1612_v59 = vunpack.c.l.b16 %v1450_v62  ;;  %v6300_v53 = vshll.u32 %v6299_v2, 16 }
 0x133   : > { %v2435_v35 = vpop.f32.mrf.mxu2 }
 0x134   : > { %v2436_v24 = vadd.f32 %v2435_v35, %v2347_v51  ;;  %v5809_v4 = vadd.f32 %v2754_v37, %v2666_v15  ;;  %v3805_v19 = vrot.slane %v6300_v53, 11  ;;  %v1962_v51 = vrot.slane %v1629_v46, 1  ;;  %v6301_v15 = vld [vmem:[#allocation7_spill] sm:$0xff] }
 0x135   : > { %v2351_v14 = vpop.f32.mrf.mxu1  ;;  %v5819_v37 = vpack.c.b16 %v1612_v59, %v1612_v59  ;;  %v1795_v49 = vshll.u32 %v6301_v15, 16 }
 0x136   : > { %2707 = vmatmul.bf16.gmra.mxu3 %v5721_v13  ;;  %v2352_v43 = vadd.f32 %v2351_v14, %v5715_v38  ;;  %v1389_v60 = vld [vmem:[#allocation2 + $0xb0] sm:$0x1]  ;;  %v4610_v14 = vld [vmem:[#allocation2 + $0x9c] sm:$0xe]  ;;  %v5829_v46 = vsel %vm1924_vm10, %v1961_v63, %v1962_v51 }
 0x137   : > { %v1390_v38 = vsel %vm4734_vm2, %v3805_v19, %v1389_v60  ;;  %6303 = vst [vmem:[#allocation10_spill] sm:$0xff] %v5829_v46  ;;  %v1797_v59 = vrot.slane %v1795_v49, 1  ;;  %v1800_v54 = vshll.u32 %v5819_v37, 16  ;;  %v4250_v19 = vld [vmem:[%s6164_s3 + $0x188] sm:$0xff] }
 0x138   : > { %2390 = vmatmul.bf16.gmra.mxu1 %v5812_v39  ;;  %v2757_v48 = vpop.f32.mrf.mxu0  ;;  %1391 = vst [vmem:[#allocation2 + $0xb0] sm:$0x1] %v1390_v38  ;;  %3115 = vmatpush.bf16.msra.mxu2 %v4250_v19 }
 0x139   : > { %v2668_v42 = vpop.f32.mrf.mxu3 }
 0x13a   : > { %v2669_v34 = vadd.f32 %v2668_v42, %v2436_v24  ;;  %v1793_v24 = vshrl.u32 %v6301_v15, 16  ;;  %v6304_v42 = vld [vmem:[#allocation13_spill] sm:$0xff] }
 0x13b   : > { %v2437_v35 = vpop.f32.mrf.mxu2  ;;  %2796 = vmatmul.bf16.gmra.mxu0 %v5745_v41  ;;  %v964_v63 = vrot.slane %v6304_v42, 4 }
 0x13c   : > { %v2438_v62 = vadd.f32 %v2437_v35, %v2349_v29  ;;  %v5825_v2 = vadd.f32 %v2757_v48, %v2669_v34  ;;  %v1798_v49 = vor.u32 %v1797_v59, %v1793_v24  ;;  %v1802_v48 = vrot.slane %v1800_v54, 1  ;;  %v1167_v34 = vld [vmem:[#allocation2 + $0xbc] sm:$0x1]  ;;  %v4218_v35 = vld [vmem:[%s6164_s3 + $0x88] sm:$0xff]  ;;  %v6305_v24 = vld [vmem:[#allocation8_spill] sm:$0xff] }
 0x13d   : > { %v2353_v11 = vpop.f32.mrf.mxu1  ;;  %v1168_v38 = vsel %vm4878_vm8, %v964_v63, %v1167_v34  ;;  %v4611_v59 = vor.u32 %v4610_v14, %v6305_v24  ;;  %2833 = vmatpush.bf16.msra.mxu1 %v4218_v35 }
 0x13e   : > { %6302 = vst [vmem:[#allocation5_spill] sm:$0xff] %v5825_v2  ;;  %v2354_v53 = vadd.f32 %v2353_v11, %v5736_v21  ;;  %v4266_v21 = vld [vmem:[%s6164_s3 + $0x208] sm:$0xff]  ;;  %v5854_v42 = vsel %vm1635_vm9, %v1798_v49, %v1802_v48 }
 0x13f   : > { %v1451_v19 = vld [vmem:[#allocation2 + $0xb0] sm:$0x1]  ;;  %1169 = vst [vmem:[#allocation2 + $0xbc] sm:$0x1] %v1168_v38  ;;  %3293 = vmatpush.bf16.msra.mxu0 %v4266_v21  ;;  %v1964_v63 = vrot.slane %v4611_v59, 1  ;;  %v1965_v38 = vrot.slane %v5819_v37, 1 }
 0x140   : > { %2479 = vmatmul.bf16.gmra.mxu2 %v5829_v46  ;;  %v2759_v29 = vpop.f32.mrf.mxu0 }
 0x141   : > { %v2670_v51 = vpop.f32.mrf.mxu3  ;;  %v5870_v37 = vsel %vm1924_vm10, %v1964_v63, %v1965_v38  ;;  %v4508_v63 = vld [vmem:[#allocation2 + $0xa8] sm:$0xe] }
 0x142   : > { %v2671_v60 = vadd.f32 %v2670_v51, %v2438_v62  ;;  %v1613_v51 = vunpack.c.l.b16 %v1451_v19  ;;  %6310 = vst [vmem:[#allocation13_spill] sm:$0xff] %v5870_v37 }
 0x143   : > { %v2440_v11 = vpop.f32.mrf.mxu2 }
 0x144   : > { %v2441_v1 = vadd.f32 %v2440_v11, %v2352_v43  ;;  %v5851_v62 = vadd.f32 %v2759_v29, %v2671_v60  ;;  %v1631_v43 = vpack.c.b16 %v1613_v51, %v1613_v51  ;;  %v5859_v11 = vld [vmem:[#allocation2 + $0xa8] sm:$0xff]   ;;  %v6307_v29 = vld [vmem:[#allocation12_spill] sm:$0xff] }
 0x145   : > { %v2356_v54 = vpop.f32.mrf.mxu1  ;;  %v1807_v14 = vshll.u32 %v5859_v11, 16  ;;  %v6308_v60 = vshll.u32 %v6307_v29, 16  ;;  %v1805_v29 = vshrl.u32 %v5859_v11, 16 }
 0x146   : > { %6306 = vst [vmem:[#allocation9_spill] sm:$0xff] %v5851_v62  ;;  %2712 = vmatmul.bf16.gmra.mxu3 %v6290_v10  ;;  %v1392_v48 = vld [vmem:[#allocation2 + $0xbc] sm:$0x1]  ;;  %v1812_v46 = vshll.u32 %v1631_v43, 16 }
 0x147   : > { %v3806_v35 = vrot.slane %v6308_v60, 11  ;;  %v1809_v60 = vrot.slane %v1807_v14, 1 }
 0x148   : > { %2395 = vmatmul.bf16.gmra.mxu1 %v5854_v42  ;;  %v2762_v21 = vpop.f32.mrf.mxu0 }
 0x149   : > { %v2673_v34 = vpop.f32.mrf.mxu3  ;;  %v1393_v24 = vsel %vm4734_vm2, %v3806_v35, %v1392_v48  ;;  %v1810_v35 = vor.u32 %v1809_v60, %v1805_v29  ;;  %v1174_v48 = vld [vmem:[#allocation2 + $0xc8] sm:$0x1] }
 0x14a   : > { %v2674_v49 = vadd.f32 %v2673_v34, %v2441_v1  ;;  %1394 = vst [vmem:[#allocation2 + $0xbc] sm:$0x1] %v1393_v24  ;;  %v981_v1 = vrot.slane %v5378_v50, 4  ;;  %v4507_v24 = vld [vmem:[#allocation2 + $0xa8] sm:$0xf0] }
 0x14b   : > { %v2442_v19 = vpop.f32.mrf.mxu2  ;;  %2801 = vmatmul.bf16.gmra.mxu0 %v5786_v56 }
 0x14c   : > { %v2443_v62 = vadd.f32 %v2442_v19, %v2354_v53  ;;  %v5866_v59 = vadd.f32 %v2762_v21, %v2674_v49  ;;  %v1814_v53 = vrot.slane %v1812_v46, 1  ;;  %v2357_v19 = vadd.f32 %v2356_v54, %v5530_v8 }
 0x14d   : > { %v2358_v51 = vpop.f32.mrf.mxu1  ;;  %v1175_v38 = vsel %vm4878_vm8, %v981_v1, %v1174_v48  ;;  %v4509_v46 = vor.u32 %v4508_v63, %v4507_v24  ;;  %v6311_v8 = vshll.u32 %v5352_v5, 16 }
 0x14e   : > { %6309 = vst [vmem:[#allocation7_spill] sm:$0xff] %v5866_v59  ;;  %v5881_v29 = vsel %vm1635_vm9, %v1810_v35, %v1814_v53  ;;  %v2359_v53 = vadd.f32 %v2358_v51, %v5556_v7  ;;  %v4249_v7 = vld [vmem:[%s6164_s3 + $0x180] sm:$0xff] }
 0x14f   : > { %1176 = vst [vmem:[#allocation2 + $0xc8] sm:$0x1] %v1175_v38  ;;  %v3807_v54 = vrot.slane %v6311_v8, 11  ;;  %v4257_v51 = vld [vmem:[%s6164_s3 + $0x1c0] sm:$0xff]  ;;  %3116 = vmatpush.bf16.msra.mxu2 %v4249_v7 }
 0x150   : > { %2484 = vmatmul.bf16.gmra.mxu2 %v5870_v37  ;;  %v2764_v21 = vpop.f32.mrf.mxu0  ;;  %3205 = vmatpush.bf16.msra.mxu3 %v4257_v51 }
 0x151   : > { %v2675_v34 = vpop.f32.mrf.mxu3  ;;  %v1452_v14 = vld [vmem:[#allocation2 + $0xbc] sm:$0x1] }
 0x152   : > { %v2676_v49 = vadd.f32 %v2675_v34, %v2443_v62  ;;  %v1614_v60 = vunpack.c.l.b16 %v1452_v14  ;;  %v5883_v62 = vld [vmem:[#allocation2 + $0x90] sm:$0xff]   ;;  %v1967_v34 = vrot.slane %v4509_v46, 1 }
 0x153   : > { %v2445_v59 = vpop.f32.mrf.mxu2 }
 0x154   : > { %v2446_v2 = vadd.f32 %v2445_v59, %v2357_v19  ;;  %v5878_v50 = vadd.f32 %v2764_v21, %v2676_v49  ;;  %v1968_v59 = vrot.slane %v1631_v43, 1  ;;  %v1632_v48 = vpack.c.b16 %v1614_v60, %v1614_v60  ;;  %v6312_v21 = vld [vmem:[#allocation17_spill] sm:$0xff] }
 0x155   : > { %v2361_v37 = vpop.f32.mrf.mxu1  ;;  %v1819_v49 = vshll.u32 %v6312_v21, 16  ;;  %v1817_v60 = vshrl.u32 %v6312_v21, 16 }
 0x156   : > { %2717 = vmatmul.bf16.gmra.mxu3 %v5883_v62  ;;  %v1395_v24 = vld [vmem:[#allocation2 + $0xc8] sm:$0x1]  ;;  %v5897_v43 = vsel %vm1924_vm10, %v1967_v34, %v1968_v59  ;;  %v1824_v8 = vshll.u32 %v1632_v48, 16 }
 0x157   : > { %v1396_v38 = vsel %vm4734_vm2, %v3807_v54, %v1395_v24  ;;  %6314 = vst [vmem:[#allocation12_spill] sm:$0xff] %v5897_v43  ;;  %v4613_v54 = vld [vmem:[#allocation2 + $0xb4] sm:$0xe]  ;;  %v4265_v24 = vld [vmem:[%s6164_s3 + $0x200] sm:$0xff] }
 0x158   : > { %2400 = vmatmul.bf16.gmra.mxu1 %v5881_v29  ;;  %v2767_v19 = vpop.f32.mrf.mxu0  ;;  %1397 = vst [vmem:[#allocation2 + $0xc8] sm:$0x1] %v1396_v38  ;;  %v1826_v59 = vrot.slane %v1824_v8, 1  ;;  %3294 = vmatpush.bf16.msra.mxu0 %v4265_v24  ;;  %v5922_v8 = vld [vmem:[#allocation2 + $0xc0] sm:$0xff]   ;;  %v1971_v24 = vrot.slane %v1632_v48, 1 }
 0x159   : > { %v2678_v1 = vpop.f32.mrf.mxu3 }
 0x15a   : > { %v2679_v35 = vadd.f32 %v2678_v1, %v2446_v2  ;;  %v1821_v2 = vrot.slane %v1819_v49, 1  ;;  %v2362_v49 = vadd.f32 %v2361_v37, %v5582_v57  ;;  %v6316_v57 = vld [vmem:[#allocation18_spill] sm:$0xff] }
 0x15b   : > { %v2447_v63 = vpop.f32.mrf.mxu2  ;;  %2806 = vmatmul.bf16.gmra.mxu0 %v5812_v39  ;;  %v4614_v37 = vor.u32 %v4613_v54, %v6316_v57  ;;  %6317 = vst [vmem:[#allocation18_spill] sm:$0xff] %v5922_v8 }
 0x15c   : > { %v2448_v14 = vadd.f32 %v2447_v63, %v2359_v53  ;;  %v5893_v5 = vadd.f32 %v2767_v19, %v2679_v35  ;;  %v1822_v34 = vor.u32 %v1821_v2, %v1817_v60  ;;  %v4217_v53 = vld [vmem:[%s6164_s3 + $0x80] sm:$0xff] }
 0x15d   : > { %v2363_v46 = vpop.f32.mrf.mxu1  ;;  %2834 = vmatpush.bf16.msra.mxu1 %v4217_v53  ;;  %v1970_v53 = vrot.slane %v4614_v37, 1 }
 0x15e   : > { %6313 = vst [vmem:[#allocation8_spill] sm:$0xff] %v5893_v5 }
 0x15f   : > { %v1453_v38 = vld [vmem:[#allocation2 + $0xc8] sm:$0x1] }
 0x160   : > { %2489 = vmatmul.bf16.gmra.mxu2 %v5897_v43  ;;  %v2769_v19 = vpop.f32.mrf.mxu0  ;;  %v1615_v2 = vunpack.c.l.b16 %v1453_v38  ;;  %v1829_v38 = vshrl.u32 %v5922_v8, 16  ;;  %v5931_v43 = vsel %vm1924_vm10, %v1970_v53, %v1971_v24 }
 0x161   : > { %v2680_v1 = vpop.f32.mrf.mxu3 }
 0x162   : > { %v2681_v35 = vadd.f32 %v2680_v1, %v2448_v14  ;;  %v5917_v14 = vsel %vm1635_vm9, %v1822_v34, %v1826_v59  ;;  %v1831_v1 = vshll.u32 %v5922_v8, 16  ;;  %v2364_v34 = vadd.f32 %v2363_v46, %v5600_v52 }
 0x163   : > { %v2450_v63 = vpop.f32.mrf.mxu2 }
 0x164   : > { %v2451_v7 = vadd.f32 %v2450_v63, %v2362_v49  ;;  %v5914_v51 = vadd.f32 %v2769_v19, %v2681_v35  ;;  %v1633_v19 = vpack.c.b16 %v1615_v2, %v1615_v2  ;;  %v1833_v57 = vrot.slane %v1831_v1, 1 }
 0x165   : > { %v2366_v60 = vpop.f32.mrf.mxu1 }
 0x166   : > { %6315 = vst [vmem:[#allocation17_spill] sm:$0xff] %v5914_v51  ;;  %2722 = vmatmul.bf16.gmra.mxu3 %v6301_v15  ;;  %v1836_v37 = vshll.u32 %v1633_v19, 16 }
 0x168   : > { %2405 = vmatmul.bf16.gmra.mxu1 %v5917_v14  ;;  %v2772_v35 = vpop.f32.mrf.mxu0  ;;  %v1838_v2 = vrot.slane %v1836_v37, 1 }
 0x169   : > { %v2683_v49 = vpop.f32.mrf.mxu3 }
 0x16a   : > { %v2684_v63 = vadd.f32 %v2683_v49, %v2451_v7  ;;  %v1834_v7 = vor.u32 %v1833_v57, %v1829_v38  ;;  %v2367_v49 = vadd.f32 %v2366_v60, %v5630_v47 }
 0x16b   : > { %v2452_v59 = vpop.f32.mrf.mxu2  ;;  %2811 = vmatmul.bf16.gmra.mxu0 %v5854_v42 }
 0x16c   : > { %v2453_v51 = vadd.f32 %v2452_v59, %v2364_v34  ;;  %v5926_v54 = vadd.f32 %v2772_v35, %v2684_v63  ;;  %v4510_v35 = vld [vmem:[#allocation2 + $0xc0] sm:$0xf0]  ;;  %v4511_v63 = vld [vmem:[#allocation2 + $0xc0] sm:$0xe]  ;;  %v5938_v53 = vsel %vm1635_vm9, %v1834_v7, %v1838_v2 }
 0x16d   : > { %v2368_v5 = vpop.f32.mrf.mxu1  ;;  %v4512_v24 = vor.u32 %v4511_v63, %v4510_v35 }
 0x16e   : > { %v2369_v60 = vadd.f32 %v2368_v5, %v5647_v58 }
 0x16f   : > { %v1973_v57 = vrot.slane %v4512_v24, 1 }
 0x170   : > { %2494 = vmatmul.bf16.gmra.mxu2 %v5931_v43  ;;  %v2774_v52 = vpop.f32.mrf.mxu0 }
 0x171   : > { %v2685_v48 = vpop.f32.mrf.mxu3 }
 0x172   : > { %v2686_v46 = vadd.f32 %v2685_v48, %v2453_v51  ;;  %v1974_v51 = vrot.slane %v1633_v19, 1  ;;  %v4486_v48 = vld [vmem:[#allocation2] sm:$0xf0] }
 0x173   : > { %v2455_v34 = vpop.f32.mrf.mxu2 }
 0x174   : > { %v2456_v1 = vadd.f32 %v2455_v34, %v2367_v49  ;;  %v5935_v59 = vadd.f32 %v2774_v52, %v2686_v46  ;;  %v4487_v49 = vld [vmem:[#allocation2] sm:$0xe]  ;;  %v5947_v7 = vsel %vm1924_vm10, %v1973_v57, %v1974_v51 }
 0x175   : > { %v2371_v8 = vpop.f32.mrf.mxu1  ;;  %v4488_v35 = vor.u32 %v4487_v49, %v4486_v48 }
 0x176   : > { %2727 = vmatmul.bf16.gmra.mxu3 %v5859_v11  ;;  %v2372_v24 = vadd.f32 %v2371_v8, %v5666_v36  ;;  %v4585_v8 = vld [vmem:[#allocation2 + $0x18] sm:$0xff]  }
 0x177   : > { %v1925_v63 = vrot.slane %v4488_v35, 1 }
 0x178   : > { %2410 = vmatmul.bf16.gmra.mxu1 %v5938_v53  ;;  %v2777_v37 = vpop.f32.mrf.mxu0 }
 0x179   : > { %v2688_v38 = vpop.f32.mrf.mxu3 }
 0x17a   : > { %v2689_v47 = vadd.f32 %v2688_v38, %v2456_v1  ;;  %v1926_v1 = vrot.slane %v5472_v61, 1 }
 0x17b   : > { %v2457_v52 = vpop.f32.mrf.mxu2  ;;  %2816 = vmatmul.bf16.gmra.mxu0 %v5881_v29 }
 0x17c   : > { %v2458_v46 = vadd.f32 %v2457_v52, %v2369_v60  ;;  %v5943_v34 = vadd.f32 %v2777_v37, %v2689_v47  ;;  %v1927_v57 = vsel %vm1924_vm10, %v1925_v63, %v1926_v1 }
 0x17d   : > { %v2373_v2 = vpop.f32.mrf.mxu1 }
 0x17e   : > { %v2374_v52 = vadd.f32 %v2373_v2, %v5680_v3 }
 0x180   : > { %2499 = vmatmul.bf16.gmra.mxu2 %v5947_v7  ;;  %v2779_v58 = vpop.f32.mrf.mxu0 }
 0x181   : > { %v2690_v19 = vpop.f32.mrf.mxu3 }
 0x182   : > { %v2691_v5 = vadd.f32 %v2690_v19, %v2458_v46 }
 0x183   : > { %v2460_v38 = vpop.f32.mrf.mxu2 }
 0x184   : > { %v2461_v37 = vadd.f32 %v2460_v38, %v2372_v24  ;;  %v5952_v47 = vadd.f32 %v2779_v58, %v2691_v5 }
 0x185   : > { %v2376_v60 = vpop.f32.mrf.mxu1 }
 0x186   : > { %2732 = vmatmul.bf16.gmra.mxu3 %v6312_v21  ;;  %v2377_v1 = vadd.f32 %v2376_v60, %v5562_v18 }
 0x188   : > { %2835 = vmatmul.bf16.vlgmr.msra.gmra.mxu1 %v1927_v57  ;;  %v2782_v48 = vpop.f32.mrf.mxu0 }
 0x189   : > { %v2693_v51 = vpop.f32.mrf.mxu3 }
 0x18a   : > { %v2694_v49 = vadd.f32 %v2693_v51, %v2461_v37 }
 0x18b   : > { %v2462_v61 = vpop.f32.mrf.mxu2  ;;  %2821 = vmatmul.bf16.gmra.mxu0 %v5917_v14 }
 0x18c   : > { %v2463_v35 = vadd.f32 %v2462_v61, %v2374_v52  ;;  %v5957_v46 = vadd.f32 %v2782_v48, %v2694_v49 }
 0x18d   : > { %v2378_v36 = vpop.f32.mrf.mxu1 }
 0x18e   : > { %v2379_v51 = vadd.f32 %v2378_v36, %v5585_v32 }
 0x190   : > { %3117 = vmatmul.bf16.vlgmr.msra.gmra.mxu2 %v4585_v8  ;;  %v2784_v58 = vpop.f32.mrf.mxu0 }
 0x191   : > { %v2695_v19 = vpop.f32.mrf.mxu3 }
 0x192   : > { %v2696_v63 = vadd.f32 %v2695_v19, %v2463_v35 }
 0x193   : > { %v2465_v5 = vpop.f32.mrf.mxu2 }
 0x194   : > { %v2466_v24 = vadd.f32 %v2465_v5, %v2377_v1  ;;  %v5961_v38 = vadd.f32 %v2784_v58, %v2696_v63 }
 0x195   : > { %v2381_v37 = vpop.f32.mrf.mxu1 }
 0x196   : > { %3206 = vmatmul.bf16.vlgmr.msra.gmra.mxu3 %v5470_v0  ;;  %v2382_v0 = vadd.f32 %v2381_v37, %v5603_v27  ;;  %v4586_v37 = vld [vmem:[#allocation2 + $0x30] sm:$0xff]  }
 0x198   : > { %2840 = vmatmul.bf16.gmra.mxu1 %v5460_v30  ;;  %v2787_v2 = vpop.f32.mrf.mxu0 }
 0x199   : > { %v2698_v3 = vpop.f32.mrf.mxu3 }
 0x19a   : > { %v2699_v57 = vadd.f32 %v2698_v3, %v2466_v24 }
 0x19b   : > { %v2467_v48 = vpop.f32.mrf.mxu2  ;;  %3295 = vmatmul.bf16.vlgmr.msra.gmra.mxu0 %v5483_v55 }
 0x19c   : > { %v2468_v49 = vadd.f32 %v2467_v48, %v2379_v51  ;;  %v5966_v52 = vadd.f32 %v2787_v2, %v2699_v57 }
 0x19d   : > { %v2383_v18 = vpop.f32.mrf.mxu1 }
 0x19e   : > { %v2384_v1 = vadd.f32 %v2383_v18, %v5635_v22 }
 0x1a0   : > { %3122 = vmatmul.bf16.gmra.mxu2 %v5242_v31  ;;  %v2789_v61 = vpop.f32.mrf.mxu0 }
 0x1a1   : > { %v2700_v60 = vpop.f32.mrf.mxu3 }
 0x1a2   : > { %v2701_v35 = vadd.f32 %v2700_v60, %v2468_v49 }
 0x1a3   : > { %v2470_v30 = vpop.f32.mrf.mxu2 }
 0x1a4   : > { %v2471_v8 = vadd.f32 %v2470_v30, %v2382_v0  ;;  %v5971_v19 = vadd.f32 %v2789_v61, %v2701_v35 }
 0x1a5   : > { %v2386_v58 = vpop.f32.mrf.mxu1 }
 0x1a6   : > { %3211 = vmatmul.bf16.gmra.mxu3 %v5504_v33  ;;  %v2387_v33 = vadd.f32 %v2386_v58, %v5659_v25 }
 0x1a8   : > { %2845 = vmatmul.bf16.gmra.mxu1 %v5483_v55  ;;  %v2792_v36 = vpop.f32.mrf.mxu0 }
 0x1a9   : > { %v2703_v32 = vpop.f32.mrf.mxu3 }
 0x1aa   : > { %v2704_v63 = vadd.f32 %v2703_v32, %v2471_v8 }
 0x1ab   : > { %v2472_v31 = vpop.f32.mrf.mxu2  ;;  %3300 = vmatmul.bf16.gmra.mxu0 %v5515_v16 }
 0x1ac   : > { %v2473_v5 = vadd.f32 %v2472_v31, %v2384_v1  ;;  %v5976_v24 = vadd.f32 %v2792_v36, %v2704_v63 }
 0x1ad   : > { %v2388_v27 = vpop.f32.mrf.mxu1 }
 0x1ae   : > { %v2389_v61 = vadd.f32 %v2388_v27, %v5677_v40  ;;  %v6319_v40 = vld [vmem:[#allocation19_spill] sm:$0xff] }
 0x1b0   : > { %3127 = vmatmul.bf16.gmra.mxu2 %v4586_v37  ;;  %v2794_v2 = vpop.f32.mrf.mxu0 }
 0x1b1   : > { %v2705_v3 = vpop.f32.mrf.mxu3 }
 0x1b2   : > { %v2706_v57 = vadd.f32 %v2705_v3, %v2473_v5  ;;  %v6320_v3 = vld [vmem:[#allocation11_spill] sm:$0xff] }
 0x1b3   : > { %v2475_v55 = vpop.f32.mrf.mxu2 }
 0x1b4   : > { %v2476_v51 = vadd.f32 %v2475_v55, %v2387_v33  ;;  %v5980_v48 = vadd.f32 %v2794_v2, %v2706_v57  ;;  %v6321_v55 = vld [vmem:[#allocation20_spill] sm:$0xff] }
 0x1b5   : > { %v2391_v49 = vpop.f32.mrf.mxu1 }
 0x1b6   : > { %3216 = vmatmul.bf16.gmra.mxu3 %v5523_v12  ;;  %v6318_v12 = vld [vmem:[#allocation32_spill] sm:$0xff] }
 0x1b7   : > { %v2392_v36 = vadd.f32 %v2391_v49, %v6318_v12  ;;  %v4587_v49 = vld [vmem:[#allocation2 + $0x48] sm:$0xff]  }
 0x1b8   : > { %2850 = vmatmul.bf16.gmra.mxu1 %v5515_v16  ;;  %v2797_v18 = vpop.f32.mrf.mxu0 }
 0x1b9   : > { %v2708_v22 = vpop.f32.mrf.mxu3 }
 0x1ba   : > { %v2709_v60 = vadd.f32 %v2708_v22, %v2476_v51 }
 0x1bb   : > { %v2477_v35 = vpop.f32.mrf.mxu2  ;;  %3305 = vmatmul.bf16.gmra.mxu0 %v5536_v44 }
 0x1bc   : > { %v2478_v0 = vadd.f32 %v2477_v35, %v2389_v61  ;;  %v5985_v30 = vadd.f32 %v2797_v18, %v2709_v60  ;;  %v6322_v61 = vld [vmem:[#allocation21_spill] sm:$0xff] }
 0x1bd   : > { %v2393_v25 = vpop.f32.mrf.mxu1 }
 0x1be   : > { %v2394_v2 = vadd.f32 %v2393_v25, %v6320_v3  ;;  %v6323_v25 = vld [vmem:[#allocation22_spill] sm:$0xff] }
 0x1bf   : > { %v6326_v3 = vld [vmem:[#allocation14_spill] sm:$0xff] }
 0x1c0   : > { %3132 = vmatmul.bf16.gmra.mxu2 %v4960_v26  ;;  %v2799_v58 = vpop.f32.mrf.mxu0 }
 0x1c1   : > { %v2710_v8 = vpop.f32.mrf.mxu3 }
 0x1c2   : > { %v2711_v32 = vadd.f32 %v2710_v8, %v2478_v0 }
 0x1c3   : > { %v2480_v16 = vpop.f32.mrf.mxu2 }
 0x1c4   : > { %v2481_v63 = vadd.f32 %v2480_v16, %v2392_v36  ;;  %v5990_v1 = vadd.f32 %v2799_v58, %v2711_v32  ;;  %v6324_v16 = vld [vmem:[#allocation23_spill] sm:$0xff] }
 0x1c5   : > { %v2396_v31 = vpop.f32.mrf.mxu1 }
 0x1c6   : > { %3221 = vmatmul.bf16.gmra.mxu3 %v6319_v40  ;;  %v2397_v35 = vadd.f32 %v2396_v31, %v6322_v61 }
 0x1c8   : > { %2855 = vmatmul.bf16.gmra.mxu1 %v5536_v44  ;;  %v2802_v27 = vpop.f32.mrf.mxu0 }
 0x1c9   : > { %v2713_v5 = vpop.f32.mrf.mxu3 }
 0x1ca   : > { %v2714_v37 = vadd.f32 %v2713_v5, %v2481_v63 }
 0x1cb   : > { %v2482_v26 = vpop.f32.mrf.mxu2  ;;  %3310 = vmatmul.bf16.gmra.mxu0 %v6321_v55 }
 0x1cc   : > { %v2483_v57 = vadd.f32 %v2482_v26, %v2394_v2  ;;  %v5995_v33 = vadd.f32 %v2802_v27, %v2714_v37  ;;  %v6325_v37 = vld [vmem:[#allocation24_spill] sm:$0xff] }
 0x1cd   : > { %v2398_v51 = vpop.f32.mrf.mxu1 }
 0x1ce   : > { %v2399_v63 = vadd.f32 %v2398_v51, %v6324_v16  ;;  %v6328_v51 = vld [vmem:[#allocation26_spill] sm:$0xff] }
 0x1d0   : > { %3137 = vmatmul.bf16.gmra.mxu2 %v4587_v49  ;;  %v2804_v18 = vpop.f32.mrf.mxu0  ;;  %v6327_v49 = vld [vmem:[#allocation25_spill] sm:$0xff] }
 0x1d1   : > { %v2715_v22 = vpop.f32.mrf.mxu3 }
 0x1d2   : > { %v2716_v60 = vadd.f32 %v2715_v22, %v2483_v57 }
 0x1d3   : > { %v2485_v44 = vpop.f32.mrf.mxu2 }
 0x1d4   : > { %v2486_v0 = vadd.f32 %v2485_v44, %v2397_v35  ;;  %v5999_v8 = vadd.f32 %v2804_v18, %v2716_v60 }
 0x1d5   : > { %v2401_v58 = vpop.f32.mrf.mxu1 }
 0x1d6   : > { %3226 = vmatmul.bf16.gmra.mxu3 %v6323_v25  ;;  %v2402_v22 = vadd.f32 %v2401_v58, %v6327_v49  ;;  %v6329_v25 = vld [vmem:[#allocation27_spill] sm:$0xff] }
 0x1d8   : > { %2860 = vmatmul.bf16.gmra.mxu1 %v6321_v55  ;;  %v2807_v12 = vpop.f32.mrf.mxu0 }
 0x1d9   : > { %v2718_v32 = vpop.f32.mrf.mxu3 }
 0x1da   : > { %v2719_v36 = vadd.f32 %v2718_v32, %v2486_v0 }
 0x1db   : > { %v2487_v40 = vpop.f32.mrf.mxu2  ;;  %3315 = vmatmul.bf16.gmra.mxu0 %v6325_v37 }
 0x1dc   : > { %v2488_v5 = vadd.f32 %v2487_v40, %v2399_v63  ;;  %v6004_v27 = vadd.f32 %v2807_v12, %v2719_v36  ;;  %v6330_v63 = vld [vmem:[#allocation28_spill] sm:$0xff] }
 0x1dd   : > { %v2403_v31 = vpop.f32.mrf.mxu1  ;;  %v4588_v40 = vld [vmem:[#allocation2 + $0x60] sm:$0xff]  }
 0x1de   : > { %v2404_v32 = vadd.f32 %v2403_v31, %v6329_v25 }
 0x1e0   : > { %3142 = vmatmul.bf16.gmra.mxu2 %v6326_v3  ;;  %v2809_v26 = vpop.f32.mrf.mxu0 }
 0x1e1   : > { %v2720_v2 = vpop.f32.mrf.mxu3 }
 0x1e2   : > { %v2721_v57 = vadd.f32 %v2720_v2, %v2488_v5 }
 0x1e3   : > { %v2490_v55 = vpop.f32.mrf.mxu2 }
 0x1e4   : > { %v2491_v18 = vadd.f32 %v2490_v55, %v2402_v22  ;;  %v6009_v60 = vadd.f32 %v2809_v26, %v2721_v57  ;;  %v6331_v26 = vld [vmem:[#allocation29_spill] sm:$0xff] }
 0x1e5   : > { %v2406_v61 = vpop.f32.mrf.mxu1 }
 0x1e6   : > { %3231 = vmatmul.bf16.gmra.mxu3 %v6328_v51  ;;  %v2407_v57 = vadd.f32 %v2406_v61, %v6331_v26 }
 0x1e8   : > { %2865 = vmatmul.bf16.gmra.mxu1 %v6325_v37  ;;  %v2812_v44 = vpop.f32.mrf.mxu0 }
 0x1e9   : > { %v2723_v35 = vpop.f32.mrf.mxu3 }
 0x1ea   : > { %v2724_v0 = vadd.f32 %v2723_v35, %v2491_v18  ;;  %v6332_v35 = vld [vmem:[#allocation31_spill] sm:$0xff] }
 0x1eb   : > { %v2492_v12 = vpop.f32.mrf.mxu2  ;;  %3320 = vmatmul.bf16.gmra.mxu0 %v6330_v63 }
 0x1ec   : > { %v2493_v36 = vadd.f32 %v2492_v12, %v2404_v32  ;;  %v6014_v16 = vadd.f32 %v2812_v44, %v2724_v0  ;;  %v6333_v12 = vld [vmem:[#allocation30_spill] sm:$0xff] }
 0x1ed   : > { %v2408_v58 = vpop.f32.mrf.mxu1 }
 0x1ee   : > { %v2409_v44 = vadd.f32 %v2408_v58, %v6332_v35 }
 0x1f0   : > { %3147 = vmatmul.bf16.gmra.mxu2 %v4588_v40  ;;  %v2814_v3 = vpop.f32.mrf.mxu0 }
 0x1f1   : > { %v2725_v5 = vpop.f32.mrf.mxu3 }
 0x1f2   : > { %v2726_v2 = vadd.f32 %v2725_v5, %v2493_v36 }
 0x1f3   : > { %v2495_v37 = vpop.f32.mrf.mxu2 }
 0x1f4   : > { %v2496_v49 = vadd.f32 %v2495_v37, %v2407_v57  ;;  %v6018_v22 = vadd.f32 %v2814_v3, %v2726_v2 }
 0x1f5   : > { %v2411_v55 = vpop.f32.mrf.mxu1 }
 0x1f6   : > { %3236 = vmatmul.bf16.gmra.mxu3 %v5669_v20  ;;  %v6334_v20 = vld [vmem:[#allocation33_spill] sm:$0xff] }
 0x1f7   : > { %v2412_v3 = vadd.f32 %v2411_v55, %v6334_v20 }
 0x1f8   : > { %2870 = vmatmul.bf16.gmra.mxu1 %v6330_v63  ;;  %v2817_v18 = vpop.f32.mrf.mxu0 }
 0x1f9   : > { %v2728_v31 = vpop.f32.mrf.mxu3 }
 0x1fa   : > { %v2729_v51 = vadd.f32 %v2728_v31, %v2496_v49  ;;  %v6335_v31 = vld [vmem:[#allocation35_spill] sm:$0xff] }
 0x1fb   : > { %v2497_v0 = vpop.f32.mrf.mxu2  ;;  %3325 = vmatmul.bf16.gmra.mxu0 %v6333_v12 }
 0x1fc   : > { %v2498_v25 = vadd.f32 %v2497_v0, %v2409_v44  ;;  %v6023_v32 = vadd.f32 %v2817_v18, %v2729_v51  ;;  %v6336_v44 = vld [vmem:[#allocation34_spill] sm:$0xff] }
 0x1fd   : > { %v2413_v61 = vpop.f32.mrf.mxu1 }
 0x1fe   : > { %v2414_v18 = vadd.f32 %v2413_v61, %v6335_v31 }
 0x200   : > { %3152 = vmatmul.bf16.gmra.mxu2 %v4971_v45  ;;  %v2819_v40 = vpop.f32.mrf.mxu0 }
 0x201   : > { %v2730_v36 = vpop.f32.mrf.mxu3 }
 0x202   : > { %v2731_v5 = vadd.f32 %v2730_v36, %v2498_v25 }
 0x203   : > { %v2500_v63 = vpop.f32.mrf.mxu2 }
 0x204   : > { %v2501_v2 = vadd.f32 %v2500_v63, %v2412_v3  ;;  %v6028_v26 = vadd.f32 %v2819_v40, %v2731_v5 }
 0x205   : > { %v2836_v57 = vpop.f32.mrf.mxu1 }
 0x206   : > { %3241 = vmatmul.bf16.gmra.mxu3 %v5713_v28 }
 0x208   : > { %2875 = vmatmul.bf16.gmra.mxu1 %v6333_v12  ;;  %v2822_v37 = vpop.f32.mrf.mxu0 }
 0x209   : > { %v2733_v58 = vpop.f32.mrf.mxu3 }
 0x20a   : > { %v2734_v49 = vadd.f32 %v2733_v58, %v2501_v2  ;;  %v6337_v58 = vld [vmem:[#allocation15_spill] sm:$0xff] }
 0x20b   : > { %v2502_v45 = vpop.f32.mrf.mxu2  ;;  %3330 = vmatmul.bf16.gmra.mxu0 %v6336_v44 }
 0x20c   : > { %v2503_v51 = vadd.f32 %v2502_v45, %v2414_v18  ;;  %v6033_v35 = vadd.f32 %v2822_v37, %v2734_v49  ;;  %v2837_v37 = vadd.f32 %v2836_v57, %v6337_v58 }
 0x20d   : > { %v2838_v55 = vpop.f32.mrf.mxu1 }
 0x20e   : > { %v2839_v45 = vadd.f32 %v2838_v55, %v5783_v17 }
 0x210   : > { %3157 = vmatmul.bf16.gmra.mxu2 %v5721_v13  ;;  %v2824_v25 = vpop.f32.mrf.mxu0 }
 0x211   : > { %v2735_v0 = vpop.f32.mrf.mxu3 }
 0x212   : > { %v2736_v36 = vadd.f32 %v2735_v0, %v2503_v51 }
 0x213   : > { %v3118_v28 = vpop.f32.mrf.mxu2 }
 0x214   : > { %v6037_v40 = vadd.f32 %v2824_v25, %v2736_v36 }
 0x215   : > { %v2841_v12 = vpop.f32.mrf.mxu1 }
 0x216   : > { %3246 = vmatmul.bf16.gmra.mxu3 %v5745_v41 }
 0x218   : > { %2880 = vmatmul.bf16.gmra.mxu1 %v6336_v44  ;;  %v3296_v5 = vpop.f32.mrf.mxu0 }
 0x219   : > { %v3207_v61 = vpop.f32.mrf.mxu3 }
 0x21a   : > { %v3208_v3 = vadd.f32 %v3207_v61, %v3118_v28 }
 0x21b   : > { %v3120_v20 = vpop.f32.mrf.mxu2  ;;  %3335 = vmatmul.bf16.gmra.mxu0 %v5761_v23 }
 0x21c   : > { %v3297_v13 = vadd.f32 %v3296_v5, %v3208_v3 }
 0x21d   : > { %v2843_v63 = vpop.f32.mrf.mxu1 }
 0x21e   : > { %v3376_v41 = vadd.f32 %v3297_v13, %v2837_v37  ;;  %v6339_v13 = vld [vmem:[#allocation16_spill] sm:$0xff] }
 0x220   : > { %3162 = vmatmul.bf16.gmra.mxu2 %v6290_v10  ;;  %v3298_v49 = vpop.f32.mrf.mxu0  ;;  %v3509_v10 = vmul.f32 %v3376_v41, %v3376_v41 }
 0x221   : > { %v3209_v2 = vpop.f32.mrf.mxu3 }
 0x222   : > { %v3210_v31 = vadd.f32 %v3209_v2, %v3120_v20  ;;  %v6338_v20 = vld [vmem:[#allocation6_spill] sm:$0xff] }
 0x223   : > { %v3123_v18 = vpop.f32.mrf.mxu2 }
 0x224   : > { %v3299_v51 = vadd.f32 %v3298_v49, %v3210_v31 }
 0x225   : > { %v2846_v44 = vpop.f32.mrf.mxu1 }
 0x226   : > { %v3377_v0 = vadd.f32 %v3299_v51, %v2839_v45  ;;  %3251 = vmatmul.bf16.gmra.mxu3 %v5786_v56  ;;  %v2842_v56 = vadd.f32 %v2841_v12, %v6338_v20 }
 0x228   : > { %v4384_v25 = vpack.c.bf16 %v3377_v0, %v3376_v41  ;;  %v3472_v57 = vadd.f32 %v3377_v0, %v3376_v41  ;;  %v3510_v36 = vmul.f32 %v3377_v0, %v3377_v0  ;;  %2885 = vmatmul.bf16.gmra.mxu1 %v5761_v23  ;;  %v3301_v55 = vpop.f32.mrf.mxu0 }
 0x229   : > { %v3212_v28 = vpop.f32.mrf.mxu3 }
 0x22a   : > { %4385 = vst [vmem:[%s6050_s29] sm:$0xff] %v4384_v25   ;;  %v3541_v17 = vadd.f32 %v3510_v36, %v3509_v10  ;;  %v3213_v61 = vadd.f32 %v3212_v28, %v3123_v18  ;;  %v2844_v18 = vadd.f32 %v2843_v63, %v5809_v4 }
 0x22b   : > { %v3125_v5 = vpop.f32.mrf.mxu2  ;;  %3340 = vmatmul.bf16.gmra.mxu0 %v6339_v13 }
 0x22c   : > { %v3302_v3 = vadd.f32 %v3301_v55, %v3213_v61 }
 0x22d   : > { %v2848_v2 = vpop.f32.mrf.mxu1 }
 0x22e   : > { %v3378_v58 = vadd.f32 %v3302_v3, %v2842_v56  ;;  %v4342_v3 = vld [vmem:[%s443_s11] sm:$0xff]  }
 0x230   : > { %v3473_v37 = vadd.f32 %v3472_v57, %v3378_v58  ;;  %v3511_v49 = vmul.f32 %v3378_v58, %v3378_v58  ;;  %3167 = vmatmul.bf16.gmra.mxu2 %v5883_v62  ;;  %v3303_v41 = vpop.f32.mrf.mxu0 }
 0x231   : > { %v3214_v31 = vpop.f32.mrf.mxu3 }
 0x232   : > { %v3542_v23 = vadd.f32 %v3541_v17, %v3511_v49  ;;  %v3215_v45 = vadd.f32 %v3214_v31, %v3125_v5  ;;  %v6340_v5 = vld [vmem:[#allocation5_spill] sm:$0xff] }
 0x233   : > { %v3128_v51 = vpop.f32.mrf.mxu2  ;;  %v2847_v20 = vadd.f32 %v2846_v44, %v6340_v5 }
 0x234   : > { %v3304_v0 = vadd.f32 %v3303_v41, %v3215_v45  ;;  %v4344_v41 = vunpack.c.h.bf16 %v4342_v3  ;;  %v4589_v45 = vld [vmem:[%s6165_s4] ss:$0 sm:$0xff] }
 0x235   : > { %v2851_v12 = vpop.f32.mrf.mxu1 }
 0x236   : > { %v3379_v10 = vadd.f32 %v3304_v0, %v2844_v18  ;;  %3256 = vmatmul.bf16.gmra.mxu3 %v5812_v39  ;;  %v6341_v39 = vld [vmem:[#allocation10_spill] sm:$0xff]  ;;  %v6342_v0 = vld [vmem:[#allocation9_spill] sm:$0xff] }
 0x238   : > { %v4389_v25 = vpack.c.bf16 %v3379_v10, %v3378_v58  ;;  %v3474_v36 = vadd.f32 %v3473_v37, %v3379_v10  ;;  %v3512_v57 = vmul.f32 %v3379_v10, %v3379_v10  ;;  %2890 = vmatmul.bf16.gmra.mxu1 %v6339_v13  ;;  %v3306_v17 = vpop.f32.mrf.mxu0  ;;  %v4343_v37 = vunpack.c.l.bf16 %v4342_v3 }
 0x239   : > { %v3217_v62 = vpop.f32.mrf.mxu3  ;;  %v2849_v10 = vadd.f32 %v2848_v2, %v6342_v0 }
 0x23a   : > { %4513 = vst [vmem:[%s6050_s29 + $0x8] sm:$0xff] %v4389_v25   ;;  %v3543_v28 = vadd.f32 %v3542_v23, %v3512_v57  ;;  %v3218_v55 = vadd.f32 %v3217_v62, %v3128_v51  ;;  %v576_v51 = vmul.f32 %v4589_v45, %v4343_v37 }
 0x23b   : > { %v3130_v61 = vpop.f32.mrf.mxu2  ;;  %3345 = vmatmul.bf16.gmra.mxu0 %v6341_v39 }
 0x23c   : > { %v3307_v4 = vadd.f32 %v3306_v17, %v3218_v55 }
 0x23d   : > { %v6067_v63 = vpop.f32.mrf.mxu1 }
 0x23e   : > { %v3380_v56 = vadd.f32 %v3307_v4, %v2847_v20 }
 0x240   : > { %v3475_v13 = vadd.f32 %v3474_v36, %v3380_v56  ;;  %v3513_v58 = vmul.f32 %v3380_v56, %v3380_v56  ;;  %3172 = vmatmul.bf16.gmra.mxu2 %v6301_v15  ;;  %v3308_v23 = vpop.f32.mrf.mxu0  ;;  %v577_v36 = vmul.f32 %v4589_v45, %v4344_v41  ;;  %v4590_v15 = vld [vmem:[%s6166_s5] ss:$0 sm:$0xff]  ;;  %v6343_v45 = vld [vmem:[#allocation7_spill] sm:$0xff] }
 0x241   : > { %v3219_v49 = vpop.f32.mrf.mxu3  ;;  %v616_v57 = vadd.f32 %v4590_v15, %v576_v51  ;;  %v2852_v51 = vadd.f32 %v2851_v12, %v6343_v45 }
 0x242   : > { %v3544_v31 = vadd.f32 %v3543_v28, %v3513_v58  ;;  %v3220_v44 = vadd.f32 %v3219_v49, %v3130_v61  ;;  %v617_v17 = vadd.f32 %v4590_v15, %v577_v36 }
 0x243   : > { %v3133_v18 = vpop.f32.mrf.mxu2  ;;  %v652_v55 = vmax.f32 %v616_v57, 0.0  ;;  %v1177_v57 = vld [vmem:[#allocation2 + $0xcc] sm:$0xf] }
 0x244   : > { %v3309_v25 = vadd.f32 %v3308_v23, %v3220_v44  ;;  %v653_v2 = vmax.f32 %v617_v17, 0.0 }
 0x245   : > { %v6077_v62 = vpop.f32.mrf.mxu1  ;;  %v688_v3 = vpack.c.bf16 %v652_v55, %v652_v55 }
 0x246   : > { %v3381_v28 = vadd.f32 %v3309_v25, %v2849_v10  ;;  %3261 = vmatmul.bf16.gmra.mxu3 %v5854_v42  ;;  %v689_v23 = vpack.c.bf16 %v653_v2, %v653_v2 }
 0x247   : > { %v983_v41 = vshrl.u32 %v688_v3, 16  ;;  %v986_v0 = vshll.u32 %v688_v3, 16 }
 0x248   : > { %v4394_v61 = vpack.c.bf16 %v3381_v28, %v3380_v56  ;;  %v3476_v5 = vadd.f32 %v3475_v13, %v3381_v28  ;;  %v3514_v20 = vmul.f32 %v3381_v28, %v3381_v28  ;;  %2895 = vmatmul.bf16.gmra.mxu1 %v6341_v39  ;;  %v3311_v37 = vpop.f32.mrf.mxu0  ;;  %v991_v10 = vshrl.u32 %v689_v23, 16  ;;  %v6344_v56 = vld [vmem:[#allocation13_spill] sm:$0xff] }
 0x249   : > { %v3222_v4 = vpop.f32.mrf.mxu3  ;;  %v985_v25 = vrot.slane %v983_v41, 7  ;;  %v994_v45 = vshll.u32 %v689_v23, 16 }
 0x24a   : > { %4514 = vst [vmem:[%s6050_s29 + $0x10] sm:$0xff] %v4394_v61   ;;  %v3545_v58 = vadd.f32 %v3544_v31, %v3514_v20  ;;  %v3223_v49 = vadd.f32 %v3222_v4, %v3133_v18  ;;  %v993_v36 = vrot.slane %v991_v10, 7  ;;  %v1181_v61 = vld [vmem:[#allocation2 + $0xd4] sm:$0x1] }
 0x24b   : > { %v3135_v44 = vpop.f32.mrf.mxu2  ;;  %3350 = vmatmul.bf16.gmra.mxu0 %v6344_v56  ;;  %v988_v15 = vor.u32 %v986_v0, %v985_v25 }
 0x24c   : > { %v3312_v42 = vadd.f32 %v3311_v37, %v3223_v49  ;;  %v998_v18 = vrot.slane %v993_v36, 4 }
 0x24d   : > { %v2858_v13 = vpop.f32.mrf.mxu1  ;;  %v1178_v12 = vsel %vm4806_vm7, %v988_v15, %v1177_v57 }
 0x24e   : > { %v3382_v39 = vadd.f32 %v3312_v42, %v2852_v51  ;;  %1179 = vst [vmem:[#allocation2 + $0xcc] sm:$0xf] %v1178_v12  ;;  %v1182_v3 = vsel %vm4878_vm8, %v998_v18, %v1181_v61  ;;  %v989_v42 = vrot.slane %v985_v25, 4  ;;  %v6348_v12 = vld [vmem:[#allocation12_spill] sm:$0xff] }
 0x24f   : > { %1183 = vst [vmem:[#allocation2 + $0xd4] sm:$0x1] %v1182_v3 }
 0x250   : > { %v3477_v28 = vadd.f32 %v3476_v5, %v3382_v39  ;;  %v3515_v31 = vmul.f32 %v3382_v39, %v3382_v39  ;;  %3177 = vmatmul.bf16.gmra.mxu2 %v5859_v11  ;;  %v3313_v2 = vpop.f32.mrf.mxu0  ;;  %v2854_v5 = vadd.f32 %v6067_v63, %v5878_v50  ;;  %v3808_v50 = vrot.slane %v994_v45, 11 }
 0x251   : > { %v3224_v17 = vpop.f32.mrf.mxu3 }
 0x252   : > { %v3546_v20 = vadd.f32 %v3545_v58, %v3515_v31  ;;  %v3225_v4 = vadd.f32 %v3224_v17, %v3135_v44  ;;  %v996_v58 = vor.u32 %v994_v45, %v993_v36 }
 0x253   : > { %v3138_v37 = vpop.f32.mrf.mxu2 }
 0x254   : > { %v3314_v11 = vadd.f32 %v3313_v2, %v3225_v4  ;;  %v997_v31 = vsel %vm4795_vm6, %v989_v42, %v996_v58 }
 0x255   : > { %v2861_v49 = vpop.f32.mrf.mxu1  ;;  %v1289_v18 = vld [vmem:[#allocation2 + $0xcc] sm:$0x1]  ;;  %1180 = vst [vmem:[#allocation2 + $0xd0] sm:$0xf] %v997_v31 }
 0x256   : > { %v3383_v51 = vadd.f32 %v3314_v11, %v2854_v5  ;;  %3266 = vmatmul.bf16.gmra.mxu3 %v5881_v29  ;;  %v1290_v29 = vsel %vm4878_vm8, %v983_v41, %v1289_v18  ;;  %v1398_v25 = vld [vmem:[#allocation2 + $0xd4] sm:$0x1]  ;;  %v6349_v5 = vld [vmem:[#allocation17_spill] sm:$0xff]  ;;  %v2862_v31 = vadd.f32 %v2861_v49, %v5926_v54 }
 0x257   : > { %1291 = vst [vmem:[#allocation2 + $0xcc] sm:$0x1] %v1290_v29  ;;  %v2859_v11 = vadd.f32 %v2858_v13, %v6349_v5  ;;  %v6350_v29 = vld [vmem:[#allocation18_spill] sm:$0xff] }
 0x258   : > { %v4399_v0 = vpack.c.bf16 %v3383_v51, %v3382_v39  ;;  %v3478_v44 = vadd.f32 %v3477_v28, %v3383_v51  ;;  %v3516_v10 = vmul.f32 %v3383_v51, %v3383_v51  ;;  %2900 = vmatmul.bf16.gmra.mxu1 %v6344_v56  ;;  %v3316_v17 = vpop.f32.mrf.mxu0  ;;  %v1399_v39 = vsel %vm4734_vm2, %v3808_v50, %v1398_v25  ;;  %v6347_v56 = vld [vmem:[#allocation8_spill] sm:$0xff] }
 0x259   : > { %v3227_v15 = vpop.f32.mrf.mxu3  ;;  %v2857_v28 = vadd.f32 %v6077_v62, %v6347_v56  ;;  %1400 = vst [vmem:[#allocation2 + $0xd4] sm:$0x1] %v1399_v39 }
 0x25a   : > { %4515 = vst [vmem:[%s6050_s29 + $0x18] sm:$0xff] %v4399_v0   ;;  %v3547_v63 = vadd.f32 %v3546_v20, %v3516_v10  ;;  %v3228_v23 = vadd.f32 %v3227_v15, %v3138_v37 }
 0x25b   : > { %v3140_v36 = vpop.f32.mrf.mxu2  ;;  %3355 = vmatmul.bf16.gmra.mxu0 %v6348_v12 }
 0x25c   : > { %v3317_v55 = vadd.f32 %v3316_v17, %v3228_v23  ;;  %v4615_v50 = vld [vmem:[#allocation2 + $0xcc] sm:$0xf0] }
 0x25d   : > { %v2863_v61 = vpop.f32.mrf.mxu1 }
 0x25e   : > { %v3384_v20 = vadd.f32 %v3317_v55, %v2857_v28  ;;  %v1435_v13 = vld [vmem:[#allocation2 + $0xcc] sm:$0xff]   ;;  %v2864_v54 = vadd.f32 %v2863_v61, %v5935_v59 }
 0x260   : > { %v3479_v2 = vadd.f32 %v3478_v44, %v3384_v20  ;;  %v3517_v4 = vmul.f32 %v3384_v20, %v3384_v20  ;;  %3182 = vmatmul.bf16.gmra.mxu2 %v6312_v21  ;;  %v3318_v3 = vpop.f32.mrf.mxu0  ;;  %v1454_v25 = vld [vmem:[#allocation2 + $0xd4] sm:$0x1] }
 0x261   : > { %v3229_v6 = vpop.f32.mrf.mxu3 }
 0x262   : > { %v3548_v41 = vadd.f32 %v3547_v63, %v3517_v4  ;;  %v3230_v9 = vadd.f32 %v3229_v6, %v3140_v36  ;;  %v1843_v4 = vshll.u32 %v1435_v13, 16 }
 0x263   : > { %v3143_v37 = vpop.f32.mrf.mxu2 }
 0x264   : > { %v3319_v62 = vadd.f32 %v3318_v3, %v3230_v9  ;;  %v1845_v59 = vrot.slane %v1843_v4, 1 }
 0x265   : > { %v2866_v45 = vpop.f32.mrf.mxu1 }
 0x266   : > { %v3385_v51 = vadd.f32 %v3319_v62, %v2859_v11  ;;  %3271 = vmatmul.bf16.gmra.mxu3 %v5917_v14 }
 0x268   : > { %v4404_v42 = vpack.c.bf16 %v3385_v51, %v3384_v20  ;;  %v3480_v58 = vadd.f32 %v3479_v2, %v3385_v51  ;;  %v3518_v0 = vmul.f32 %v3385_v51, %v3385_v51  ;;  %2905 = vmatmul.bf16.gmra.mxu1 %v6348_v12  ;;  %v3321_v10 = vpop.f32.mrf.mxu0  ;;  %v1616_v12 = vunpack.c.l.b16 %v1454_v25 }
 0x269   : > { %v3232_v44 = vpop.f32.mrf.mxu3 }
 0x26a   : > { %4516 = vst [vmem:[%s6050_s29 + $0x20] sm:$0xff] %v4404_v42   ;;  %v3549_v21 = vadd.f32 %v3548_v41, %v3518_v0  ;;  %v3233_v15 = vadd.f32 %v3232_v44, %v3143_v37  ;;  %v1634_v6 = vpack.c.b16 %v1616_v12, %v1616_v12  ;;  %v1841_v42 = vshrl.u32 %v1435_v13, 16 }
 0x26b   : > { %v3145_v57 = vpop.f32.mrf.mxu2  ;;  %3360 = vmatmul.bf16.gmra.mxu0 %v5931_v43  ;;  %v2867_v0 = vadd.f32 %v2866_v45, %v5943_v34 }
 0x26c   : > { %v3322_v18 = vadd.f32 %v3321_v10, %v3233_v15  ;;  %v1848_v61 = vshll.u32 %v1634_v6, 16  ;;  %v1846_v10 = vor.u32 %v1845_v59, %v1841_v42 }
 0x26d   : > { %v2868_v63 = vpop.f32.mrf.mxu1 }
 0x26e   : > { %v3386_v14 = vadd.f32 %v3322_v18, %v2862_v31  ;;  %v1850_v15 = vrot.slane %v1848_v61, 1  ;;  %v2869_v34 = vadd.f32 %v2868_v63, %v5952_v47 }
 0x270   : > { %v3481_v17 = vadd.f32 %v3480_v58, %v3386_v14  ;;  %v3519_v23 = vmul.f32 %v3386_v14, %v3386_v14  ;;  %3187 = vmatmul.bf16.gmra.mxu2 %v6350_v29  ;;  %v3323_v56 = vpop.f32.mrf.mxu0  ;;  %v4616_v58 = vld [vmem:[#allocation2 + $0xcc] sm:$0xe]  ;;  %v1851_v29 = vsel %vm1635_vm9, %v1846_v10, %v1850_v15 }
 0x271   : > { %v3234_v36 = vpop.f32.mrf.mxu3 }
 0x272   : > { %v3550_v39 = vadd.f32 %v3549_v21, %v3519_v23  ;;  %v3235_v28 = vadd.f32 %v3234_v36, %v3145_v57  ;;  %v4617_v23 = vor.u32 %v4616_v58, %v4615_v50 }
 0x273   : > { %v3148_v55 = vpop.f32.mrf.mxu2 }
 0x274   : > { %v3324_v49 = vadd.f32 %v3323_v56, %v3235_v28  ;;  %v1977_v56 = vrot.slane %v1634_v6, 1 }
 0x275   : > { %v2871_v20 = vpop.f32.mrf.mxu1 }
 0x276   : > { %v3387_v2 = vadd.f32 %v3324_v49, %v2864_v54  ;;  %3276 = vmatmul.bf16.gmra.mxu3 %v5938_v53 }
 0x278   : > { %v4409_v41 = vpack.c.bf16 %v3387_v2, %v3386_v14  ;;  %v3482_v3 = vadd.f32 %v3481_v17, %v3387_v2  ;;  %v3520_v9 = vmul.f32 %v3387_v2, %v3387_v2  ;;  %2910 = vmatmul.bf16.gmra.mxu1 %v5931_v43  ;;  %v3326_v11 = vpop.f32.mrf.mxu0 }
 0x279   : > { %v3237_v37 = vpop.f32.mrf.mxu3 }
 0x27a   : > { %4517 = vst [vmem:[%s6050_s29 + $0x28] sm:$0xff] %v4409_v41   ;;  %v3551_v5 = vadd.f32 %v3550_v39, %v3520_v9  ;;  %v3238_v62 = vadd.f32 %v3237_v37, %v3148_v55  ;;  %v1976_v39 = vrot.slane %v4617_v23, 1  ;;  %v2872_v41 = vadd.f32 %v2871_v20, %v5957_v46 }
 0x27b   : > { %v3150_v51 = vpop.f32.mrf.mxu2  ;;  %3365 = vmatmul.bf16.gmra.mxu0 %v5947_v7 }
 0x27c   : > { %v3327_v53 = vadd.f32 %v3326_v11, %v3238_v62  ;;  %v1978_v50 = vsel %vm1924_vm10, %v1976_v39, %v1977_v56 }
 0x27d   : > { %v2873_v44 = vpop.f32.mrf.mxu1 }
 0x27e   : > { %v3388_v21 = vadd.f32 %v3327_v53, %v2867_v0  ;;  %v2874_v42 = vadd.f32 %v2873_v44, %v5961_v38 }
 0x280   : > { %v3483_v43 = vadd.f32 %v3482_v3, %v3388_v21  ;;  %v3521_v57 = vmul.f32 %v3388_v21, %v3388_v21  ;;  %3192 = vmatmul.bf16.gmra.mxu2 %v1435_v13  ;;  %v3328_v14 = vpop.f32.mrf.mxu0 }
 0x281   : > { %v3239_v31 = vpop.f32.mrf.mxu3 }
 0x282   : > { %v3552_v18 = vadd.f32 %v3551_v5, %v3521_v57  ;;  %v3240_v17 = vadd.f32 %v3239_v31, %v3150_v51 }
 0x283   : > { %v3153_v25 = vpop.f32.mrf.mxu2 }
 0x284   : > { %v3329_v45 = vadd.f32 %v3328_v14, %v3240_v17 }
 0x285   : > { %v2876_v7 = vpop.f32.mrf.mxu1 }
 0x286   : > { %v3389_v36 = vadd.f32 %v3329_v45, %v2869_v34  ;;  %3281 = vmatmul.bf16.gmra.mxu3 %v1851_v29  ;;  %v2877_v57 = vadd.f32 %v2876_v7, %v5966_v52 }
 0x288   : > { %v4414_v28 = vpack.c.bf16 %v3389_v36, %v3388_v21  ;;  %v3484_v55 = vadd.f32 %v3483_v43, %v3389_v36  ;;  %v3522_v13 = vmul.f32 %v3389_v36, %v3389_v36  ;;  %v3331_v49 = vpop.f32.mrf.mxu0 }
 0x289   : > { %v3242_v12 = vpop.f32.mrf.mxu3 }
 0x28a   : > { %4518 = vst [vmem:[%s6050_s29 + $0x30] sm:$0xff] %v4414_v28   ;;  %v3553_v54 = vadd.f32 %v3552_v18, %v3522_v13  ;;  %v3243_v2 = vadd.f32 %v3242_v12, %v3153_v25 }
 0x28b   : > { %v3155_v4 = vpop.f32.mrf.mxu2  ;;  %3370 = vmatmul.bf16.gmra.mxu0 %v1978_v50 }
 0x28c   : > { %v3332_v47 = vadd.f32 %v3331_v49, %v3243_v2 }
 0x28d   : > { %v2878_v63 = vpop.f32.mrf.mxu1 }
 0x28e   : > { %v3390_v3 = vadd.f32 %v3332_v47, %v2872_v41  ;;  %v2879_v45 = vadd.f32 %v2878_v63, %v5971_v19 }
 0x290   : > { %v3485_v9 = vadd.f32 %v3484_v55, %v3390_v3  ;;  %v3523_v6 = vmul.f32 %v3390_v3, %v3390_v3  ;;  %v3333_v11 = vpop.f32.mrf.mxu0 }
 0x291   : > { %v3244_v37 = vpop.f32.mrf.mxu3 }
 0x292   : > { %v3554_v5 = vadd.f32 %v3553_v54, %v3523_v6  ;;  %v3245_v62 = vadd.f32 %v3244_v37, %v3155_v4 }
 0x293   : > { %v3158_v51 = vpop.f32.mrf.mxu2 }
 0x294   : > { %v3334_v59 = vadd.f32 %v3333_v11, %v3245_v62 }
 0x295   : > { %v2881_v61 = vpop.f32.mrf.mxu1 }
 0x296   : > { %v3391_v58 = vadd.f32 %v3334_v59, %v2874_v42  ;;  %v2882_v50 = vadd.f32 %v2881_v61, %v5976_v24 }
 0x298   : > { %v4419_v0 = vpack.c.bf16 %v3391_v58, %v3390_v3  ;;  %v3486_v53 = vadd.f32 %v3485_v9, %v3391_v58  ;;  %v3524_v46 = vmul.f32 %v3391_v58, %v3391_v58  ;;  %v3336_v10 = vpop.f32.mrf.mxu0 }
 0x299   : > { %v3247_v20 = vpop.f32.mrf.mxu3 }
 0x29a   : > { %4519 = vst [vmem:[%s6050_s29 + $0x38] sm:$0xff] %v4419_v0   ;;  %v3555_v21 = vadd.f32 %v3554_v5, %v3524_v46  ;;  %v3248_v15 = vadd.f32 %v3247_v20, %v3158_v51 }
 0x29b   : > { %v3160_v43 = vpop.f32.mrf.mxu2 }
 0x29c   : > { %v3337_v31 = vadd.f32 %v3336_v10, %v3248_v15 }
 0x29d   : > { %v2883_v18 = vpop.f32.mrf.mxu1 }
 0x29e   : > { %v3392_v14 = vadd.f32 %v3337_v31, %v2877_v57  ;;  %v2884_v5 = vadd.f32 %v2883_v18, %v5980_v48 }
 0x2a0   : > { %v3487_v17 = vadd.f32 %v3486_v53, %v3392_v14  ;;  %v3525_v38 = vmul.f32 %v3392_v14, %v3392_v14  ;;  %v3338_v29 = vpop.f32.mrf.mxu0 }
 0x2a1   : > { %v3249_v44 = vpop.f32.mrf.mxu3 }
 0x2a2   : > { %v3556_v23 = vadd.f32 %v3555_v21, %v3525_v38  ;;  %v3250_v25 = vadd.f32 %v3249_v44, %v3160_v43 }
 0x2a3   : > { %v3163_v34 = vpop.f32.mrf.mxu2 }
 0x2a4   : > { %v3339_v36 = vadd.f32 %v3338_v29, %v3250_v25 }
 0x2a5   : > { %v2886_v39 = vpop.f32.mrf.mxu1 }
 0x2a6   : > { %v3393_v56 = vadd.f32 %v3339_v36, %v2879_v45  ;;  %v2887_v20 = vadd.f32 %v2886_v39, %v5985_v30 }
 0x2a8   : > { %v4424_v28 = vpack.c.bf16 %v3393_v56, %v3392_v14  ;;  %v3488_v55 = vadd.f32 %v3487_v17, %v3393_v56  ;;  %v3526_v13 = vmul.f32 %v3393_v56, %v3393_v56  ;;  %v3341_v12 = vpop.f32.mrf.mxu0 }
 0x2a9   : > { %v3252_v52 = vpop.f32.mrf.mxu3 }
 0x2aa   : > { %4520 = vst [vmem:[%s6050_s29 + $0x40] sm:$0xff] %v4424_v28   ;;  %v3557_v7 = vadd.f32 %v3556_v23, %v3526_v13  ;;  %v3253_v54 = vadd.f32 %v3252_v52, %v3163_v34 }
 0x2ab   : > { %v3165_v49 = vpop.f32.mrf.mxu2 }
 0x2ac   : > { %v3342_v2 = vadd.f32 %v3341_v12, %v3253_v54 }
 0x2ad   : > { %v2888_v4 = vpop.f32.mrf.mxu1 }
 0x2ae   : > { %v3394_v41 = vadd.f32 %v3342_v2, %v2882_v50  ;;  %v2889_v38 = vadd.f32 %v2888_v4, %v5990_v1 }
 0x2b0   : > { %v3489_v47 = vadd.f32 %v3488_v55, %v3394_v41  ;;  %v3527_v19 = vmul.f32 %v3394_v41, %v3394_v41  ;;  %v3343_v9 = vpop.f32.mrf.mxu0 }
 0x2b1   : > { %v3254_v63 = vpop.f32.mrf.mxu3 }
 0x2b2   : > { %v3558_v3 = vadd.f32 %v3557_v7, %v3527_v19  ;;  %v3255_v6 = vadd.f32 %v3254_v63, %v3165_v49 }
 0x2b3   : > { %v3168_v37 = vpop.f32.mrf.mxu2 }
 0x2b4   : > { %v3344_v11 = vadd.f32 %v3343_v9, %v3255_v6 }
 0x2b5   : > { %v2891_v51 = vpop.f32.mrf.mxu1 }
 0x2b6   : > { %v3395_v62 = vadd.f32 %v3344_v11, %v2884_v5  ;;  %v2892_v55 = vadd.f32 %v2891_v51, %v5995_v33 }
 0x2b8   : > { %v4429_v42 = vpack.c.bf16 %v3395_v62, %v3394_v41  ;;  %v3490_v59 = vadd.f32 %v3489_v47, %v3395_v62  ;;  %v3528_v58 = vmul.f32 %v3395_v62, %v3395_v62  ;;  %v3346_v0 = vpop.f32.mrf.mxu0 }
 0x2b9   : > { %v3257_v24 = vpop.f32.mrf.mxu3 }
 0x2ba   : > { %4521 = vst [vmem:[%s6050_s29 + $0x48] sm:$0xff] %v4429_v42   ;;  %v3559_v61 = vadd.f32 %v3558_v3, %v3528_v58  ;;  %v3258_v53 = vadd.f32 %v3257_v24, %v3168_v37 }
 0x2bb   : > { %v3170_v46 = vpop.f32.mrf.mxu2 }
 0x2bc   : > { %v3347_v21 = vadd.f32 %v3346_v0, %v3258_v53 }
 0x2bd   : > { %v2893_v57 = vpop.f32.mrf.mxu1 }
 0x2be   : > { %v3396_v10 = vadd.f32 %v3347_v21, %v2887_v20  ;;  %v2894_v4 = vadd.f32 %v2893_v57, %v5999_v8 }
 0x2c0   : > { %v3491_v15 = vadd.f32 %v3490_v59, %v3396_v10  ;;  %v3529_v43 = vmul.f32 %v3396_v10, %v3396_v10  ;;  %v3348_v18 = vpop.f32.mrf.mxu0 }
 0x2c1   : > { %v3259_v48 = vpop.f32.mrf.mxu3 }
 0x2c2   : > { %v3560_v31 = vadd.f32 %v3559_v61, %v3529_v43  ;;  %v3260_v14 = vadd.f32 %v3259_v48, %v3170_v46 }
 0x2c3   : > { %v3173_v17 = vpop.f32.mrf.mxu2 }
 0x2c4   : > { %v3349_v44 = vadd.f32 %v3348_v18, %v3260_v14 }
 0x2c5   : > { %v2896_v28 = vpop.f32.mrf.mxu1 }
 0x2c6   : > { %v3397_v23 = vadd.f32 %v3349_v44, %v2889_v38  ;;  %v2897_v62 = vadd.f32 %v2896_v28, %v6004_v27 }
 0x2c8   : > { %v4434_v29 = vpack.c.bf16 %v3397_v23, %v3396_v10  ;;  %v3492_v25 = vadd.f32 %v3491_v15, %v3397_v23  ;;  %v3530_v34 = vmul.f32 %v3397_v23, %v3397_v23  ;;  %v3351_v36 = vpop.f32.mrf.mxu0 }
 0x2c9   : > { %v3262_v45 = vpop.f32.mrf.mxu3 }
 0x2ca   : > { %4522 = vst [vmem:[%s6050_s29 + $0x50] sm:$0xff] %v4434_v29   ;;  %v3561_v30 = vadd.f32 %v3560_v31, %v3530_v34  ;;  %v3263_v39 = vadd.f32 %v3262_v45, %v3173_v17 }
 0x2cb   : > { %v3175_v56 = vpop.f32.mrf.mxu2 }
 0x2cc   : > { %v3352_v13 = vadd.f32 %v3351_v36, %v3263_v39 }
 0x2cd   : > { %v2898_v47 = vpop.f32.mrf.mxu1 }
 0x2ce   : > { %v3398_v52 = vadd.f32 %v3352_v13, %v2892_v55  ;;  %v2899_v20 = vadd.f32 %v2898_v47, %v6009_v60 }
 0x2d0   : > { %v3493_v7 = vadd.f32 %v3492_v25, %v3398_v52  ;;  %v3531_v12 = vmul.f32 %v3398_v52, %v3398_v52  ;;  %v3353_v49 = vpop.f32.mrf.mxu0 }
 0x2d1   : > { %v3264_v1 = vpop.f32.mrf.mxu3 }
 0x2d2   : > { %v3562_v54 = vadd.f32 %v3561_v30, %v3531_v12  ;;  %v3265_v50 = vadd.f32 %v3264_v1, %v3175_v56 }
 0x2d3   : > { %v3178_v2 = vpop.f32.mrf.mxu2 }
 0x2d4   : > { %v3354_v41 = vadd.f32 %v3353_v49, %v3265_v50 }
 0x2d5   : > { %v2901_v59 = vpop.f32.mrf.mxu1 }
 0x2d6   : > { %v3399_v19 = vadd.f32 %v3354_v41, %v2894_v4  ;;  %v2902_v38 = vadd.f32 %v2901_v59, %v6014_v16 }
 0x2d8   : > { %v4439_v63 = vpack.c.bf16 %v3399_v19, %v3398_v52  ;;  %v3494_v3 = vadd.f32 %v3493_v7, %v3399_v19  ;;  %v3532_v9 = vmul.f32 %v3399_v19, %v3399_v19  ;;  %v3356_v37 = vpop.f32.mrf.mxu0 }
 0x2d9   : > { %v3267_v6 = vpop.f32.mrf.mxu3 }
 0x2da   : > { %4523 = vst [vmem:[%s6050_s29 + $0x58] sm:$0xff] %v4439_v63   ;;  %v3563_v33 = vadd.f32 %v3562_v54, %v3532_v9  ;;  %v3268_v5 = vadd.f32 %v3267_v6, %v3178_v2 }
 0x2db   : > { %v3180_v11 = vpop.f32.mrf.mxu2 }
 0x2dc   : > { %v3357_v51 = vadd.f32 %v3356_v37, %v3268_v5 }
 0x2dd   : > { %v2903_v27 = vpop.f32.mrf.mxu1 }
 0x2de   : > { %v3400_v42 = vadd.f32 %v3357_v51, %v2897_v62  ;;  %v2904_v56 = vadd.f32 %v2903_v27, %v6018_v22 }
 0x2e0   : > { %v3495_v58 = vadd.f32 %v3494_v3, %v3400_v42  ;;  %v3533_v8 = vmul.f32 %v3400_v42, %v3400_v42  ;;  %v3358_v0 = vpop.f32.mrf.mxu0 }
 0x2e1   : > { %v3269_v24 = vpop.f32.mrf.mxu3 }
 0x2e2   : > { %v3564_v61 = vadd.f32 %v3563_v33, %v3533_v8  ;;  %v3270_v53 = vadd.f32 %v3269_v24, %v3180_v11 }
 0x2e3   : > { %v3183_v46 = vpop.f32.mrf.mxu2 }
 0x2e4   : > { %v3359_v21 = vadd.f32 %v3358_v0, %v3270_v53 }
 0x2e5   : > { %v2906_v36 = vpop.f32.mrf.mxu1 }
 0x2e6   : > { %v3401_v10 = vadd.f32 %v3359_v21, %v2899_v20  ;;  %v2907_v50 = vadd.f32 %v2906_v36, %v6023_v32 }
 0x2e8   : > { %v4444_v15 = vpack.c.bf16 %v3401_v10, %v3400_v42  ;;  %v3496_v43 = vadd.f32 %v3495_v58, %v3401_v10  ;;  %v3534_v48 = vmul.f32 %v3401_v10, %v3401_v10  ;;  %v3361_v18 = vpop.f32.mrf.mxu0 }
 0x2e9   : > { %v3272_v57 = vpop.f32.mrf.mxu3 }
 0x2ea   : > { %4524 = vst [vmem:[%s6050_s29 + $0x60] sm:$0xff] %v4444_v15   ;;  %v3565_v31 = vadd.f32 %v3564_v61, %v3534_v48  ;;  %v3273_v14 = vadd.f32 %v3272_v57, %v3183_v46 }
 0x2eb   : > { %v3185_v17 = vpop.f32.mrf.mxu2 }
 0x2ec   : > { %v3362_v44 = vadd.f32 %v3361_v18, %v3273_v14 }
 0x2ed   : > { %v2908_v4 = vpop.f32.mrf.mxu1 }
 0x2ee   : > { %v3402_v23 = vadd.f32 %v3362_v44, %v2902_v38  ;;  %v2909_v6 = vadd.f32 %v2908_v4, %v6028_v26 }
 0x2f0   : > { %v3497_v29 = vadd.f32 %v3496_v43, %v3402_v23  ;;  %v3535_v25 = vmul.f32 %v3402_v23, %v3402_v23  ;;  %v3363_v45 = vpop.f32.mrf.mxu0 }
 0x2f1   : > { %v3274_v60 = vpop.f32.mrf.mxu3 }
 0x2f2   : > { %v3566_v34 = vadd.f32 %v3565_v31, %v3535_v25  ;;  %v3275_v30 = vadd.f32 %v3274_v60, %v3185_v17 }
 0x2f3   : > { %v3188_v39 = vpop.f32.mrf.mxu2 }
 0x2f4   : > { %v3364_v28 = vadd.f32 %v3363_v45, %v3275_v30 }
 0x2f5   : > { %v2911_v11 = vpop.f32.mrf.mxu1 }
 0x2f6   : > { %v3403_v55 = vadd.f32 %v3364_v28, %v2904_v56  ;;  %v2912_v24 = vadd.f32 %v2911_v11, %v6033_v35 }
 0x2f8   : > { %v4449_v13 = vpack.c.bf16 %v3403_v55, %v3402_v23  ;;  %v3498_v52 = vadd.f32 %v3497_v29, %v3403_v55  ;;  %v3536_v7 = vmul.f32 %v3403_v55, %v3403_v55  ;;  %v3366_v1 = vpop.f32.mrf.mxu0 }
 0x2f9   : > { %v3277_v12 = vpop.f32.mrf.mxu3 }
 0x2fa   : > { %4525 = vst [vmem:[%s6050_s29 + $0x68] sm:$0xff] %v4449_v13   ;;  %v3567_v16 = vadd.f32 %v3566_v34, %v3536_v7  ;;  %v3278_v54 = vadd.f32 %v3277_v12, %v3188_v39 }
 0x2fb   : > { %v3190_v49 = vpop.f32.mrf.mxu2 }
 0x2fc   : > { %v3367_v2 = vadd.f32 %v3366_v1, %v3278_v54 }
 0x2fd   : > { %v2913_v20 = vpop.f32.mrf.mxu1 }
 0x2fe   : > { %v3404_v41 = vadd.f32 %v3367_v2, %v2907_v50  ;;  %v2914_v48 = vadd.f32 %v2913_v20, %v6037_v40 }
 0x300   : > { %v3499_v47 = vadd.f32 %v3498_v52, %v3404_v41  ;;  %v3537_v19 = vmul.f32 %v3404_v41, %v3404_v41  ;;  %v3368_v3 = vpop.f32.mrf.mxu0 }
 0x301   : > { %v3279_v22 = vpop.f32.mrf.mxu3 }
 0x302   : > { %v3568_v63 = vadd.f32 %v3567_v16, %v3537_v19  ;;  %v3280_v9 = vadd.f32 %v3279_v22, %v3190_v49 }
 0x303   : > { %v3193_v37 = vpop.f32.mrf.mxu2 }
 0x304   : > { %v3369_v33 = vadd.f32 %v3368_v3, %v3280_v9 }
 0x306   : > { %v3405_v5 = vadd.f32 %v3369_v33, %v2909_v6 }
 0x308   : > { %v4454_v62 = vpack.c.bf16 %v3405_v5, %v3404_v41  ;;  %v3500_v51 = vadd.f32 %v3499_v47, %v3405_v5  ;;  %v3538_v42 = vmul.f32 %v3405_v5, %v3405_v5  ;;  %v3371_v58 = vpop.f32.mrf.mxu0 }
 0x309   : > { %v3282_v32 = vpop.f32.mrf.mxu3 }
 0x30a   : > { %4526 = vst [vmem:[%s6050_s29 + $0x70] sm:$0xff] %v4454_v62   ;;  %v3569_v59 = vadd.f32 %v3568_v63, %v3538_v42  ;;  %v3283_v8 = vadd.f32 %v3282_v32, %v3193_v37 }
 0x30b   : > { %v3195_v53 = vpop.f32.mrf.mxu2 }
 0x30c   : > { %v3372_v61 = vadd.f32 %v3371_v58, %v3283_v8 }
 0x30e   : > { %v3406_v0 = vadd.f32 %v3372_v61, %v2912_v24 }
 0x310   : > { %v3501_v46 = vadd.f32 %v3500_v51, %v3406_v0  ;;  %v3539_v26 = vmul.f32 %v3406_v0, %v3406_v0  ;;  %v3373_v43 = vpop.f32.mrf.mxu0 }
 0x311   : > { %v3284_v21 = vpop.f32.mrf.mxu3 }
 0x312   : > { %v3570_v10 = vadd.f32 %v3569_v59, %v3539_v26  ;;  %v3285_v15 = vadd.f32 %v3284_v21, %v3195_v53 }
 0x314   : > { %v3374_v57 = vadd.f32 %v3373_v43, %v3285_v15 }
 0x316   : > { %v3407_v27 = vadd.f32 %v3374_v57, %v2914_v48 }
 0x318   : > { %v4459_v31 = vpack.c.bf16 %v3407_v27, %v3406_v0  ;;  %v3502_v18 = vadd.f32 %v3501_v46, %v3407_v27  ;;  %v3540_v14 = vmul.f32 %v3407_v27, %v3407_v27 }
 0x31a   : > { %4527 = vst [vmem:[%s6050_s29 + $0x78] sm:$0xff] %v4459_v31   ;;  %v3503_v35 = vrot.slane %v3502_v18, 4  ;;  %v3571_v17 = vadd.f32 %v3570_v10, %v3540_v14 }
 0x31c   : > { %v3504_v38 = vadd.f32 %v3503_v35, %v3502_v18  ;;  %v3572_v44 = vrot.slane %v3571_v17, 4 }
 0x31e   : > { %v3505_v23 = vrot.slane %v3504_v38, 2  ;;  %v3573_v29 = vadd.f32 %v3572_v44, %v3571_v17 }
 0x320   : > { %v3506_v25 = vadd.f32 %v3505_v23, %v3504_v38  ;;  %v3574_v60 = vrot.slane %v3573_v29, 2 }
 0x322   : > { %v3507_v34 = vrot.slane %v3506_v25, 1  ;;  %v3575_v45 = vadd.f32 %v3574_v60, %v3573_v29 }
 0x324   : > { %v3508_v40 = vadd.f32 %v3507_v34, %v3506_v25  ;;  %v3576_v30 = vrot.slane %v3575_v45, 1 }
 0x326   : > { %v3577_v36 = vadd.f32 %v3576_v30, %v3575_v45  ;;  %3578 = vst [vmem:[%s465_s19] sm:$0x1] %v3508_v40 }
 0x328   : > { %3579 = vst [vmem:[%s465_s19 + $0x1] sm:$0x1] %v3577_v36 }
 0x329 PF: > { %s18_s26 = sadd.s32 1, %s4640_s26   ;;  %s6351_s24 = smov %s4636_s25 }
 0x32a   : > { %p15_p5 = scmp.ge.s32.totalorder %s18_s26, 4   ;;  %s6352_s25 = smov %s6354_s27 }
 0x32c   :  { %17 = sbr.rel (!%p15_p5) target bundleno = 2 (0x2), region = 94 }

</bundles_post_ra>
